<compile_context>
chip_gen: v5e
topology: v5e:2x2
jax: 0.10.0
libtpu: 0.0.40
codegen_flags: <defaults>
</compile_context>

<pallas_src>
import functools
import math

import jax
import jax.numpy as jnp
from jax.experimental import pallas as pl
from jax.experimental.pallas import tpu as pltpu


def _round_up(a: int, b: int) -> int:
    return ((a + b - 1) // b) * b


def _tpu_hints():
    """Return (vmem_capacity_bytes, is_v5) with conservative fallbacks."""
    vmem = 64 * 1024 * 1024  # conservative: v7x per-TC VMEM
    try:
        info = pltpu.get_tpu_info()
        cap = int(getattr(info, "vmem_capacity_bytes", 0) or 0)
        if cap > 0:
            vmem = cap
    except Exception:
        pass
    kind = ""
    try:
        kind = jax.devices()[0].device_kind.lower()
    except Exception:
        pass
    return vmem, ("v5" in kind)


def _pick_tn(inner: int, target: int, align: int, tn_min: int) -> int:
    """Largest lane-aligned divisor of `inner` <= target (search up if needed)."""
    target = max(min(int(target), inner), 1)
    if inner % 128 != 0:
        # Lane dim can't be legally tiled below full width.
        return inner
    align = max(int(align), 128)
    lo = max(align, min(int(tn_min), inner))
    # Downward: largest aligned divisor in [lo, target].
    t = (target // align) * align
    while t >= lo:
        if inner % t == 0:
            return t
        t -= align
    # Upward: smallest aligned divisor >= target.
    t = max(((target + align - 1) // align) * align, align)
    while t < inner:
        if inner % t == 0:
            return t
        t += align
    return inner


def _ffn_geglu_kernel(x_ref, w1v_ref, w1g_ref, b1v_ref, b1g_ref, w2_ref, b2_ref,
                      o_ref, *scratch, use_acc: bool):
    # Grid: (token tiles i, inner-dim reduction tiles k) — k innermost.
    # x_ref  : (tm, dim)        token tile (block index constant over k)
    # w1v_ref: (dim, tn)        "value" half of W1 (transposed), inner tile
    # w1g_ref: (dim, tn)        "gate"  half of W1 (transposed), inner tile
    # b1v_ref/b1g_ref: (1, tn)
    # w2_ref : (tn, dim_out)    output proj (transposed), inner tile
    # b2_ref : (1, dim_out)
    # o_ref  : (tm, dim_out)    resident across k (block index (i, 0))
    # scratch: optional (tm, dim_out) f32 accumulator (only for narrow outputs)
    k = pl.program_id(1)
    n_k = pl.num_programs(1)

    x = x_ref[...]  # native dtype (bf16 fast path); MXU accumulates in f32

    val = jnp.dot(x, w1v_ref[...], preferred_element_type=jnp.float32)
    val = val + b1v_ref[...].astype(jnp.float32)
    gate = jnp.dot(x, w1g_ref[...], preferred_element_type=jnp.float32)
    gate = gate + b1g_ref[...].astype(jnp.float32)

    # Exact erf GELU (PyTorch default); GEGLU = val * gelu(gate).
    inv_sqrt2 = jnp.float32(0.7071067811865476)
    act = val * (0.5 * gate * (1.0 + jax.lax.erf(gate * inv_sqrt2)))

    # Second projection contribution for this inner tile (f32 accumulation).
    contrib = jnp.dot(act.astype(w2_ref.dtype), w2_ref[...],
                      preferred_element_type=jnp.float32)
    b2 = b2_ref[...].astype(jnp.float32)

    if use_acc:
        # Narrow output dtype + real k-reduction: accumulate in f32 scratch.
        acc_ref = scratch[0]

        @pl.when(k == 0)
        def _():
            acc_ref[...] = contrib

        @pl.when(k > 0)
        def _():
            acc_ref[...] += contrib

        @pl.when(k == n_k - 1)
        def _():
            o_ref[...] = (acc_ref[...] + b2).astype(o_ref.dtype)
    else:
        # Either f32 output (accumulate directly into the resident out block)
        # or n_k == 1 (single store). No scratch, no zero-fill.
        @pl.when(k == 0)
        def _():
            o_ref[...] = (contrib + b2).astype(o_ref.dtype)

        @pl.when(k > 0)
        def _():
            o_ref[...] = (o_ref[...].astype(jnp.float32) + contrib).astype(o_ref.dtype)


def prepare_ffn_params(w1, b1, w2, b2):
    """One-time weight plumbing (do this at load time, not per forward call).

    w1: (2*inner, dim) torch-layout GEGLU projection weight; b1: (2*inner,)
    w2: (dim_out, inner) torch-layout output projection;     b2: (dim_out,)
    """
    two_inner, dim = w1.shape
    inner = two_inner // 2
    dim_out = w2.shape[0]
    return {
        "w1_val": jnp.transpose(w1[:inner, :]),    # (dim, inner)
        "w1_gate": jnp.transpose(w1[inner:, :]),   # (dim, inner)
        "b1_val": b1[:inner].reshape(1, inner),
        "b1_gate": b1[inner:].reshape(1, inner),
        "w2_t": jnp.transpose(w2),                 # (inner, dim_out)
        "b2": b2.reshape(1, dim_out),
    }


def feed_forward_geglu(x, params, *, tm=None, tn_inner=None, vmem_limit_bytes=None):
    """GEGLU FeedForward forward pass. x: (B, S, dim) -> (B, S, dim_out)."""
    w1v, w1g = params["w1_val"], params["w1_gate"]
    b1v, b1g = params["b1_val"], params["b1_gate"]
    w2t, b2 = params["w2_t"], params["b2"]

    B, S, dim = x.shape
    dim_w, inner = w1v.shape
    assert dim_w == dim, "w1 / x dim mismatch"
    inner_w2, dim_out = w2t.shape
    assert inner_w2 == inner, "w2 / inner_dim mismatch"

    xb = jnp.dtype(x.dtype).itemsize
    wb = jnp.dtype(w1v.dtype).itemsize
    M = B * S
    sublane = {4: 8, 2: 16, 1: 32}.get(xb, 8)

    # ---- generation-aware configuration ------------------------------------
    vmem_cap, is_v5 = _tpu_hints()
    big_vmem = vmem_cap >= (100 << 20)  # v5e/v5p/v6e: 128 MiB physical
    if vmem_limit_bytes is None:
        vmem_limit_bytes = (100 << 20) if big_vmem else (52 << 20)
    vmem_limit_bytes = int(min(vmem_limit_bytes, max(vmem_cap - (8 << 20), 32 << 20)))
    budget = vmem_limit_bytes - (6 << 20)  # headroom for internal scratch / sems

    if big_vmem:
        tm_target = 1024
        tn_target = 512
        align = 128 if is_v5 else 256   # v6e/v7x MXUs want 256-aligned N tiles
        tn_min = 512 if is_v5 else 256  # v5e: keep acc RMW amortized (1 vst slot)
    else:  # v7x-class (64 MiB per-TC VMEM) or unknown
        tm_target = 768
        tn_target = 256
        align = 256
        tn_min = 256

    # ---- inner-dim (reduction) tiling ---------------------------------------
    weight_bytes = (2 * dim * inner + inner * dim_out + 2 * inner + dim_out) * wb
    if tn_inner is None and 2 * weight_bytes <= budget // 2:
        # Weights-resident fast path: everything stays in VMEM, single k step.
        tn = inner
    else:
        tn = _pick_tn(inner, tn_inner if tn_inner is not None else tn_target,
                      align, tn_min)
        # Keep the streamed (double-buffered) weight tiles inside the budget.
        while tn > align and 2 * (2 * dim * tn + tn * dim_out) * wb > budget // 2:
            new_tn = _pick_tn(inner, tn // 2, align, align)
            if new_tn >= tn:
                break
            tn = new_tn
    n_k = inner // tn

    out_is_f32 = jnp.dtype(x.dtype) == jnp.dtype(jnp.float32)
    use_acc = (n_k > 1) and not out_is_f32

    # ---- token (row) tiling --------------------------------------------------
    if tm is not None:
        tm_val = int(tm)
    else:
        fixed = 2 * (2 * dim * tn + tn * dim_out + 2 * tn + dim_out) * wb
        per_row = (2 * dim * xb + 2 * dim_out * xb          # x / out double-buffers
                   + (dim_out * 4 if use_acc else 0)         # f32 acc scratch
                   + 3 * tn * 4 + dim_out * 4)               # f32 temporaries
        avail = max(budget - fixed, per_row * sublane)
        tm_val = min(tm_target, avail // per_row)
    tm_val = min(tm_val, _round_up(M, sublane))
    tm_val = max(sublane, (tm_val // sublane) * sublane)
    if tm is None and tm_val >= 256:
        tm_val = (tm_val // 128) * 128
    M_pad = _round_up(M, tm_val)

    x2d = x.reshape(M, dim)
    if M_pad != M:
        x2d = jnp.pad(x2d, ((0, M_pad - M), (0, 0)))

    n_m_tiles = M_pad // tm_val
    flops = 2 * M * dim * (2 * inner) + 2 * M * inner * dim_out
    weight_stream = weight_bytes * (1 if n_k == 1 else n_m_tiles)
    bytes_accessed = (M_pad * dim * xb + M_pad * dim_out * xb + weight_stream)

    scratch_shapes = ([pltpu.VMEM((tm_val, dim_out), jnp.float32)] if use_acc else [])

    out2d = pl.pallas_call(
        functools.partial(_ffn_geglu_kernel, use_acc=use_acc),
        out_shape=jax.ShapeDtypeStruct((M_pad, dim_out), x.dtype),
        grid_spec=pltpu.PrefetchScalarGridSpec(
            num_scalar_prefetch=0,
            grid=(n_m_tiles, n_k),
            in_specs=[
                pl.BlockSpec((tm_val, dim), lambda i, k: (i, 0)),     # x tile
                pl.BlockSpec((dim, tn), lambda i, k: (0, k)),         # W1 val
                pl.BlockSpec((dim, tn), lambda i, k: (0, k)),         # W1 gate
                pl.BlockSpec((1, tn), lambda i, k: (0, k)),           # b1 val
                pl.BlockSpec((1, tn), lambda i, k: (0, k)),           # b1 gate
                pl.BlockSpec((tn, dim_out), lambda i, k: (k, 0)),     # W2
                pl.BlockSpec((1, dim_out), lambda i, k: (0, 0)),      # b2
            ],
            out_specs=pl.BlockSpec((tm_val, dim_out), lambda i, k: (i, 0)),
            scratch_shapes=scratch_shapes,
        ),
        compiler_params=pltpu.CompilerParams(
            dimension_semantics=("parallel", "arbitrary"),
            vmem_limit_bytes=vmem_limit_bytes,
        ),
        cost_estimate=pl.CostEstimate(
            flops=flops,
            transcendentals=M * inner,
            bytes_accessed=int(bytes_accessed),
        ),
    )(x2d, w1v, w1g, b1v, b1g, w2t, b2)

    return out2d[:M].reshape(B, S, dim_out)


def feed_forward_geglu_torch_layout(x, w1, b1, w2, b2, **kwargs):
    """Convenience wrapper taking torch-layout weights (prep done per call)."""
    return feed_forward_geglu(x, prepare_ffn_params(w1, b1, w2, b2), **kwargs)


def _reference(x, w1, b1, w2, b2):
    h = jnp.einsum("bsd,od->bso", x, w1) + b1
    val, gate = jnp.split(h, 2, axis=-1)
    act = val * (0.5 * gate * (1.0 + jax.lax.erf(gate / jnp.sqrt(2.0))))
    return jnp.einsum("bsi,oi->bso", act, w2) + b2


if __name__ == "__main__":
    # Small shapes consistent with the module: dim=128, mult=4 -> inner_dim=512.
    # dim_out=128 keeps the output lane-dense (multiple of 128).
    batch, seq, dim = 2, 96, 128
    mult = 4
    inner_dim = dim * mult          # 512
    dim_out = dim                   # 128

    key = jax.random.PRNGKey(0)
    kx, kw1, kb1, kw2, kb2 = jax.random.split(key, 5)

    x = jax.random.normal(kx, (batch, seq, dim), dtype=jnp.float32)

    # Linear-like uniform fan-in init (deterministic).
    bound1 = 1.0 / math.sqrt(dim)
    w1 = jax.random.uniform(kw1, (2 * inner_dim, dim), jnp.float32, -bound1, bound1)
    b1 = jax.random.uniform(kb1, (2 * inner_dim,), jnp.float32, -bound1, bound1)
    bound2 = 1.0 / math.sqrt(inner_dim)
    w2 = jax.random.uniform(kw2, (dim_out, inner_dim), jnp.float32, -bound2, bound2)
    b2 = jax.random.uniform(kb2, (dim_out,), jnp.float32, -bound2, bound2)

    # One-time weight prep (pre-split / pre-transposed persistent params).
    params = prepare_ffn_params(w1, b1, w2, b2)
    y_ref = _reference(x, w1, b1, w2, b2)

    # 1) Auto (generation-aware) config: weights-resident single-k fast path.
    ffn_auto = jax.jit(feed_forward_geglu)
    y = jax.block_until_ready(ffn_auto(x, params))
    assert y.shape == (batch, seq, dim_out)
    assert jnp.allclose(y, y_ref, atol=5e-4, rtol=5e-4), "auto-config mismatch"

    # 2) Explicit small tiles: exercises M padding (192 -> 256), the k-reduction
    #    grid axis, and the f32 accumulate-into-o_ref (no scratch) path.
    ffn_small = jax.jit(functools.partial(feed_forward_geglu, tm=128, tn_inner=256))
    y2 = jax.block_until_ready(ffn_small(x, params))
    assert jnp.allclose(y2, y_ref, atol=5e-4, rtol=5e-4), "tiled-config mismatch"

    # 3) bf16 fast path (bf16 operands on the MXU, f32 accumulation) with a real
    #    k-reduction -> exercises the f32 acc-scratch path; loose tolerance test.
    params_bf16 = jax.tree_util.tree_map(lambda a: a.astype(jnp.bfloat16), params)
    yb = jax.block_until_ready(
        feed_forward_geglu(x.astype(jnp.bfloat16), params_bf16, tm=128, tn_inner=256))
    assert yb.dtype == jnp.bfloat16 and yb.shape == (batch, seq, dim_out)
    err = float(jnp.max(jnp.abs(yb.astype(jnp.float32) - y_ref)))
    assert math.isfinite(err) and err < 0.2, f"bf16 path error too large: {err}"

    # TODO(synk): dropout layers are identity in eval mode (p=0.0); not implemented.
    print("KERNEL_OK")
</pallas_src>

<mosaic_0001>
module attributes {stable_mosaic.version = 11 : i64} {
  func.func @_ffn_geglu_kernel(%arg0: i32, %arg1: i32, %arg2: memref<192x128xf32, #tpu.memory_space<vmem>>, %arg3: memref<128x512xf32, #tpu.memory_space<vmem>>, %arg4: memref<128x512xf32, #tpu.memory_space<vmem>>, %arg5: memref<1x512xf32, #tpu.memory_space<vmem>>, %arg6: memref<1x512xf32, #tpu.memory_space<vmem>>, %arg7: memref<512x128xf32, #tpu.memory_space<vmem>>, %arg8: memref<1x128xf32, #tpu.memory_space<vmem>>, %arg9: memref<192x128xf32, #tpu.memory_space<vmem>>) attributes {dimension_semantics = [#tpu.dimension_semantics<parallel>, #tpu.dimension_semantics<arbitrary>], iteration_bounds = array<i64: 1, 1>, scalar_prefetch = 0 : i64, scratch_operands = 0 : i64, tpu.core_type = #tpu.core_type<tc>, window_params = [{transform_indices = @transform_0, window_bounds = array<i64: 192, 128>}, {transform_indices = @transform_1, window_bounds = array<i64: 128, 512>}, {transform_indices = @transform_2, window_bounds = array<i64: 128, 512>}, {transform_indices = @transform_3, window_bounds = array<i64: 1, 512>}, {transform_indices = @transform_4, window_bounds = array<i64: 1, 512>}, {transform_indices = @transform_5, window_bounds = array<i64: 512, 128>}, {pipeline_mode = #tpu.pipeline_mode<synchronous>, transform_indices = @transform_6, window_bounds = array<i64: 1, 128>}, {transform_indices = @transform_7, window_bounds = array<i64: 192, 128>}]} {
    %c0 = arith.constant 0 : index
    %c0_0 = arith.constant 0 : index
    %0 = vector.load %arg2[%c0, %c0_0] : memref<192x128xf32, #tpu.memory_space<vmem>>, vector<192x128xf32>
    %c0_1 = arith.constant 0 : index
    %c0_2 = arith.constant 0 : index
    %1 = vector.load %arg3[%c0_1, %c0_2] : memref<128x512xf32, #tpu.memory_space<vmem>>, vector<128x512xf32>
    %cst = arith.constant dense<0.000000e+00> : vector<192x512xf32>
    %2 = tpu.matmul %0, %1, %cst {dimension_numbers = #tpu.dot_dimension_numbers<[1], [0], [0], [1], [0, 0, 1, 1], [], []>} : vector<192x128xf32>, vector<128x512xf32>, vector<192x512xf32> -> vector<192x512xf32>
    %c0_3 = arith.constant 0 : index
    %c0_4 = arith.constant 0 : index
    %3 = vector.load %arg5[%c0_3, %c0_4] : memref<1x512xf32, #tpu.memory_space<vmem>>, vector<1x512xf32>
    %4 = vector.broadcast %3 : vector<1x512xf32> to vector<192x512xf32>
    %5 = arith.addf %2, %4 : vector<192x512xf32>
    %c0_5 = arith.constant 0 : index
    %c0_6 = arith.constant 0 : index
    %6 = vector.load %arg4[%c0_5, %c0_6] : memref<128x512xf32, #tpu.memory_space<vmem>>, vector<128x512xf32>
    %cst_7 = arith.constant dense<0.000000e+00> : vector<192x512xf32>
    %7 = tpu.matmul %0, %6, %cst_7 {dimension_numbers = #tpu.dot_dimension_numbers<[1], [0], [0], [1], [0, 0, 1, 1], [], []>} : vector<192x128xf32>, vector<128x512xf32>, vector<192x512xf32> -> vector<192x512xf32>
    %c0_8 = arith.constant 0 : index
    %c0_9 = arith.constant 0 : index
    %8 = vector.load %arg6[%c0_8, %c0_9] : memref<1x512xf32, #tpu.memory_space<vmem>>, vector<1x512xf32>
    %9 = vector.broadcast %8 : vector<1x512xf32> to vector<192x512xf32>
    %10 = arith.addf %7, %9 : vector<192x512xf32>
    %cst_10 = arith.constant 5.000000e-01 : f32
    %11 = vector.broadcast %cst_10 : f32 to vector<192x512xf32>
    %12 = arith.mulf %11, %10 : vector<192x512xf32>
    %cst_11 = arith.constant 0.707106769 : f32
    %13 = vector.broadcast %cst_11 : f32 to vector<192x512xf32>
    %14 = arith.mulf %10, %13 : vector<192x512xf32>
    %15 = math.erf %14 : vector<192x512xf32>
    %cst_12 = arith.constant 1.000000e+00 : f32
    %16 = vector.broadcast %cst_12 : f32 to vector<192x512xf32>
    %17 = arith.addf %16, %15 : vector<192x512xf32>
    %18 = arith.mulf %12, %17 : vector<192x512xf32>
    %19 = arith.mulf %5, %18 : vector<192x512xf32>
    %c0_13 = arith.constant 0 : index
    %c0_14 = arith.constant 0 : index
    %20 = vector.load %arg7[%c0_13, %c0_14] : memref<512x128xf32, #tpu.memory_space<vmem>>, vector<512x128xf32>
    %cst_15 = arith.constant dense<0.000000e+00> : vector<192x128xf32>
    %21 = tpu.matmul %19, %20, %cst_15 {dimension_numbers = #tpu.dot_dimension_numbers<[1], [0], [0], [1], [0, 0, 1, 1], [], []>} : vector<192x512xf32>, vector<512x128xf32>, vector<192x128xf32> -> vector<192x128xf32>
    %c0_16 = arith.constant 0 : index
    %c0_17 = arith.constant 0 : index
    %22 = vector.load %arg8[%c0_16, %c0_17] : memref<1x128xf32, #tpu.memory_space<vmem>>, vector<1x128xf32>
    %c0_i32 = arith.constant 0 : i32
    %23 = arith.cmpi eq, %arg1, %c0_i32 : i32
    %24 = arith.extui %23 : i1 to i32
    %c0_i32_18 = arith.constant 0 : i32
    %25 = arith.cmpi ne, %24, %c0_i32_18 : i32
    scf.if %25 {
      %29 = vector.broadcast %22 : vector<1x128xf32> to vector<192x128xf32>
      %30 = arith.addf %21, %29 : vector<192x128xf32>
      %c0_21 = arith.constant 0 : index
      %c0_22 = arith.constant 0 : index
      %31 = vector.load %arg9[%c0_21, %c0_22] : memref<192x128xf32, #tpu.memory_space<vmem>>, vector<192x128xf32>
      tpu.vector_store %arg9[%c0_21, %c0_22], %30 {strides = array<i32>} : memref<192x128xf32, #tpu.memory_space<vmem>>, vector<192x128xf32>,
    } else {
    }
    %c0_i32_19 = arith.constant 0 : i32
    %26 = arith.cmpi sgt, %arg1, %c0_i32_19 : i32
    %27 = arith.extui %26 : i1 to i32
    %c0_i32_20 = arith.constant 0 : i32
    %28 = arith.cmpi ne, %27, %c0_i32_20 : i32
    scf.if %28 {
      %c0_21 = arith.constant 0 : index
      %c0_22 = arith.constant 0 : index
      %29 = vector.load %arg9[%c0_21, %c0_22] : memref<192x128xf32, #tpu.memory_space<vmem>>, vector<192x128xf32>
      %30 = arith.addf %29, %21 : vector<192x128xf32>
      %c0_23 = arith.constant 0 : index
      %c0_24 = arith.constant 0 : index
      %31 = vector.load %arg9[%c0_23, %c0_24] : memref<192x128xf32, #tpu.memory_space<vmem>>, vector<192x128xf32>
      tpu.vector_store %arg9[%c0_23, %c0_24], %30 {strides = array<i32>} : memref<192x128xf32, #tpu.memory_space<vmem>>, vector<192x128xf32>,
    } else {
    }
    return
  }
  func.func @transform_0(%arg0: i32, %arg1: i32) -> (i32, i32) {
    %c0_i32 = arith.constant 0 : i32
    %c0_i32_0 = arith.constant 0 : i32
    return %arg0, %c0_i32 : i32, i32
  }
  func.func @transform_1(%arg0: i32, %arg1: i32) -> (i32, i32) {
    %c0_i32 = arith.constant 0 : i32
    %c0_i32_0 = arith.constant 0 : i32
    return %c0_i32, %arg1 : i32, i32
  }
  func.func @transform_2(%arg0: i32, %arg1: i32) -> (i32, i32) {
    %c0_i32 = arith.constant 0 : i32
    %c0_i32_0 = arith.constant 0 : i32
    return %c0_i32, %arg1 : i32, i32
  }
  func.func @transform_3(%arg0: i32, %arg1: i32) -> (i32, i32) {
    %c0_i32 = arith.constant 0 : i32
    %c0_i32_0 = arith.constant 0 : i32
    return %c0_i32, %arg1 : i32, i32
  }
  func.func @transform_4(%arg0: i32, %arg1: i32) -> (i32, i32) {
    %c0_i32 = arith.constant 0 : i32
    %c0_i32_0 = arith.constant 0 : i32
    return %c0_i32, %arg1 : i32, i32
  }
  func.func @transform_5(%arg0: i32, %arg1: i32) -> (i32, i32) {
    %c0_i32 = arith.constant 0 : i32
    %c0_i32_0 = arith.constant 0 : i32
    return %arg1, %c0_i32 : i32, i32
  }
  func.func @transform_6(%arg0: i32, %arg1: i32) -> (i32, i32) {
    %c0_i32 = arith.constant 0 : i32
    %c0_i32_0 = arith.constant 0 : i32
    %c0_i32_1 = arith.constant 0 : i32
    return %c0_i32, %c0_i32_0 : i32, i32
  }
  func.func @transform_7(%arg0: i32, %arg1: i32) -> (i32, i32) {
    %c0_i32 = arith.constant 0 : i32
    %c0_i32_0 = arith.constant 0 : i32
    return %arg0, %c0_i32 : i32, i32
  }
}

</mosaic_0001>

<bundles_post_ra>
// kernel: feed_forward_geglu.1
= control target key start
LH: loop header
LB: loop body
LE: loop exit
PB: predicated region body
PF: predicated region fallthrough
CT: control target
= control target key end

     0   :  { %12 = vsyncpa [#allocation3], 0  ;;  %s12728_s0 = inlined_call_operand.hbm [shape: f32[192,128], index: 0, kind: input, shape index: {}]   ;;  %s12729_s1 = inlined_call_operand.hbm [shape: f32[128,512], index: 1, kind: input, shape index: {}]   ;;  %s12730_s2 = inlined_call_operand.hbm [shape: f32[128,512], index: 2, kind: input, shape index: {}]   ;;  %s12731_s3 = inlined_call_operand.hbm [shape: f32[1,512], index: 3, kind: input, shape index: {}]   ;;  %s12732_s4 = inlined_call_operand.hbm [shape: f32[1,512], index: 4, kind: input, shape index: {}]   ;;  %s12733_s5 = inlined_call_operand.hbm [shape: f32[512,128], index: 5, kind: input, shape index: {}]   ;;  %s12734_s6 = inlined_call_operand.vmem [shape: f32[1,128], index: 6, kind: input, shape index: {}]   ;;  %s12735_s7 = inlined_call_operand.hbm [shape: f32[192,128], index: 7, kind: output, shape index: {}]  }
   0x1   :  { %13 = vsyncpa [#allocation6], 0 }
   0x2   :  { %14 = vsyncpa [#allocation9], 0 }
   0x3   :  { %15 = vsyncpa [#allocation12], 0  ;;  %s34_s26 = sshll.u32 %s12729_s1, 4  ;;  %s35_s26 = int_to_ptr.hbm [resolvable:$true] %s34_s26 }
   0x4   :  { %16 = vsyncpa [#allocation4], 0  ;;  %s6373_s27 = smov [#allocation5]   ;;  %s61_s8 = sshll.u32 %s12731_s3, 4  ;;  %s62_s8 = int_to_ptr.hbm [resolvable:$true] %s61_s8 }
   0x5   :  { %s36_s28 = sshll.u32 %s6373_s27, 4  ;;  %s6374_s9 = smov 512   ;;  %s37_s28 = int_to_ptr.vmem [resolvable:$true] %s36_s28 }
   0x6   :  { %s6375_s10 = smov 32   ;;  %s6376_s11 = smov [#allocation8]  }
   0x7   :  { %42 = dma.hbm_to_vmem [thread:$0]  %s35_s26, 8192, %s37_s28, [#allocation6], %s6374_s9, %s6374_s9, %s6375_s10  }
   0x8   :  { %s63_s12 = sshll.u32 %s6376_s11, 4  ;;  %s21_s15 = sshll.u32 %s12728_s0, 4  ;;  %s64_s12 = int_to_ptr.vmem [resolvable:$true] %s63_s12  ;;  %s22_s15 = int_to_ptr.hbm [resolvable:$true] %s21_s15 }
   0x9   :  { %66 = dma.hbm_to_vmem [thread:$0]  %s62_s8, 64, %s64_s12, [#allocation9]  }
   0xa   :  { %s6377_s1 = smov [#allocation2]   ;;  %s47_s3 = sshll.u32 %s12730_s2, 4  ;;  %s48_s3 = int_to_ptr.hbm [resolvable:$true] %s47_s3 }
   0xb   :  { %s23_s16 = sshll.u32 %s6377_s1, 4  ;;  %s6378_s19 = smov 128   ;;  %s24_s16 = int_to_ptr.vmem [resolvable:$true] %s23_s16 }
   0xc   :  { %s6379_s20 = smov 8   ;;  %s6380_s21 = smov [#allocation7]  }
   0xd   :  { %29 = dma.hbm_to_vmem [thread:$0]  %s22_s15, 3072, %s24_s16, [#allocation3], %s6378_s19, %s6378_s19, %s6379_s20  }
   0xe   :  { %s49_s22 = sshll.u32 %s6380_s21, 4  ;;  %s72_s24 = sshll.u32 %s12732_s4, 4  ;;  %s50_s22 = int_to_ptr.vmem [resolvable:$true] %s49_s22  ;;  %s73_s24 = int_to_ptr.hbm [resolvable:$true] %s72_s24 }
   0xf   :  { %55 = dma.hbm_to_vmem [thread:$0]  %s48_s3, 8192, %s50_s22, [#allocation6], %s6374_s9, %s6374_s9, %s6375_s10  }
  0x10   :  { %s82_s2 = sshll.u32 %s12733_s5, 4  ;;  %s6381_s27 = smov [#allocation10]   ;;  %s83_s2 = int_to_ptr.hbm [resolvable:$true] %s82_s2 }
  0x11   :  { %s74_s28 = sshll.u32 %s6381_s27, 4  ;;  %s6382_s29 = smov [#allocation11]   ;;  %s75_s28 = int_to_ptr.vmem [resolvable:$true] %s74_s28 }
  0x12   :  { %77 = dma.hbm_to_vmem [thread:$0]  %s73_s24, 64, %s75_s28, [#allocation9]  }
  0x13   :  { %s84_s30 = sshll.u32 %s6382_s29, 4  ;;  %s85_s30 = int_to_ptr.vmem [resolvable:$true] %s84_s30 }
  0x14   :  { %90 = dma.hbm_to_vmem [thread:$0]  %s83_s2, 8192, %s85_s30, [#allocation12], %s6378_s19, %s6378_s19, %s6379_s20  }
  0x15   :  { %6363 = dma.done.wait [#allocation3], 3072  }
  0x16   :  { %6364 = vsyncadd [#allocation3], 4294964224 }
  0x17   :  { %6365 = dma.done.wait [#allocation6], 16384  }
  0x18   :  { %6366 = vsyncadd [#allocation6], 4294950912 }
  0x19   :  { %6367 = dma.done.wait [#allocation9], 128  }
  0x1a   :  { %6368 = vsyncadd [#allocation9], 4294967168 }
  0x1b   :  { %6369 = dma.done.wait [#allocation12], 8192  }
  0x1c   :  { %6370 = vsyncadd [#allocation12], 4294959104  ;;  %v201_v0 = vld [vmem:[#allocation5 + $0x1e0] sm:$0xff]  ;;  %v202_v1 = vld [vmem:[#allocation5 + $0x1e8] sm:$0xff]  ;;  %s5879_s11 = sshll.u32 %s12735_s7, 4  ;;  %s5880_s11 = int_to_ptr.hbm [resolvable:$true] %s5879_s11 }
  0x1d   :  { %v203_v2 = vld [vmem:[#allocation5 + $0x1f0] sm:$0xff]  ;;  %215 = vmatpush.msra.mxu0 %v201_v0  ;;  %304 = vmatpush.msra.mxu1 %v202_v1  ;;  %v204_v3 = vld [vmem:[#allocation5 + $0x1f8] sm:$0xff]  ;;  %v197_v4 = vld [vmem:[#allocation5 + $0x1c0] sm:$0xff] }
  0x1e   :  { %v198_v5 = vld [vmem:[#allocation5 + $0x1c8] sm:$0xff]  ;;  %393 = vmatpush.msra.mxu2 %v203_v2  ;;  %482 = vmatpush.msra.mxu3 %v204_v3  ;;  %v199_v6 = vld [vmem:[#allocation5 + $0x1d0] sm:$0xff]  ;;  %v200_v7 = vld [vmem:[#allocation5 + $0x1d8] sm:$0xff] }
  0x1f   :  { %v193_v8 = vld [vmem:[#allocation5 + $0x1a0] sm:$0xff]  ;;  %216 = vmatpush.msra.mxu0 %v197_v4  ;;  %305 = vmatpush.msra.mxu1 %v198_v5  ;;  %v194_v9 = vld [vmem:[#allocation5 + $0x1a8] sm:$0xff]  ;;  %v195_v10 = vld [vmem:[#allocation5 + $0x1b0] sm:$0xff] }
  0x20   :  { %v196_v11 = vld [vmem:[#allocation5 + $0x1b8] sm:$0xff]  ;;  %394 = vmatpush.msra.mxu2 %v199_v6  ;;  %483 = vmatpush.msra.mxu3 %v200_v7  ;;  %v189_v12 = vld [vmem:[#allocation5 + $0x180] sm:$0xff]  ;;  %v190_v13 = vld [vmem:[#allocation5 + $0x188] sm:$0xff] }
  0x21   :  { %217 = vmatpush.msra.mxu0 %v193_v8  ;;  %306 = vmatpush.msra.mxu1 %v194_v9  ;;  %v191_v14 = vld [vmem:[#allocation5 + $0x190] sm:$0xff]  ;;  %v192_v15 = vld [vmem:[#allocation5 + $0x198] sm:$0xff]  ;;  %v185_v16 = vld [vmem:[#allocation5 + $0x160] sm:$0xff] }
  0x22   :  { %395 = vmatpush.msra.mxu2 %v195_v10  ;;  %484 = vmatpush.msra.mxu3 %v196_v11  ;;  %v186_v17 = vld [vmem:[#allocation5 + $0x168] sm:$0xff]  ;;  %v187_v18 = vld [vmem:[#allocation5 + $0x170] sm:$0xff]  ;;  %v188_v19 = vld [vmem:[#allocation5 + $0x178] sm:$0xff] }
  0x23   :  { %218 = vmatpush.msra.mxu0 %v189_v12  ;;  %307 = vmatpush.msra.mxu1 %v190_v13  ;;  %v181_v20 = vld [vmem:[#allocation5 + $0x140] sm:$0xff]  ;;  %v182_v21 = vld [vmem:[#allocation5 + $0x148] sm:$0xff]  ;;  %v183_v22 = vld [vmem:[#allocation5 + $0x150] sm:$0xff] }
  0x24   :  { %396 = vmatpush.msra.mxu2 %v191_v14  ;;  %485 = vmatpush.msra.mxu3 %v192_v15  ;;  %v184_v23 = vld [vmem:[#allocation5 + $0x158] sm:$0xff]  ;;  %v177_v24 = vld [vmem:[#allocation5 + $0x120] sm:$0xff]  ;;  %v178_v25 = vld [vmem:[#allocation5 + $0x128] sm:$0xff] }
  0x25   :  { %219 = vmatpush.msra.mxu0 %v185_v16  ;;  %308 = vmatpush.msra.mxu1 %v186_v17  ;;  %v179_v26 = vld [vmem:[#allocation5 + $0x130] sm:$0xff]  ;;  %v180_v27 = vld [vmem:[#allocation5 + $0x138] sm:$0xff]  ;;  %v173_v28 = vld [vmem:[#allocation5 + $0x100] sm:$0xff] }
  0x26   :  { %397 = vmatpush.msra.mxu2 %v187_v18  ;;  %486 = vmatpush.msra.mxu3 %v188_v19  ;;  %v174_v29 = vld [vmem:[#allocation5 + $0x108] sm:$0xff]  ;;  %v175_v30 = vld [vmem:[#allocation5 + $0x110] sm:$0xff]  ;;  %v176_v31 = vld [vmem:[#allocation5 + $0x118] sm:$0xff] }
  0x27   :  { %220 = vmatpush.msra.mxu0 %v181_v20  ;;  %309 = vmatpush.msra.mxu1 %v182_v21  ;;  %v169_v32 = vld [vmem:[#allocation5 + $0xe0] sm:$0xff]  ;;  %v170_v33 = vld [vmem:[#allocation5 + $0xe8] sm:$0xff]  ;;  %v171_v34 = vld [vmem:[#allocation5 + $0xf0] sm:$0xff] }
  0x28   :  { %398 = vmatpush.msra.mxu2 %v183_v22  ;;  %487 = vmatpush.msra.mxu3 %v184_v23  ;;  %v172_v35 = vld [vmem:[#allocation5 + $0xf8] sm:$0xff]  ;;  %v165_v36 = vld [vmem:[#allocation5 + $0xc0] sm:$0xff]  ;;  %v166_v37 = vld [vmem:[#allocation5 + $0xc8] sm:$0xff] }
  0x29   :  { %221 = vmatpush.msra.mxu0 %v177_v24  ;;  %310 = vmatpush.msra.mxu1 %v178_v25  ;;  %v167_v38 = vld [vmem:[#allocation5 + $0xd0] sm:$0xff]  ;;  %v168_v39 = vld [vmem:[#allocation5 + $0xd8] sm:$0xff]  ;;  %v161_v40 = vld [vmem:[#allocation5 + $0xa0] sm:$0xff] }
  0x2a   :  { %399 = vmatpush.msra.mxu2 %v179_v26  ;;  %488 = vmatpush.msra.mxu3 %v180_v27  ;;  %v162_v41 = vld [vmem:[#allocation5 + $0xa8] sm:$0xff]  ;;  %v163_v42 = vld [vmem:[#allocation5 + $0xb0] sm:$0xff]  ;;  %v164_v43 = vld [vmem:[#allocation5 + $0xb8] sm:$0xff] }
  0x2b   :  { %222 = vmatpush.msra.mxu0 %v173_v28  ;;  %311 = vmatpush.msra.mxu1 %v174_v29  ;;  %v157_v44 = vld [vmem:[#allocation5 + $0x80] sm:$0xff]  ;;  %v158_v45 = vld [vmem:[#allocation5 + $0x88] sm:$0xff]  ;;  %v159_v46 = vld [vmem:[#allocation5 + $0x90] sm:$0xff] }
  0x2c   :  { %400 = vmatpush.msra.mxu2 %v175_v30  ;;  %489 = vmatpush.msra.mxu3 %v176_v31  ;;  %v160_v47 = vld [vmem:[#allocation5 + $0x98] sm:$0xff]  ;;  %v153_v48 = vld [vmem:[#allocation5 + $0x60] sm:$0xff]  ;;  %v154_v49 = vld [vmem:[#allocation5 + $0x68] sm:$0xff] }
  0x2d   :  { %223 = vmatpush.msra.mxu0 %v169_v32  ;;  %312 = vmatpush.msra.mxu1 %v170_v33  ;;  %v155_v50 = vld [vmem:[#allocation5 + $0x70] sm:$0xff]  ;;  %v156_v51 = vld [vmem:[#allocation5 + $0x78] sm:$0xff]  ;;  %v149_v52 = vld [vmem:[#allocation5 + $0x40] sm:$0xff] }
  0x2e   :  { %401 = vmatpush.msra.mxu2 %v171_v34  ;;  %490 = vmatpush.msra.mxu3 %v172_v35  ;;  %v150_v53 = vld [vmem:[#allocation5 + $0x48] sm:$0xff]  ;;  %v151_v54 = vld [vmem:[#allocation5 + $0x50] sm:$0xff]  ;;  %v152_v55 = vld [vmem:[#allocation5 + $0x58] sm:$0xff] }
  0x2f   :  { %224 = vmatpush.msra.mxu0 %v165_v36  ;;  %313 = vmatpush.msra.mxu1 %v166_v37  ;;  %v145_v56 = vld [vmem:[#allocation5 + $0x20] sm:$0xff]  ;;  %v146_v57 = vld [vmem:[#allocation5 + $0x28] sm:$0xff]  ;;  %v147_v58 = vld [vmem:[#allocation5 + $0x30] sm:$0xff] }
  0x30   :  { %402 = vmatpush.msra.mxu2 %v167_v38  ;;  %491 = vmatpush.msra.mxu3 %v168_v39  ;;  %v148_v59 = vld [vmem:[#allocation5 + $0x38] sm:$0xff]  ;;  %v141_v60 = vld [vmem:[#allocation5] sm:$0xff]  ;;  %v142_v61 = vld [vmem:[#allocation5 + $0x8] sm:$0xff] }
  0x31   :  { %225 = vmatpush.msra.mxu0 %v161_v40  ;;  %314 = vmatpush.msra.mxu1 %v162_v41  ;;  %v143_v62 = vld [vmem:[#allocation5 + $0x10] sm:$0xff]  ;;  %v144_v63 = vld [vmem:[#allocation5 + $0x18] sm:$0xff]  ;;  %v6448_v0 = vld [vmem:[#allocation2] sm:$0xff] }
  0x32   :  { %403 = vmatpush.msra.mxu2 %v163_v42  ;;  %492 = vmatpush.msra.mxu3 %v164_v43  ;;  %v633_v1 = vld [vmem:[#allocation7 + $0x1f0] sm:$0xff]  ;;  %v634_v2 = vld [vmem:[#allocation7 + $0x1f8] sm:$0xff]  ;;  %v631_v3 = vld [vmem:[#allocation7 + $0x1e0] sm:$0xff] }
  0x33   :  { %226 = vmatpush.msra.mxu0 %v157_v44  ;;  %315 = vmatpush.msra.mxu1 %v158_v45  ;;  %v632_v4 = vld [vmem:[#allocation7 + $0x1e8] sm:$0xff]  ;;  %v629_v5 = vld [vmem:[#allocation7 + $0x1d0] sm:$0xff]  ;;  %v630_v6 = vld [vmem:[#allocation7 + $0x1d8] sm:$0xff] }
  0x34   :  { %404 = vmatpush.msra.mxu2 %v159_v46  ;;  %493 = vmatpush.msra.mxu3 %v160_v47  ;;  %v627_v7 = vld [vmem:[#allocation7 + $0x1c0] sm:$0xff]  ;;  %v628_v8 = vld [vmem:[#allocation7 + $0x1c8] sm:$0xff]  ;;  %v625_v9 = vld [vmem:[#allocation7 + $0x1b0] sm:$0xff] }
  0x35   :  { %227 = vmatpush.msra.mxu0 %v153_v48  ;;  %316 = vmatpush.msra.mxu1 %v154_v49  ;;  %v626_v10 = vld [vmem:[#allocation7 + $0x1b8] sm:$0xff]  ;;  %v623_v11 = vld [vmem:[#allocation7 + $0x1a0] sm:$0xff]  ;;  %v624_v12 = vld [vmem:[#allocation7 + $0x1a8] sm:$0xff] }
  0x36   :  { %405 = vmatpush.msra.mxu2 %v155_v50  ;;  %494 = vmatpush.msra.mxu3 %v156_v51  ;;  %v6454_v13 = vld [vmem:[#allocation2 + $0x8] sm:$0xff]  ;;  %v621_v14 = vld [vmem:[#allocation7 + $0x190] sm:$0xff]  ;;  %v622_v15 = vld [vmem:[#allocation7 + $0x198] sm:$0xff] }
  0x37   :  { %228 = vmatpush.msra.mxu0 %v149_v52  ;;  %317 = vmatpush.msra.mxu1 %v150_v53  ;;  %v619_v16 = vld [vmem:[#allocation7 + $0x180] sm:$0xff]  ;;  %v620_v17 = vld [vmem:[#allocation7 + $0x188] sm:$0xff]  ;;  %v6460_v18 = vld [vmem:[#allocation2 + $0x10] sm:$0xff] }
  0x38   :  { %406 = vmatpush.msra.mxu2 %v151_v54  ;;  %495 = vmatpush.msra.mxu3 %v152_v55  ;;  %v617_v19 = vld [vmem:[#allocation7 + $0x170] sm:$0xff]  ;;  %v618_v20 = vld [vmem:[#allocation7 + $0x178] sm:$0xff]  ;;  %v615_v21 = vld [vmem:[#allocation7 + $0x160] sm:$0xff] }
  0x39   :  { %229 = vmatpush.msra.mxu0 %v145_v56  ;;  %318 = vmatpush.msra.mxu1 %v146_v57  ;;  %v616_v22 = vld [vmem:[#allocation7 + $0x168] sm:$0xff]  ;;  %v6466_v23 = vld [vmem:[#allocation2 + $0x18] sm:$0xff]  ;;  %v613_v24 = vld [vmem:[#allocation7 + $0x150] sm:$0xff] }
  0x3a   :  { %407 = vmatpush.msra.mxu2 %v147_v58  ;;  %496 = vmatpush.msra.mxu3 %v148_v59  ;;  %v614_v25 = vld [vmem:[#allocation7 + $0x158] sm:$0xff]  ;;  %v6472_v26 = vld [vmem:[#allocation2 + $0x20] sm:$0xff]  ;;  %v612_v28 = vld [vmem:[#allocation7 + $0x148] sm:$0xff] }
  0x3b   :  { %230 = vmatpush.msra.mxu0 %v141_v60  ;;  %319 = vmatpush.msra.mxu1 %v142_v61  ;;  %v611_v27 = vld [vmem:[#allocation7 + $0x140] sm:$0xff]  ;;  %v6478_v29 = vld [vmem:[#allocation2 + $0x28] sm:$0xff]  ;;  %v609_v30 = vld [vmem:[#allocation7 + $0x130] sm:$0xff] }
  0x3c   :  { %408 = vmatpush.msra.mxu2 %v143_v62  ;;  %497 = vmatpush.msra.mxu3 %v144_v63  ;;  %v610_v31 = vld [vmem:[#allocation7 + $0x138] sm:$0xff]  ;;  %v607_v32 = vld [vmem:[#allocation7 + $0x120] sm:$0xff]  ;;  %v608_v33 = vld [vmem:[#allocation7 + $0x128] sm:$0xff] }
  0x3d   :  { %231 = vmatmul.f32.vlgmr.msra.gmra.mxu0 %v6448_v0  ;;  %320 = vmatmul.f32.vlgmr.msra.gmra.mxu1 %v6448_v0  ;;  %v6484_v34 = vld [vmem:[#allocation2 + $0x30] sm:$0xff]  ;;  %v606_v36 = vld [vmem:[#allocation7 + $0x118] sm:$0xff]  ;;  %v603_v38 = vld [vmem:[#allocation7 + $0x100] sm:$0xff] }
  0x3e   :  { %409 = vmatmul.f32.vlgmr.msra.gmra.mxu2 %v6448_v0  ;;  %498 = vmatmul.f32.vlgmr.msra.gmra.mxu3 %v6448_v0  ;;  %v605_v35 = vld [vmem:[#allocation7 + $0x110] sm:$0xff]  ;;  %v6490_v37 = vld [vmem:[#allocation2 + $0x38] sm:$0xff]  ;;  %v604_v39 = vld [vmem:[#allocation7 + $0x108] sm:$0xff] }
  0x3f   :  { %823 = vmatpush.msrb.mxu2 %v633_v1  ;;  %912 = vmatpush.msrb.mxu3 %v634_v2  ;;  %v6496_v40 = vld [vmem:[#allocation2 + $0x40] sm:$0xff]  ;;  %v601_v41 = vld [vmem:[#allocation7 + $0xf0] sm:$0xff]  ;;  %v602_v42 = vld [vmem:[#allocation7 + $0xf8] sm:$0xff] }
  0x40   :  { %645 = vmatpush.msrb.mxu0 %v631_v3  ;;  %734 = vmatpush.msrb.mxu1 %v632_v4  ;;  %v599_v43 = vld [vmem:[#allocation7 + $0xe0] sm:$0xff]  ;;  %v600_v44 = vld [vmem:[#allocation7 + $0xe8] sm:$0xff]  ;;  %v597_v46 = vld [vmem:[#allocation7 + $0xd0] sm:$0xff] }
  0x41   :  { %824 = vmatpush.msrb.mxu2 %v629_v5  ;;  %913 = vmatpush.msrb.mxu3 %v630_v6  ;;  %v6502_v45 = vld [vmem:[#allocation2 + $0x48] sm:$0xff]  ;;  %v598_v47 = vld [vmem:[#allocation7 + $0xd8] sm:$0xff]  ;;  %v6508_v48 = vld [vmem:[#allocation2 + $0x50] sm:$0xff] }
  0x42   :  { %646 = vmatpush.msrb.mxu0 %v627_v7  ;;  %735 = vmatpush.msrb.mxu1 %v628_v8  ;;  %v595_v49 = vld [vmem:[#allocation7 + $0xc0] sm:$0xff]  ;;  %v596_v50 = vld [vmem:[#allocation7 + $0xc8] sm:$0xff]  ;;  %v6514_v51 = vld [vmem:[#allocation2 + $0x58] sm:$0xff] }
  0x43   :  { %825 = vmatpush.msrb.mxu2 %v625_v9  ;;  %914 = vmatpush.msrb.mxu3 %v626_v10  ;;  %v593_v52 = vld [vmem:[#allocation7 + $0xb0] sm:$0xff]  ;;  %v594_v53 = vld [vmem:[#allocation7 + $0xb8] sm:$0xff]  ;;  %v591_v54 = vld [vmem:[#allocation7 + $0xa0] sm:$0xff] }
  0x44   :  { %647 = vmatpush.msrb.mxu0 %v623_v11  ;;  %736 = vmatpush.msrb.mxu1 %v624_v12  ;;  %v592_v55 = vld [vmem:[#allocation7 + $0xa8] sm:$0xff]  ;;  %v6520_v56 = vld [vmem:[#allocation2 + $0x60] sm:$0xff]  ;;  %v589_v58 = vld [vmem:[#allocation7 + $0x90] sm:$0xff] }
  0x45   :  { %234 = vmatmul.f32.gmra.mxu0 %v6454_v13  ;;  %323 = vmatmul.f32.gmra.mxu1 %v6454_v13  ;;  %v6526_v57 = vld [vmem:[#allocation2 + $0x68] sm:$0xff]  ;;  %v590_v59 = vld [vmem:[#allocation7 + $0x98] sm:$0xff]  ;;  %v587_v60 = vld [vmem:[#allocation7 + $0x80] sm:$0xff] }
  0x46   :  { %412 = vmatmul.f32.gmra.mxu2 %v6454_v13  ;;  %501 = vmatmul.f32.gmra.mxu3 %v6454_v13  ;;  %v588_v61 = vld [vmem:[#allocation7 + $0x88] sm:$0xff]  ;;  %v6532_v62 = vld [vmem:[#allocation2 + $0x70] sm:$0xff]  ;;  %v586_v1 = vld [vmem:[#allocation7 + $0x78] sm:$0xff] }
  0x47   :  { %826 = vmatpush.msrb.mxu2 %v621_v14  ;;  %915 = vmatpush.msrb.mxu3 %v622_v15  ;;  %v585_v63 = vld [vmem:[#allocation7 + $0x70] sm:$0xff]  ;;  %v6538_v2 = vld [vmem:[#allocation2 + $0x78] sm:$0xff]  ;;  %v583_v3 = vld [vmem:[#allocation7 + $0x60] sm:$0xff] }
  0x48   :  { %648 = vmatpush.msrb.mxu0 %v619_v16  ;;  %737 = vmatpush.msrb.mxu1 %v620_v17  ;;  %v584_v4 = vld [vmem:[#allocation7 + $0x68] sm:$0xff]  ;;  %v6548_v7 = vld [vmem:[#allocation2 + $0x80] sm:$0xff]  ;;  %v581_v8 = vld [vmem:[#allocation7 + $0x50] sm:$0xff] }
  0x49   :  { %827 = vmatpush.msrb.mxu2 %v617_v19  ;;  %916 = vmatpush.msrb.mxu3 %v618_v20  ;;  %v582_v9 = vld [vmem:[#allocation7 + $0x58] sm:$0xff]  ;;  %v579_v10 = vld [vmem:[#allocation7 + $0x40] sm:$0xff]  ;;  %v580_v11 = vld [vmem:[#allocation7 + $0x48] sm:$0xff] }
  0x4a   :  { %649 = vmatpush.msrb.mxu0 %v615_v21  ;;  %738 = vmatpush.msrb.mxu1 %v616_v22  ;;  %v6562_v17 = vld [vmem:[#allocation2 + $0x88] sm:$0xff]  ;;  %v577_v19 = vld [vmem:[#allocation7 + $0x30] sm:$0xff]  ;;  %v578_v20 = vld [vmem:[#allocation7 + $0x38] sm:$0xff] }
  0x4b   :  { %828 = vmatpush.msrb.mxu2 %v613_v24  ;;  %917 = vmatpush.msrb.mxu3 %v614_v25 }
  0x4c   :  { %650 = vmatpush.msrb.mxu0 %v611_v27  ;;  %739 = vmatpush.msrb.mxu1 %v612_v28  ;;  %v6576_v27 = vld [vmem:[#allocation2 + $0x90] sm:$0xff]  ;;  %v575_v28 = vld [vmem:[#allocation7 + $0x20] sm:$0xff] }
  0x4d   :  { %237 = vmatmul.f32.gmra.mxu0 %v6460_v18  ;;  %326 = vmatmul.f32.gmra.mxu1 %v6460_v18 }
  0x4e   :  { %415 = vmatmul.f32.gmra.mxu2 %v6460_v18  ;;  %504 = vmatmul.f32.gmra.mxu3 %v6460_v18 }
  0x4f   :  { %829 = vmatpush.msrb.mxu2 %v609_v30  ;;  %918 = vmatpush.msrb.mxu3 %v610_v31  ;;  %v576_v30 = vld [vmem:[#allocation7 + $0x28] sm:$0xff] }
  0x50   :  { %651 = vmatpush.msrb.mxu0 %v607_v32  ;;  %740 = vmatpush.msrb.mxu1 %v608_v33 }
  0x51   :  { %830 = vmatpush.msrb.mxu2 %v605_v35  ;;  %919 = vmatpush.msrb.mxu3 %v606_v36  ;;  %v6590_v36 = vld [vmem:[#allocation2 + $0x98] sm:$0xff] }
  0x52   :  { %652 = vmatpush.msrb.mxu0 %v603_v38  ;;  %741 = vmatpush.msrb.mxu1 %v604_v39  ;;  %12760 = vst [vmem:[#allocation19_spill] sm:$0xff] %v6590_v36  ;;  %v573_v38 = vld [vmem:[#allocation7 + $0x10] sm:$0xff]  ;;  %v574_v39 = vld [vmem:[#allocation7 + $0x18] sm:$0xff] }
  0x53   :  { %831 = vmatpush.msrb.mxu2 %v601_v41  ;;  %920 = vmatpush.msrb.mxu3 %v602_v42  ;;  %v571_v41 = vld [vmem:[#allocation7] sm:$0xff]  ;;  %v572_v42 = vld [vmem:[#allocation7 + $0x8] sm:$0xff] }
  0x54   :  { %653 = vmatpush.msrb.mxu0 %v599_v43  ;;  %742 = vmatpush.msrb.mxu1 %v600_v44 }
  0x55   :  { %240 = vmatmul.f32.gmra.mxu0 %v6466_v23  ;;  %329 = vmatmul.f32.gmra.mxu1 %v6466_v23 }
  0x56   :  { %418 = vmatmul.f32.gmra.mxu2 %v6466_v23  ;;  %507 = vmatmul.f32.gmra.mxu3 %v6466_v23 }
  0x57   :  { %832 = vmatpush.msrb.mxu2 %v597_v46  ;;  %921 = vmatpush.msrb.mxu3 %v598_v47 }
  0x58   :  { %654 = vmatpush.msrb.mxu0 %v595_v49  ;;  %743 = vmatpush.msrb.mxu1 %v596_v50  ;;  %v6604_v49 = vld [vmem:[#allocation2 + $0xa0] sm:$0xff] }
  0x59   :  { %833 = vmatpush.msrb.mxu2 %v593_v52  ;;  %922 = vmatpush.msrb.mxu3 %v594_v53  ;;  %12761 = vst [vmem:[#allocation20_spill] sm:$0xff] %v6604_v49  ;;  %v5368_v50 = vld [vmem:[#allocation11 + $0x178] sm:$0xff] }
  0x5a   :  { %655 = vmatpush.msrb.mxu0 %v591_v54  ;;  %744 = vmatpush.msrb.mxu1 %v592_v55  ;;  %v5384_v52 = vld [vmem:[#allocation11 + $0x1f8] sm:$0xff] }
  0x5b   :  { %834 = vmatpush.msrb.mxu2 %v589_v58  ;;  %923 = vmatpush.msrb.mxu3 %v590_v59  ;;  %v6618_v59 = vld [vmem:[#allocation2 + $0xa8] sm:$0xff] }
  0x5c   :  { %656 = vmatpush.msrb.mxu0 %v587_v60  ;;  %745 = vmatpush.msrb.mxu1 %v588_v61  ;;  %12762 = vst [vmem:[#allocation21_spill] sm:$0xff] %v6618_v59  ;;  %v5336_v60 = vld [vmem:[#allocation11 + $0x78] sm:$0xff] }
  0x5d   :  { %243 = vmatmul.f32.gmra.mxu0 %v6472_v26  ;;  %332 = vmatmul.f32.gmra.mxu1 %v6472_v26  ;;  %v5352_v61 = vld [vmem:[#allocation11 + $0xf8] sm:$0xff] }
  0x5e   :  { %421 = vmatmul.f32.gmra.mxu2 %v6472_v26  ;;  %510 = vmatmul.f32.gmra.mxu3 %v6472_v26 }
  0x5f   :  { %835 = vmatpush.msrb.mxu2 %v585_v63  ;;  %924 = vmatpush.msrb.mxu3 %v586_v1 }
  0x60   :  { %657 = vmatpush.msrb.mxu0 %v583_v3  ;;  %746 = vmatpush.msrb.mxu1 %v584_v4 }
  0x61   :  { %836 = vmatpush.msrb.mxu2 %v581_v8  ;;  %925 = vmatpush.msrb.mxu3 %v582_v9  ;;  %v6632_v8 = vld [vmem:[#allocation2 + $0xb0] sm:$0xff]  ;;  %v5367_v9 = vld [vmem:[#allocation11 + $0x170] sm:$0xff] }
  0x62   :  { %658 = vmatpush.msrb.mxu0 %v579_v10  ;;  %747 = vmatpush.msrb.mxu1 %v580_v11  ;;  %12763 = vst [vmem:[#allocation22_spill] sm:$0xff] %v6632_v8  ;;  %v5383_v10 = vld [vmem:[#allocation11 + $0x1f0] sm:$0xff] }
  0x63   :  { %837 = vmatpush.msrb.mxu2 %v577_v19  ;;  %926 = vmatpush.msrb.mxu3 %v578_v20  ;;  %v5335_v11 = vld [vmem:[#allocation11 + $0x70] sm:$0xff] }
  0x64   :  { %659 = vmatpush.msrb.mxu0 %v575_v28  ;;  %748 = vmatpush.msrb.mxu1 %v576_v30  ;;  %v5351_v19 = vld [vmem:[#allocation11 + $0xf0] sm:$0xff] }
  0x65   :  { %246 = vmatmul.f32.gmra.mxu0 %v6478_v29  ;;  %335 = vmatmul.f32.gmra.mxu1 %v6478_v29 }
  0x66   :  { %424 = vmatmul.f32.gmra.mxu2 %v6478_v29  ;;  %513 = vmatmul.f32.gmra.mxu3 %v6478_v29 }
  0x67   :  { %838 = vmatpush.msrb.mxu2 %v573_v38  ;;  %927 = vmatpush.msrb.mxu3 %v574_v39  ;;  %v6646_v39 = vld [vmem:[#allocation2 + $0xb8] sm:$0xff] }
  0x68   :  { %660 = vmatpush.msrb.mxu0 %v571_v41  ;;  %749 = vmatpush.msrb.mxu1 %v572_v42  ;;  %12764 = vst [vmem:[#allocation23_spill] sm:$0xff] %v6646_v39  ;;  %v5366_v41 = vld [vmem:[#allocation11 + $0x168] sm:$0xff] }
  0x69   :  { %5563 = vmatpush.msra.mxu2 %v5368_v50  ;;  %5652 = vmatpush.msra.mxu3 %v5384_v52  ;;  %v5382_v42 = vld [vmem:[#allocation11 + $0x1e8] sm:$0xff] }
  0x6a   :  { %5385 = vmatpush.msra.mxu0 %v5336_v60  ;;  %5474 = vmatpush.msra.mxu1 %v5352_v61 }
  0x6b   :  { %5564 = vmatpush.msra.mxu2 %v5367_v9  ;;  %5653 = vmatpush.msra.mxu3 %v5383_v10  ;;  %v5334_v9 = vld [vmem:[#allocation11 + $0x68] sm:$0xff] }
  0x6c   :  { %5386 = vmatpush.msra.mxu0 %v5335_v11  ;;  %5475 = vmatpush.msra.mxu1 %v5351_v19  ;;  %v5350_v10 = vld [vmem:[#allocation11 + $0xe8] sm:$0xff] }
  0x6d   :  { %249 = vmatmul.f32.gmra.mxu0 %v6484_v34  ;;  %338 = vmatmul.f32.gmra.mxu1 %v6484_v34 }
  0x6e   :  { %427 = vmatmul.f32.gmra.mxu2 %v6484_v34  ;;  %516 = vmatmul.f32.gmra.mxu3 %v6484_v34 }
  0x6f   :  { %5565 = vmatpush.msra.mxu2 %v5366_v41  ;;  %5654 = vmatpush.msra.mxu3 %v5382_v42 }
  0x70   :  { %5387 = vmatpush.msra.mxu0 %v5334_v9  ;;  %5476 = vmatpush.msra.mxu1 %v5350_v10  ;;  %v5381_v9 = vld [vmem:[#allocation11 + $0x1e0] sm:$0xff] }
  0x71   :  { %5655 = vmatpush.msra.mxu3 %v5381_v9  ;;  %v5349_v10 = vld [vmem:[#allocation11 + $0xe0] sm:$0xff]  ;;  %v5380_v9 = vld [vmem:[#allocation11 + $0x1d8] sm:$0xff] }
  0x72   :  { %5477 = vmatpush.msra.mxu1 %v5349_v10 }
  0x73   :  { %5656 = vmatpush.msra.mxu3 %v5380_v9 }
  0x75   :  { %252 = vmatmul.f32.gmra.mxu0 %v6490_v37  ;;  %341 = vmatmul.f32.gmra.mxu1 %v6490_v37 }
  0x76   :  { %430 = vmatmul.f32.gmra.mxu2 %v6490_v37  ;;  %519 = vmatmul.f32.gmra.mxu3 %v6490_v37 }
  0x7d   :  { %255 = vmatmul.f32.gmra.mxu0 %v6496_v40  ;;  %344 = vmatmul.f32.gmra.mxu1 %v6496_v40 }
  0x7e   :  { %433 = vmatmul.f32.gmra.mxu2 %v6496_v40  ;;  %522 = vmatmul.f32.gmra.mxu3 %v6496_v40 }
  0x85   :  { %258 = vmatmul.f32.gmra.mxu0 %v6502_v45  ;;  %347 = vmatmul.f32.gmra.mxu1 %v6502_v45 }
  0x86   :  { %436 = vmatmul.f32.gmra.mxu2 %v6502_v45  ;;  %525 = vmatmul.f32.gmra.mxu3 %v6502_v45 }
  0x8d   :  { %261 = vmatmul.f32.gmra.mxu0 %v6508_v48  ;;  %350 = vmatmul.f32.gmra.mxu1 %v6508_v48 }
  0x8e   :  { %439 = vmatmul.f32.gmra.mxu2 %v6508_v48  ;;  %528 = vmatmul.f32.gmra.mxu3 %v6508_v48 }
  0x95   :  { %264 = vmatmul.f32.gmra.mxu0 %v6514_v51  ;;  %353 = vmatmul.f32.gmra.mxu1 %v6514_v51 }
  0x96   :  { %442 = vmatmul.f32.gmra.mxu2 %v6514_v51  ;;  %531 = vmatmul.f32.gmra.mxu3 %v6514_v51 }
  0x9d   :  { %267 = vmatmul.f32.gmra.mxu0 %v6520_v56  ;;  %356 = vmatmul.f32.gmra.mxu1 %v6520_v56 }
  0x9e   :  { %445 = vmatmul.f32.gmra.mxu2 %v6520_v56  ;;  %534 = vmatmul.f32.gmra.mxu3 %v6520_v56 }
  0xa5   :  { %270 = vmatmul.f32.gmra.mxu0 %v6526_v57  ;;  %359 = vmatmul.f32.gmra.mxu1 %v6526_v57 }
  0xa6   :  { %448 = vmatmul.f32.gmra.mxu2 %v6526_v57  ;;  %537 = vmatmul.f32.gmra.mxu3 %v6526_v57 }
  0xad   :  { %273 = vmatmul.f32.gmra.mxu0 %v6532_v62  ;;  %362 = vmatmul.f32.gmra.mxu1 %v6532_v62 }
  0xae   :  { %451 = vmatmul.f32.gmra.mxu2 %v6532_v62  ;;  %540 = vmatmul.f32.gmra.mxu3 %v6532_v62 }
  0xb5   :  { %276 = vmatmul.f32.gmra.mxu0 %v6538_v2  ;;  %365 = vmatmul.f32.gmra.mxu1 %v6538_v2 }
  0xb6   :  { %454 = vmatmul.f32.gmra.mxu2 %v6538_v2  ;;  %543 = vmatmul.f32.gmra.mxu3 %v6538_v2 }
  0xba   :  { %v6544_v5 = vpop.f32.mrf.mxu0  ;;  %v6546_v6 = vpop.f32.mrf.mxu1 }
  0xbd   :  { %279 = vmatmul.f32.gmra.mxu0 %v6548_v7  ;;  %368 = vmatmul.f32.gmra.mxu1 %v6548_v7 }
  0xbe   :  { %457 = vmatmul.f32.gmra.mxu2 %v6548_v7  ;;  %546 = vmatmul.f32.gmra.mxu3 %v6548_v7 }
  0xc1   :  { %v6554_v12 = vpop.f32.mrf.mxu2  ;;  %v6556_v14 = vpop.f32.mrf.mxu3 }
  0xc2   :  { %v6558_v15 = vpop.f32.mrf.mxu0  ;;  %v6560_v16 = vpop.f32.mrf.mxu1 }
  0xc5   :  { %282 = vmatmul.f32.gmra.mxu0 %v6562_v17  ;;  %371 = vmatmul.f32.gmra.mxu1 %v6562_v17 }
  0xc6   :  { %460 = vmatmul.f32.gmra.mxu2 %v6562_v17  ;;  %549 = vmatmul.f32.gmra.mxu3 %v6562_v17 }
  0xc9   :  { %v6568_v21 = vpop.f32.mrf.mxu2  ;;  %v6570_v22 = vpop.f32.mrf.mxu3 }
  0xca   :  { %v6572_v24 = vpop.f32.mrf.mxu0  ;;  %v6574_v25 = vpop.f32.mrf.mxu1 }
  0xcd   :  { %285 = vmatmul.f32.gmra.mxu0 %v6576_v27  ;;  %374 = vmatmul.f32.gmra.mxu1 %v6576_v27 }
  0xce   :  { %463 = vmatmul.f32.gmra.mxu2 %v6576_v27  ;;  %552 = vmatmul.f32.gmra.mxu3 %v6576_v27 }
  0xd1   :  { %v6582_v31 = vpop.f32.mrf.mxu2  ;;  %v6584_v32 = vpop.f32.mrf.mxu3 }
  0xd2   :  { %v6586_v33 = vpop.f32.mrf.mxu0  ;;  %v6588_v35 = vpop.f32.mrf.mxu1 }
  0xd5   :  { %288 = vmatmul.f32.gmra.mxu0 %v6590_v36  ;;  %377 = vmatmul.f32.gmra.mxu1 %v6590_v36 }
  0xd6   :  { %466 = vmatmul.f32.gmra.mxu2 %v6590_v36  ;;  %555 = vmatmul.f32.gmra.mxu3 %v6590_v36 }
  0xd9   :  { %v6596_v43 = vpop.f32.mrf.mxu2  ;;  %v6598_v44 = vpop.f32.mrf.mxu3 }
  0xda   :  { %v6600_v46 = vpop.f32.mrf.mxu0  ;;  %v6602_v47 = vpop.f32.mrf.mxu1 }
  0xdd   :  { %291 = vmatmul.f32.gmra.mxu0 %v6604_v49  ;;  %380 = vmatmul.f32.gmra.mxu1 %v6604_v49 }
  0xde   :  { %469 = vmatmul.f32.gmra.mxu2 %v6604_v49  ;;  %558 = vmatmul.f32.gmra.mxu3 %v6604_v49 }
  0xe1   :  { %v6610_v53 = vpop.f32.mrf.mxu2  ;;  %v6612_v54 = vpop.f32.mrf.mxu3 }
  0xe2   :  { %v6614_v55 = vpop.f32.mrf.mxu0  ;;  %v6616_v58 = vpop.f32.mrf.mxu1 }
  0xe5   :  { %294 = vmatmul.f32.gmra.mxu0 %v6618_v59  ;;  %383 = vmatmul.f32.gmra.mxu1 %v6618_v59 }
  0xe6   :  { %472 = vmatmul.f32.gmra.mxu2 %v6618_v59  ;;  %561 = vmatmul.f32.gmra.mxu3 %v6618_v59 }
  0xe9   :  { %v6624_v63 = vpop.f32.mrf.mxu2  ;;  %v6626_v1 = vpop.f32.mrf.mxu3 }
  0xea   :  { %v6628_v3 = vpop.f32.mrf.mxu0  ;;  %v6630_v4 = vpop.f32.mrf.mxu1 }
  0xed   :  { %297 = vmatmul.f32.gmra.mxu0 %v6632_v8  ;;  %386 = vmatmul.f32.gmra.mxu1 %v6632_v8 }
  0xee   :  { %475 = vmatmul.f32.gmra.mxu2 %v6632_v8  ;;  %564 = vmatmul.f32.gmra.mxu3 %v6632_v8 }
  0xf1   :  { %v6638_v20 = vpop.f32.mrf.mxu2  ;;  %v6640_v28 = vpop.f32.mrf.mxu3 }
  0xf2   :  { %v6642_v30 = vpop.f32.mrf.mxu0  ;;  %v6644_v38 = vpop.f32.mrf.mxu1 }
  0xf5   :  { %300 = vmatmul.f32.gmra.mxu0 %v6646_v39  ;;  %389 = vmatmul.f32.gmra.mxu1 %v6646_v39 }
  0xf6   :  { %478 = vmatmul.f32.gmra.mxu2 %v6646_v39  ;;  %567 = vmatmul.f32.gmra.mxu3 %v6646_v39  ;;  %v5365_v39 = vld [vmem:[#allocation11 + $0x160] sm:$0xff] }
  0xf7   :  { %5566 = vmatpush.msra.mxu2 %v5365_v39 }
  0xf9   :  { %v6652_v50 = vpop.f32.mrf.mxu2  ;;  %v6654_v52 = vpop.f32.mrf.mxu3 }
  0xfa   :  { %v6656_v60 = vpop.f32.mrf.mxu0  ;;  %v6658_v61 = vpop.f32.mrf.mxu1 }
  0xfd   :  { %661 = vmatmul.f32.vlgmr.msrb.gmra.mxu0 %v6448_v0  ;;  %750 = vmatmul.f32.vlgmr.msrb.gmra.mxu1 %v6448_v0 }
  0xfe   :  { %839 = vmatmul.f32.vlgmr.msrb.gmra.mxu2 %v6448_v0  ;;  %928 = vmatmul.f32.vlgmr.msrb.gmra.mxu3 %v6448_v0  ;;  %v5333_v0 = vld [vmem:[#allocation11 + $0x60] sm:$0xff] }
  0xff   :  { %5388 = vmatpush.msra.mxu0 %v5333_v0 }
 0x101   :  { %v6664_v11 = vpop.f32.mrf.mxu2  ;;  %v6666_v19 = vpop.f32.mrf.mxu3 }
 0x102   :  { %v6668_v41 = vpop.f32.mrf.mxu0  ;;  %v6670_v42 = vpop.f32.mrf.mxu1 }
 0x105   :  { %664 = vmatmul.f32.gmra.mxu0 %v6454_v13  ;;  %753 = vmatmul.f32.gmra.mxu1 %v6454_v13 }
 0x106   :  { %842 = vmatmul.f32.gmra.mxu2 %v6454_v13  ;;  %931 = vmatmul.f32.gmra.mxu3 %v6454_v13  ;;  %v5364_v13 = vld [vmem:[#allocation11 + $0x158] sm:$0xff] }
 0x107   :  { %5567 = vmatpush.msra.mxu2 %v5364_v13 }
 0x109   :  { %v6676_v8 = vpop.f32.mrf.mxu2  ;;  %v6678_v59 = vpop.f32.mrf.mxu3 }
 0x10a   :  { %12765 = vst [vmem:[#allocation24_spill] sm:$0xff] %v6678_v59  ;;  %v6680_v49 = vpop.f32.mrf.mxu0  ;;  %v6682_v39 = vpop.f32.mrf.mxu1  ;;  %v5348_v59 = vld [vmem:[#allocation11 + $0xd8] sm:$0xff] }
 0x10b   :  { %12766 = vst [vmem:[#allocation25_spill] sm:$0xff] %v6680_v49  ;;  %5478 = vmatpush.msra.mxu1 %v5348_v59  ;;  %v5347_v59 = vld [vmem:[#allocation11 + $0xd0] sm:$0xff] }
 0x10c   :  { %12767 = vst [vmem:[#allocation26_spill] sm:$0xff] %v6682_v39  ;;  %v5332_v39 = vld [vmem:[#allocation11 + $0x58] sm:$0xff] }
 0x10d   :  { %667 = vmatmul.f32.gmra.mxu0 %v6460_v18  ;;  %756 = vmatmul.f32.gmra.mxu1 %v6460_v18 }
 0x10e   :  { %845 = vmatmul.f32.gmra.mxu2 %v6460_v18  ;;  %934 = vmatmul.f32.gmra.mxu3 %v6460_v18 }
 0x10f   :  { %5389 = vmatpush.msra.mxu0 %v5332_v39  ;;  %v5379_v39 = vld [vmem:[#allocation11 + $0x1d0] sm:$0xff]  ;;  %5479 = vmatpush.msra.mxu1 %v5347_v59 }
 0x110   :  { %5657 = vmatpush.msra.mxu3 %v5379_v39  ;;  %v5378_v39 = vld [vmem:[#allocation11 + $0x1c8] sm:$0xff] }
 0x111   :  { %v6688_v0 = vpop.f32.mrf.mxu2  ;;  %v6690_v10 = vpop.f32.mrf.mxu3 }
 0x112   :  { %v6692_v36 = vpop.f32.mrf.mxu0  ;;  %v6694_v49 = vpop.f32.mrf.mxu1  ;;  %5658 = vmatpush.msra.mxu3 %v5378_v39 }
 0x113   :  { %12768 = vst [vmem:[#allocation27_spill] sm:$0xff] %v6692_v36 }
 0x114   :  { %12769 = vst [vmem:[#allocation28_spill] sm:$0xff] %v6694_v49  ;;  %v5363_v49 = vld [vmem:[#allocation11 + $0x150] sm:$0xff] }
 0x115   :  { %670 = vmatmul.f32.gmra.mxu0 %v6466_v23  ;;  %759 = vmatmul.f32.gmra.mxu1 %v6466_v23 }
 0x116   :  { %848 = vmatmul.f32.gmra.mxu2 %v6466_v23  ;;  %937 = vmatmul.f32.gmra.mxu3 %v6466_v23  ;;  %v5331_v23 = vld [vmem:[#allocation11 + $0x50] sm:$0xff] }
 0x117   :  { %5568 = vmatpush.msra.mxu2 %v5363_v49  ;;  %5390 = vmatpush.msra.mxu0 %v5331_v23 }
 0x119   :  { %v6700_v18 = vpop.f32.mrf.mxu2  ;;  %v6702_v13 = vpop.f32.mrf.mxu3 }
 0x11a   :  { %12770 = vst [vmem:[#allocation29_spill] sm:$0xff] %v6702_v13  ;;  %v6704_v9 = vpop.f32.mrf.mxu0  ;;  %v6706_v36 = vpop.f32.mrf.mxu1 }
 0x11b   :  { %12771 = vst [vmem:[#allocation30_spill] sm:$0xff] %v6704_v9 }
 0x11c   :  { %12772 = vst [vmem:[#allocation31_spill] sm:$0xff] %v6706_v36 }
 0x11d   :  { %673 = vmatmul.f32.gmra.mxu0 %v6472_v26  ;;  %762 = vmatmul.f32.gmra.mxu1 %v6472_v26 }
 0x11e   :  { %851 = vmatmul.f32.gmra.mxu2 %v6472_v26  ;;  %940 = vmatmul.f32.gmra.mxu3 %v6472_v26  ;;  %v5362_v26 = vld [vmem:[#allocation11 + $0x148] sm:$0xff] }
 0x11f   :  { %5569 = vmatpush.msra.mxu2 %v5362_v26 }
 0x121   :  { %v6712_v13 = vpop.f32.mrf.mxu2  ;;  %v6714_v9 = vpop.f32.mrf.mxu3 }
 0x122   :  { %12773 = vst [vmem:[#allocation32_spill] sm:$0xff] %v6712_v13  ;;  %v6716_v36 = vpop.f32.mrf.mxu0  ;;  %v6718_v49 = vpop.f32.mrf.mxu1  ;;  %v5346_v13 = vld [vmem:[#allocation11 + $0xc8] sm:$0xff] }
 0x123   :  { %12774 = vst [vmem:[#allocation33_spill] sm:$0xff] %v6714_v9  ;;  %5480 = vmatpush.msra.mxu1 %v5346_v13  ;;  %v5345_v13 = vld [vmem:[#allocation11 + $0xc0] sm:$0xff] }
 0x124   :  { %12775 = vst [vmem:[#allocation34_spill] sm:$0xff] %v6716_v36 }
 0x125   :  { %12776 = vst [vmem:[#allocation35_spill] sm:$0xff] %v6718_v49  ;;  %676 = vmatmul.f32.gmra.mxu0 %v6478_v29  ;;  %765 = vmatmul.f32.gmra.mxu1 %v6478_v29  ;;  %v5330_v49 = vld [vmem:[#allocation11 + $0x48] sm:$0xff] }
 0x126   :  { %854 = vmatmul.f32.gmra.mxu2 %v6478_v29  ;;  %943 = vmatmul.f32.gmra.mxu3 %v6478_v29 }
 0x127   :  { %5391 = vmatpush.msra.mxu0 %v5330_v49  ;;  %v5377_v49 = vld [vmem:[#allocation11 + $0x1c0] sm:$0xff]  ;;  %5481 = vmatpush.msra.mxu1 %v5345_v13 }
 0x128   :  { %5659 = vmatpush.msra.mxu3 %v5377_v49  ;;  %v5376_v49 = vld [vmem:[#allocation11 + $0x1b8] sm:$0xff] }
 0x129   :  { %v6724_v23 = vpop.f32.mrf.mxu2  ;;  %v6726_v59 = vpop.f32.mrf.mxu3 }
 0x12a   :  { %v6728_v9 = vpop.f32.mrf.mxu0  ;;  %v6730_v36 = vpop.f32.mrf.mxu1  ;;  %5660 = vmatpush.msra.mxu3 %v5376_v49 }
 0x12b   :  { %12777 = vst [vmem:[#allocation36_spill] sm:$0xff] %v6728_v9 }
 0x12c   :  { %12778 = vst [vmem:[#allocation37_spill] sm:$0xff] %v6730_v36  ;;  %v5361_v36 = vld [vmem:[#allocation11 + $0x140] sm:$0xff] }
 0x12d   :  { %679 = vmatmul.f32.gmra.mxu0 %v6484_v34  ;;  %768 = vmatmul.f32.gmra.mxu1 %v6484_v34 }
 0x12e   :  { %857 = vmatmul.f32.gmra.mxu2 %v6484_v34  ;;  %946 = vmatmul.f32.gmra.mxu3 %v6484_v34  ;;  %v5329_v34 = vld [vmem:[#allocation11 + $0x40] sm:$0xff] }
 0x12f   :  { %5570 = vmatpush.msra.mxu2 %v5361_v36  ;;  %5392 = vmatpush.msra.mxu0 %v5329_v34 }
 0x131   :  { %v6736_v29 = vpop.f32.mrf.mxu2  ;;  %v6738_v26 = vpop.f32.mrf.mxu3 }
 0x132   :  { %12779 = vst [vmem:[#allocation38_spill] sm:$0xff] %v6738_v26  ;;  %v6740_v39 = vpop.f32.mrf.mxu0  ;;  %v6742_v9 = vpop.f32.mrf.mxu1 }
 0x133   :  { %12780 = vst [vmem:[#allocation39_spill] sm:$0xff] %v6740_v39 }
 0x134   :  { %12781 = vst [vmem:[#allocation40_spill] sm:$0xff] %v6742_v9 }
 0x135   :  { %682 = vmatmul.f32.gmra.mxu0 %v6490_v37  ;;  %771 = vmatmul.f32.gmra.mxu1 %v6490_v37 }
 0x136   :  { %860 = vmatmul.f32.gmra.mxu2 %v6490_v37  ;;  %949 = vmatmul.f32.gmra.mxu3 %v6490_v37  ;;  %v5360_v37 = vld [vmem:[#allocation11 + $0x138] sm:$0xff] }
 0x137   :  { %5571 = vmatpush.msra.mxu2 %v5360_v37 }
 0x139   :  { %v6748_v26 = vpop.f32.mrf.mxu2  ;;  %v6750_v39 = vpop.f32.mrf.mxu3 }
 0x13a   :  { %12782 = vst [vmem:[#allocation41_spill] sm:$0xff] %v6748_v26  ;;  %v6752_v9 = vpop.f32.mrf.mxu0  ;;  %v6754_v36 = vpop.f32.mrf.mxu1  ;;  %v5344_v26 = vld [vmem:[#allocation11 + $0xb8] sm:$0xff] }
 0x13b   :  { %12783 = vst [vmem:[#allocation42_spill] sm:$0xff] %v6750_v39  ;;  %5482 = vmatpush.msra.mxu1 %v5344_v26  ;;  %v5343_v26 = vld [vmem:[#allocation11 + $0xb0] sm:$0xff] }
 0x13c   :  { %12784 = vst [vmem:[#allocation43_spill] sm:$0xff] %v6752_v9 }
 0x13d   :  { %12785 = vst [vmem:[#allocation44_spill] sm:$0xff] %v6754_v36  ;;  %685 = vmatmul.f32.gmra.mxu0 %v6496_v40  ;;  %774 = vmatmul.f32.gmra.mxu1 %v6496_v40  ;;  %v5328_v36 = vld [vmem:[#allocation11 + $0x38] sm:$0xff] }
 0x13e   :  { %863 = vmatmul.f32.gmra.mxu2 %v6496_v40  ;;  %952 = vmatmul.f32.gmra.mxu3 %v6496_v40 }
 0x13f   :  { %5393 = vmatpush.msra.mxu0 %v5328_v36  ;;  %v5375_v36 = vld [vmem:[#allocation11 + $0x1b0] sm:$0xff]  ;;  %5483 = vmatpush.msra.mxu1 %v5343_v26 }
 0x140   :  { %5661 = vmatpush.msra.mxu3 %v5375_v36  ;;  %v5374_v36 = vld [vmem:[#allocation11 + $0x1a8] sm:$0xff] }
 0x141   :  { %v6760_v34 = vpop.f32.mrf.mxu2  ;;  %v6762_v13 = vpop.f32.mrf.mxu3 }
 0x142   :  { %12786 = vst [vmem:[#allocation45_spill] sm:$0xff] %v6762_v13  ;;  %v6764_v39 = vpop.f32.mrf.mxu0  ;;  %v6766_v9 = vpop.f32.mrf.mxu1  ;;  %5662 = vmatpush.msra.mxu3 %v5374_v36 }
 0x143   :  { %12787 = vst [vmem:[#allocation46_spill] sm:$0xff] %v6764_v39 }
 0x144   :  { %12788 = vst [vmem:[#allocation47_spill] sm:$0xff] %v6766_v9  ;;  %v5359_v9 = vld [vmem:[#allocation11 + $0x130] sm:$0xff] }
 0x145   :  { %688 = vmatmul.f32.gmra.mxu0 %v6502_v45  ;;  %777 = vmatmul.f32.gmra.mxu1 %v6502_v45 }
 0x146   :  { %866 = vmatmul.f32.gmra.mxu2 %v6502_v45  ;;  %955 = vmatmul.f32.gmra.mxu3 %v6502_v45  ;;  %v5327_v45 = vld [vmem:[#allocation11 + $0x30] sm:$0xff] }
 0x147   :  { %5572 = vmatpush.msra.mxu2 %v5359_v9  ;;  %5394 = vmatpush.msra.mxu0 %v5327_v45 }
 0x149   :  { %v6772_v40 = vpop.f32.mrf.mxu2  ;;  %v6774_v37 = vpop.f32.mrf.mxu3 }
 0x14a   :  { %12789 = vst [vmem:[#allocation48_spill] sm:$0xff] %v6772_v40  ;;  %v6776_v49 = vpop.f32.mrf.mxu0  ;;  %v6778_v39 = vpop.f32.mrf.mxu1 }
 0x14b   :  { %12790 = vst [vmem:[#allocation49_spill] sm:$0xff] %v6774_v37 }
 0x14c   :  { %12791 = vst [vmem:[#allocation50_spill] sm:$0xff] %v6776_v49 }
 0x14d   :  { %12792 = vst [vmem:[#allocation51_spill] sm:$0xff] %v6778_v39  ;;  %691 = vmatmul.f32.gmra.mxu0 %v6508_v48  ;;  %780 = vmatmul.f32.gmra.mxu1 %v6508_v48 }
 0x14e   :  { %869 = vmatmul.f32.gmra.mxu2 %v6508_v48  ;;  %958 = vmatmul.f32.gmra.mxu3 %v6508_v48  ;;  %v5358_v48 = vld [vmem:[#allocation11 + $0x128] sm:$0xff] }
 0x14f   :  { %5573 = vmatpush.msra.mxu2 %v5358_v48 }
 0x151   :  { %v6784_v37 = vpop.f32.mrf.mxu2  ;;  %v6786_v49 = vpop.f32.mrf.mxu3 }
 0x152   :  { %12793 = vst [vmem:[#allocation52_spill] sm:$0xff] %v6784_v37  ;;  %v6788_v39 = vpop.f32.mrf.mxu0  ;;  %v6790_v9 = vpop.f32.mrf.mxu1  ;;  %v5342_v37 = vld [vmem:[#allocation11 + $0xa8] sm:$0xff] }
 0x153   :  { %12794 = vst [vmem:[#allocation53_spill] sm:$0xff] %v6786_v49  ;;  %5484 = vmatpush.msra.mxu1 %v5342_v37 }
 0x154   :  { %12795 = vst [vmem:[#allocation54_spill] sm:$0xff] %v6788_v39 }
 0x155   :  { %12796 = vst [vmem:[#allocation55_spill] sm:$0xff] %v6790_v9  ;;  %694 = vmatmul.f32.gmra.mxu0 %v6514_v51  ;;  %783 = vmatmul.f32.gmra.mxu1 %v6514_v51  ;;  %v5326_v9 = vld [vmem:[#allocation11 + $0x28] sm:$0xff] }
 0x156   :  { %872 = vmatmul.f32.gmra.mxu2 %v6514_v51  ;;  %961 = vmatmul.f32.gmra.mxu3 %v6514_v51 }
 0x157   :  { %5395 = vmatpush.msra.mxu0 %v5326_v9 }
 0x159   :  { %v6796_v45 = vpop.f32.mrf.mxu2  ;;  %v6798_v26 = vpop.f32.mrf.mxu3 }
 0x15a   :  { %12797 = vst [vmem:[#allocation56_spill] sm:$0xff] %v6796_v45  ;;  %v6800_v49 = vpop.f32.mrf.mxu0  ;;  %v6802_v39 = vpop.f32.mrf.mxu1 }
 0x15b   :  { %12798 = vst [vmem:[#allocation57_spill] sm:$0xff] %v6798_v26 }
 0x15c   :  { %12799 = vst [vmem:[#allocation58_spill] sm:$0xff] %v6800_v49 }
 0x15d   :  { %12800 = vst [vmem:[#allocation59_spill] sm:$0xff] %v6802_v39  ;;  %697 = vmatmul.f32.gmra.mxu0 %v6520_v56  ;;  %786 = vmatmul.f32.gmra.mxu1 %v6520_v56 }
 0x15e   :  { %875 = vmatmul.f32.gmra.mxu2 %v6520_v56  ;;  %964 = vmatmul.f32.gmra.mxu3 %v6520_v56 }
 0x161   :  { %v6808_v51 = vpop.f32.mrf.mxu2  ;;  %v6810_v48 = vpop.f32.mrf.mxu3 }
 0x162   :  { %12801 = vst [vmem:[#allocation60_spill] sm:$0xff] %v6808_v51  ;;  %v6812_v36 = vpop.f32.mrf.mxu0  ;;  %v6814_v49 = vpop.f32.mrf.mxu1 }
 0x163   :  { %12802 = vst [vmem:[#allocation61_spill] sm:$0xff] %v6810_v48 }
 0x164   :  { %12803 = vst [vmem:[#allocation62_spill] sm:$0xff] %v6812_v36 }
 0x165   :  { %12804 = vst [vmem:[#allocation63_spill] sm:$0xff] %v6814_v49  ;;  %700 = vmatmul.f32.gmra.mxu0 %v6526_v57  ;;  %789 = vmatmul.f32.gmra.mxu1 %v6526_v57 }
 0x166   :  { %878 = vmatmul.f32.gmra.mxu2 %v6526_v57  ;;  %967 = vmatmul.f32.gmra.mxu3 %v6526_v57 }
 0x169   :  { %v6820_v37 = vpop.f32.mrf.mxu2  ;;  %v6822_v9 = vpop.f32.mrf.mxu3 }
 0x16a   :  { %12805 = vst [vmem:[#allocation64_spill] sm:$0xff] %v6820_v37  ;;  %v6824_v56 = vpop.f32.mrf.mxu0  ;;  %v6826_v51 = vpop.f32.mrf.mxu1 }
 0x16b   :  { %12806 = vst [vmem:[#allocation65_spill] sm:$0xff] %v6822_v9  ;;  %v635_v9 = vld [vmem:[#allocation10] sm:$0xf] }
 0x16c   :  { %12807 = vst [vmem:[#allocation66_spill] sm:$0xff] %v6824_v56  ;;  %v6844_v56 = vperm.slane %v635_v9, 0 }
 0x16d   :  { %12808 = vst [vmem:[#allocation67_spill] sm:$0xff] %v6826_v51  ;;  %703 = vmatmul.f32.gmra.mxu0 %v6532_v62  ;;  %792 = vmatmul.f32.gmra.mxu1 %v6532_v62  ;;  %v205_v51 = vld [vmem:[#allocation8] sm:$0xf] }
 0x16e   :  { %881 = vmatmul.f32.gmra.mxu2 %v6532_v62  ;;  %970 = vmatmul.f32.gmra.mxu3 %v6532_v62  ;;  %v6846_v62 = vperm.slane %v635_v9, 1  ;;  %v6856_v48 = vperm.slane %v205_v51, 2  ;;  %v6858_v39 = vperm.slane %v205_v51, 3 }
 0x170   :  { %12817 = vst [vmem:[#allocation76_spill] sm:$0xff] %v6856_v48 }
 0x171   :  { %v6832_v49 = vpop.f32.mrf.mxu2  ;;  %v6834_v36 = vpop.f32.mrf.mxu3  ;;  %12818 = vst [vmem:[#allocation77_spill] sm:$0xff] %v6858_v39 }
 0x172   :  { %12809 = vst [vmem:[#allocation68_spill] sm:$0xff] %v6832_v49  ;;  %v6836_v57 = vpop.f32.mrf.mxu0  ;;  %v6838_v37 = vpop.f32.mrf.mxu1  ;;  %v6848_v49 = vperm.slane %v205_v51, 0 }
 0x173   :  { %12810 = vst [vmem:[#allocation69_spill] sm:$0xff] %v6834_v36  ;;  %v6850_v36 = vperm.slane %v205_v51, 1 }
 0x174   :  { %12811 = vst [vmem:[#allocation70_spill] sm:$0xff] %v6836_v57  ;;  %v6868_v13 = vadd.f32 %v6544_v5, %v6848_v49  ;;  %v6888_v5 = vadd.f32 %v6556_v14, %v6858_v39 }
 0x175   :  { %12812 = vst [vmem:[#allocation71_spill] sm:$0xff] %v6838_v37  ;;  %706 = vmatmul.f32.gmra.mxu0 %v6538_v2  ;;  %795 = vmatmul.f32.gmra.mxu1 %v6538_v2 }
 0x176   :  { %884 = vmatmul.f32.gmra.mxu2 %v6538_v2  ;;  %973 = vmatmul.f32.gmra.mxu3 %v6538_v2  ;;  %12813 = vst [vmem:[#allocation72_spill] sm:$0xff] %v6848_v49 }
 0x177   :  { %12814 = vst [vmem:[#allocation73_spill] sm:$0xff] %v6850_v36 }
 0x178   :  { %12820 = vst [vmem:[#allocation79_spill] sm:$0xff] %v6888_v5 }
 0x179   :  { %v6852_v57 = vpop.f32.mrf.mxu2  ;;  %v6854_v37 = vpop.f32.mrf.mxu3 }
 0x17a   :  { %12815 = vst [vmem:[#allocation74_spill] sm:$0xff] %v6852_v57  ;;  %v662_v26 = vpop.f32.mrf.mxu0  ;;  %v751_v45 = vpop.f32.mrf.mxu1  ;;  %v6872_v57 = vadd.f32 %v6546_v6, %v6850_v36  ;;  %v6892_v6 = vperm.slane %v635_v9, 2 }
 0x17b   :  { %12816 = vst [vmem:[#allocation75_spill] sm:$0xff] %v6854_v37  ;;  %v6861_v2 = vadd.f32 %v662_v26, %v6844_v56  ;;  %v6864_v40 = vadd.f32 %v751_v45, %v6846_v62  ;;  %v6884_v45 = vadd.f32 %v6554_v12, %v6856_v48  ;;  %v6894_v26 = vperm.slane %v635_v9, 3 }
 0x17c   :  { %12819 = vst [vmem:[#allocation78_spill] sm:$0xff] %v6872_v57  ;;  %v6898_v57 = vadd.f32 %v6558_v15, %v6848_v49  ;;  %v6902_v12 = vadd.f32 %v6560_v16, %v6850_v36  ;;  %v6914_v9 = vadd.f32 %v6570_v22, %v6858_v39  ;;  %v6918_v15 = vadd.f32 %v6572_v24, %v6848_v49 }
 0x17d   :  { %v6875_v37 = vmul.f32 0.70710677, %v6861_v2  ;;  %v6878_v51 = vmul.f32 0.70710677, %v6864_v40  ;;  %709 = vmatmul.f32.gmra.mxu0 %v6548_v7  ;;  %798 = vmatmul.f32.gmra.mxu1 %v6548_v7  ;;  %v6922_v16 = vadd.f32 %v6574_v25, %v6850_v36  ;;  %v6938_v24 = vadd.f32 %v6586_v33, %v6848_v49 }
 0x17e   :  { %887 = vmatmul.f32.gmra.mxu2 %v6548_v7  ;;  %976 = vmatmul.f32.gmra.mxu3 %v6548_v7  ;;  %12821 = vst [vmem:[#allocation80_spill] sm:$0xff] %v6898_v57  ;;  %v6910_v7 = vadd.f32 %v6568_v21, %v6856_v48  ;;  %v6930_v21 = vadd.f32 %v6584_v32, %v6858_v39 }
 0x17f   :  { %12822 = vst [vmem:[#allocation81_spill] sm:$0xff] %v6902_v12  ;;  %v1193_v14 = vmul.f32 %v6875_v37, %v6875_v37  ;;  %v1233_v5 = vmul.f32 %v6878_v51, %v6878_v51  ;;  %v6926_v12 = vadd.f32 %v6582_v31, %v6856_v48  ;;  %v6942_v25 = vadd.f32 %v6588_v35, %v6850_v36 }
 0x180   :  { %12823 = vst [vmem:[#allocation82_spill] sm:$0xff] %v6910_v7  ;;  %v6960_v33 = vadd.f32 %v6600_v46, %v6848_v49  ;;  %v6981_v46 = vadd.f32 %v6614_v55, %v6848_v49 }
 0x181   :  { %12824 = vst [vmem:[#allocation83_spill] sm:$0xff] %v6914_v9  ;;  %v6932_v7 = vmin.f32 %v1193_v14, 16.0  ;;  %v6934_v22 = vmin.f32 %v1233_v5, 16.0  ;;  %v840_v9 = vpop.f32.mrf.mxu2  ;;  %v929_v57 = vpop.f32.mrf.mxu3  ;;  %v6952_v5 = vadd.f32 %v6596_v43, %v6856_v48  ;;  %v6956_v14 = vadd.f32 %v6598_v44, %v6858_v39 }
 0x182   :  { %12825 = vst [vmem:[#allocation84_spill] sm:$0xff] %v6918_v15  ;;  %v6945_v31 = vadd.f32 %v840_v9, %v6892_v6  ;;  %v6948_v32 = vadd.f32 %v929_v57, %v6894_v26  ;;  %v6965_v9 = vadd.f32 %v6602_v47, %v6850_v36  ;;  %v6969_v57 = vadd.f32 %v6610_v53, %v6856_v48 }
 0x183   :  { %12826 = vst [vmem:[#allocation85_spill] sm:$0xff] %v6922_v16  ;;  %v1206_v35 = vmul.f32 3.8918573e-05, %v6932_v7  ;;  %v1246_v43 = vmul.f32 3.8918573e-05, %v6934_v22  ;;  %v6977_v44 = vadd.f32 %v6612_v54, %v6858_v39  ;;  %v6985_v47 = vadd.f32 %v6616_v58, %v6850_v36 }
 0x184   :  { %12827 = vst [vmem:[#allocation86_spill] sm:$0xff] %v6926_v12  ;;  %v6991_v53 = vadd.f32 %v6624_v63, %v6856_v48  ;;  %v6996_v55 = vmul.f32 0.70710677, %v6948_v32  ;;  %v7002_v58 = vadd.f32 %v6626_v1, %v6858_v39  ;;  %v7010_v63 = vadd.f32 %v6630_v4, %v6850_v36 }
 0x185   :  { %12828 = vst [vmem:[#allocation87_spill] sm:$0xff] %v6930_v21  ;;  %712 = vmatmul.f32.gmra.mxu0 %v6562_v17  ;;  %801 = vmatmul.f32.gmra.mxu1 %v6562_v17  ;;  %v7028_v4 = vadd.f32 %v6642_v30, %v6848_v49  ;;  %v7046_v30 = vadd.f32 %v6656_v60, %v6848_v49 }
 0x186   :  { %12829 = vst [vmem:[#allocation88_spill] sm:$0xff] %v6938_v24  ;;  %890 = vmatmul.f32.gmra.mxu2 %v6562_v17  ;;  %979 = vmatmul.f32.gmra.mxu3 %v6562_v17  ;;  %v1313_v1 = vmul.f32 %v6996_v55, %v6996_v55  ;;  %v7062_v60 = vadd.f32 %v6666_v19, %v6858_v39 }
 0x187   :  { %12830 = vst [vmem:[#allocation89_spill] sm:$0xff] %v6942_v25  ;;  %v5341_v25 = vld [vmem:[#allocation11 + $0xa0] sm:$0xff] }
 0x188   :  { %12831 = vst [vmem:[#allocation90_spill] sm:$0xff] %v6952_v5  ;;  %v6973_v5 = vmul.f32 0.70710677, %v6945_v31  ;;  %5485 = vmatpush.msra.mxu1 %v5341_v25 }
 0x189   :  { %12832 = vst [vmem:[#allocation91_spill] sm:$0xff] %v6956_v14  ;;  %v5325_v14 = vld [vmem:[#allocation11 + $0x20] sm:$0xff] }
 0x18a   :  { %12833 = vst [vmem:[#allocation92_spill] sm:$0xff] %v6960_v33  ;;  %v1273_v54 = vmul.f32 %v6973_v5, %v6973_v5  ;;  %5396 = vmatpush.msra.mxu0 %v5325_v14 }
 0x18b   :  { %12834 = vst [vmem:[#allocation93_spill] sm:$0xff] %v6965_v9  ;;  %v1207_v9 = vadd.f32 0.001143296, %v1206_v35  ;;  %v7006_v35 = vadd.f32 %v6628_v3, %v6848_v49  ;;  %v7024_v3 = vadd.f32 %v6640_v28, %v6858_v39  ;;  %v7042_v28 = vadd.f32 %v6654_v52, %v6858_v39 }
 0x18c   :  { %12835 = vst [vmem:[#allocation94_spill] sm:$0xff] %v6969_v57  ;;  %v1247_v57 = vadd.f32 0.001143296, %v1246_v43 }
 0x18d   :  { %12836 = vst [vmem:[#allocation95_spill] sm:$0xff] %v6977_v44  ;;  %v1208_v43 = vmul.f32 %v1207_v9, %v6932_v7  ;;  %v7032_v9 = vadd.f32 %v6644_v38, %v6850_v36  ;;  %v1235_v38 = vmul.f32 2.1237322e-06, %v6934_v22  ;;  %715 = vmatmul.f32.gmra.mxu0 %v6576_v27  ;;  %804 = vmatmul.f32.gmra.mxu1 %v6576_v27 }
 0x18e   :  { %12837 = vst [vmem:[#allocation96_spill] sm:$0xff] %v6981_v46  ;;  %v1248_v17 = vmul.f32 %v1247_v57, %v6934_v22  ;;  %v7036_v57 = vadd.f32 %v6652_v50, %v6856_v48  ;;  %v7053_v50 = vadd.f32 %v6658_v61, %v6850_v36  ;;  %893 = vmatmul.f32.gmra.mxu2 %v6576_v27  ;;  %v932_v46 = vpop.f32.mrf.mxu3 }
 0x18f   :  { %12838 = vst [vmem:[#allocation97_spill] sm:$0xff] %v6985_v47  ;;  %v7018_v47 = vmin.f32 %v1273_v54, 16.0  ;;  %v1195_v54 = vmul.f32 2.1237322e-06, %v6932_v7  ;;  %982 = vmatmul.f32.gmra.mxu3 %v6576_v27  ;;  %v7100_v27 = vadd.f32 %v6688_v0, %v6856_v48 }
 0x190   :  { %12839 = vst [vmem:[#allocation98_spill] sm:$0xff] %v6991_v53  ;;  %v7015_v53 = vadd.f32 %v6638_v20, %v6856_v48  ;;  %v1209_v20 = vadd.f32 0.014752088, %v1208_v43  ;;  %v7049_v43 = vmin.f32 %v1313_v1, 16.0  ;;  %v7066_v1 = vadd.f32 %v6668_v41, %v6848_v49 }
 0x191   :  { %12840 = vst [vmem:[#allocation99_spill] sm:$0xff] %v7002_v58  ;;  %v1196_v61 = vadd.f32 0.00028619796, %v1195_v54  ;;  %v7083_v41 = vadd.f32 %v6676_v8, %v6856_v48  ;;  %v1236_v54 = vadd.f32 0.00028619796, %v1235_v38  ;;  %v12864_v38 = vld [vmem:[#allocation27_spill] sm:$0xff] }
 0x192   :  { %12841 = vst [vmem:[#allocation100_spill] sm:$0xff] %v7006_v35  ;;  %v1210_v52 = vmul.f32 %v1209_v20, %v6932_v7 }
 0x193   :  { %12842 = vst [vmem:[#allocation101_spill] sm:$0xff] %v7010_v63  ;;  %v1286_v63 = vmul.f32 3.8918573e-05, %v7018_v47  ;;  %v1197_v0 = vmul.f32 %v1196_v61, %v6932_v7  ;;  %v12875_v61 = vld [vmem:[#allocation32_spill] sm:$0xff] }
 0x194   :  { %12843 = vst [vmem:[#allocation102_spill] sm:$0xff] %v7015_v53  ;;  %v1249_v53 = vadd.f32 0.014752088, %v1248_v17  ;;  %v7057_v17 = vadd.f32 %v6664_v11, %v6856_v48  ;;  %v1211_v8 = vadd.f32 0.112945676, %v1210_v52 }
 0x195   :  { %12844 = vst [vmem:[#allocation103_spill] sm:$0xff] %v7024_v3  ;;  %v12938_v3 = vld [vmem:[#allocation60_spill] sm:$0xff] }
 0x196   :  { %12845 = vst [vmem:[#allocation104_spill] sm:$0xff] %v7028_v4  ;;  %v1250_v11 = vmul.f32 %v1249_v53, %v6934_v22  ;;  %v1326_v53 = vmul.f32 3.8918573e-05, %v7049_v43 }
 0x197   :  { %12846 = vst [vmem:[#allocation105_spill] sm:$0xff] %v7032_v9  ;;  %v665_v9 = vpop.f32.mrf.mxu0 }
 0x198   :  { %12847 = vst [vmem:[#allocation106_spill] sm:$0xff] %v7036_v57  ;;  %v7077_v19 = vadd.f32 %v665_v9, %v6844_v56  ;;  %v12860_v9 = vld [vmem:[#allocation26_spill] sm:$0xff]  ;;  %v1251_v52 = vadd.f32 0.112945676, %v1250_v11  ;;  %v7137_v11 = vadd.f32 %v12875_v61, %v6856_v48  ;;  %v12882_v61 = vld [vmem:[#allocation35_spill] sm:$0xff] }
 0x199   :  { %12848 = vst [vmem:[#allocation107_spill] sm:$0xff] %v7042_v28  ;;  %v1287_v28 = vadd.f32 0.001143296, %v1286_v63  ;;  %v12936_v57 = vld [vmem:[#allocation59_spill] sm:$0xff] }
 0x19a   :  { %12849 = vst [vmem:[#allocation108_spill] sm:$0xff] %v7046_v30  ;;  %v7070_v30 = vadd.f32 %v6670_v42, %v6850_v36  ;;  %v12856_v42 = vld [vmem:[#allocation24_spill] sm:$0xff] }
 0x19b   :  { %12850 = vst [vmem:[#allocation109_spill] sm:$0xff] %v7053_v50  ;;  %v1288_v63 = vmul.f32 %v1287_v28, %v7018_v47  ;;  %v7087_v20 = vadd.f32 %v12856_v42, %v6858_v39  ;;  %v12858_v28 = vld [vmem:[#allocation25_spill] sm:$0xff]  ;;  %v7104_v42 = vadd.f32 %v6690_v10, %v6858_v39 }
 0x19c   :  { %12851 = vst [vmem:[#allocation110_spill] sm:$0xff] %v7057_v17  ;;  %v12869_v10 = vld [vmem:[#allocation29_spill] sm:$0xff]  ;;  %v843_v17 = vpop.f32.mrf.mxu2 }
 0x19d   :  { %12852 = vst [vmem:[#allocation111_spill] sm:$0xff] %v7062_v60 }
 0x19e   :  { %12853 = vst [vmem:[#allocation112_spill] sm:$0xff] %v7066_v1  ;;  %v7096_v1 = vadd.f32 %v12860_v9, %v6850_v36  ;;  %v7116_v9 = vadd.f32 %v6700_v18, %v6856_v48  ;;  %v12873_v18 = vld [vmem:[#allocation31_spill] sm:$0xff] }
 0x19f   :  { %12854 = vst [vmem:[#allocation113_spill] sm:$0xff] %v7070_v30  ;;  %v7092_v30 = vadd.f32 %v12858_v28, %v6848_v49  ;;  %v12866_v28 = vld [vmem:[#allocation28_spill] sm:$0xff] }
 0x1a0   :  { %12855 = vst [vmem:[#allocation114_spill] sm:$0xff] %v7083_v41  ;;  %v1289_v41 = vadd.f32 0.014752088, %v1288_v63  ;;  %v1237_v63 = vmul.f32 %v1236_v54, %v6934_v22 }
 0x1a1   :  { %12857 = vst [vmem:[#allocation24_spill] sm:$0xff] %v7087_v20  ;;  %v7108_v20 = vadd.f32 %v12864_v38, %v6848_v49  ;;  %v12871_v38 = vld [vmem:[#allocation30_spill] sm:$0xff] }
 0x1a2   :  { %12859 = vst [vmem:[#allocation25_spill] sm:$0xff] %v7092_v30  ;;  %v7112_v30 = vadd.f32 %v12866_v28, %v6850_v36  ;;  %v1327_v28 = vadd.f32 0.001143296, %v1326_v53  ;;  %v1290_v53 = vmul.f32 %v1289_v41, %v7018_v47  ;;  %v7163_v41 = vadd.f32 %v6724_v23, %v6856_v48 }
 0x1a3   :  { %12861 = vst [vmem:[#allocation26_spill] sm:$0xff] %v7096_v1  ;;  %v7180_v23 = vadd.f32 %v6736_v29, %v6856_v48  ;;  %v12897_v29 = vld [vmem:[#allocation41_spill] sm:$0xff] }
 0x1a4   :  { %12862 = vst [vmem:[#allocation115_spill] sm:$0xff] %v7100_v27  ;;  %v7120_v27 = vmul.f32 0.70710677, %v7077_v19 }
 0x1a5   :  { %12863 = vst [vmem:[#allocation116_spill] sm:$0xff] %v7104_v42  ;;  %v7124_v42 = vadd.f32 %v12869_v10, %v6858_v39  ;;  %v1275_v10 = vmul.f32 2.1237322e-06, %v7018_v47 }
 0x1a6   :  { %12865 = vst [vmem:[#allocation27_spill] sm:$0xff] %v7108_v20  ;;  %v7128_v20 = vadd.f32 %v12871_v38, %v6848_v49  ;;  %v12879_v38 = vld [vmem:[#allocation34_spill] sm:$0xff] }
 0x1a7   :  { %12867 = vst [vmem:[#allocation28_spill] sm:$0xff] %v7112_v30  ;;  %v1212_v30 = vmul.f32 %v1211_v8, %v6932_v7  ;;  %v7147_v54 = vadd.f32 %v12879_v38, %v6848_v49  ;;  %v1198_v8 = vadd.f32 0.0036580483, %v1197_v0  ;;  %v7167_v38 = vadd.f32 %v6726_v59, %v6858_v39  ;;  %v12891_v59 = vld [vmem:[#allocation38_spill] sm:$0xff] }
 0x1a8   :  { %12868 = vst [vmem:[#allocation117_spill] sm:$0xff] %v7116_v9  ;;  %v7133_v9 = vadd.f32 %v12873_v18, %v6850_v36  ;;  %v12881_v18 = vld [vmem:[#allocation19_spill] sm:$0xff]  ;;  %v1328_v0 = vmul.f32 %v1327_v28, %v7049_v43 }
 0x1a9   :  { %12870 = vst [vmem:[#allocation29_spill] sm:$0xff] %v7124_v42  ;;  %v12877_v42 = vld [vmem:[#allocation33_spill] sm:$0xff]  ;;  %718 = vmatmul.f32.gmra.mxu0 %v12881_v18  ;;  %807 = vmatmul.f32.gmra.mxu1 %v12881_v18 }
 0x1aa   :  { %12872 = vst [vmem:[#allocation30_spill] sm:$0xff] %v7128_v20  ;;  %v7143_v1 = vadd.f32 %v12877_v42, %v6858_v39  ;;  %v1353_v42 = vmul.f32 %v7120_v27, %v7120_v27  ;;  %896 = vmatmul.f32.gmra.mxu2 %v12881_v18  ;;  %985 = vmatmul.f32.gmra.mxu3 %v12881_v18  ;;  %v1213_v18 = vadd.f32 0.4994258, %v1212_v30  ;;  %v1276_v20 = vadd.f32 0.00028619796, %v1275_v10 }
 0x1ab   :  { %12874 = vst [vmem:[#allocation31_spill] sm:$0xff] %v7133_v9  ;;  %v1252_v9 = vmul.f32 %v1251_v52, %v6934_v22  ;;  %v12886_v52 = vld [vmem:[#allocation36_spill] sm:$0xff]  ;;  %v1199_v30 = vmul.f32 %v1198_v8, %v6932_v7 }
 0x1ac   :  { %12876 = vst [vmem:[#allocation32_spill] sm:$0xff] %v7137_v11  ;;  %v7154_v11 = vadd.f32 %v12882_v61, %v6850_v36  ;;  %v1238_v61 = vadd.f32 0.0036580483, %v1237_v63  ;;  %v12893_v63 = vld [vmem:[#allocation39_spill] sm:$0xff]  ;;  %v1277_v8 = vmul.f32 %v1276_v20, %v7018_v47 }
 0x1ad   :  { %12878 = vst [vmem:[#allocation33_spill] sm:$0xff] %v7143_v1  ;;  %v7188_v28 = vadd.f32 %v12893_v63, %v6848_v49  ;;  %v1253_v10 = vadd.f32 0.4994258, %v1252_v9  ;;  %v1214_v9 = vmul.f32 %v1213_v18, %v6932_v7 }
 0x1ae   :  { %12880 = vst [vmem:[#allocation34_spill] sm:$0xff] %v7147_v54  ;;  %v12888_v54 = vld [vmem:[#allocation37_spill] sm:$0xff]  ;;  %v1239_v63 = vmul.f32 %v1238_v61, %v6934_v22 }
 0x1af   :  { %12883 = vst [vmem:[#allocation19_spill] sm:$0xff] %v7154_v11  ;;  %v7172_v11 = vadd.f32 %v12886_v52, %v6848_v49  ;;  %v7176_v1 = vadd.f32 %v12888_v54, %v6850_v36  ;;  %v1291_v52 = vadd.f32 0.112945676, %v1290_v53  ;;  %v7195_v54 = vmin.f32 %v1353_v42, 16.0 }
 0x1b0   :  { %12884 = vst [vmem:[#allocation35_spill] sm:$0xff] %v7163_v41  ;;  %v1329_v53 = vadd.f32 0.014752088, %v1328_v0  ;;  %v1315_v42 = vmul.f32 2.1237322e-06, %v7049_v43  ;;  %v12905_v0 = vld [vmem:[#allocation20_spill] sm:$0xff] }
 0x1b1   :  { %12885 = vst [vmem:[#allocation118_spill] sm:$0xff] %v7167_v38  ;;  %v7184_v38 = vadd.f32 %v12891_v59, %v6858_v39  ;;  %v12899_v59 = vld [vmem:[#allocation42_spill] sm:$0xff]  ;;  %721 = vmatmul.f32.gmra.mxu0 %v12905_v0  ;;  %810 = vmatmul.f32.gmra.mxu1 %v12905_v0  ;;  %v1366_v18 = vmul.f32 3.8918573e-05, %v7195_v54 }
 0x1b2   :  { %12887 = vst [vmem:[#allocation36_spill] sm:$0xff] %v7172_v11  ;;  %v12895_v11 = vld [vmem:[#allocation40_spill] sm:$0xff]  ;;  %v1330_v61 = vmul.f32 %v1329_v53, %v7049_v43  ;;  %899 = vmatmul.f32.gmra.mxu2 %v12905_v0  ;;  %988 = vmatmul.f32.gmra.mxu3 %v12905_v0  ;;  %v12907_v53 = vld [vmem:[#allocation45_spill] sm:$0xff]  ;;  %v1278_v0 = vadd.f32 0.0036580483, %v1277_v8 }
 0x1b3   :  { %12889 = vst [vmem:[#allocation37_spill] sm:$0xff] %v7176_v1  ;;  %v7192_v41 = vadd.f32 %v12895_v11, %v6850_v36  ;;  %v12901_v11 = vld [vmem:[#allocation43_spill] sm:$0xff]  ;;  %v7244_v1 = vadd.f32 1.0, %v1214_v9  ;;  %v1316_v60 = vadd.f32 0.00028619796, %v1315_v42  ;;  %v12917_v42 = vld [vmem:[#allocation50_spill] sm:$0xff] }
 0x1b4   :  { %12890 = vst [vmem:[#allocation119_spill] sm:$0xff] %v7180_v23  ;;  %v7199_v23 = vadd.f32 %v12897_v29, %v6856_v48  ;;  %v12903_v29 = vld [vmem:[#allocation44_spill] sm:$0xff]  ;;  %v1367_v9 = vadd.f32 0.001143296, %v1366_v18  ;;  %v1279_v18 = vmul.f32 %v1278_v0, %v7018_v47 }
 0x1b5   :  { %12892 = vst [vmem:[#allocation38_spill] sm:$0xff] %v7184_v38  ;;  %v7203_v38 = vadd.f32 %v12899_v59, %v6858_v39  ;;  %v1292_v59 = vmul.f32 %v1291_v52, %v7018_v47  ;;  %v7230_v52 = vadd.f32 %v6760_v34, %v6856_v48  ;;  %v12913_v34 = vld [vmem:[#allocation48_spill] sm:$0xff]  ;;  %6003 = vrcp.f32 %v7244_v1 }
 0x1b6   :  { %12894 = vst [vmem:[#allocation39_spill] sm:$0xff] %v7188_v28  ;;  %v754_v28 = vpop.f32.mrf.mxu1  ;;  %vm1221_vm0 = vweird.f32 %v7244_v1 }
 0x1b7   :  { %12896 = vst [vmem:[#allocation40_spill] sm:$0xff] %v7192_v41  ;;  %v7208_v41 = vadd.f32 %v12901_v11, %v6848_v49  ;;  %v1200_v11 = vadd.f32 0.05243302, %v1199_v30  ;;  %v7224_v20 = vadd.f32 %v754_v28, %v6846_v62  ;;  %v12909_v30 = vld [vmem:[#allocation46_spill] sm:$0xff]  ;;  %v12911_v28 = vld [vmem:[#allocation47_spill] sm:$0xff] }
 0x1b8   :  { %12898 = vst [vmem:[#allocation41_spill] sm:$0xff] %v7199_v23  ;;  %v7215_v23 = vadd.f32 %v12903_v29, %v6850_v36  ;;  %v7234_v29 = vadd.f32 %v12907_v53, %v6858_v39  ;;  %v12915_v53 = vld [vmem:[#allocation49_spill] sm:$0xff] }
 0x1b9   :  { %12900 = vst [vmem:[#allocation42_spill] sm:$0xff] %v7203_v38  ;;  %v7242_v38 = vadd.f32 %v12911_v28, %v6850_v36  ;;  %v1201_v50 = vmul.f32 %v1200_v11, %v6932_v7  ;;  %v7258_v8 = vmul.f32 0.70710677, %v7224_v20 }
 0x1ba   :  { %12902 = vst [vmem:[#allocation43_spill] sm:$0xff] %v7208_v41  ;;  %v1254_v41 = vmul.f32 %v1253_v10, %v6934_v22  ;;  %v7238_v10 = vadd.f32 %v12909_v30, %v6848_v49  ;;  %v1293_v30 = vadd.f32 0.4994258, %v1292_v59  ;;  %v12921_v59 = vld [vmem:[#allocation52_spill] sm:$0xff] }
 0x1bb   :  { %12904 = vst [vmem:[#allocation44_spill] sm:$0xff] %v7215_v23  ;;  %v1240_v23 = vadd.f32 0.05243302, %v1239_v63  ;;  %v5357_v63 = vld [vmem:[#allocation11 + $0x120] sm:$0xff]  ;;  %v7322_v4 = vpop.eup %6003 }
 0x1bc   :  { %12906 = vst [vmem:[#allocation20_spill] sm:$0xff] %v7230_v52  ;;  %v7248_v52 = vadd.f32 %v12913_v34, %v6856_v48  ;;  %v7255_v28 = vadd.f32 1.0, %v1254_v41  ;;  %5574 = vmatpush.msra.mxu2 %v5357_v63  ;;  %v7262_v34 = vadd.f32 %v12917_v42, %v6848_v49  ;;  %v7273_v41 = vadd.f32 %v843_v17, %v6892_v6  ;;  %v12923_v42 = vld [vmem:[#allocation53_spill] sm:$0xff] }
 0x1bd   :  { %12908 = vst [vmem:[#allocation45_spill] sm:$0xff] %v7234_v29  ;;  %v7252_v29 = vadd.f32 %v12915_v53, %v6858_v39  ;;  %v1241_v11 = vmul.f32 %v1240_v23, %v6934_v22  ;;  %v1317_v63 = vmul.f32 %v1316_v60, %v7049_v43  ;;  %v12925_v17 = vld [vmem:[#allocation21_spill] sm:$0xff]  ;;  %v1202_v23 = vadd.f32 0.18741608, %v1201_v50 }
 0x1be   :  { %12910 = vst [vmem:[#allocation46_spill] sm:$0xff] %v7238_v10  ;;  %v1331_v10 = vadd.f32 0.112945676, %v1330_v61  ;;  %v7270_v61 = vadd.f32 %v12921_v59, %v6856_v48  ;;  %724 = vmatmul.f32.gmra.mxu0 %v12925_v17  ;;  %6005 = vrcp.f32 %v7255_v28  ;;  %v1393_v60 = vmul.f32 %v7258_v8, %v7258_v8  ;;  %813 = vmatmul.f32.gmra.mxu1 %v12925_v17 }
 0x1bf   :  { %12912 = vst [vmem:[#allocation47_spill] sm:$0xff] %v7242_v38  ;;  %902 = vmatmul.f32.gmra.mxu2 %v12925_v17  ;;  %991 = vmatmul.f32.gmra.mxu3 %v12925_v17  ;;  %v1242_v38 = vadd.f32 0.18741608, %v1241_v11  ;;  %v7326_v17 = vadd.f32 %v12938_v3, %v6856_v48  ;;  %v1203_v11 = vmul.f32 %v1202_v23, %v6932_v7  ;;  %v7352_v7 = vmul.f32 0.5, %v6861_v2 }
 0x1c0   :  { %12914 = vst [vmem:[#allocation48_spill] sm:$0xff] %v7248_v52  ;;  %v12919_v52 = vld [vmem:[#allocation51_spill] sm:$0xff]  ;;  %v1332_v59 = vmul.f32 %v1331_v10, %v7049_v43  ;;  %v7364_v2 = vmul.f32 0.5, %v6864_v40  ;;  %vm1261_vm1 = vweird.f32 %v7255_v28  ;;  %vm1222_vm3 = vweird.f32 %v7322_v4 }
 0x1c1   :  { %12916 = vst [vmem:[#allocation49_spill] sm:$0xff] %v7252_v29  ;;  %v7266_v53 = vadd.f32 %v12919_v52, %v6850_v36  ;;  %v1294_v52 = vmul.f32 %v1293_v30, %v7018_v47  ;;  %v12928_v10 = vld [vmem:[#allocation55_spill] sm:$0xff]  ;;  %v12930_v30 = vld [vmem:[#allocation56_spill] sm:$0xff]  ;;  %v1243_v23 = vmul.f32 %v1242_v38, %v6934_v22  ;;  %v7367_v22 = vmul.f32 0.5, %v6945_v31  ;;  %v12949_v31 = vld [vmem:[#allocation65_spill] sm:$0xff] }
 0x1c2   :  { %12918 = vst [vmem:[#allocation50_spill] sm:$0xff] %v7262_v34  ;;  %v7281_v34 = vadd.f32 %v12923_v42, %v6858_v39  ;;  %v7298_v0 = vadd.f32 %v12928_v10, %v6850_v36  ;;  %v7309_v42 = vmul.f32 0.70710677, %v7273_v41  ;;  %v1280_v10 = vadd.f32 0.05243302, %v1279_v18  ;;  %vm7444_vm6 = vmor %vm1221_vm0, %vm1222_vm3 }
 0x1c3   :  { %12920 = vst [vmem:[#allocation51_spill] sm:$0xff] %v7266_v53  ;;  %v12926_v53 = vld [vmem:[#allocation54_spill] sm:$0xff]  ;;  %v7333_v18 = vmin.f32 %v1393_v60, 16.0 }
 0x1c4   :  { %12922 = vst [vmem:[#allocation52_spill] sm:$0xff] %v7270_v61  ;;  %v1368_v61 = vmul.f32 %v1367_v9, %v7195_v54  ;;  %v7289_v29 = vadd.f32 %v12926_v53, %v6848_v49  ;;  %v7302_v9 = vadd.f32 %v12930_v30, %v6856_v48  ;;  %v12932_v53 = vld [vmem:[#allocation57_spill] sm:$0xff]  ;;  %v7318_v30 = vadd.f32 %v12936_v57, %v6850_v36  ;;  %v12942_v57 = vld [vmem:[#allocation62_spill] sm:$0xff] }
 0x1c5   :  { %12924 = vst [vmem:[#allocation53_spill] sm:$0xff] %v7281_v34  ;;  %v7306_v50 = vadd.f32 %v12932_v53, %v6858_v39  ;;  %v1333_v53 = vadd.f32 0.4994258, %v1332_v59  ;;  %v12946_v59 = vld [vmem:[#allocation64_spill] sm:$0xff]  ;;  %v1281_v60 = vmul.f32 %v1280_v10, %v7018_v47  ;;  %v1406_v38 = vmul.f32 3.8918573e-05, %v7333_v18 }
 0x1c6   :  { %12927 = vst [vmem:[#allocation21_spill] sm:$0xff] %v7289_v29  ;;  %v12934_v29 = vld [vmem:[#allocation58_spill] sm:$0xff]  ;;  %v7345_v3 = vadd.f32 %v12946_v59, %v6856_v48  ;;  %v7378_v10 = vmul.f32 0.5, %v7077_v19 }
 0x1c7   :  { %12929 = vst [vmem:[#allocation54_spill] sm:$0xff] %v7298_v0  ;;  %v7314_v34 = vadd.f32 %v12934_v29, %v6848_v49  ;;  %v1318_v0 = vadd.f32 0.0036580483, %v1317_v63  ;;  %v12940_v29 = vld [vmem:[#allocation61_spill] sm:$0xff]  ;;  %v7337_v63 = vadd.f32 %v12942_v57, %v6848_v49  ;;  %v1334_v59 = vmul.f32 %v1333_v53, %v7049_v43 }
 0x1c8   :  { %12931 = vst [vmem:[#allocation55_spill] sm:$0xff] %v7302_v9  ;;  %v7320_v9 = vadd.f32 1.0, %v1294_v52  ;;  %v1204_v49 = vadd.f32 1.1283791, %v1203_v11  ;;  %v7385_v53 = vadd.f32 %v12949_v31, %v6858_v39  ;;  %v1282_v11 = vadd.f32 0.18741608, %v1281_v60 }
 0x1c9   :  { %12933 = vst [vmem:[#allocation56_spill] sm:$0xff] %v7306_v50  ;;  %v1369_v50 = vadd.f32 0.014752088, %v1368_v61  ;;  %v12944_v61 = vld [vmem:[#allocation63_spill] sm:$0xff]  ;;  %v1319_v57 = vmul.f32 %v1318_v0, %v7049_v43  ;;  %v1407_v35 = vadd.f32 0.001143296, %v1406_v38 }
 0x1ca   :  { %12935 = vst [vmem:[#allocation57_spill] sm:$0xff] %v7314_v34  ;;  %v7330_v34 = vadd.f32 %v12940_v29, %v6858_v39  ;;  %v7341_v52 = vadd.f32 %v12944_v61, %v6850_v36  ;;  %v1433_v29 = vmul.f32 %v7309_v42, %v7309_v42  ;;  %v1217_v61 = vmul.f32 %v7322_v4, %v7244_v1  ;;  %v12948_v36 = vld [vmem:[#allocation22_spill] sm:$0xff]  ;;  %v12951_v39 = vld [vmem:[#allocation23_spill] sm:$0xff] }
 0x1cb   :  { %12937 = vst [vmem:[#allocation58_spill] sm:$0xff] %v7318_v30  ;;  %6007 = vrcp.f32 %v7320_v9  ;;  %v1370_v48 = vmul.f32 %v1369_v50, %v7195_v54  ;;  %727 = vmatmul.f32.gmra.mxu0 %v12948_v36  ;;  %816 = vmatmul.f32.gmra.mxu1 %v12948_v36  ;;  %v7375_v50 = vmul.f32 0.5, %v6948_v32  ;;  %v7388_v30 = vadd.f32 1.0, %v1334_v59 }
 0x1cc   :  { %12939 = vst [vmem:[#allocation59_spill] sm:$0xff] %v7326_v17  ;;  %905 = vmatmul.f32.gmra.mxu2 %v12948_v36  ;;  %v7380_v40 = vmin.f32 %v1433_v29, 16.0  ;;  %994 = vmatmul.f32.gmra.mxu3 %v12948_v36  ;;  %v1244_v17 = vadd.f32 1.1283791, %v1243_v23  ;;  %v7391_v19 = vmul.f32 %v1204_v49, %v6875_v37  ;;  %v1225_v29 = vand.u32 2147483647, %v7244_v1 }
 0x1cd   :  { %12941 = vst [vmem:[#allocation60_spill] sm:$0xff] %v7330_v34  ;;  %v7349_v34 = vpop.eup %6005  ;;  %v1371_v32 = vadd.f32 0.112945676, %v1370_v48  ;;  %v1227_v36 = vand.u32 2147483648, %v7244_v1  ;;  %v1267_v23 = vand.u32 2147483648, %v7255_v28  ;;  %v1283_v48 = vmul.f32 %v1282_v11, %v7018_v47 }
 0x1ce   :  { %12943 = vst [vmem:[#allocation61_spill] sm:$0xff] %v7337_v63  ;;  %v1257_v0 = vmul.f32 %v7349_v34, %v7255_v28  ;;  %v1218_v63 = vsub.f32 1.0, %v1217_v61  ;;  %v1446_v61 = vmul.f32 3.8918573e-05, %v7380_v40  ;;  %v1408_v59 = vmul.f32 %v1407_v35, %v7333_v18 }
 0x1cf   :  { %12945 = vst [vmem:[#allocation62_spill] sm:$0xff] %v7341_v52  ;;  %v1355_v52 = vmul.f32 2.1237322e-06, %v7195_v54  ;;  %6009 = vrcp.f32 %v7388_v30  ;;  %v1372_v31 = vmul.f32 %v1371_v32, %v7195_v54  ;;  %vm7417_vm2 = vcmp.eq.f32.partialorder %v1225_v29, 8.507059e+37 }
 0x1d0   :  { %12947 = vst [vmem:[#allocation63_spill] sm:$0xff] %v7345_v3  ;;  %v1320_v3 = vadd.f32 0.05243302, %v1319_v57  ;;  %v1258_v60 = vsub.f32 1.0, %v1257_v0  ;;  %v1265_v57 = vand.u32 2147483647, %v7255_v28  ;;  %v1219_v38 = vmul.f32 %v7322_v4, %v1218_v63 }
 0x1d1   :  { %12950 = vst [vmem:[#allocation64_spill] sm:$0xff] %v7385_v53  ;;  %v7395_v58 = vpop.eup %6007  ;;  %v1356_v37 = vadd.f32 0.00028619796, %v1355_v52  ;;  %v1447_v0 = vadd.f32 0.001143296, %v1446_v61  ;;  %v7409_v53 = vmul.f32 %v1244_v17, %v6878_v51  ;;  %v1228_v63 = vor.u32 1.1754944e-38, %v1227_v36 }
 0x1d2   :  { %v1321_v49 = vmul.f32 %v1320_v3, %v7049_v43  ;;  %v1297_v47 = vmul.f32 %v7395_v58, %v7320_v9  ;;  %v1395_v52 = vmul.f32 2.1237322e-06, %v7333_v18  ;;  %v1259_v3 = vmul.f32 %v7349_v34, %v1258_v60 }
 0x1d3   :  { %730 = vmatmul.f32.gmra.mxu0 %v12951_v39  ;;  %819 = vmatmul.f32.gmra.mxu1 %v12951_v39  ;;  %v1268_v51 = vor.u32 1.1754944e-38, %v1267_v23  ;;  %v1284_v17 = vadd.f32 1.1283791, %v1283_v48  ;;  %v1357_v11 = vmul.f32 %v1356_v37, %v7195_v54  ;;  %v1409_v32 = vadd.f32 0.014752088, %v1408_v59  ;;  %v668_v37 = vpop.f32.mrf.mxu0 }
 0x1d4   :  { %908 = vmatmul.f32.gmra.mxu2 %v12951_v39  ;;  %997 = vmatmul.f32.gmra.mxu3 %v12951_v39  ;;  %v1448_v61 = vmul.f32 %v1447_v0, %v7380_v40  ;;  %v1220_v44 = vadd.f32 %v7322_v4, %v1219_v38  ;;  %vm7427_vm4 = vcmp.eq.f32.partialorder %v1265_v57, 8.507059e+37  ;;  %v1322_v36 = vadd.f32 0.18741608, %v1321_v49  ;;  %v5373_v57 = vld [vmem:[#allocation11 + $0x1a0] sm:$0xff] }
 0x1d5   :  { %v1373_v60 = vadd.f32 0.4994258, %v1372_v31  ;;  %v1298_v23 = vsub.f32 1.0, %v1297_v47  ;;  %v1396_v33 = vadd.f32 0.00028619796, %v1395_v52  ;;  %v1410_v39 = vmul.f32 %v1409_v32, %v7333_v18  ;;  %v7432_v59 = vpop.eup %6009  ;;  %5663 = vmatpush.msra.mxu3 %v5373_v57 }
 0x1d6   :  { %v1449_v48 = vadd.f32 0.014752088, %v1448_v61  ;;  %v1260_v0 = vadd.f32 %v7349_v34, %v1259_v3  ;;  %vm1262_vm5 = vweird.f32 %v7349_v34  ;;  %v1305_v38 = vand.u32 2147483647, %v7320_v9 }
 0x1d7   :  { %v7438_v49 = vadd.f32 %v932_v46, %v6894_v26  ;;  %v7449_v47 = vmul.f32 %v1284_v17, %v6973_v5  ;;  %v1307_v52 = vand.u32 2147483648, %v7320_v9  ;;  %v1358_v3 = vadd.f32 0.0036580483, %v1357_v11  ;;  %v757_v17 = vpop.f32.mrf.mxu1  ;;  %vm7465_vm8 = vmor %vm1261_vm1, %vm1262_vm5 }
 0x1d8   :  { %v1411_v32 = vadd.f32 0.112945676, %v1410_v39  ;;  %v1224_v46 = vsel %vm7444_vm6, %v7322_v4, %v1220_v44  ;;  %vm1301_vm7 = vweird.f32 %v7320_v9  ;;  %v1374_v1 = vmul.f32 %v1373_v60, %v7195_v54 }
 0x1d9   :  { %v1450_v61 = vmul.f32 %v1449_v48, %v7380_v40  ;;  %v7459_v5 = vadd.f32 %v668_v37, %v6844_v56  ;;  %v1299_v44 = vmul.f32 %v7395_v58, %v1298_v23  ;;  %v1323_v4 = vmul.f32 %v1322_v36, %v7049_v43 }
 0x1da   :  { %v1337_v25 = vmul.f32 %v7432_v59, %v7388_v30  ;;  %v1397_v11 = vmul.f32 %v1396_v33, %v7333_v18  ;;  %v1264_v60 = vsel %vm7465_vm8, %v7349_v34, %v1260_v0  ;;  %v1412_v39 = vmul.f32 %v1411_v32, %v7333_v18 }
 0x1db   :  { %v1435_v28 = vmul.f32 2.1237322e-06, %v7380_v40  ;;  %v7480_v48 = vmul.f32 0.70710677, %v7438_v49  ;;  %v1229_v23 = vsel %vm7417_vm2, %v1228_v63, %v1224_v46  ;;  %vm1302_vm9 = vweird.f32 %v7395_v58 }
 0x1dc   :  { %v1359_v43 = vmul.f32 %v1358_v3, %v7195_v54  ;;  %v7487_v33 = vadd.f32 %v757_v17, %v6846_v62  ;;  %v7489_v36 = vadd.f32 1.0, %v1374_v1  ;;  %v1451_v34 = vadd.f32 0.112945676, %v1450_v61  ;;  %vm7519_vm11 = vmor %vm1301_vm7, %vm1302_vm9 }
 0x1dd   :  { %v1473_v37 = vmul.f32 %v7480_v48, %v7480_v48  ;;  %v7494_v0 = vmul.f32 0.70710677, %v7459_v5  ;;  %v1269_v35 = vsel %vm7427_vm4, %v1268_v51, %v1264_v60  ;;  %v1300_v63 = vadd.f32 %v7395_v58, %v1299_v44 }
 0x1de   :  { %v1338_v57 = vsub.f32 1.0, %v1337_v25  ;;  %v1398_v31 = vadd.f32 0.0036580483, %v1397_v11  ;;  %v1413_v3 = vadd.f32 0.4994258, %v1412_v39  ;;  %v1230_v61 = vmul.f32 %v1229_v23, %v7391_v19 }
 0x1df   :  { %v1436_v32 = vadd.f32 0.00028619796, %v1435_v28  ;;  %v7499_v46 = vmin.f32 %v1473_v37, 16.0  ;;  %v1513_v1 = vmul.f32 %v7494_v0, %v7494_v0  ;;  %vm7504_vm10 = vcmp.eq.f32.partialorder %v1305_v38, 8.507059e+37 }
 0x1e0   :  { %v1360_v14 = vadd.f32 0.05243302, %v1359_v43  ;;  %v7509_v51 = vmul.f32 0.70710677, %v7487_v33  ;;  %v1270_v29 = vmul.f32 %v1269_v35, %v7409_v53  ;;  %6011 = vrcp.f32 %v7489_v36 }
 0x1e1   :  { %v1452_v44 = vmul.f32 %v1451_v34, %v7380_v40  ;;  %v1486_v25 = vmul.f32 3.8918573e-05, %v7499_v46  ;;  %v1308_v38 = vor.u32 1.1754944e-38, %v1307_v52  ;;  %v1324_v11 = vadd.f32 1.1283791, %v1323_v4 }
 0x1e2   :  { %v1339_v60 = vmul.f32 %v7432_v59, %v1338_v57  ;;  %v1399_v53 = vmul.f32 %v1398_v31, %v7333_v18  ;;  %v1304_v39 = vsel %vm7519_vm11, %v7395_v58, %v1300_v63  ;;  %v1414_v28 = vmul.f32 %v1413_v3, %v7333_v18 }
 0x1e3   :  { %v1437_v23 = vmul.f32 %v1436_v32, %v7380_v40  ;;  %v7530_v43 = vmin.f32 %v1513_v1, 16.0  ;;  %v5895_v9 = vclamps-f32 %v1230_v61, 1.0  ;;  %v1361_v34 = vmul.f32 %v1360_v14, %v7195_v54 }
 0x1e4   :  { %v1487_v37 = vadd.f32 0.001143296, %v1486_v25  ;;  %v1553_v52 = vmul.f32 %v7509_v51, %v7509_v51  ;;  %v5896_v4 = vclamps-f32 %v1270_v29, 1.0  ;;  %vm1341_vm12 = vweird.f32 %v7388_v30 }
 0x1e5   :  { %v1345_v35 = vand.u32 2147483647, %v7388_v30  ;;  %v1453_v57 = vadd.f32 0.4994258, %v1452_v44  ;;  %v1309_v58 = vsel %vm7504_vm10, %v1308_v38, %v1304_v39  ;;  %v1340_v63 = vadd.f32 %v7432_v59, %v1339_v60 }
 0x1e6   :  { %vm1342_vm13 = vweird.f32 %v7432_v59  ;;  %v1400_v31 = vadd.f32 0.05243302, %v1399_v53  ;;  %v7541_v3 = vpop.eup %6011  ;;  %v7543_v32 = vadd.f32 1.0, %v1414_v28  ;;  %v1438_v1 = vadd.f32 0.0036580483, %v1437_v23 }
 0x1e7   :  { %v1488_v61 = vmul.f32 %v1487_v37, %v7499_v46  ;;  %v1526_v14 = vmul.f32 3.8918573e-05, %v7530_v43  ;;  %v5033_v29 = vadd.f32 1.0, %v5895_v9  ;;  %v1347_v44 = vand.u32 2147483648, %v7388_v30  ;;  %vm7560_vm15 = vmor %vm1341_vm12, %vm1342_vm13 }
 0x1e8   :  { %v1362_v25 = vadd.f32 0.18741608, %v1361_v34  ;;  %v7548_v17 = vmin.f32 %v1553_v52, 16.0  ;;  %v5034_v19 = vadd.f32 1.0, %v5896_v4  ;;  %vm7550_vm14 = vcmp.eq.f32.partialorder %v1345_v35, 8.507059e+37 }
 0x1e9   :  { %v1454_v60 = vmul.f32 %v1453_v57, %v7380_v40  ;;  %v1489_v53 = vadd.f32 0.014752088, %v1488_v61  ;;  %v1310_v39 = vmul.f32 %v1309_v58, %v7449_v47  ;;  %v1377_v23 = vmul.f32 %v7541_v3, %v7489_v36 }
 0x1ea   :  { %v1401_v9 = vmul.f32 %v1400_v31, %v7333_v18  ;;  %v1527_v34 = vadd.f32 0.001143296, %v1526_v14  ;;  %v1344_v37 = vsel %vm7560_vm15, %v7432_v59, %v1340_v63  ;;  %6013 = vrcp.f32 %v7543_v32 }
 0x1eb   :  { %v1439_v47 = vmul.f32 %v1438_v1, %v7380_v40  ;;  %v1475_v30 = vmul.f32 2.1237322e-06, %v7499_v46  ;;  %v5129_v52 = vmul.f32 %v5033_v29, %v7352_v7  ;;  %v1348_v4 = vor.u32 1.1754944e-38, %v1347_v44 }
 0x1ec   :  { %v1363_v35 = vmul.f32 %v1362_v25, %v7195_v54  ;;  %v1566_v57 = vmul.f32 3.8918573e-05, %v7548_v17  ;;  %v5130_v58 = vmul.f32 %v5034_v19, %v7364_v2  ;;  %v7577_v31 = vadd.f32 1.0, %v1454_v60 }
 0x1ed   :  { %v1490_v61 = vmul.f32 %v1489_v53, %v7499_v46  ;;  %v1528_v59 = vmul.f32 %v1527_v34, %v7530_v43  ;;  %v5897_v63 = vclamps-f32 %v1310_v39, 1.0  ;;  %v1349_v1 = vsel %vm7550_vm14, %v1348_v4, %v1344_v37 }
 0x1ee   :  { %v1378_v14 = vsub.f32 1.0, %v1377_v23  ;;  %v1402_v28 = vadd.f32 0.18741608, %v1401_v9  ;;  %v1325_v7 = vmul.f32 %v1324_v11, %v6996_v55  ;;  %v7585_v54 = vmul.f32 0.5, %v7224_v20  ;;  %v12968_v11 = vld [vmem:[#allocation78_spill] sm:$0xff] }
 0x1ef   :  { %v1440_v29 = vadd.f32 0.05243302, %v1439_v47  ;;  %v1476_v44 = vadd.f32 0.00028619796, %v1475_v30  ;;  %v7588_v2 = vmul.f32 %v5129_v52, %v6868_v13  ;;  %v1364_v25 = vadd.f32 1.1283791, %v1363_v35 }
 0x1f0   :  { %v7591_v19 = vmul.f32 0.5, %v7273_v41  ;;  %v1567_v60 = vadd.f32 0.001143296, %v1566_v57  ;;  %v7593_v53 = vpop.eup %6013  ;;  %v1350_v38 = vmul.f32 %v1349_v1, %v1325_v7  ;;  %6015 = vrcp.f32 %v7577_v31 }
 0x1f1   :  { %v1491_v39 = vadd.f32 0.112945676, %v1490_v61  ;;  %v1529_v55 = vadd.f32 0.014752088, %v1528_v59  ;;  %v7597_v20 = vmul.f32 %v5130_v58, %v12968_v11  ;;  %v5035_v23 = vadd.f32 1.0, %v5897_v63  ;;  %v5356_v61 = vld [vmem:[#allocation11 + $0x118] sm:$0xff]  ;;  %v846_v63 = vpop.f32.mrf.mxu2 }
 0x1f2   :  { %v1379_v9 = vmul.f32 %v7541_v3, %v1378_v14  ;;  %v1403_v13 = vmul.f32 %v1402_v28, %v7333_v18  ;;  %v1385_v34 = vand.u32 2147483647, %v7489_v36  ;;  %v1387_v41 = vand.u32 2147483648, %v7489_v36  ;;  %v5372_v59 = vld [vmem:[#allocation11 + $0x198] sm:$0xff]  ;;  %5575 = vmatpush.msra.mxu2 %v5356_v61 }
 0x1f3   :  { %v1441_v37 = vmul.f32 %v1440_v29, %v7380_v40  ;;  %v1477_v47 = vmul.f32 %v1476_v44, %v7499_v46  ;;  %v1365_v30 = vmul.f32 %v1364_v25, %v7120_v27  ;;  %v1417_v52 = vmul.f32 %v7593_v53, %v7543_v32  ;;  %5664 = vmatpush.msra.mxu3 %v5372_v59 }
 0x1f4   :  { %v1515_v4 = vmul.f32 2.1237322e-06, %v7530_v43  ;;  %v1568_v35 = vmul.f32 %v1567_v60, %v7548_v17  ;;  %v5898_v57 = vclamps-f32 %v1350_v38, 1.0  ;;  %vm1381_vm0 = vweird.f32 %v7489_v36 }
 0x1f5   :  { %v1492_v18 = vmul.f32 %v1491_v39, %v7499_v46  ;;  %v1530_v58 = vmul.f32 %v1529_v55, %v7530_v43  ;;  %v7614_v1 = vmul.f32 %v5035_v23, %v7367_v22  ;;  %v1380_v27 = vadd.f32 %v7541_v3, %v1379_v9  ;;  %v935_v55 = vpop.f32.mrf.mxu3 }
 0x1f6   :  { %vm1382_vm1 = vweird.f32 %v7541_v3  ;;  %v1404_v14 = vadd.f32 1.1283791, %v1403_v13  ;;  %v7618_v28 = vpop.eup %6015  ;;  %vm7620_vm2 = vcmp.eq.f32.partialorder %v1385_v34, 8.507059e+37  ;;  %v1388_v29 = vor.u32 1.1754944e-38, %v1387_v41 }
 0x1f7   :  { %v1442_v44 = vadd.f32 0.18741608, %v1441_v37  ;;  %v1478_v25 = vadd.f32 0.0036580483, %v1477_v47  ;;  %v1418_v60 = vsub.f32 1.0, %v1417_v52  ;;  %v7625_v39 = vadd.f32 %v846_v63, %v6892_v6  ;;  %vm7633_vm3 = vmor %vm1381_vm0, %vm1382_vm1 }
 0x1f8   :  { %v1516_v38 = vadd.f32 0.00028619796, %v1515_v4  ;;  %v1569_v22 = vadd.f32 0.014752088, %v1568_v35  ;;  %v7627_v11 = vadd.f32 1.0, %v5898_v57  ;;  %v7638_v9 = vmul.f32 0.5, %v7438_v49 }
 0x1f9   :  { %v1493_v13 = vadd.f32 0.4994258, %v1492_v18  ;;  %v1531_v34 = vadd.f32 0.112945676, %v1530_v58  ;;  %v1384_v41 = vsel %vm7633_vm3, %v7541_v3, %v1380_v27  ;;  %v7644_v37 = vmul.f32 %v1404_v14, %v7258_v8 }
 0x1fa   :  { %v1457_v47 = vmul.f32 %v7618_v28, %v7577_v31  ;;  %v7649_v36 = vmul.f32 0.5, %v7459_v5  ;;  %v1443_v52 = vmul.f32 %v1442_v44, %v7380_v40  ;;  %v1479_v49 = vmul.f32 %v1478_v25, %v7499_v46 }
 0x1fb   :  { %v1555_v4 = vmul.f32 2.1237322e-06, %v7548_v17  ;;  %v7655_v35 = vadd.f32 %v935_v55, %v6894_v26  ;;  %v1419_v3 = vmul.f32 %v7593_v53, %v1418_v60  ;;  %v1517_v8 = vmul.f32 %v1516_v38, %v7530_v43 }
 0x1fc   :  { %v1570_v57 = vmul.f32 %v1569_v22, %v7548_v17  ;;  %v7661_v18 = vmul.f32 0.70710677, %v7625_v39  ;;  %v1389_v5 = vsel %vm7620_vm2, %v1388_v29, %v1384_v41  ;;  %v1494_v40 = vmul.f32 %v1493_v13, %v7499_v46  ;;  %v671_v29 = vpop.f32.mrf.mxu0 }
 0x1fd   :  { %v1532_v58 = vmul.f32 %v1531_v34, %v7530_v43  ;;  %v7668_v61 = vmul.f32 0.70710677, %v7655_v35  ;;  %vm1421_vm4 = vweird.f32 %v7543_v32  ;;  %v1425_v59 = vand.u32 2147483647, %v7543_v32 }
 0x1fe   :  { %v1427_v63 = vand.u32 2147483648, %v7543_v32  ;;  %v1458_v27 = vsub.f32 1.0, %v1457_v47  ;;  %vm1422_vm5 = vweird.f32 %v7593_v53  ;;  %v1480_v14 = vadd.f32 0.05243302, %v1479_v49 }
 0x1ff   :  { %v1556_v44 = vadd.f32 0.00028619796, %v1555_v4  ;;  %v1593_v7 = vmul.f32 %v7661_v18, %v7661_v18  ;;  %v1420_v25 = vadd.f32 %v7593_v53, %v1419_v3  ;;  %v1518_v60 = vadd.f32 0.0036580483, %v1517_v8  ;;  %vm7693_vm6 = vmor %vm1421_vm4, %vm1422_vm5 }
 0x200   :  { %v1571_v38 = vadd.f32 0.112945676, %v1570_v57  ;;  %v1633_v22 = vmul.f32 %v7668_v61, %v7668_v61  ;;  %v1390_v55 = vmul.f32 %v1389_v5, %v1365_v30  ;;  %v7679_v23 = vadd.f32 1.0, %v1494_v40 }
 0x201   :  { %v1533_v13 = vadd.f32 0.4994258, %v1532_v58  ;;  %v7681_v34 = vmin.f32 %v1593_v7, 16.0  ;;  %v1444_v41 = vadd.f32 1.1283791, %v1443_v52  ;;  %v1459_v47 = vmul.f32 %v7618_v28, %v1458_v27 }
 0x202   :  { %v7684_v49 = vmin.f32 %v1633_v22, 16.0  ;;  %v7687_v4 = vadd.f32 %v671_v29, %v6844_v56  ;;  %vm7697_vm7 = vcmp.eq.f32.partialorder %v1425_v59, 8.507059e+37  ;;  %v1428_v52 = vor.u32 1.1754944e-38, %v1427_v63  ;;  %v5324_v29 = vld [vmem:[#allocation11 + $0x18] sm:$0xff] }
 0x203   :  { %v1481_v8 = vmul.f32 %v1480_v14, %v7499_v46  ;;  %v1606_v57 = vmul.f32 3.8918573e-05, %v7681_v34  ;;  %v1424_v5 = vsel %vm7693_vm6, %v7593_v53, %v1420_v25  ;;  %v1519_v40 = vmul.f32 %v1518_v60, %v7530_v43  ;;  %v5340_v53 = vld [vmem:[#allocation11 + $0x98] sm:$0xff]  ;;  %5397 = vmatpush.msra.mxu0 %v5324_v29 }
 0x204   :  { %v1557_v32 = vmul.f32 %v1556_v44, %v7548_v17  ;;  %v1572_v58 = vmul.f32 %v1571_v38, %v7548_v17  ;;  %6017 = vrcp.f32 %v7679_v23  ;;  %v1534_v59 = vmul.f32 %v1533_v13, %v7530_v43  ;;  %5486 = vmatpush.msra.mxu1 %v5340_v53 }
 0x205   :  { %v1607_v27 = vadd.f32 0.001143296, %v1606_v57  ;;  %v1646_v63 = vmul.f32 3.8918573e-05, %v7684_v49  ;;  %v5899_v14 = vclamps-f32 %v1390_v55, 1.0  ;;  %v1460_v7 = vadd.f32 %v7618_v28, %v1459_v47 }
 0x206   :  { %vm1462_vm8 = vweird.f32 %v7618_v28  ;;  %v7715_v25 = vmul.f32 0.70710677, %v7687_v4  ;;  %v1429_v44 = vsel %vm7697_vm7, %v1428_v52, %v1424_v5  ;;  %vm1461_vm9 = vweird.f32 %v7577_v31 }
 0x207   :  { %v1465_v60 = vand.u32 2147483647, %v7577_v31  ;;  %v1467_v38 = vand.u32 2147483648, %v7577_v31  ;;  %v1482_v22 = vadd.f32 0.18741608, %v1481_v8  ;;  %v1608_v47 = vmul.f32 %v1607_v27, %v7681_v34  ;;  %vm7727_vm10 = vmor %vm1461_vm9, %vm1462_vm8 }
 0x208   :  { %v1558_v55 = vadd.f32 0.0036580483, %v1557_v32  ;;  %v1573_v13 = vadd.f32 0.4994258, %v1572_v58  ;;  %v5132_v3 = vmul.f32 %v7627_v11, %v7375_v50  ;;  %v1520_v52 = vadd.f32 0.05243302, %v1519_v40 }
 0x209   :  { %v7731_v57 = vadd.f32 1.0, %v1534_v59  ;;  %v1647_v31 = vadd.f32 0.001143296, %v1646_v63  ;;  %v1430_v5 = vmul.f32 %v1429_v44, %v7644_v37  ;;  %v1464_v8 = vsel %vm7727_vm10, %v7618_v28, %v1460_v7 }
 0x20a   :  { %v1609_v32 = vadd.f32 0.014752088, %v1608_v47  ;;  %v1673_v50 = vmul.f32 %v7715_v25, %v7715_v25  ;;  %v7739_v11 = vpop.eup %6017  ;;  %v5037_v58 = vadd.f32 1.0, %v5899_v14  ;;  %v1468_v27 = vor.u32 1.1754944e-38, %v1467_v38 }
 0x20b   :  { %v7742_v29 = vmul.f32 0.5, %v7487_v33  ;;  %v1648_v40 = vmul.f32 %v1647_v31, %v7684_v49  ;;  %vm1466_vm11 = vcmp.eq.f32.partialorder %v1465_v60, 8.507059e+37  ;;  %v1574_v37 = vmul.f32 %v1573_v13, %v7548_v17 }
 0x20c   :  { %v1610_v59 = vmul.f32 %v1609_v32, %v7681_v34  ;;  %v7747_v63 = vmin.f32 %v1673_v50, 16.0  ;;  %v1469_v28 = vsel %vm1466_vm11, %v1468_v27, %v1464_v8  ;;  %v1521_v7 = vmul.f32 %v1520_v52, %v7530_v43  ;;  %v12979_v52 = vld [vmem:[#allocation79_spill] sm:$0xff] }
 0x20d   :  { %6019 = vrcp.f32 %v7731_v57  ;;  %v1559_v14 = vmul.f32 %v1558_v55, %v7548_v17  ;;  %v5900_v53 = vclamps-f32 %v1430_v5, 1.0  ;;  %v1445_v33 = vmul.f32 %v1444_v41, %v7309_v42 }
 0x20e   :  { %v1483_v44 = vmul.f32 %v1482_v22, %v7499_v46  ;;  %v1497_v60 = vmul.f32 %v7739_v11, %v7679_v23  ;;  %v7758_v38 = vmul.f32 %v7614_v1, %v6884_v45  ;;  %v1595_v13 = vmul.f32 2.1237322e-06, %v7681_v34 }
 0x20f   :  { %v1611_v47 = vadd.f32 0.112945676, %v1610_v59  ;;  %v1649_v30 = vadd.f32 0.014752088, %v1648_v40  ;;  %v7762_v31 = vmul.f32 %v5132_v3, %v12979_v52  ;;  %v1470_v55 = vmul.f32 %v1469_v28, %v1445_v33  ;;  %v760_v28 = vpop.f32.mrf.mxu1 }
 0x210   :  { %v7764_v5 = vadd.f32 1.0, %v1574_v37  ;;  %v1686_v42 = vmul.f32 3.8918573e-05, %v7747_v63  ;;  %v7768_v46 = vmul.f32 %v5037_v58, %v7378_v10  ;;  %v1522_v41 = vadd.f32 0.18741608, %v1521_v7 }
 0x211   :  { %v1560_v22 = vadd.f32 0.05243302, %v1559_v14  ;;  %v1650_v45 = vmul.f32 %v1649_v30, %v7684_v49  ;;  %v5038_v1 = vadd.f32 1.0, %v5900_v53  ;;  %v1484_v8 = vadd.f32 1.1283791, %v1483_v44 }
 0x212   :  { %12980 = vst [vmem:[#allocation22_spill] sm:$0xff] %v7768_v46  ;;  %v1498_v32 = vsub.f32 1.0, %v1497_v60  ;;  %v1687_v50 = vadd.f32 0.001143296, %v1686_v42  ;;  %v1596_v3 = vadd.f32 0.00028619796, %v1595_v13  ;;  %v1612_v40 = vmul.f32 %v1611_v47, %v7681_v34 }
 0x213   :  { %v7771_v27 = vpop.eup %6019  ;;  %v1635_v37 = vmul.f32 2.1237322e-06, %v7684_v49  ;;  %v1651_v59 = vadd.f32 0.112945676, %v1650_v45  ;;  %v5901_v33 = vclamps-f32 %v1470_v55, 1.0  ;;  %6021 = vrcp.f32 %v7764_v5 }
 0x214   :  { %v1505_v10 = vand.u32 2147483647, %v7679_v23  ;;  %v1688_v58 = vmul.f32 %v1687_v50, %v7747_v63  ;;  %v1507_v7 = vand.u32 2147483648, %v7679_v23  ;;  %v1523_v14 = vmul.f32 %v1522_v41, %v7530_v43 }
 0x215   :  { %v1561_v53 = vmul.f32 %v1560_v22, %v7548_v17  ;;  %v1652_v44 = vmul.f32 %v1651_v59, %v7684_v49  ;;  %v7783_v60 = vmul.f32 %v1484_v8, %v7480_v48  ;;  %v1499_v13 = vmul.f32 %v7739_v11, %v1498_v32 }
 0x216   :  { %v1537_v47 = vmul.f32 %v7771_v27, %v7731_v57  ;;  %v7789_v30 = vadd.f32 %v760_v28, %v6846_v62  ;;  %v1597_v52 = vmul.f32 %v1596_v3, %v7681_v34  ;;  %v1613_v55 = vadd.f32 0.4994258, %v1612_v40 }
 0x217   :  { %v1636_v42 = vadd.f32 0.00028619796, %v1635_v37  ;;  %v1689_v43 = vadd.f32 0.014752088, %v1688_v58  ;;  %v7793_v41 = vmul.f32 %v5038_v1, %v7585_v54  ;;  %v7795_v22 = vadd.f32 1.0, %v5901_v33  ;;  %v849_v58 = vpop.f32.mrf.mxu2 }
 0x218   :  { %vm1501_vm12 = vweird.f32 %v7679_v23  ;;  %v1653_v48 = vadd.f32 0.4994258, %v1652_v44  ;;  %vm7798_vm13 = vcmp.eq.f32.partialorder %v1505_v10, 8.507059e+37  ;;  %v1508_v8 = vor.u32 1.1754944e-38, %v1507_v7 }
 0x219   :  { %12981 = vst [vmem:[#allocation65_spill] sm:$0xff] %v7793_v41  ;;  %v1524_v32 = vadd.f32 1.1283791, %v1523_v14  ;;  %v1562_v50 = vadd.f32 0.18741608, %v1561_v53  ;;  %v7803_v3 = vmul.f32 0.5, %v7625_v39  ;;  %v7805_v40 = vpop.eup %6021  ;;  %v1500_v54 = vadd.f32 %v7739_v11, %v1499_v13 }
 0x21a   :  { %vm1502_vm14 = vweird.f32 %v7739_v11  ;;  %v1690_v1 = vmul.f32 %v1689_v43, %v7747_v63  ;;  %v7811_v37 = vmul.f32 0.70710677, %v7789_v30  ;;  %v1538_v59 = vsub.f32 1.0, %v1537_v47 }
 0x21b   :  { %v1598_v28 = vadd.f32 0.0036580483, %v1597_v52  ;;  %v1614_v33 = vmul.f32 %v1613_v55, %v7681_v34  ;;  %v1637_v10 = vmul.f32 %v1636_v42, %v7684_v49  ;;  %v1654_v39 = vmul.f32 %v1653_v48, %v7684_v49  ;;  %vm7832_vm15 = vmor %vm1501_vm12, %vm1502_vm14 }
 0x21c   :  { %v1675_v7 = vmul.f32 2.1237322e-06, %v7747_v63  ;;  %v1691_v14 = vadd.f32 0.112945676, %v1690_v1  ;;  %v1713_v53 = vmul.f32 %v7811_v37, %v7811_v37  ;;  %v7820_v44 = vmul.f32 %v1524_v32, %v7494_v0 }
 0x21d   :  { %v1563_v13 = vmul.f32 %v1562_v50, %v7548_v17  ;;  %v1577_v47 = vmul.f32 %v7805_v40, %v7764_v5  ;;  %v7826_v52 = vmul.f32 0.5, %v7655_v35  ;;  %v1545_v42 = vand.u32 2147483647, %v7731_v57 }
 0x21e   :  { %v1692_v0 = vmul.f32 %v1691_v14, %v7747_v63  ;;  %v7838_v43 = vmin.f32 %v1713_v53, 16.0  ;;  %v7841_v17 = vadd.f32 %v849_v58, %v6892_v6  ;;  %v1504_v35 = vsel %vm7832_vm15, %v7739_v11, %v1500_v54  ;;  %v938_v53 = vpop.f32.mrf.mxu3 }
 0x21f   :  { %vm1541_vm0 = vweird.f32 %v7731_v57  ;;  %v7847_v23 = vadd.f32 1.0, %v1614_v33  ;;  %v1638_v48 = vadd.f32 0.0036580483, %v1637_v10  ;;  %v1539_v32 = vmul.f32 %v7771_v27, %v1538_v59 }
 0x220   :  { %v1599_v50 = vmul.f32 %v1598_v28, %v7681_v34  ;;  %v7851_v1 = vadd.f32 1.0, %v1654_v39  ;;  %v1676_v14 = vadd.f32 0.00028619796, %v1675_v7  ;;  %v1547_v58 = vand.u32 2147483648, %v7731_v57 }
 0x221   :  { %v1564_v24 = vadd.f32 1.1283791, %v1563_v13  ;;  %v1578_v21 = vsub.f32 1.0, %v1577_v47  ;;  %v1726_v55 = vmul.f32 3.8918573e-05, %v7838_v43  ;;  %v1509_v11 = vsel %vm7798_vm13, %v1508_v8, %v1504_v35 }
 0x222   :  { %vm1542_vm1 = vweird.f32 %v7771_v27  ;;  %vm7858_vm2 = vcmp.eq.f32.partialorder %v1545_v42, 8.507059e+37  ;;  %v1693_v59 = vadd.f32 0.4994258, %v1692_v0  ;;  %v7863_v28 = vmul.f32 0.70710677, %v7841_v17 }
 0x223   :  { %6023 = vrcp.f32 %v7847_v23  ;;  %v1639_v33 = vmul.f32 %v1638_v48, %v7684_v49  ;;  %v1727_v10 = vadd.f32 0.001143296, %v1726_v55  ;;  %v7868_v39 = vadd.f32 %v938_v53, %v6894_v26  ;;  %vm7885_vm3 = vmor %vm1541_vm0, %vm1542_vm1 }
 0x224   :  { %v1540_v45 = vadd.f32 %v7771_v27, %v1539_v32  ;;  %v1600_v8 = vadd.f32 0.05243302, %v1599_v50  ;;  %6025 = vrcp.f32 %v7851_v1  ;;  %v1677_v7 = vmul.f32 %v1676_v14, %v7747_v63 }
 0x225   :  { %v1548_v13 = vor.u32 1.1754944e-38, %v1547_v58  ;;  %v1579_v47 = vmul.f32 %v7805_v40, %v1578_v21  ;;  %v1585_v42 = vand.u32 2147483647, %v7764_v5  ;;  %v1753_v0 = vmul.f32 %v7863_v28, %v7863_v28 }
 0x226   :  { %v1510_v35 = vmul.f32 %v1509_v11, %v7783_v60  ;;  %v1565_v48 = vmul.f32 %v1564_v24, %v7509_v51  ;;  %v1694_v53 = vmul.f32 %v1693_v59, %v7747_v63  ;;  %v1728_v32 = vmul.f32 %v1727_v10, %v7838_v43 }
 0x227   :  { %v1587_v21 = vand.u32 2147483648, %v7764_v5  ;;  %v1640_v14 = vadd.f32 0.05243302, %v1639_v33  ;;  %v7891_v58 = vmul.f32 0.5, %v7687_v4  ;;  %v7894_v24 = vmul.f32 0.70710677, %v7868_v39  ;;  %v674_v33 = vpop.f32.mrf.mxu0 }
 0x228   :  { %v1544_v51 = vsel %vm7885_vm3, %v7771_v27, %v1540_v45  ;;  %v1601_v60 = vmul.f32 %v1600_v8, %v7681_v34  ;;  %v1678_v57 = vadd.f32 0.0036580483, %v1677_v7  ;;  %v7900_v55 = vmin.f32 %v1753_v0, 16.0 }
 0x229   :  { %v7902_v11 = vpop.eup %6023  ;;  %v1580_v59 = vadd.f32 %v7805_v40, %v1579_v47  ;;  %vm1581_vm4 = vweird.f32 %v7764_v5  ;;  %vm1582_vm5 = vweird.f32 %v7805_v40  ;;  %vm7907_vm6 = vcmp.eq.f32.partialorder %v1585_v42, 8.507059e+37 }
 0x22a   :  { %v7911_v10 = vpop.eup %6025  ;;  %v5902_v27 = vclamps-f32 %v1510_v35, 1.0  ;;  %v7913_v45 = vadd.f32 1.0, %v1694_v53  ;;  %v1729_v8 = vadd.f32 0.014752088, %v1728_v32  ;;  %v1766_v7 = vmul.f32 3.8918573e-05, %v7900_v55  ;;  %vm7921_vm7 = vmor %vm1581_vm4, %vm1582_vm5 }
 0x22b   :  { %v1549_v47 = vsel %vm7858_vm2, %v1548_v13, %v1544_v51  ;;  %v1588_v0 = vor.u32 1.1754944e-38, %v1587_v21  ;;  %v1641_v5 = vmul.f32 %v1640_v14, %v7684_v49  ;;  %v1793_v42 = vmul.f32 %v7894_v24, %v7894_v24  ;;  %v5355_v51 = vld [vmem:[#allocation11 + $0x110] sm:$0xff] }
 0x22c   :  { %v1602_v12 = vadd.f32 0.18741608, %v1601_v60  ;;  %v1679_v35 = vmul.f32 %v1678_v57, %v7747_v63  ;;  %v1767_v53 = vadd.f32 0.001143296, %v1766_v7  ;;  %v7927_v32 = vadd.f32 %v674_v33, %v6844_v56  ;;  %5576 = vmatpush.msra.mxu2 %v5355_v51 }
 0x22d   :  { %v1584_v54 = vsel %vm7921_vm7, %v7805_v40, %v1580_v59  ;;  %v1617_v13 = vmul.f32 %v7902_v11, %v7847_v23  ;;  %v1657_v21 = vmul.f32 %v7911_v10, %v7851_v1  ;;  %v1715_v14 = vmul.f32 2.1237322e-06, %v7838_v43 }
 0x22e   :  { %v5040_v60 = vadd.f32 1.0, %v5902_v27  ;;  %6027 = vrcp.f32 %v7913_v45  ;;  %v7939_v57 = vmul.f32 0.5, %v7789_v30  ;;  %v1730_v33 = vmul.f32 %v1729_v8, %v7838_v43 }
 0x22f   :  { %v7943_v40 = vmul.f32 %v1549_v47, %v7820_v44  ;;  %v1642_v59 = vadd.f32 0.18741608, %v1641_v5  ;;  %v1768_v7 = vmul.f32 %v1767_v53, %v7900_v55  ;;  %v7946_v50 = vmin.f32 %v1793_v42, 16.0 }
 0x230   :  { %v1589_v16 = vsel %vm7907_vm6, %v1588_v0, %v1584_v54  ;;  %v1603_v27 = vmul.f32 %v1602_v12, %v7681_v34  ;;  %v1680_v15 = vadd.f32 0.05243302, %v1679_v35  ;;  %v7952_v30 = vmul.f32 0.70710677, %v7927_v32  ;;  %v763_v12 = vpop.f32.mrf.mxu1 }
 0x231   :  { %v1618_v41 = vsub.f32 1.0, %v1617_v13  ;;  %v1658_v8 = vsub.f32 1.0, %v1657_v21  ;;  %v1716_v51 = vadd.f32 0.00028619796, %v1715_v14  ;;  %v1769_v46 = vadd.f32 0.014752088, %v1768_v7 }
 0x232   :  { %v7956_v44 = vmul.f32 %v7795_v22, %v7591_v19  ;;  %v1731_v47 = vadd.f32 0.112945676, %v1730_v33  ;;  %v1755_v5 = vmul.f32 2.1237322e-06, %v7900_v55  ;;  %v1806_v4 = vmul.f32 3.8918573e-05, %v7946_v50 }
 0x233   :  { %v7961_v0 = vmul.f32 %v5040_v60, %v7638_v9  ;;  %v7964_v34 = vmul.f32 %v1589_v16, %v1565_v48  ;;  %v1643_v42 = vmul.f32 %v1642_v59, %v7684_v49  ;;  %v1604_v53 = vadd.f32 1.1283791, %v1603_v27 }
 0x234   :  { %v7967_v35 = vpop.eup %6027  ;;  %v1770_v19 = vmul.f32 %v1769_v46, %v7900_v55  ;;  %v1807_v22 = vadd.f32 0.001143296, %v1806_v4  ;;  %v1833_v54 = vmul.f32 %v7952_v30, %v7952_v30  ;;  %v1619_v13 = vmul.f32 %v7902_v11, %v1618_v41 }
 0x235   :  { %12994 = vst [vmem:[#allocation23_spill] sm:$0xff] %v7961_v0  ;;  %vm1621_vm8 = vweird.f32 %v7847_v23  ;;  %v1681_v9 = vmul.f32 %v1680_v15, %v7747_v63  ;;  %v1717_v16 = vmul.f32 %v1716_v51, %v7838_v43  ;;  %v1625_v48 = vand.u32 2147483647, %v7847_v23 }
 0x236   :  { %v1659_v49 = vmul.f32 %v7911_v10, %v1658_v8  ;;  %v1732_v21 = vmul.f32 %v1731_v47, %v7838_v43  ;;  %v1756_v14 = vadd.f32 0.00028619796, %v1755_v5  ;;  %v1627_v60 = vand.u32 2147483648, %v7847_v23  ;;  %v5371_v23 = vld [vmem:[#allocation11 + $0x190] sm:$0xff] }
 0x237   :  { %v1644_v33 = vadd.f32 1.1283791, %v1643_v42  ;;  %v1697_v41 = vmul.f32 %v7967_v35, %v7913_v45  ;;  %vm1622_vm9 = vweird.f32 %v7902_v11  ;;  %v1771_v15 = vadd.f32 0.112945676, %v1770_v19  ;;  %5665 = vmatpush.msra.mxu3 %v5371_v23 }
 0x238   :  { %v1808_v59 = vmul.f32 %v1807_v22, %v7946_v50  ;;  %v7985_v7 = vmin.f32 %v1833_v54, 16.0  ;;  %v1620_v27 = vadd.f32 %v7902_v11, %v1619_v13  ;;  %vm1662_vm10 = vweird.f32 %v7911_v10  ;;  %vm8000_vm12 = vmor %vm1621_vm8, %vm1622_vm9 }
 0x239   :  { %v1682_v8 = vadd.f32 0.18741608, %v1681_v9  ;;  %v1718_v51 = vadd.f32 0.0036580483, %v1717_v16  ;;  %v1660_v47 = vadd.f32 %v7911_v10, %v1659_v49  ;;  %v1733_v5 = vadd.f32 0.4994258, %v1732_v21 }
 0x23a   :  { %v1757_v4 = vmul.f32 %v1756_v14, %v7900_v55  ;;  %v1809_v42 = vadd.f32 0.014752088, %v1808_v59  ;;  %vm7991_vm11 = vcmp.eq.f32.partialorder %v1625_v48, 8.507059e+37  ;;  %v1628_v19 = vor.u32 1.1754944e-38, %v1627_v60 }
 0x23b   :  { %v1698_v22 = vsub.f32 1.0, %v1697_v41  ;;  %v1846_v54 = vmul.f32 3.8918573e-05, %v7985_v7  ;;  %vm1661_vm13 = vweird.f32 %v7851_v1  ;;  %v1667_v9 = vand.u32 2147483648, %v7851_v1 }
 0x23c   :  { %v1772_v16 = vmul.f32 %v1771_v15, %v7900_v55  ;;  %v1810_v48 = vmul.f32 %v1809_v42, %v7946_v50  ;;  %v1624_v49 = vsel %vm8000_vm12, %v7902_v11, %v1620_v27  ;;  %vm8013_vm14 = vmor %vm1661_vm13, %vm1662_vm10  ;;  %v1665_v21 = vand.u32 2147483647, %v7851_v1 }
 0x23d   :  { %v1683_v14 = vmul.f32 %v1682_v8, %v7747_v63  ;;  %v1719_v60 = vmul.f32 %v1718_v51, %v7838_v43  ;;  %v1664_v41 = vsel %vm8013_vm14, %v7911_v10, %v1660_v47  ;;  %v1734_v15 = vmul.f32 %v1733_v5, %v7838_v43  ;;  %v5323_v10 = vld [vmem:[#allocation11 + $0x10] sm:$0xff] }
 0x23e   :  { %v1758_v59 = vadd.f32 0.0036580483, %v1757_v4  ;;  %v8025_v11 = vadd.f32 %v763_v12, %v6846_v62  ;;  %v1699_v27 = vmul.f32 %v7967_v35, %v1698_v22  ;;  %v1795_v42 = vmul.f32 2.1237322e-06, %v7946_v50  ;;  %v5339_v47 = vld [vmem:[#allocation11 + $0x90] sm:$0xff]  ;;  %5398 = vmatpush.msra.mxu0 %v5323_v10 }
 0x23f   :  { %v1811_v13 = vadd.f32 0.112945676, %v1810_v48  ;;  %v1847_v1 = vadd.f32 0.001143296, %v1846_v54  ;;  %v1605_v63 = vmul.f32 %v1604_v53, %v7661_v18  ;;  %v1645_v8 = vmul.f32 %v1644_v33, %v7668_v61  ;;  %5487 = vmatpush.msra.mxu1 %v5339_v47 }
 0x240   :  { %v1668_v51 = vor.u32 1.1754944e-38, %v1667_v9  ;;  %v1773_v0 = vadd.f32 0.4994258, %v1772_v16  ;;  %v1629_v5 = vsel %vm7991_vm11, %v1628_v19, %v1624_v49  ;;  %vm1666_vm15 = vcmp.eq.f32.partialorder %v1665_v21, 8.507059e+37  ;;  %v852_v19 = vpop.f32.mrf.mxu2 }
 0x241   :  { %v1684_v12 = vadd.f32 1.1283791, %v1683_v14  ;;  %v1720_v4 = vadd.f32 0.05243302, %v1719_v60  ;;  %v8033_v48 = vadd.f32 1.0, %v1734_v15  ;;  %v1848_v18 = vmul.f32 %v1847_v1, %v7985_v7 }
 0x242   :  { %v1669_v22 = vsel %vm1666_vm15, %v1668_v51, %v1664_v41  ;;  %v8037_v61 = vmul.f32 0.70710677, %v8025_v11  ;;  %v1700_v53 = vadd.f32 %v7967_v35, %v1699_v27  ;;  %vm1702_vm0 = vweird.f32 %v7967_v35 }
 0x243   :  { %v1759_v46 = vmul.f32 %v1758_v59, %v7900_v55  ;;  %v1812_v33 = vmul.f32 %v1811_v13, %v7946_v50  ;;  %v1774_v54 = vmul.f32 %v1773_v0, %v7900_v55  ;;  %v1796_v9 = vadd.f32 0.00028619796, %v1795_v42 }
 0x244   :  { %v1849_v16 = vadd.f32 0.014752088, %v1848_v18  ;;  %v1873_v49 = vmul.f32 %v8037_v61, %v8037_v61  ;;  %vm1701_vm1 = vweird.f32 %v7913_v45  ;;  %v1705_v21 = vand.u32 2147483647, %v7913_v45 }
 0x245   :  { %v1707_v14 = vand.u32 2147483648, %v7913_v45  ;;  %v1721_v60 = vmul.f32 %v1720_v4, %v7838_v43  ;;  %6029 = vrcp.f32 %v8033_v48  ;;  %v8055_v0 = vadd.f32 %v852_v19, %v6892_v6  ;;  %vm8061_vm2 = vmor %vm1701_vm1, %vm1702_vm0 }
 0x246   :  { %v1850_v41 = vmul.f32 %v1849_v16, %v7985_v7  ;;  %v8052_v15 = vmin.f32 %v1873_v49, 16.0  ;;  %v13001_v59 = vclamps-f32 %v7943_v40, 1.0  ;;  %v1630_v42 = vmul.f32 %v1629_v5, %v1605_v63 }
 0x247   :  { %v1670_v13 = vmul.f32 %v1669_v22, %v1645_v8  ;;  %v1813_v1 = vadd.f32 0.4994258, %v1812_v33  ;;  %v1704_v51 = vsel %vm8061_vm2, %v7967_v35, %v1700_v53  ;;  %v1760_v23 = vadd.f32 0.05243302, %v1759_v46  ;;  %v941_v35 = vpop.f32.mrf.mxu3 }
 0x248   :  { %v5041_v27 = vadd.f32 1.0, %v13001_v59  ;;  %v8068_v10 = vadd.f32 1.0, %v1774_v54  ;;  %v1797_v47 = vmul.f32 %v1796_v9, %v7946_v50  ;;  %v13004_v40 = vclamps-f32 %v7964_v34, 1.0 }
 0x249   :  { %v1708_v8 = vor.u32 1.1754944e-38, %v1707_v14  ;;  %v1722_v5 = vadd.f32 0.18741608, %v1721_v60  ;;  %v1886_v4 = vmul.f32 3.8918573e-05, %v8052_v15  ;;  %v1685_v22 = vmul.f32 %v1684_v12, %v7715_v25 }
 0x24a   :  { %v5042_v63 = vadd.f32 1.0, %v13004_v40  ;;  %vm1706_vm3 = vcmp.eq.f32.partialorder %v1705_v21, 8.507059e+37  ;;  %v1851_v18 = vadd.f32 0.112945676, %v1850_v41  ;;  %v8076_v33 = vmul.f32 0.70710677, %v8055_v0 }
 0x24b   :  { %v5905_v53 = vclamps-f32 %v1630_v42, 1.0  ;;  %v5906_v46 = vclamps-f32 %v1670_v13, 1.0  ;;  %v1709_v19 = vsel %vm1706_vm3, %v1708_v8, %v1704_v51  ;;  %v1814_v54 = vmul.f32 %v1813_v1, %v7946_v50  ;;  %v8079_v9 = vpop.eup %6029 }
 0x24c   :  { %v1761_v34 = vmul.f32 %v1760_v23, %v7900_v55  ;;  %6031 = vrcp.f32 %v8068_v10  ;;  %v1798_v16 = vadd.f32 0.0036580483, %v1797_v47  ;;  %v1887_v49 = vadd.f32 0.001143296, %v1886_v4 }
 0x24d   :  { %v8084_v25 = vmul.f32 %v5041_v27, %v7649_v36  ;;  %v8087_v12 = vmul.f32 %v5042_v63, %v7742_v29  ;;  %v1723_v21 = vmul.f32 %v1722_v5, %v7838_v43  ;;  %v8091_v14 = vadd.f32 %v941_v35, %v6894_v26 }
 0x24e   :  { %v1710_v60 = vmul.f32 %v1709_v19, %v1685_v22  ;;  %v1852_v41 = vmul.f32 %v1851_v18, %v7985_v7  ;;  %v1888_v59 = vmul.f32 %v1887_v49, %v8052_v15  ;;  %v1913_v42 = vmul.f32 %v8076_v33, %v8076_v33 }
 0x24f   :  { %v5043_v13 = vadd.f32 1.0, %v5905_v53  ;;  %v1737_v36 = vmul.f32 %v8079_v9, %v8033_v48  ;;  %v8099_v27 = vadd.f32 1.0, %v1814_v54  ;;  %v1835_v29 = vmul.f32 2.1237322e-06, %v7985_v7 }
 0x250   :  { %v5044_v43 = vadd.f32 1.0, %v5906_v46  ;;  %v1762_v45 = vadd.f32 0.18741608, %v1761_v34  ;;  %v1799_v1 = vmul.f32 %v1798_v16, %v7946_v50  ;;  %v8103_v51 = vmin.f32 %v1913_v42, 16.0 }
 0x251   :  { %v1724_v23 = vadd.f32 1.1283791, %v1723_v21  ;;  %v8106_v47 = vmul.f32 0.5, %v7841_v17  ;;  %v8109_v40 = vmul.f32 0.5, %v7868_v39  ;;  %v8112_v63 = vmul.f32 0.70710677, %v8091_v14 }
 0x252   :  { %v8114_v8 = vpop.eup %6031  ;;  %v5907_v5 = vclamps-f32 %v1710_v60, 1.0  ;;  %v8117_v4 = vmul.f32 0.5, %v7927_v32  ;;  %v1853_v22 = vadd.f32 0.4994258, %v1852_v41  ;;  %v1889_v18 = vadd.f32 0.014752088, %v1888_v59 }
 0x253   :  { %v1738_v35 = vsub.f32 1.0, %v1737_v36  ;;  %6033 = vrcp.f32 %v8099_v27  ;;  %v1836_v53 = vadd.f32 0.00028619796, %v1835_v29  ;;  %v1926_v17 = vmul.f32 3.8918573e-05, %v8103_v51 }
 0x254   :  { %v8122_v39 = vmul.f32 %v5043_v13, %v7803_v3  ;;  %v8125_v46 = vmul.f32 %v5044_v43, %v7826_v52  ;;  %v1763_v19 = vmul.f32 %v1762_v45, %v7900_v55  ;;  %v1800_v54 = vadd.f32 0.05243302, %v1799_v1 }
 0x255   :  { %v1745_v32 = vand.u32 2147483647, %v8033_v48  ;;  %v1777_v34 = vmul.f32 %v8114_v8, %v8068_v10  ;;  %v1875_v16 = vmul.f32 2.1237322e-06, %v8052_v15  ;;  %v1953_v49 = vmul.f32 %v8112_v63, %v8112_v63 }
 0x256   :  { %13005 = vst [vmem:[#allocation78_spill] sm:$0xff] %v8125_v46  ;;  %v1747_v21 = vand.u32 2147483648, %v8033_v48  ;;  %v1854_v3 = vmul.f32 %v1853_v22, %v7985_v7  ;;  %v1890_v52 = vmul.f32 %v1889_v18, %v8052_v15  ;;  %v1927_v60 = vadd.f32 0.001143296, %v1926_v17 }
 0x257   :  { %v5045_v41 = vadd.f32 1.0, %v5907_v5  ;;  %v8138_v55 = vmul.f32 %v1724_v23, %v7811_v37  ;;  %v1739_v59 = vmul.f32 %v8079_v9, %v1738_v35  ;;  %v1837_v42 = vmul.f32 %v1836_v53, %v7985_v7 }
 0x258   :  { %vm1741_vm4 = vweird.f32 %v8033_v48  ;;  %v1764_v13 = vadd.f32 1.1283791, %v1763_v19  ;;  %v1801_v36 = vmul.f32 %v1800_v54, %v7946_v50  ;;  %v1928_v29 = vmul.f32 %v1927_v60, %v8103_v51 }
 0x259   :  { %v8145_v43 = vpop.eup %6033  ;;  %vm8147_vm5 = vcmp.eq.f32.partialorder %v1745_v32, 8.507059e+37  ;;  %v1778_v1 = vsub.f32 1.0, %v1777_v34  ;;  %v1876_v37 = vadd.f32 0.00028619796, %v1875_v16  ;;  %v8151_v23 = vmin.f32 %v1953_v49, 16.0 }
 0x25a   :  { %v1748_v5 = vor.u32 1.1754944e-38, %v1747_v21  ;;  %v8153_v22 = vadd.f32 1.0, %v1854_v3  ;;  %v1891_v18 = vadd.f32 0.112945676, %v1890_v52  ;;  %v1929_v35 = vadd.f32 0.014752088, %v1928_v29  ;;  %v677_v52 = vpop.f32.mrf.mxu0 }
 0x25b   :  { %v8156_v53 = vmul.f32 %v5045_v41, %v7891_v58  ;;  %v1740_v17 = vadd.f32 %v8079_v9, %v1739_v59  ;;  %vm1742_vm6 = vweird.f32 %v8079_v9  ;;  %v1838_v19 = vadd.f32 0.0036580483, %v1837_v42 }
 0x25c   :  { %v8161_v54 = vmul.f32 %v1764_v13, %v7863_v28  ;;  %v1802_v32 = vadd.f32 0.18741608, %v1801_v36  ;;  %v1817_v34 = vmul.f32 %v8145_v43, %v8099_v27  ;;  %v1930_v16 = vmul.f32 %v1929_v35, %v8103_v51  ;;  %vm8174_vm7 = vmor %vm1741_vm4, %vm1742_vm6  ;;  %v766_v36 = vpop.f32.mrf.mxu1 }
 0x25d   :  { %13008 = vst [vmem:[#allocation79_spill] sm:$0xff] %v8156_v53  ;;  %v1779_v49 = vmul.f32 %v8114_v8, %v1778_v1  ;;  %v8168_v21 = vmul.f32 0.5, %v8025_v11  ;;  %v1877_v58 = vmul.f32 %v1876_v37, %v8052_v15  ;;  %v1966_v3 = vmul.f32 3.8918573e-05, %v8151_v23 }
 0x25e   :  { %v1785_v60 = vand.u32 2147483647, %v8068_v10  ;;  %6035 = vrcp.f32 %v8153_v22  ;;  %v1892_v41 = vmul.f32 %v1891_v18, %v8052_v15  ;;  %v1931_v59 = vadd.f32 0.112945676, %v1930_v16 }
 0x25f   :  { %v1744_v11 = vsel %vm8174_vm7, %v8079_v9, %v1740_v17  ;;  %v1787_v42 = vand.u32 2147483648, %v8068_v10  ;;  %v1839_v13 = vmul.f32 %v1838_v19, %v7985_v7  ;;  %v1967_v48 = vadd.f32 0.001143296, %v1966_v3 }
 0x260   :  { %vm1781_vm8 = vweird.f32 %v8068_v10  ;;  %v1803_v29 = vmul.f32 %v1802_v32, %v7946_v50  ;;  %v1818_v1 = vsub.f32 1.0, %v1817_v34  ;;  %v8189_v37 = vadd.f32 %v677_v52, %v6844_v56  ;;  %v5354_v50 = vld [vmem:[#allocation11 + $0x108] sm:$0xff] }
 0x261   :  { %v1780_v18 = vadd.f32 %v8114_v8, %v1779_v49  ;;  %vm1782_vm9 = vweird.f32 %v8114_v8  ;;  %v1878_v35 = vadd.f32 0.0036580483, %v1877_v58  ;;  %v1915_v9 = vmul.f32 2.1237322e-06, %v8103_v51  ;;  %v5370_v32 = vld [vmem:[#allocation11 + $0x188] sm:$0xff]  ;;  %5577 = vmatpush.msra.mxu2 %v5354_v50 }
 0x262   :  { %v1749_v17 = vsel %vm8147_vm5, %v1748_v5, %v1744_v11  ;;  %v1893_v19 = vadd.f32 0.4994258, %v1892_v41  ;;  %v1932_v16 = vmul.f32 %v1931_v59, %v8103_v51  ;;  %v8198_v3 = vadd.f32 %v766_v36, %v6846_v62  ;;  %5666 = vmatpush.msra.mxu3 %v5370_v32  ;;  %vm8211_vm11 = vmor %vm1781_vm8, %vm1782_vm9  ;;  %v855_v5 = vpop.f32.mrf.mxu2 }
 0x263   :  { %vm8200_vm10 = vcmp.eq.f32.partialorder %v1785_v60, 8.507059e+37  ;;  %v1788_v49 = vor.u32 1.1754944e-38, %v1787_v42  ;;  %v1840_v52 = vadd.f32 0.05243302, %v1839_v13  ;;  %v1968_v58 = vmul.f32 %v1967_v48, %v8151_v23 }
 0x264   :  { %v8205_v45 = vpop.eup %6035  ;;  %v1804_v28 = vadd.f32 1.1283791, %v1803_v29  ;;  %v1819_v60 = vmul.f32 %v8145_v43, %v1818_v1  ;;  %v8217_v41 = vmul.f32 0.5, %v8055_v0  ;;  %v8220_v59 = vmul.f32 0.70710677, %v8189_v37 }
 0x265   :  { %v1750_v11 = vmul.f32 %v1749_v17, %v8138_v55  ;;  %v1784_v42 = vsel %vm8211_vm11, %v8114_v8, %v1780_v18  ;;  %v1879_v10 = vmul.f32 %v1878_v35, %v8052_v15  ;;  %v1916_v13 = vadd.f32 0.00028619796, %v1915_v9 }
 0x266   :  { %v1894_v48 = vmul.f32 %v1893_v19, %v8052_v15  ;;  %v1933_v36 = vadd.f32 0.4994258, %v1932_v16  ;;  %v1993_v29 = vmul.f32 %v8220_v59, %v8220_v59  ;;  %v8231_v0 = vmul.f32 0.70710677, %v8198_v3 }
 0x267   :  { %v1827_v1 = vand.u32 2147483648, %v8099_v27  ;;  %v1841_v55 = vmul.f32 %v1840_v52, %v7985_v7  ;;  %v1857_v17 = vmul.f32 %v8205_v45, %v8153_v22  ;;  %v1969_v8 = vadd.f32 0.014752088, %v1968_v58 }
 0x268   :  { %v1789_v18 = vsel %vm8200_vm10, %v1788_v49, %v1784_v42  ;;  %v1820_v35 = vadd.f32 %v8145_v43, %v1819_v60  ;;  %vm1822_vm12 = vweird.f32 %v8145_v43  ;;  %v8241_v9 = vmin.f32 %v1993_v29, 16.0 }
 0x269   :  { %v1880_v19 = vadd.f32 0.05243302, %v1879_v10  ;;  %v1917_v16 = vmul.f32 %v1916_v13, %v8103_v51  ;;  %v1955_v50 = vmul.f32 2.1237322e-06, %v8151_v23  ;;  %v2033_v32 = vmul.f32 %v8231_v0, %v8231_v0 }
 0x26a   :  { %vm1821_vm13 = vweird.f32 %v8099_v27  ;;  %v1825_v52 = vand.u32 2147483647, %v8099_v27  ;;  %v8249_v34 = vadd.f32 1.0, %v1894_v48  ;;  %v1934_v49 = vmul.f32 %v1933_v36, %v8103_v51 }
 0x26b   :  { %v5908_v58 = vclamps-f32 %v1750_v11, 1.0  ;;  %vm8252_vm14 = vmor %vm1821_vm13, %vm1822_vm12  ;;  %v1842_v60 = vadd.f32 0.18741608, %v1841_v55  ;;  %v1858_v42 = vsub.f32 1.0, %v1857_v17  ;;  %v1970_v10 = vmul.f32 %v1969_v8, %v8151_v23 }
 0x26c   :  { %v1790_v13 = vmul.f32 %v1789_v18, %v8161_v54  ;;  %v1824_v29 = vsel %vm8252_vm14, %v8145_v43, %v1820_v35  ;;  %v1828_v27 = vor.u32 1.1754944e-38, %v1827_v1  ;;  %v2006_v48 = vmul.f32 3.8918573e-05, %v8241_v9 }
 0x26d   :  { %v1881_v36 = vmul.f32 %v1880_v19, %v8052_v15  ;;  %v1918_v11 = vadd.f32 0.0036580483, %v1917_v16  ;;  %v1956_v53 = vadd.f32 0.00028619796, %v1955_v50  ;;  %v8263_v46 = vmin.f32 %v2033_v32, 16.0 }
 0x26e   :  { %vm1826_vm15 = vcmp.eq.f32.partialorder %v1825_v52, 8.507059e+37  ;;  %6037 = vrcp.f32 %v8249_v34  ;;  %v8266_v55 = vadd.f32 1.0, %v1934_v49  ;;  %v2007_v17 = vadd.f32 0.001143296, %v2006_v48 }
 0x26f   :  { %v1805_v54 = vmul.f32 %v1804_v28, %v7894_v24  ;;  %v1829_v8 = vsel %vm1826_vm15, %v1828_v27, %v1824_v29  ;;  %v1859_v43 = vmul.f32 %v8205_v45, %v1858_v42  ;;  %v1971_v1 = vadd.f32 0.112945676, %v1970_v10  ;;  %v5322_v29 = vld [vmem:[#allocation11 + $0x8] sm:$0xff] }
 0x270   :  { %v5046_v18 = vadd.f32 1.0, %v5908_v58  ;;  %v1843_v35 = vmul.f32 %v1842_v60, %v7985_v7  ;;  %v2008_v19 = vmul.f32 %v2007_v17, %v8241_v9  ;;  %v2046_v16 = vmul.f32 3.8918573e-05, %v8263_v46  ;;  %v5338_v27 = vld [vmem:[#allocation11 + $0x88] sm:$0xff]  ;;  %5399 = vmatpush.msra.mxu0 %v5322_v29 }
 0x271   :  { %v5909_v50 = vclamps-f32 %v1790_v13, 1.0  ;;  %v1882_v32 = vadd.f32 0.18741608, %v1881_v36  ;;  %v1919_v52 = vmul.f32 %v1918_v11, %v8103_v51  ;;  %v1957_v49 = vmul.f32 %v1956_v53, %v8151_v23  ;;  %5488 = vmatpush.msra.mxu1 %v5338_v27 }
 0x272   :  { %v1830_v48 = vmul.f32 %v1829_v8, %v1805_v54  ;;  %v1867_v24 = vand.u32 2147483648, %v8153_v22  ;;  %6039 = vrcp.f32 %v8266_v55  ;;  %v2009_v28 = vadd.f32 0.014752088, %v2008_v19 }
 0x273   :  { %v1860_v58 = vadd.f32 %v8205_v45, %v1859_v43  ;;  %vm1862_vm0 = vweird.f32 %v8205_v45  ;;  %v1972_v7 = vmul.f32 %v1971_v1, %v8151_v23  ;;  %v2047_v60 = vadd.f32 0.001143296, %v2046_v16 }
 0x274   :  { %v8280_v42 = vpop.eup %6037  ;;  %vm1861_vm1 = vweird.f32 %v8153_v22  ;;  %v1865_v53 = vand.u32 2147483647, %v8153_v22  ;;  %v8285_v10 = vmul.f32 0.5, %v8091_v14  ;;  %v8288_v13 = vadd.f32 %v855_v5, %v6892_v6 }
 0x275   :  { %v1883_v36 = vmul.f32 %v1882_v32, %v8052_v15  ;;  %v1920_v11 = vadd.f32 0.05243302, %v1919_v52  ;;  %v1958_v17 = vadd.f32 0.0036580483, %v1957_v49  ;;  %v2010_v54 = vmul.f32 %v2009_v28, %v8241_v9  ;;  %vm8294_vm2 = vmor %vm1861_vm1, %vm1862_vm0 }
 0x276   :  { %v5047_v8 = vadd.f32 1.0, %v5909_v50  ;;  %v1844_v43 = vadd.f32 1.1283791, %v1843_v35  ;;  %v1868_v22 = vor.u32 1.1754944e-38, %v1867_v24  ;;  %v2048_v1 = vmul.f32 %v2047_v60, %v8263_v46  ;;  %v944_v24 = vpop.f32.mrf.mxu3 }
 0x277   :  { %v5910_v19 = vclamps-f32 %v1830_v48, 1.0  ;;  %v1864_v15 = vsel %vm8294_vm2, %v8205_v45, %v1860_v58  ;;  %v1897_v16 = vmul.f32 %v8280_v42, %v8249_v34  ;;  %v1973_v32 = vadd.f32 0.4994258, %v1972_v7 }
 0x278   :  { %v8304_v50 = vpop.eup %6039  ;;  %v8307_v35 = vmul.f32 %v5046_v18, %v7939_v57  ;;  %v2011_v52 = vadd.f32 0.112945676, %v2010_v54  ;;  %v2049_v49 = vadd.f32 0.014752088, %v2048_v1  ;;  %v8310_v5 = vmul.f32 0.70710677, %v8288_v13 }
 0x279   :  { %vm1866_vm3 = vcmp.eq.f32.partialorder %v1865_v53, 8.507059e+37  ;;  %v1884_v48 = vadd.f32 1.1283791, %v1883_v36  ;;  %v1921_v28 = vmul.f32 %v1920_v11, %v8103_v51  ;;  %v1959_v45 = vmul.f32 %v1958_v17, %v8151_v23 }
 0x27a   :  { %13019 = vst [vmem:[#allocation120_spill] sm:$0xff] %v8307_v35  ;;  %v8315_v58 = vmul.f32 %v5047_v8, %v8106_v47  ;;  %v1845_v7 = vmul.f32 %v1844_v43, %v7952_v30  ;;  %v1869_v60 = vsel %vm1866_vm3, %v1868_v22, %v1864_v15  ;;  %v1995_v57 = vmul.f32 2.1237322e-06, %v8241_v9 }
 0x27b   :  { %v1898_v18 = vsub.f32 1.0, %v1897_v16  ;;  %v1937_v29 = vmul.f32 %v8304_v50, %v8266_v55  ;;  %v1974_v27 = vmul.f32 %v1973_v32, %v8151_v23  ;;  %v8323_v53 = vadd.f32 %v944_v24, %v6894_v26 }
 0x27c   :  { %13020 = vst [vmem:[#allocation121_spill] sm:$0xff] %v8315_v58  ;;  %v5048_v36 = vadd.f32 1.0, %v5910_v19  ;;  %v2012_v11 = vmul.f32 %v2011_v52, %v8241_v9  ;;  %v2050_v47 = vmul.f32 %v2049_v49, %v8263_v46  ;;  %v2073_v30 = vmul.f32 %v8310_v5, %v8310_v5 }
 0x27d   :  { %v8330_v17 = vmul.f32 %v1884_v48, %v8037_v61  ;;  %v1905_v54 = vand.u32 2147483647, %v8249_v34  ;;  %v1922_v8 = vadd.f32 0.18741608, %v1921_v28  ;;  %v1960_v43 = vadd.f32 0.05243302, %v1959_v45 }
 0x27e   :  { %v1870_v14 = vmul.f32 %v1869_v60, %v1845_v7  ;;  %vm1901_vm4 = vweird.f32 %v8249_v34  ;;  %v1996_v22 = vadd.f32 0.00028619796, %v1995_v57  ;;  %v2035_v1 = vmul.f32 2.1237322e-06, %v8263_v46  ;;  %v680_v60 = vpop.f32.mrf.mxu0 }
 0x27f   :  { %v1899_v19 = vmul.f32 %v8280_v42, %v1898_v18  ;;  %v1938_v15 = vsub.f32 1.0, %v1937_v29  ;;  %v8336_v16 = vadd.f32 1.0, %v1974_v27  ;;  %v8339_v32 = vmul.f32 0.70710677, %v8323_v53 }
 0x280   :  { %v1907_v61 = vand.u32 2147483648, %v8249_v34  ;;  %v2013_v52 = vadd.f32 0.4994258, %v2012_v11  ;;  %v2051_v49 = vadd.f32 0.112945676, %v2050_v47  ;;  %v8342_v24 = vmin.f32 %v2073_v30, 16.0 }
 0x281   :  { %v8345_v48 = vmul.f32 %v5048_v36, %v8109_v40  ;;  %vm8347_vm5 = vcmp.eq.f32.partialorder %v1905_v54, 8.507059e+37  ;;  %v1923_v45 = vmul.f32 %v1922_v8, %v8103_v51  ;;  %v1961_v7 = vmul.f32 %v1960_v43, %v8151_v23 }
 0x282   :  { %v5911_v57 = vclamps-f32 %v1870_v14, 1.0  ;;  %vm1902_vm6 = vweird.f32 %v8280_v42  ;;  %v1997_v18 = vmul.f32 %v1996_v22, %v8241_v9  ;;  %v2036_v29 = vadd.f32 0.00028619796, %v2035_v1 }
 0x283   :  { %13021 = vst [vmem:[#allocation122_spill] sm:$0xff] %v8345_v48  ;;  %v1900_v27 = vadd.f32 %v8280_v42, %v1899_v19  ;;  %v1939_v40 = vmul.f32 %v8304_v50, %v1938_v15  ;;  %6041 = vrcp.f32 %v8336_v16  ;;  %v2113_v36 = vmul.f32 %v8339_v32, %v8339_v32  ;;  %vm8373_vm7 = vmor %vm1901_vm4, %vm1902_vm6 }
 0x284   :  { %v2014_v51 = vmul.f32 %v2013_v52, %v8241_v9  ;;  %v2052_v11 = vmul.f32 %v2051_v49, %v8263_v46  ;;  %v2086_v47 = vmul.f32 3.8918573e-05, %v8342_v24  ;;  %v8364_v30 = vadd.f32 %v680_v60, %v6844_v56 }
 0x285   :  { %v1908_v54 = vor.u32 1.1754944e-38, %v1907_v61  ;;  %v1924_v8 = vadd.f32 1.1283791, %v1923_v45  ;;  %v1962_v43 = vadd.f32 0.18741608, %v1961_v7  ;;  %v8367_v14 = vmul.f32 0.5, %v8189_v37 }
 0x286   :  { %v5049_v22 = vadd.f32 1.0, %v5911_v57  ;;  %v1998_v19 = vadd.f32 0.0036580483, %v1997_v18  ;;  %v2037_v15 = vmul.f32 %v2036_v29, %v8263_v46  ;;  %v2087_v52 = vadd.f32 0.001143296, %v2086_v47  ;;  %v769_v57 = vpop.f32.mrf.mxu1 }
 0x287   :  { %v1904_v61 = vsel %vm8373_vm7, %v8280_v42, %v1900_v27  ;;  %v1940_v37 = vadd.f32 %v8304_v50, %v1939_v40  ;;  %vm1942_vm8 = vweird.f32 %v8304_v50  ;;  %v8383_v49 = vmin.f32 %v2113_v36, 16.0 }
 0x288   :  { %v8385_v45 = vadd.f32 1.0, %v2014_v51  ;;  %v2053_v34 = vadd.f32 0.4994258, %v2052_v11  ;;  %v2088_v7 = vmul.f32 %v2087_v52, %v8342_v24  ;;  %v8389_v60 = vmul.f32 0.70710677, %v8364_v30 }
 0x289   :  { %v8391_v18 = vpop.eup %6041  ;;  %vm1941_vm9 = vweird.f32 %v8266_v55  ;;  %v1945_v42 = vand.u32 2147483647, %v8266_v55  ;;  %v1947_v29 = vand.u32 2147483648, %v8266_v55  ;;  %v1963_v27 = vmul.f32 %v1962_v43, %v8151_v23 }
 0x28a   :  { %v1909_v40 = vsel %vm8347_vm5, %v1908_v54, %v1904_v61  ;;  %vm8399_vm10 = vmor %vm1941_vm9, %vm1942_vm8  ;;  %v1999_v51 = vmul.f32 %v1998_v19, %v8241_v9  ;;  %v2038_v11 = vadd.f32 0.0036580483, %v2037_v15  ;;  %v2089_v47 = vadd.f32 0.014752088, %v2088_v7 }
 0x28b   :  { %v1944_v1 = vsel %vm8399_vm10, %v8304_v50, %v1940_v37  ;;  %v2075_v52 = vmul.f32 2.1237322e-06, %v8342_v24  ;;  %v2126_v55 = vmul.f32 3.8918573e-05, %v8383_v49  ;;  %v8410_v23 = vadd.f32 %v769_v57, %v6846_v62 }
 0x28c   :  { %6043 = vrcp.f32 %v8385_v45  ;;  %v2054_v28 = vmul.f32 %v2053_v34, %v8263_v46  ;;  %v2090_v54 = vmul.f32 %v2089_v47, %v8342_v24  ;;  %v2153_v43 = vmul.f32 %v8389_v60, %v8389_v60 }
 0x28d   :  { %v1948_v19 = vor.u32 1.1754944e-38, %v1947_v29  ;;  %v1964_v15 = vadd.f32 1.1283791, %v1963_v27  ;;  %v1977_v50 = vmul.f32 %v8391_v18, %v8336_v16  ;;  %v2127_v61 = vadd.f32 0.001143296, %v2126_v55 }
 0x28e   :  { %v1910_v37 = vmul.f32 %v1909_v40, %v8330_v17  ;;  %vm1946_vm11 = vcmp.eq.f32.partialorder %v1945_v42, 8.507059e+37  ;;  %v8421_v7 = vmul.f32 0.5, %v8198_v3  ;;  %v2091_v57 = vadd.f32 0.112945676, %v2090_v54 }
 0x28f   :  { %v1949_v36 = vsel %vm1946_vm11, %v1948_v19, %v1944_v1  ;;  %v2000_v34 = vadd.f32 0.05243302, %v1999_v51  ;;  %v2076_v48 = vadd.f32 0.00028619796, %v2075_v52  ;;  %v2128_v47 = vmul.f32 %v2127_v61, %v8383_v49 }
 0x290   :  { %v2039_v58 = vmul.f32 %v2038_v11, %v8263_v46  ;;  %v8425_v29 = vadd.f32 1.0, %v2054_v28  ;;  %v8427_v27 = vmin.f32 %v2153_v43, 16.0  ;;  %v8430_v55 = vmul.f32 0.70710677, %v8410_v23 }
 0x291   :  { %v8433_v17 = vmul.f32 %v5049_v22, %v8117_v4  ;;  %v1925_v3 = vmul.f32 %v1924_v8, %v8076_v33  ;;  %v8437_v42 = vmul.f32 %v1964_v15, %v8112_v63  ;;  %v1978_v40 = vsub.f32 1.0, %v1977_v50 }
 0x292   :  { %v8439_v51 = vpop.eup %6043  ;;  %v5912_v1 = vclamps-f32 %v1910_v37, 1.0  ;;  %v1985_v11 = vand.u32 2147483647, %v8336_v16  ;;  %v1987_v52 = vand.u32 2147483648, %v8336_v16  ;;  %v2092_v28 = vmul.f32 %v2091_v57, %v8342_v24 }
 0x293   :  { %13028 = vst [vmem:[#allocation123_spill] sm:$0xff] %v8433_v17  ;;  %v1950_v54 = vmul.f32 %v1949_v36, %v1925_v3  ;;  %v2001_v43 = vmul.f32 %v2000_v34, %v8241_v9  ;;  %v2077_v4 = vmul.f32 %v2076_v48, %v8342_v24  ;;  %v2129_v22 = vadd.f32 0.014752088, %v2128_v47 }
 0x294   :  { %v2040_v33 = vadd.f32 0.05243302, %v2039_v58  ;;  %6045 = vrcp.f32 %v8425_v29  ;;  %v2166_v63 = vmul.f32 3.8918573e-05, %v8427_v27  ;;  %v2193_v8 = vmul.f32 %v8430_v55, %v8430_v55 }
 0x295   :  { %v1979_v19 = vmul.f32 %v8391_v18, %v1978_v40  ;;  %v2017_v15 = vmul.f32 %v8439_v51, %v8385_v45  ;;  %v8454_v50 = vmul.f32 0.5, %v8288_v13  ;;  %v2115_v61 = vmul.f32 2.1237322e-06, %v8383_v49 }
 0x296   :  { %v5050_v48 = vadd.f32 1.0, %v5912_v1  ;;  %vm1981_vm12 = vweird.f32 %v8336_v16  ;;  %v2093_v58 = vadd.f32 0.4994258, %v2092_v28  ;;  %v2167_v37 = vadd.f32 0.001143296, %v2166_v63 }
 0x297   :  { %v5913_v57 = vclamps-f32 %v1950_v54, 1.0  ;;  %v2002_v36 = vadd.f32 0.18741608, %v2001_v43  ;;  %v2078_v34 = vadd.f32 0.0036580483, %v2077_v4  ;;  %v2130_v47 = vmul.f32 %v2129_v22, %v8383_v49 }
 0x298   :  { %vm8459_vm13 = vcmp.eq.f32.partialorder %v1985_v11, 8.507059e+37  ;;  %v1988_v40 = vor.u32 1.1754944e-38, %v1987_v52  ;;  %v2041_v13 = vmul.f32 %v2040_v33, %v8263_v46  ;;  %v8464_v17 = vmin.f32 %v2193_v8, 16.0 }
 0x299   :  { %v1980_v1 = vadd.f32 %v8391_v18, %v1979_v19  ;;  %vm1982_vm14 = vweird.f32 %v8391_v18  ;;  %v2018_v28 = vsub.f32 1.0, %v2017_v15  ;;  %v2116_v63 = vadd.f32 0.00028619796, %v2115_v61  ;;  %v5353_v15 = vld [vmem:[#allocation11 + $0x100] sm:$0xff] }
 0x29a   :  { %v8468_v54 = vpop.eup %6045  ;;  %v2094_v43 = vmul.f32 %v2093_v58, %v8342_v24  ;;  %v8472_v11 = vmul.f32 0.5, %v8323_v53  ;;  %v2155_v4 = vmul.f32 2.1237322e-06, %v8427_v27  ;;  %v2168_v52 = vmul.f32 %v2167_v37, %v8427_v27  ;;  %vm8485_vm15 = vmor %vm1981_vm12, %vm1982_vm14  ;;  %5578 = vmatpush.msra.mxu2 %v5353_v15 }
 0x29b   :  { %v8476_v22 = vadd.f32 1.0, %v5913_v57  ;;  %v2003_v33 = vmul.f32 %v2002_v36, %v8241_v9  ;;  %v2079_v8 = vmul.f32 %v2078_v34, %v8342_v24  ;;  %v2131_v19 = vadd.f32 0.112945676, %v2130_v47  ;;  %v858_v57 = vpop.f32.mrf.mxu2  ;;  %5579 = vmatmul.f32.vlgmr.msra.gmra.mxu2 %v7758_v38 }
 0x29c   :  { %v8481_v61 = vmul.f32 %v5050_v48, %v8168_v21  ;;  %v2042_v58 = vadd.f32 0.18741608, %v2041_v13  ;;  %v2169_v35 = vadd.f32 0.014752088, %v2168_v52  ;;  %v2206_v37 = vmul.f32 3.8918573e-05, %v8464_v17 }
 0x29d   :  { %v1984_v9 = vsel %vm8485_vm15, %v8391_v18, %v1980_v1  ;;  %v2019_v36 = vmul.f32 %v8439_v51, %v2018_v28  ;;  %v2057_v21 = vmul.f32 %v8468_v54, %v8425_v29  ;;  %v2117_v16 = vmul.f32 %v2116_v63, %v8383_v49 }
 0x29e   :  { %v8498_v48 = vadd.f32 1.0, %v2094_v43  ;;  %v2156_v34 = vadd.f32 0.00028619796, %v2155_v4  ;;  %v2170_v47 = vmul.f32 %v2169_v35, %v8427_v27  ;;  %v2207_v13 = vadd.f32 0.001143296, %v2206_v37 }
 0x29f   :  { %v2004_v52 = vadd.f32 1.1283791, %v2003_v33  ;;  %v2080_v15 = vadd.f32 0.05243302, %v2079_v8  ;;  %v2132_v53 = vmul.f32 %v2131_v19, %v8383_v49  ;;  %v8503_v18 = vadd.f32 %v858_v57, %v6892_v6 }
 0x2a0   :  { %v2025_v1 = vand.u32 2147483647, %v8385_v45  ;;  %v2027_v28 = vand.u32 2147483648, %v8385_v45  ;;  %v2043_v63 = vmul.f32 %v2042_v58, %v8263_v46  ;;  %v2171_v38 = vadd.f32 0.112945676, %v2170_v47 }
 0x2a1   :  { %v1989_v43 = vsel %vm8459_vm13, %v1988_v40, %v1984_v9  ;;  %v2020_v35 = vadd.f32 %v8439_v51, %v2019_v36  ;;  %vm2022_vm0 = vweird.f32 %v8439_v51  ;;  %v2208_v4 = vmul.f32 %v2207_v13, %v8464_v17 }
 0x2a2   :  { %v2058_v33 = vsub.f32 1.0, %v2057_v21  ;;  %6047 = vrcp.f32 %v8498_v48  ;;  %v2118_v8 = vadd.f32 0.0036580483, %v2117_v16  ;;  %v2157_v19 = vmul.f32 %v2156_v34, %v8427_v27 }
 0x2a3   :  { %v2081_v37 = vmul.f32 %v2080_v15, %v8342_v24  ;;  %v2133_v57 = vadd.f32 0.4994258, %v2132_v53  ;;  %v2209_v46 = vadd.f32 0.014752088, %v2208_v4  ;;  %v8517_v58 = vmul.f32 0.70710677, %v8503_v18 }
 0x2a4   :  { %v1990_v3 = vmul.f32 %v1989_v43, %v8437_v42  ;;  %v2005_v40 = vmul.f32 %v2004_v52, %v8220_v59  ;;  %vm2021_vm1 = vweird.f32 %v8385_v45  ;;  %v2172_v9 = vmul.f32 %v2171_v38, %v8427_v27 }
 0x2a5   :  { %vm8523_vm2 = vmor %vm2021_vm1, %vm2022_vm0  ;;  %vm8527_vm3 = vcmp.eq.f32.partialorder %v2025_v1, 8.507059e+37  ;;  %v2028_v16 = vor.u32 1.1754944e-38, %v2027_v28  ;;  %v2210_v34 = vmul.f32 %v2209_v46, %v8464_v17  ;;  %v2233_v42 = vmul.f32 %v8517_v58, %v8517_v58 }
 0x2a6   :  { %v2024_v59 = vsel %vm8523_vm2, %v8439_v51, %v2020_v35  ;;  %v2059_v45 = vmul.f32 %v8468_v54, %v2058_v33  ;;  %v2119_v47 = vmul.f32 %v2118_v8, %v8383_v49  ;;  %v2158_v13 = vadd.f32 0.0036580483, %v2157_v19  ;;  %v947_v8 = vpop.f32.mrf.mxu3 }
 0x2a7   :  { %v2044_v52 = vadd.f32 1.1283791, %v2043_v63  ;;  %v2082_v15 = vadd.f32 0.18741608, %v2081_v37  ;;  %v2134_v53 = vmul.f32 %v2133_v57, %v8383_v49  ;;  %v8541_v1 = vmul.f32 0.5, %v8364_v30 }
 0x2a8   :  { %v8543_v28 = vpop.eup %6047  ;;  %v5914_v38 = vclamps-f32 %v1990_v3, 1.0  ;;  %vm2061_vm4 = vweird.f32 %v8425_v29  ;;  %v2173_v43 = vadd.f32 0.4994258, %v2172_v9  ;;  %v8546_v4 = vmin.f32 %v2233_v42, 16.0 }
 0x2a9   :  { %v2029_v51 = vsel %vm8527_vm3, %v2028_v16, %v2024_v59  ;;  %v2065_v35 = vand.u32 2147483647, %v8425_v29  ;;  %v2067_v63 = vand.u32 2147483648, %v8425_v29  ;;  %v2211_v33 = vadd.f32 0.112945676, %v2210_v34 }
 0x2aa   :  { %v2060_v30 = vadd.f32 %v8468_v54, %v2059_v45  ;;  %vm2062_vm5 = vweird.f32 %v8468_v54  ;;  %v2120_v19 = vadd.f32 0.05243302, %v2119_v47  ;;  %v2159_v37 = vmul.f32 %v2158_v13, %v8427_v27 }
 0x2ab   :  { %v2083_v57 = vmul.f32 %v2082_v15, %v8342_v24  ;;  %v2097_v46 = vmul.f32 %v8543_v28, %v8498_v48  ;;  %v8558_v3 = vadd.f32 1.0, %v2134_v53  ;;  %v2195_v9 = vmul.f32 2.1237322e-06, %v8464_v17  ;;  %vm8568_vm6 = vmor %vm2061_vm4, %vm2062_vm5 }
 0x2ac   :  { %v2030_v36 = vmul.f32 %v2029_v51, %v2005_v40  ;;  %v2174_v21 = vmul.f32 %v2173_v43, %v8427_v27  ;;  %v2246_v16 = vmul.f32 3.8918573e-05, %v8546_v4  ;;  %v8564_v34 = vadd.f32 %v947_v8, %v6894_v26  ;;  %v683_v51 = vpop.f32.mrf.mxu0 }
 0x2ad   :  { %v5052_v42 = vadd.f32 1.0, %v5914_v38  ;;  %vm8572_vm7 = vcmp.eq.f32.partialorder %v2065_v35, 8.507059e+37  ;;  %v2068_v45 = vor.u32 1.1754944e-38, %v2067_v63  ;;  %v2212_v40 = vmul.f32 %v2211_v33, %v8464_v17 }
 0x2ae   :  { %v2064_v47 = vsel %vm8568_vm6, %v8468_v54, %v2060_v30  ;;  %v2121_v13 = vmul.f32 %v2120_v19, %v8383_v49  ;;  %v2160_v15 = vadd.f32 0.05243302, %v2159_v37  ;;  %v2247_v53 = vadd.f32 0.001143296, %v2246_v16  ;;  %v5369_v54 = vld [vmem:[#allocation11 + $0x180] sm:$0xff] }
 0x2af   :  { %v2084_v29 = vadd.f32 1.1283791, %v2083_v57  ;;  %v2098_v38 = vsub.f32 1.0, %v2097_v46  ;;  %6049 = vrcp.f32 %v8558_v3  ;;  %v2196_v43 = vadd.f32 0.00028619796, %v2195_v9  ;;  %v5321_v30 = vld [vmem:[#allocation11] sm:$0xff]  ;;  %5667 = vmatpush.msra.mxu3 %v5369_v54 }
 0x2b0   :  { %v8584_v35 = vmul.f32 %v8476_v22, %v8217_v41  ;;  %v5915_v63 = vclamps-f32 %v2030_v36, 1.0  ;;  %v8586_v33 = vadd.f32 1.0, %v2174_v21  ;;  %v8589_v8 = vmul.f32 0.70710677, %v8564_v34  ;;  %5400 = vmatpush.msra.mxu0 %v5321_v30  ;;  %v5337_v41 = vld [vmem:[#allocation11 + $0x80] sm:$0xff]  ;;  %5668 = vmatmul.f32.vlgmr.msra.gmra.mxu3 %v7762_v31 }
 0x2b1   :  { %v2045_v19 = vmul.f32 %v2044_v52, %v8231_v0  ;;  %v2069_v37 = vsel %vm8572_vm7, %v2068_v45, %v2064_v47  ;;  %v2213_v57 = vadd.f32 0.4994258, %v2212_v40  ;;  %v2248_v46 = vmul.f32 %v2247_v53, %v8546_v4  ;;  %5489 = vmatpush.msra.mxu1 %v5337_v41  ;;  %5401 = vmatmul.f32.vlgmr.msra.gmra.mxu0 %v7588_v2 }
 0x2b2   :  { %v8596_v22 = vmul.f32 %v5052_v42, %v8285_v10  ;;  %v2122_v9 = vadd.f32 0.18741608, %v2121_v13  ;;  %v2161_v36 = vmul.f32 %v2160_v15, %v8427_v27  ;;  %v8600_v21 = vadd.f32 %v683_v51, %v6844_v56  ;;  %5490 = vmatmul.f32.vlgmr.msra.gmra.mxu1 %v7597_v20 }
 0x2b3   :  { %v2099_v0 = vmul.f32 %v8543_v28, %v2098_v38  ;;  %v8605_v52 = vmul.f32 0.5, %v8410_v23  ;;  %v2197_v16 = vmul.f32 %v2196_v43, %v8464_v17  ;;  %v2273_v10 = vmul.f32 %v8589_v8, %v8589_v8 }
 0x2b4   :  { %13041 = vst [vmem:[#allocation124_spill] sm:$0xff] %v8596_v22  ;;  %v5053_v42 = vadd.f32 1.0, %v5915_v63  ;;  %v2070_v24 = vmul.f32 %v2069_v37, %v2045_v19  ;;  %v8613_v59 = vmul.f32 %v2084_v29, %v8310_v5  ;;  %6051 = vrcp.f32 %v8586_v33 }
 0x2b5   :  { %v8616_v2 = vpop.eup %6049  ;;  %vm2101_vm8 = vweird.f32 %v8498_v48  ;;  %v2214_v23 = vmul.f32 %v2213_v57, %v8464_v17  ;;  %v2249_v45 = vadd.f32 0.014752088, %v2248_v46  ;;  %v8620_v40 = vmin.f32 %v2273_v10, 16.0 }
 0x2b6   :  { %v2105_v20 = vand.u32 2147483647, %v8498_v48  ;;  %v2107_v31 = vand.u32 2147483648, %v8498_v48  ;;  %v2123_v47 = vmul.f32 %v2122_v9, %v8383_v49  ;;  %v8626_v5 = vmul.f32 0.70710677, %v8600_v21 }
 0x2b7   :  { %v2100_v13 = vadd.f32 %v8543_v28, %v2099_v0  ;;  %vm2102_vm9 = vweird.f32 %v8543_v28  ;;  %v2162_v15 = vadd.f32 0.18741608, %v2161_v36  ;;  %v2198_v53 = vadd.f32 0.0036580483, %v2197_v16 }
 0x2b8   :  { %v2137_v29 = vmul.f32 %v8616_v2, %v8558_v3  ;;  %v2235_v38 = vmul.f32 2.1237322e-06, %v8546_v4  ;;  %v2286_v43 = vmul.f32 3.8918573e-05, %v8620_v40  ;;  %v2313_v51 = vmul.f32 %v8626_v5, %v8626_v5  ;;  %vm8646_vm10 = vmor %vm2101_vm8, %vm2102_vm9 }
 0x2b9   :  { %v8637_v49 = vmul.f32 %v5053_v42, %v8367_v14  ;;  %v5916_v63 = vclamps-f32 %v2070_v24, 1.0  ;;  %v8639_v54 = vadd.f32 1.0, %v2214_v23  ;;  %v2250_v30 = vmul.f32 %v2249_v45, %v8546_v4 }
 0x2ba   :  { %v8642_v19 = vpop.eup %6051  ;;  %vm8650_vm11 = vcmp.eq.f32.partialorder %v2105_v20, 8.507059e+37  ;;  %v2124_v46 = vadd.f32 1.1283791, %v2123_v47  ;;  %v2287_v14 = vadd.f32 0.001143296, %v2286_v43  ;;  %v8654_v41 = vmin.f32 %v2313_v51, 16.0 }
 0x2bb   :  { %13042 = vst [vmem:[#allocation125_spill] sm:$0xff] %v8637_v49  ;;  %v2104_v9 = vsel %vm8646_vm10, %v8543_v28, %v2100_v13  ;;  %v2108_v36 = vor.u32 1.1754944e-38, %v2107_v31  ;;  %v2163_v0 = vmul.f32 %v2162_v15, %v8427_v27  ;;  %v2199_v48 = vmul.f32 %v2198_v53, %v8464_v17 }
 0x2bc   :  { %v2138_v16 = vsub.f32 1.0, %v2137_v29  ;;  %v2236_v10 = vadd.f32 0.00028619796, %v2235_v38  ;;  %v2288_v42 = vmul.f32 %v2287_v14, %v8620_v40  ;;  %v2326_v24 = vmul.f32 3.8918573e-05, %v8654_v41  ;;  %v772_v38 = vpop.f32.mrf.mxu1 }
 0x2bd   :  { %v5054_v23 = vadd.f32 1.0, %v5916_v63  ;;  %v2177_v45 = vmul.f32 %v8642_v19, %v8586_v33  ;;  %6053 = vrcp.f32 %v8639_v54  ;;  %v2251_v20 = vadd.f32 0.112945676, %v2250_v30 }
 0x2be   :  { %v8667_v28 = vmul.f32 %v2124_v46, %v8339_v32  ;;  %v2147_v27 = vand.u32 2147483648, %v8558_v3  ;;  %v2289_v31 = vadd.f32 0.014752088, %v2288_v42  ;;  %v2327_v47 = vadd.f32 0.001143296, %v2326_v24 }
 0x2bf   :  { %v2109_v13 = vsel %vm8650_vm11, %v2108_v36, %v2104_v9  ;;  %v2145_v15 = vand.u32 2147483647, %v8558_v3  ;;  %v2164_v53 = vadd.f32 1.1283791, %v2163_v0  ;;  %v2200_v29 = vadd.f32 0.05243302, %v2199_v48 }
 0x2c0   :  { %v2139_v43 = vmul.f32 %v8616_v2, %v2138_v16  ;;  %v2237_v51 = vmul.f32 %v2236_v10, %v8546_v4  ;;  %v2290_v63 = vmul.f32 %v2289_v31, %v8620_v40  ;;  %v2328_v32 = vmul.f32 %v2327_v47, %v8654_v41  ;;  %v861_v10 = vpop.f32.mrf.mxu2 }
 0x2c1   :  { %v8678_v30 = vmul.f32 %v5054_v23, %v8421_v7  ;;  %vm2141_vm12 = vweird.f32 %v8558_v3  ;;  %v2178_v37 = vsub.f32 1.0, %v2177_v45  ;;  %v2252_v57 = vmul.f32 %v2251_v20, %v8546_v4 }
 0x2c2   :  { %v2148_v46 = vor.u32 1.1754944e-38, %v2147_v27  ;;  %v8683_v14 = vmul.f32 0.5, %v8503_v18  ;;  %v2275_v9 = vmul.f32 2.1237322e-06, %v8620_v40  ;;  %v8687_v36 = vadd.f32 %v772_v38, %v6846_v62 }
 0x2c3   :  { %13047 = vst [vmem:[#allocation126_spill] sm:$0xff] %v8678_v30  ;;  %v8689_v0 = vpop.eup %6053  ;;  %v2110_v48 = vmul.f32 %v2109_v13, %v8613_v59  ;;  %vm2142_vm13 = vweird.f32 %v8616_v2  ;;  %v2291_v7 = vadd.f32 0.112945676, %v2290_v63  ;;  %v2329_v16 = vadd.f32 0.014752088, %v2328_v32 }
 0x2c4   :  { %v2140_v42 = vadd.f32 %v8616_v2, %v2139_v43  ;;  %vm8694_vm14 = vcmp.eq.f32.partialorder %v2145_v15, 8.507059e+37  ;;  %v8699_v18 = vmul.f32 %v2164_v53, %v8389_v60  ;;  %v2201_v23 = vmul.f32 %v2200_v29, %v8464_v17  ;;  %vm8717_vm0 = vmor %vm2141_vm12, %vm2142_vm13 }
 0x2c5   :  { %v2238_v45 = vadd.f32 0.0036580483, %v2237_v51  ;;  %v2179_v20 = vmul.f32 %v8642_v19, %v2178_v37  ;;  %vm2181_vm15 = vweird.f32 %v8586_v33  ;;  %v2253_v59 = vadd.f32 0.4994258, %v2252_v57 }
 0x2c6   :  { %v2292_v27 = vmul.f32 %v2291_v7, %v8620_v40  ;;  %v2217_v31 = vmul.f32 %v8689_v0, %v8639_v54  ;;  %v2276_v47 = vadd.f32 0.00028619796, %v2275_v9  ;;  %v8708_v13 = vmul.f32 0.70710677, %v8687_v36 }
 0x2c7   :  { %v8711_v60 = vadd.f32 %v861_v10, %v6892_v6  ;;  %v5917_v15 = vclamps-f32 %v2110_v48, 1.0  ;;  %v2185_v29 = vand.u32 2147483647, %v8586_v33  ;;  %v2330_v43 = vmul.f32 %v2329_v16, %v8654_v41 }
 0x2c8   :  { %v2293_v38 = vadd.f32 0.4994258, %v2292_v27  ;;  %v2144_v51 = vsel %vm8717_vm0, %v8616_v2, %v2140_v42  ;;  %v2187_v63 = vand.u32 2147483648, %v8586_v33  ;;  %v2202_v32 = vadd.f32 0.18741608, %v2201_v23 }
 0x2c9   :  { %v2239_v37 = vmul.f32 %v2238_v45, %v8546_v4  ;;  %v2180_v3 = vadd.f32 %v8642_v19, %v2179_v20  ;;  %vm2182_vm1 = vweird.f32 %v8642_v19  ;;  %v2254_v57 = vmul.f32 %v2253_v59, %v8546_v4  ;;  %v950_v20 = vpop.f32.mrf.mxu3 }
 0x2ca   :  { %v2353_v9 = vmul.f32 %v8708_v13, %v8708_v13  ;;  %v2218_v48 = vsub.f32 1.0, %v2217_v31  ;;  %v2277_v7 = vmul.f32 %v2276_v47, %v8620_v40  ;;  %v2315_v16 = vmul.f32 2.1237322e-06, %v8654_v41  ;;  %vm8747_vm3 = vmor %vm2181_vm15, %vm2182_vm1 }
 0x2cb   :  { %v8736_v2 = vmul.f32 0.70710677, %v8711_v60  ;;  %vm8738_vm2 = vcmp.eq.f32.partialorder %v2185_v29, 8.507059e+37  ;;  %v2294_v42 = vmul.f32 %v2293_v38, %v8620_v40  ;;  %v2331_v23 = vadd.f32 0.112945676, %v2330_v43 }
 0x2cc   :  { %v8743_v45 = vmin.f32 %v2353_v9, 16.0  ;;  %v5055_v59 = vadd.f32 1.0, %v5917_v15  ;;  %v2188_v31 = vor.u32 1.1754944e-38, %v2187_v63  ;;  %v2240_v47 = vadd.f32 0.05243302, %v2239_v37 }
 0x2cd   :  { %v2393_v53 = vmul.f32 %v8736_v2, %v8736_v2  ;;  %v2149_v29 = vsel %vm8694_vm14, %v2148_v46, %v2144_v51  ;;  %v2184_v38 = vsel %vm8747_vm3, %v8642_v19, %v2180_v3  ;;  %v2203_v15 = vmul.f32 %v2202_v32, %v8464_v17 }
 0x2ce   :  { %v8759_v43 = vadd.f32 1.0, %v2254_v57  ;;  %v2219_v33 = vmul.f32 %v8689_v0, %v2218_v48  ;;  %v2278_v9 = vadd.f32 0.0036580483, %v2277_v7  ;;  %v2316_v30 = vadd.f32 0.00028619796, %v2315_v16 }
 0x2cf   :  { %v8763_v63 = vadd.f32 %v950_v20, %v6894_v26  ;;  %v8765_v37 = vadd.f32 1.0, %v2294_v42  ;;  %v2332_v24 = vmul.f32 %v2331_v23, %v8654_v41  ;;  %v2366_v46 = vmul.f32 3.8918573e-05, %v8743_v45 }
 0x2d0   :  { %v8769_v51 = vmin.f32 %v2393_v53, 16.0  ;;  %v2150_v19 = vmul.f32 %v2149_v29, %v8667_v28  ;;  %v2227_v17 = vand.u32 2147483648, %v8639_v54  ;;  %v2241_v32 = vmul.f32 %v2240_v47, %v8546_v4 }
 0x2d1   :  { %v8775_v3 = vmul.f32 0.5, %v8564_v34  ;;  %v2189_v57 = vsel %vm8738_vm2, %v2188_v31, %v2184_v38  ;;  %vm2222_vm4 = vweird.f32 %v8689_v0  ;;  %6055 = vrcp.f32 %v8759_v43 }
 0x2d2   :  { %v2367_v48 = vadd.f32 0.001143296, %v2366_v46  ;;  %v2220_v7 = vadd.f32 %v8689_v0, %v2219_v33  ;;  %v2279_v16 = vmul.f32 %v2278_v9, %v8620_v40  ;;  %v2317_v28 = vmul.f32 %v2316_v30, %v8654_v41 }
 0x2d3   :  { %v2406_v42 = vmul.f32 3.8918573e-05, %v8769_v51  ;;  %6057 = vrcp.f32 %v8765_v37  ;;  %v2333_v34 = vadd.f32 0.4994258, %v2332_v24  ;;  %v8788_v10 = vmul.f32 0.70710677, %v8763_v63 }
 0x2d4   :  { %v2368_v23 = vmul.f32 %v2367_v48, %v8743_v45  ;;  %v5918_v20 = vclamps-f32 %v2150_v19, 1.0  ;;  %v2204_v27 = vadd.f32 1.1283791, %v2203_v15  ;;  %vm2221_vm5 = vweird.f32 %v8639_v54 }
 0x2d5   :  { %v2225_v31 = vand.u32 2147483647, %v8639_v54  ;;  %v2190_v47 = vmul.f32 %v2189_v57, %v8699_v18  ;;  %vm8795_vm6 = vmor %vm2221_vm5, %vm2222_vm4  ;;  %v2228_v53 = vor.u32 1.1754944e-38, %v2227_v17  ;;  %v2242_v29 = vadd.f32 0.18741608, %v2241_v32 }
 0x2d6   :  { %v2369_v38 = vadd.f32 0.014752088, %v2368_v23  ;;  %v2224_v33 = vsel %vm8795_vm6, %v8689_v0, %v2220_v7  ;;  %v2280_v15 = vadd.f32 0.05243302, %v2279_v16  ;;  %v2318_v9 = vadd.f32 0.0036580483, %v2317_v28 }
 0x2d7   :  { %v2407_v24 = vadd.f32 0.001143296, %v2406_v42  ;;  %v8802_v46 = vpop.eup %6055  ;;  %v2334_v54 = vmul.f32 %v2333_v34, %v8654_v41  ;;  %v2355_v18 = vmul.f32 2.1237322e-06, %v8743_v45  ;;  %v2433_v17 = vmul.f32 %v8788_v10, %v8788_v10 }
 0x2d8   :  { %v2370_v19 = vmul.f32 %v2369_v38, %v8743_v45  ;;  %v8810_v32 = vmul.f32 %v5055_v59, %v8454_v50  ;;  %v5056_v57 = vadd.f32 1.0, %v5918_v20  ;;  %vm2226_vm7 = vcmp.eq.f32.partialorder %v2225_v31, 8.507059e+37 }
 0x2d9   :  { %v2408_v0 = vmul.f32 %v2407_v24, %v8769_v51  ;;  %v8813_v48 = vpop.eup %6057  ;;  %v5919_v7 = vclamps-f32 %v2190_v47, 1.0  ;;  %v2229_v16 = vsel %vm2226_vm7, %v2228_v53, %v2224_v33  ;;  %v2243_v28 = vmul.f32 %v2242_v29, %v8546_v4  ;;  %v686_v47 = vpop.f32.mrf.mxu0 }
 0x2da   :  { %13058 = vst [vmem:[#allocation127_spill] sm:$0xff] %v8810_v32  ;;  %v2371_v42 = vadd.f32 0.112945676, %v2370_v19  ;;  %v2205_v34 = vmul.f32 %v2204_v27, %v8430_v55  ;;  %v2257_v23 = vmul.f32 %v8802_v46, %v8759_v43  ;;  %v2319_v30 = vmul.f32 %v2318_v9, %v8654_v41 }
 0x2db   :  { %v2409_v50 = vadd.f32 0.014752088, %v2408_v0  ;;  %v2281_v59 = vmul.f32 %v2280_v15, %v8620_v40  ;;  %v8821_v20 = vadd.f32 1.0, %v2334_v54  ;;  %v2356_v31 = vadd.f32 0.00028619796, %v2355_v18 }
 0x2dc   :  { %v8823_v38 = vmin.f32 %v2433_v17, 16.0  ;;  %v8826_v53 = vmul.f32 %v5056_v57, %v8472_v11  ;;  %v2230_v4 = vmul.f32 %v2229_v16, %v2205_v34  ;;  %v2297_v55 = vmul.f32 %v8813_v48, %v8765_v37 }
 0x2dd   :  { %v8831_v27 = vmul.f32 0.5, %v8600_v21  ;;  %v5057_v29 = vadd.f32 1.0, %v5919_v7  ;;  %v2244_v33 = vadd.f32 1.1283791, %v2243_v28  ;;  %v2372_v15 = vmul.f32 %v2371_v42, %v8743_v45 }
 0x2de   :  { %13059 = vst [vmem:[#allocation128_spill] sm:$0xff] %v8826_v53  ;;  %v2410_v9 = vmul.f32 %v2409_v50, %v8769_v51  ;;  %v2258_v24 = vsub.f32 1.0, %v2257_v23  ;;  %v2320_v54 = vadd.f32 0.05243302, %v2319_v30  ;;  %v2395_v18 = vmul.f32 2.1237322e-06, %v8769_v51 }
 0x2df   :  { %v8837_v11 = vadd.f32 %v686_v47, %v6844_v56  ;;  %v2282_v19 = vadd.f32 0.18741608, %v2281_v59  ;;  %6059 = vrcp.f32 %v8821_v20  ;;  %v2357_v17 = vmul.f32 %v2356_v31, %v8743_v45 }
 0x2e0   :  { %v2446_v21 = vmul.f32 3.8918573e-05, %v8823_v38  ;;  %v5920_v57 = vclamps-f32 %v2230_v4, 1.0  ;;  %v2265_v0 = vand.u32 2147483647, %v8759_v43  ;;  %v2267_v7 = vand.u32 2147483648, %v8759_v43 }
 0x2e1   :  { %v2298_v16 = vsub.f32 1.0, %v2297_v55  ;;  %v8845_v28 = vmul.f32 %v2244_v33, %v8517_v58  ;;  %v2373_v42 = vadd.f32 0.4994258, %v2372_v15  ;;  %v2411_v34 = vadd.f32 0.112945676, %v2410_v9 }
 0x2e2   :  { %v2447_v23 = vadd.f32 0.001143296, %v2446_v21  ;;  %v2259_v30 = vmul.f32 %v8802_v46, %v2258_v24  ;;  %v2321_v50 = vmul.f32 %v2320_v54, %v8654_v41  ;;  %v2396_v59 = vadd.f32 0.00028619796, %v2395_v18 }
 0x2e3   :  { %v8850_v31 = vmul.f32 0.70710677, %v8837_v11  ;;  %v8853_v47 = vmul.f32 %v5057_v29, %v8541_v1  ;;  %vm2261_vm8 = vweird.f32 %v8759_v43  ;;  %v2283_v4 = vmul.f32 %v2282_v19, %v8620_v40 }
 0x2e4   :  { %v2358_v58 = vadd.f32 0.0036580483, %v2357_v17  ;;  %v5058_v55 = vadd.f32 1.0, %v5920_v57  ;;  %v2268_v33 = vor.u32 1.1754944e-38, %v2267_v7  ;;  %v2299_v15 = vmul.f32 %v8813_v48, %v2298_v16  ;;  %v775_v16 = vpop.f32.mrf.mxu1 }
 0x2e5   :  { %13060 = vst [vmem:[#allocation129_spill] sm:$0xff] %v8853_v47  ;;  %v8859_v9 = vmul.f32 0.5, %v8687_v36  ;;  %v8861_v24 = vpop.eup %6059  ;;  %vm2262_vm9 = vweird.f32 %v8802_v46  ;;  %vm8864_vm10 = vcmp.eq.f32.partialorder %v2265_v0, 8.507059e+37  ;;  %v2374_v1 = vmul.f32 %v2373_v42, %v8743_v45 }
 0x2e6   :  { %v2412_v40 = vmul.f32 %v2411_v34, %v8769_v51  ;;  %v2448_v29 = vmul.f32 %v2447_v23, %v8823_v38  ;;  %v2260_v18 = vadd.f32 %v8802_v46, %v2259_v30  ;;  %v2322_v19 = vadd.f32 0.18741608, %v2321_v50  ;;  %v864_v30 = vpop.f32.mrf.mxu2  ;;  %vm8887_vm12 = vmor %vm2261_vm8, %vm2262_vm9 }
 0x2e7   :  { %v2397_v36 = vmul.f32 %v2396_v59, %v8769_v51  ;;  %v2473_v17 = vmul.f32 %v8850_v31, %v8850_v31  ;;  %v2284_v21 = vadd.f32 1.1283791, %v2283_v4  ;;  %v2305_v57 = vand.u32 2147483647, %v8765_v37 }
 0x2e8   :  { %v2359_v0 = vmul.f32 %v2358_v58, %v8743_v45  ;;  %v2449_v7 = vadd.f32 0.014752088, %v2448_v29  ;;  %v2300_v42 = vadd.f32 %v8813_v48, %v2299_v15  ;;  %vm2302_vm11 = vweird.f32 %v8813_v48 }
 0x2e9   :  { %v2337_v34 = vmul.f32 %v8861_v24, %v8821_v20  ;;  %v8881_v23 = vmin.f32 %v2473_v17, 16.0  ;;  %vm2301_vm13 = vweird.f32 %v8765_v37  ;;  %v2307_v59 = vand.u32 2147483648, %v8765_v37 }
 0x2ea   :  { %v8893_v4 = vadd.f32 1.0, %v2374_v1  ;;  %v2413_v58 = vadd.f32 0.4994258, %v2412_v40  ;;  %v2264_v15 = vsel %vm8887_vm12, %v8802_v46, %v2260_v18  ;;  %v2323_v29 = vmul.f32 %v2322_v19, %v8654_v41  ;;  %vm8902_vm14 = vmor %vm2301_vm13, %vm2302_vm11 }
 0x2eb   :  { %v2398_v17 = vadd.f32 0.0036580483, %v2397_v36  ;;  %v8900_v43 = vadd.f32 %v775_v16, %v6846_v62  ;;  %v2360_v53 = vadd.f32 0.05243302, %v2359_v0  ;;  %v2450_v37 = vmul.f32 %v2449_v7, %v8823_v38 }
 0x2ec   :  { %v2486_v1 = vmul.f32 3.8918573e-05, %v8881_v23  ;;  %v8909_v40 = vadd.f32 %v864_v30, %v6892_v6  ;;  %v2304_v41 = vsel %vm8902_vm14, %v8813_v48, %v2300_v42  ;;  %vm2306_vm15 = vcmp.eq.f32.partialorder %v2305_v57, 8.507059e+37 }
 0x2ed   :  { %v2338_v46 = vsub.f32 1.0, %v2337_v34  ;;  %v2435_v18 = vmul.f32 2.1237322e-06, %v8823_v38  ;;  %6061 = vrcp.f32 %v8893_v4  ;;  %v2414_v19 = vmul.f32 %v2413_v58, %v8769_v51 }
 0x2ee   :  { %v2451_v36 = vadd.f32 0.112945676, %v2450_v37  ;;  %v2487_v0 = vadd.f32 0.001143296, %v2486_v1  ;;  %v2269_v7 = vsel %vm8864_vm10, %v2268_v33, %v2264_v15  ;;  %v2308_v16 = vor.u32 1.1754944e-38, %v2307_v59 }
 0x2ef   :  { %v2399_v30 = vmul.f32 %v2398_v17, %v8769_v51  ;;  %v8921_v50 = vmul.f32 0.70710677, %v8900_v43  ;;  %v2361_v48 = vmul.f32 %v2360_v53, %v8743_v45  ;;  %v8927_v42 = vmul.f32 0.70710677, %v8909_v40 }
 0x2f0   :  { %v2452_v47 = vmul.f32 %v2451_v36, %v8823_v38  ;;  %v2488_v57 = vmul.f32 %v2487_v0, %v8881_v23  ;;  %v2309_v34 = vsel %vm2306_vm15, %v2308_v16, %v2304_v41  ;;  %v2339_v58 = vmul.f32 %v8861_v24, %v2338_v46 }
 0x2f1   :  { %v8931_v33 = vmul.f32 0.5, %v8711_v60  ;;  %v2436_v54 = vadd.f32 0.00028619796, %v2435_v18  ;;  %v8933_v59 = vadd.f32 1.0, %v2414_v19  ;;  %v2513_v53 = vmul.f32 %v8921_v50, %v8921_v50 }
 0x2f2   :  { %v2453_v15 = vadd.f32 0.4994258, %v2452_v47  ;;  %v2489_v17 = vadd.f32 0.014752088, %v2488_v57  ;;  %v8938_v37 = vmul.f32 %v5058_v55, %v8605_v52  ;;  %v2270_v1 = vmul.f32 %v2269_v7, %v8845_v28 }
 0x2f3   :  { %v2285_v41 = vmul.f32 %v2284_v21, %v8589_v8  ;;  %v2400_v36 = vadd.f32 0.05243302, %v2399_v30  ;;  %v8942_v46 = vpop.eup %6061  ;;  %v2324_v60 = vadd.f32 1.1283791, %v2323_v29  ;;  %v2345_v18 = vand.u32 2147483647, %v8821_v20 }
 0x2f4   :  { %13067 = vst [vmem:[#allocation130_spill] sm:$0xff] %v8938_v37  ;;  %v2362_v19 = vadd.f32 0.18741608, %v2361_v48  ;;  %v2553_v0 = vmul.f32 %v8927_v42, %v8927_v42  ;;  %vm2342_vm0 = vweird.f32 %v8861_v24  ;;  %v2437_v52 = vmul.f32 %v2436_v54, %v8823_v38 }
 0x2f5   :  { %v2310_v16 = vmul.f32 %v2309_v34, %v2285_v41  ;;  %v8949_v55 = vmin.f32 %v2513_v53, 16.0  ;;  %v2340_v28 = vadd.f32 %v8861_v24, %v2339_v58  ;;  %6063 = vrcp.f32 %v8933_v59 }
 0x2f6   :  { %v2454_v8 = vmul.f32 %v2453_v15, %v8823_v38  ;;  %v2490_v21 = vmul.f32 %v2489_v17, %v8881_v23  ;;  %v5921_v29 = vclamps-f32 %v2270_v1, 1.0  ;;  %v2347_v7 = vand.u32 2147483648, %v8821_v20 }
 0x2f7   :  { %v2377_v30 = vmul.f32 %v8942_v46, %v8893_v4  ;;  %v2401_v48 = vmul.f32 %v2400_v36, %v8769_v51  ;;  %vm2341_vm1 = vweird.f32 %v8821_v20  ;;  %v2363_v47 = vmul.f32 %v2362_v19, %v8743_v45 }
 0x2f8   :  { %v2526_v57 = vmul.f32 3.8918573e-05, %v8949_v55  ;;  %v8962_v34 = vmin.f32 %v2553_v0, 16.0  ;;  %v5922_v58 = vclamps-f32 %v2310_v16, 1.0  ;;  %vm8966_vm2 = vmor %vm2341_vm1, %vm2342_vm0  ;;  %v8971_v15 = vmul.f32 0.5, %v8763_v63 }
 0x2f9   :  { %v2438_v17 = vadd.f32 0.0036580483, %v2437_v52  ;;  %v2475_v53 = vmul.f32 2.1237322e-06, %v8881_v23  ;;  %v2344_v45 = vsel %vm8966_vm2, %v8861_v24, %v2340_v28  ;;  %vm2346_vm3 = vcmp.eq.f32.partialorder %v2345_v18, 8.507059e+37  ;;  %v953_v28 = vpop.f32.mrf.mxu3 }
 0x2fa   :  { %v8977_v20 = vadd.f32 1.0, %v2454_v8  ;;  %v2491_v1 = vadd.f32 0.112945676, %v2490_v21  ;;  %v5059_v41 = vadd.f32 1.0, %v5921_v29  ;;  %v2348_v36 = vor.u32 1.1754944e-38, %v2347_v7 }
 0x2fb   :  { %v2378_v19 = vsub.f32 1.0, %v2377_v30  ;;  %v2402_v0 = vadd.f32 0.18741608, %v2401_v48  ;;  %v8979_v16 = vpop.eup %6063  ;;  %v2325_v63 = vmul.f32 %v2324_v60, %v8626_v5  ;;  %v2364_v37 = vadd.f32 1.1283791, %v2363_v47 }
 0x2fc   :  { %v2527_v52 = vadd.f32 0.001143296, %v2526_v57  ;;  %v2566_v32 = vmul.f32 3.8918573e-05, %v8962_v34  ;;  %v5060_v49 = vadd.f32 1.0, %v5922_v58  ;;  %v2349_v22 = vsel %vm2346_vm3, %v2348_v36, %v2344_v45 }
 0x2fd   :  { %v2439_v24 = vmul.f32 %v2438_v17, %v8823_v38  ;;  %v2476_v18 = vadd.f32 0.00028619796, %v2475_v53  ;;  %6065 = vrcp.f32 %v8977_v20  ;;  %v2492_v8 = vmul.f32 %v2491_v1, %v8881_v23 }
 0x2fe   :  { %v2528_v21 = vmul.f32 %v2527_v52, %v8949_v55  ;;  %v2567_v29 = vadd.f32 0.001143296, %v2566_v32  ;;  %v2379_v7 = vmul.f32 %v8942_v46, %v2378_v19  ;;  %v2417_v5 = vmul.f32 %v8979_v16, %v8933_v59 }
 0x2ff   :  { %v8991_v60 = vmul.f32 0.5, %v8837_v11  ;;  %v2515_v30 = vmul.f32 2.1237322e-06, %v8949_v55  ;;  %v8995_v48 = vmul.f32 %v5059_v41, %v8683_v14  ;;  %v2403_v47 = vmul.f32 %v2402_v0, %v8769_v51  ;;  %v689_v51 = vpop.f32.mrf.mxu0 }
 0x300   :  { %v2529_v57 = vadd.f32 0.014752088, %v2528_v21  ;;  %v8999_v58 = vadd.f32 %v953_v28, %v6894_v26  ;;  %v9001_v32 = vmul.f32 %v2349_v22, %v2325_v63  ;;  %v2440_v54 = vadd.f32 0.05243302, %v2439_v24 }
 0x301   :  { %v2477_v17 = vmul.f32 %v2476_v18, %v8881_v23  ;;  %v2568_v53 = vmul.f32 %v2567_v29, %v8962_v34  ;;  %v9006_v11 = vmul.f32 %v5060_v49, %v8775_v3  ;;  %v2365_v45 = vmul.f32 %v2364_v37, %v8708_v13 }
 0x302   :  { %vm2381_vm4 = vweird.f32 %v8893_v4  ;;  %v2493_v14 = vadd.f32 0.4994258, %v2492_v8  ;;  %v2380_v1 = vadd.f32 %v8942_v46, %v2379_v7  ;;  %vm2382_vm5 = vweird.f32 %v8942_v46 }
 0x303   :  { %v2418_v22 = vsub.f32 1.0, %v2417_v5  ;;  %v2516_v41 = vadd.f32 0.00028619796, %v2515_v30  ;;  %v9012_v36 = vpop.eup %6065  ;;  %v2387_v19 = vand.u32 2147483648, %v8893_v4  ;;  %v2530_v0 = vmul.f32 %v2529_v57, %v8949_v55  ;;  %vm9027_vm6 = vmor %vm2381_vm4, %vm2382_vm5 }
 0x304   :  { %v2569_v49 = vadd.f32 0.014752088, %v2568_v53  ;;  %v9017_v3 = vmul.f32 0.70710677, %v8999_v58  ;;  %v2385_v13 = vand.u32 2147483647, %v8893_v4  ;;  %v2441_v37 = vmul.f32 %v2440_v54, %v8823_v38 }
 0x305   :  { %v2478_v63 = vadd.f32 0.0036580483, %v2477_v17  ;;  %v9022_v52 = vadd.f32 %v689_v51, %v6844_v56  ;;  %v5923_v24 = vclamps-f32 %v9001_v32, 1.0  ;;  %v2404_v28 = vadd.f32 1.1283791, %v2403_v47 }
 0x306   :  { %v2494_v8 = vmul.f32 %v2493_v14, %v8881_v23  ;;  %v2593_v21 = vmul.f32 %v9017_v3, %v9017_v3  ;;  %v2384_v29 = vsel %vm9027_vm6, %v8942_v46, %v2380_v1  ;;  %v2419_v7 = vmul.f32 %v8979_v16, %v2418_v22 }
 0x307   :  { %v2457_v5 = vmul.f32 %v9012_v36, %v8977_v20  ;;  %v2517_v4 = vmul.f32 %v2516_v41, %v8949_v55  ;;  %v2388_v30 = vor.u32 1.1754944e-38, %v2387_v19  ;;  %v2531_v57 = vadd.f32 0.112945676, %v2530_v0 }
 0x308   :  { %v2570_v47 = vmul.f32 %v2569_v49, %v8962_v34  ;;  %v9042_v32 = vmin.f32 %v2593_v21, 16.0  ;;  %vm2386_vm7 = vcmp.eq.f32.partialorder %v2385_v13, 8.507059e+37  ;;  %v2442_v54 = vadd.f32 0.18741608, %v2441_v37 }
 0x309   :  { %v2479_v17 = vmul.f32 %v2478_v63, %v8881_v23  ;;  %v9046_v53 = vmul.f32 0.70710677, %v9022_v52  ;;  %v2389_v46 = vsel %vm2386_vm7, %v2388_v30, %v2384_v29  ;;  %vm2422_vm8 = vweird.f32 %v8979_v16 }
 0x30a   :  { %v9049_v14 = vadd.f32 1.0, %v2494_v8  ;;  %v2555_v51 = vmul.f32 2.1237322e-06, %v8962_v34  ;;  %v2420_v1 = vadd.f32 %v8979_v16, %v2419_v7  ;;  %v2458_v22 = vsub.f32 1.0, %v2457_v5 }
 0x30b   :  { %v2518_v41 = vadd.f32 0.0036580483, %v2517_v4  ;;  %v2606_v19 = vmul.f32 3.8918573e-05, %v9042_v32  ;;  %vm2421_vm9 = vweird.f32 %v8933_v59  ;;  %v2427_v0 = vand.u32 2147483648, %v8933_v59 }
 0x30c   :  { %v2532_v49 = vmul.f32 %v2531_v57, %v8949_v55  ;;  %v2571_v13 = vadd.f32 0.112945676, %v2570_v47  ;;  %v2425_v37 = vand.u32 2147483647, %v8933_v59  ;;  %v2443_v63 = vmul.f32 %v2442_v54, %v8823_v38  ;;  %vm9063_vm10 = vmor %vm2421_vm9, %vm2422_vm8 }
 0x30d   :  { %v2480_v18 = vadd.f32 0.05243302, %v2479_v17  ;;  %v2633_v8 = vmul.f32 %v9046_v53, %v9046_v53  ;;  %v2390_v21 = vmul.f32 %v2389_v46, %v2365_v45  ;;  %6067 = vrcp.f32 %v9049_v14 }
 0x30e   :  { %v2556_v7 = vadd.f32 0.00028619796, %v2555_v51  ;;  %v2607_v5 = vadd.f32 0.001143296, %v2606_v19  ;;  %v2405_v4 = vmul.f32 %v2404_v28, %v8736_v2  ;;  %v2424_v38 = vsel %vm9063_vm10, %v8979_v16, %v2420_v1  ;;  %v778_v1 = vpop.f32.mrf.mxu1 }
 0x30f   :  { %v2459_v59 = vmul.f32 %v9012_v36, %v2458_v22  ;;  %v2519_v45 = vmul.f32 %v2518_v41, %v8949_v55  ;;  %v5061_v30 = vadd.f32 1.0, %v5923_v24  ;;  %v2428_v57 = vor.u32 1.1754944e-38, %v2427_v0 }
 0x310   :  { %v2533_v47 = vadd.f32 0.4994258, %v2532_v49  ;;  %v2572_v54 = vmul.f32 %v2571_v13, %v8962_v34  ;;  %vm2426_vm11 = vcmp.eq.f32.partialorder %v2425_v37, 8.507059e+37  ;;  %v2444_v17 = vadd.f32 1.1283791, %v2443_v63 }
 0x311   :  { %v2481_v46 = vmul.f32 %v2480_v18, %v8881_v23  ;;  %v9076_v51 = vmin.f32 %v2633_v8, 16.0  ;;  %v5924_v2 = vclamps-f32 %v2390_v21, 1.0  ;;  %v2429_v28 = vsel %vm2426_vm11, %v2428_v57, %v2424_v38 }
 0x312   :  { %v2557_v19 = vmul.f32 %v2556_v7, %v8962_v34  ;;  %v2608_v16 = vmul.f32 %v2607_v5, %v9042_v32  ;;  %v2460_v22 = vadd.f32 %v9012_v36, %v2459_v59  ;;  %vm2461_vm12 = vweird.f32 %v8977_v20 }
 0x313   :  { %vm2462_vm13 = vweird.f32 %v9012_v36  ;;  %v2520_v24 = vadd.f32 0.05243302, %v2519_v45  ;;  %v9083_v41 = vpop.eup %6067  ;;  %v2467_v0 = vand.u32 2147483648, %v8977_v20  ;;  %v2534_v49 = vmul.f32 %v2533_v47, %v8949_v55 }
 0x314   :  { %v2573_v13 = vadd.f32 0.4994258, %v2572_v54  ;;  %v2595_v37 = vmul.f32 2.1237322e-06, %v9042_v32  ;;  %v2430_v63 = vmul.f32 %v2429_v28, %v2405_v4  ;;  %v2482_v18 = vadd.f32 0.18741608, %v2481_v46  ;;  %vm9095_vm14 = vmor %vm2461_vm12, %vm2462_vm13 }
 0x315   :  { %v2646_v8 = vmul.f32 3.8918573e-05, %v9076_v51  ;;  %v9090_v21 = vadd.f32 %v778_v1, %v6846_v62  ;;  %v9093_v29 = vmul.f32 %v5061_v30, %v8831_v27  ;;  %v2465_v5 = vand.u32 2147483647, %v8977_v20 }
 0x316   :  { %v2558_v38 = vadd.f32 0.0036580483, %v2557_v19  ;;  %v2609_v59 = vadd.f32 0.014752088, %v2608_v16  ;;  %v2445_v45 = vmul.f32 %v2444_v17, %v8788_v10  ;;  %v2464_v4 = vsel %vm9095_vm14, %v9012_v36, %v2460_v22 }
 0x317   :  { %v2497_v57 = vmul.f32 %v9083_v41, %v9049_v14  ;;  %v2521_v27 = vmul.f32 %v2520_v24, %v8949_v55  ;;  %v9107_v30 = vadd.f32 1.0, %v2534_v49  ;;  %v2574_v47 = vmul.f32 %v2573_v13, %v8962_v34 }
 0x318   :  { %v2596_v54 = vadd.f32 0.00028619796, %v2595_v37  ;;  %v2647_v46 = vadd.f32 0.001143296, %v2646_v8  ;;  %v5925_v20 = vclamps-f32 %v2430_v63, 1.0  ;;  %v2468_v28 = vor.u32 1.1754944e-38, %v2467_v0 }
 0x319   :  { %v2483_v19 = vmul.f32 %v2482_v18, %v8881_v23  ;;  %v9112_v10 = vmul.f32 0.70710677, %v9090_v21  ;;  %v5062_v17 = vadd.f32 1.0, %v5924_v2  ;;  %vm2466_vm15 = vcmp.eq.f32.partialorder %v2465_v5, 8.507059e+37  ;;  %v13076_v0 = vld [vmem:[#allocation80_spill] sm:$0xff]  ;;  %v13077_v37 = vld [vmem:[#allocation22_spill] sm:$0xff] }
 0x31a   :  { %v2559_v36 = vmul.f32 %v2558_v38, %v8962_v34  ;;  %v2610_v16 = vmul.f32 %v2609_v59, %v9042_v32  ;;  %v2469_v1 = vsel %vm2466_vm15, %v2468_v28, %v2464_v4  ;;  %v2498_v22 = vsub.f32 1.0, %v2497_v57  ;;  %v13078_v4 = vld [vmem:[#allocation81_spill] sm:$0xff] }
 0x31b   :  { %v2522_v24 = vadd.f32 0.18741608, %v2521_v27  ;;  %v2648_v49 = vmul.f32 %v2647_v46, %v9076_v51  ;;  %6069 = vrcp.f32 %v9107_v30  ;;  %v9118_v13 = vadd.f32 1.0, %v2574_v47  ;;  %v13079_v57 = vld [vmem:[#allocation65_spill] sm:$0xff] }
 0x31c   :  { %v2597_v23 = vmul.f32 %v2596_v54, %v9042_v32  ;;  %v5229_v63 = vmul.f32 %v13077_v37, %v13076_v0  ;;  %v5063_v2 = vadd.f32 1.0, %v5925_v20  ;;  %v2484_v18 = vadd.f32 1.1283791, %v2483_v19 }
 0x31d   :  { %v2649_v8 = vadd.f32 0.014752088, %v2648_v49  ;;  %v2673_v7 = vmul.f32 %v9112_v10, %v9112_v10  ;;  %v9126_v5 = vmul.f32 0.5, %v8900_v43  ;;  %v2560_v38 = vadd.f32 0.05243302, %v2559_v36 }
 0x31e   :  { %v2611_v59 = vadd.f32 0.112945676, %v2610_v16  ;;  %5404 = vmatmul.f32.gmra.mxu0 %v5229_v63  ;;  %v5230_v27 = vmul.f32 %v13079_v57, %v13078_v4  ;;  %v9131_v47 = vmul.f32 %v5062_v17, %v8859_v9  ;;  %v2470_v54 = vmul.f32 %v2469_v1, %v2445_v45  ;;  %v13080_v63 = vld [vmem:[#allocation82_spill] sm:$0xff] }
 0x31f   :  { %v9134_v46 = vmul.f32 0.5, %v8909_v40  ;;  %v2650_v20 = vmul.f32 %v2649_v8, %v9076_v51  ;;  %v2499_v28 = vmul.f32 %v9083_v41, %v2498_v22  ;;  %v2523_v43 = vmul.f32 %v2522_v24, %v8949_v55  ;;  %v13082_v8 = vld [vmem:[#allocation23_spill] sm:$0xff] }
 0x320   :  { %6071 = vrcp.f32 %v9118_v13  ;;  %v2598_v19 = vadd.f32 0.0036580483, %v2597_v23  ;;  %5493 = vmatmul.f32.gmra.mxu1 %v5230_v27  ;;  %v9141_v36 = vmul.f32 %v5063_v2, %v8931_v33  ;;  %v9144_v9 = vmul.f32 %v2484_v18, %v8850_v31  ;;  %v13081_v18 = vld [vmem:[#allocation83_spill] sm:$0xff] }
 0x321   :  { %v9147_v45 = vmul.f32 0.5, %v8999_v58  ;;  %v9149_v40 = vmin.f32 %v2673_v7, 16.0  ;;  %v9151_v17 = vpop.eup %6069  ;;  %v2505_v16 = vand.u32 2147483647, %v9049_v14  ;;  %v2507_v55 = vand.u32 2147483648, %v9049_v14 }
 0x322   :  { %v2561_v1 = vmul.f32 %v2560_v38, %v8962_v34  ;;  %v2612_v22 = vmul.f32 %v2611_v59, %v9042_v32  ;;  %v5926_v33 = vclamps-f32 %v2470_v54, 1.0  ;;  %vm2501_vm0 = vweird.f32 %v9049_v14  ;;  %v867_v54 = vpop.f32.mrf.mxu2 }
 0x323   :  { %vm2502_vm1 = vweird.f32 %v9083_v41  ;;  %v2651_v31 = vadd.f32 0.112945676, %v2650_v20  ;;  %v2500_v58 = vadd.f32 %v9083_v41, %v2499_v28  ;;  %v2524_v24 = vadd.f32 1.1283791, %v2523_v43 }
 0x324   :  { %v2599_v49 = vmul.f32 %v2598_v19, %v9042_v32  ;;  %v2635_v23 = vmul.f32 2.1237322e-06, %v9076_v51  ;;  %v2537_v0 = vmul.f32 %v9151_v17, %v9107_v30  ;;  %v2686_v37 = vmul.f32 3.8918573e-05, %v9149_v40  ;;  %vm9179_vm3 = vmor %vm2501_vm0, %vm2502_vm1 }
 0x325   :  { %v5231_v2 = vmul.f32 %v7956_v44, %v13080_v63  ;;  %v5232_v7 = vmul.f32 %v13082_v8, %v13081_v18  ;;  %vm9171_vm2 = vcmp.eq.f32.partialorder %v2505_v16, 8.507059e+37  ;;  %v2508_v4 = vor.u32 1.1754944e-38, %v2507_v55  ;;  %v956_v16 = vpop.f32.mrf.mxu3 }
 0x326   :  { %v9169_v38 = vpop.eup %6071  ;;  %v2562_v57 = vadd.f32 0.18741608, %v2561_v1  ;;  %v2613_v27 = vadd.f32 0.4994258, %v2612_v22  ;;  %v5064_v20 = vadd.f32 1.0, %v5926_v33  ;;  %v9184_v28 = vmul.f32 0.5, %v9022_v52 }
 0x327   :  { %v2652_v43 = vmul.f32 %v2651_v31, %v9076_v51  ;;  %v2687_v19 = vadd.f32 0.001143296, %v2686_v37  ;;  %5582 = vmatmul.f32.gmra.mxu2 %v5231_v2  ;;  %5671 = vmatmul.f32.gmra.mxu3 %v5232_v7  ;;  %v2504_v55 = vsel %vm9179_vm3, %v9083_v41, %v2500_v58  ;;  %v9191_v1 = vmul.f32 %v2524_v24, %v8921_v50 }
 0x328   :  { %v2600_v14 = vadd.f32 0.05243302, %v2599_v49  ;;  %v2636_v22 = vadd.f32 0.00028619796, %v2635_v23  ;;  %v2538_v33 = vsub.f32 1.0, %v2537_v0  ;;  %v2577_v52 = vmul.f32 %v9169_v38, %v9118_v13 }
 0x329   :  { %v2688_v63 = vmul.f32 %v2687_v19, %v9149_v40  ;;  %v9197_v31 = vadd.f32 %v867_v54, %v6892_v6  ;;  %v2545_v37 = vand.u32 2147483647, %v9107_v30  ;;  %v2563_v2 = vmul.f32 %v2562_v57, %v8962_v34 }
 0x32a   :  { %v2614_v41 = vmul.f32 %v2613_v27, %v9042_v32  ;;  %v9203_v50 = vadd.f32 %v956_v16, %v6894_v26  ;;  %v9206_v58 = vmul.f32 %v5064_v20, %v8971_v15  ;;  %v2653_v24 = vadd.f32 0.4994258, %v2652_v43  ;;  %v692_v27 = vpop.f32.mrf.mxu0 }
 0x32b   :  { %v2689_v49 = vadd.f32 0.014752088, %v2688_v63  ;;  %v9209_v23 = vmul.f32 0.70710677, %v9197_v31  ;;  %v2509_v0 = vsel %vm9171_vm2, %v2508_v4, %v2504_v55  ;;  %vm2541_vm4 = vweird.f32 %v9107_v30 }
 0x32c   :  { %13087 = vst [vmem:[#allocation80_spill] sm:$0xff] %v9206_v58  ;;  %v2601_v34 = vmul.f32 %v2600_v14, %v9042_v32  ;;  %v2637_v18 = vmul.f32 %v2636_v22, %v9076_v51  ;;  %v2539_v8 = vmul.f32 %v9151_v17, %v2538_v33  ;;  %v2578_v7 = vsub.f32 1.0, %v2577_v52 }
 0x32d   :  { %v2690_v15 = vmul.f32 %v2689_v49, %v9149_v40  ;;  %v2713_v57 = vmul.f32 %v9209_v23, %v9209_v23  ;;  %v2547_v54 = vand.u32 2147483648, %v9107_v30  ;;  %v2564_v20 = vadd.f32 1.1283791, %v2563_v2 }
 0x32e   :  { %v9221_v59 = vadd.f32 1.0, %v2614_v41  ;;  %v9224_v4 = vmul.f32 0.70710677, %v9203_v50  ;;  %v2510_v44 = vmul.f32 %v2509_v0, %v9144_v9  ;;  %vm9227_vm5 = vcmp.eq.f32.partialorder %v2545_v37, 8.507059e+37 }
 0x32f   :  { %v2654_v19 = vmul.f32 %v2653_v24, %v9076_v51  ;;  %v9232_v16 = vmin.f32 %v2713_v57, 16.0  ;;  %vm2542_vm6 = vweird.f32 %v9151_v17  ;;  %v2691_v55 = vadd.f32 0.112945676, %v2690_v15 }
 0x330   :  { %v2753_v14 = vmul.f32 %v9224_v4, %v9224_v4  ;;  %v9238_v22 = vadd.f32 %v692_v27, %v6844_v56  ;;  %v2540_v33 = vadd.f32 %v9151_v17, %v2539_v8  ;;  %v2579_v9 = vmul.f32 %v9169_v38, %v2578_v7  ;;  %vm9257_vm7 = vmor %vm2541_vm4, %vm2542_vm6 }
 0x331   :  { %v2602_v52 = vadd.f32 0.18741608, %v2601_v34  ;;  %v2638_v63 = vadd.f32 0.0036580483, %v2637_v18  ;;  %6073 = vrcp.f32 %v9221_v59  ;;  %v2726_v37 = vmul.f32 3.8918573e-05, %v9232_v16 }
 0x332   :  { %v9244_v2 = vmin.f32 %v2753_v14, 16.0  ;;  %v9247_v41 = vmul.f32 0.70710677, %v9238_v22  ;;  %v2548_v24 = vor.u32 1.1754944e-38, %v2547_v54  ;;  %v2585_v49 = vand.u32 2147483647, %v9118_v13 }
 0x333   :  { %v9250_v0 = vadd.f32 1.0, %v2654_v19  ;;  %v2675_v8 = vmul.f32 2.1237322e-06, %v9149_v40  ;;  %v5927_v15 = vclamps-f32 %v2510_v44, 1.0  ;;  %v2587_v18 = vand.u32 2147483648, %v9118_v13 }
 0x334   :  { %v2692_v7 = vmul.f32 %v2691_v55, %v9149_v40  ;;  %v2727_v57 = vadd.f32 0.001143296, %v2726_v37  ;;  %v2544_v27 = vsel %vm9257_vm7, %v9151_v17, %v2540_v33  ;;  %vm2582_vm8 = vweird.f32 %v9169_v38 }
 0x335   :  { %v2603_v54 = vmul.f32 %v2602_v52, %v9042_v32  ;;  %v2639_v44 = vmul.f32 %v2638_v63, %v9076_v51  ;;  %v2580_v30 = vadd.f32 %v9169_v38, %v2579_v9  ;;  %v2766_v14 = vmul.f32 3.8918573e-05, %v9244_v2 }
 0x336   :  { %v2728_v19 = vmul.f32 %v2727_v57, %v9232_v16  ;;  %v2793_v55 = vmul.f32 %v9247_v41, %v9247_v41  ;;  %vm2581_vm9 = vweird.f32 %v9118_v13  ;;  %vm9275_vm10 = vcmp.eq.f32.partialorder %v2585_v49, 8.507059e+37 }
 0x337   :  { %6075 = vrcp.f32 %v9250_v0  ;;  %v2676_v32 = vadd.f32 0.00028619796, %v2675_v8  ;;  %v9280_v17 = vpop.eup %6073  ;;  %v5065_v33 = vadd.f32 1.0, %v5927_v15  ;;  %v2549_v9 = vsel %vm9227_vm5, %v2548_v24, %v2544_v27  ;;  %vm9287_vm11 = vmor %vm2581_vm9, %vm2582_vm8 }
 0x338   :  { %v2588_v52 = vor.u32 1.1754944e-38, %v2587_v18  ;;  %v2693_v63 = vadd.f32 0.4994258, %v2692_v7  ;;  %v2565_v34 = vmul.f32 %v2564_v20, %v8927_v42  ;;  %v2604_v49 = vadd.f32 1.1283791, %v2603_v54  ;;  %v781_v42 = vpop.f32.mrf.mxu1 }
 0x339   :  { %v2640_v57 = vadd.f32 0.05243302, %v2639_v44  ;;  %v2767_v58 = vadd.f32 0.001143296, %v2766_v14  ;;  %v2584_v8 = vsel %vm9287_vm11, %v9169_v38, %v2580_v30  ;;  %v9295_v43 = vmul.f32 0.5, %v9090_v21 }
 0x33a   :  { %v2729_v24 = vadd.f32 0.014752088, %v2728_v19  ;;  %v9297_v15 = vmin.f32 %v2793_v55, 16.0  ;;  %v2550_v20 = vmul.f32 %v2549_v9, %v9191_v1  ;;  %v2617_v18 = vmul.f32 %v9280_v17, %v9221_v59  ;;  %v13097_v9 = vld [vmem:[#allocation84_spill] sm:$0xff] }
 0x33b   :  { %v2677_v7 = vmul.f32 %v2676_v32, %v9149_v40  ;;  %v2715_v27 = vmul.f32 2.1237322e-06, %v9232_v16  ;;  %v9305_v54 = vmul.f32 %v5065_v33, %v8991_v60  ;;  %v2694_v38 = vmul.f32 %v2693_v63, %v9149_v40 }
 0x33c   :  { %v2755_v21 = vmul.f32 2.1237322e-06, %v9244_v2  ;;  %v2768_v44 = vmul.f32 %v2767_v58, %v9244_v2  ;;  %v2589_v1 = vsel %vm9275_vm10, %v2588_v52, %v2584_v8  ;;  %v9315_v19 = vmul.f32 %v2604_v49, %v9017_v3 }
 0x33d   :  { %13096 = vst [vmem:[#allocation22_spill] sm:$0xff] %v9305_v54  ;;  %v9310_v30 = vpop.eup %6075  ;;  %v2641_v14 = vmul.f32 %v2640_v57, %v9076_v51  ;;  %v9319_v55 = vadd.f32 %v781_v42, %v6846_v62  ;;  %v2730_v60 = vmul.f32 %v2729_v24, %v9232_v16  ;;  %v2806_v33 = vmul.f32 3.8918573e-05, %v9297_v15 }
 0x33e   :  { %v2769_v32 = vadd.f32 0.014752088, %v2768_v44  ;;  %v5233_v58 = vmul.f32 %v8084_v25, %v13097_v9  ;;  %v5928_v63 = vclamps-f32 %v2550_v20, 1.0  ;;  %v2618_v13 = vsub.f32 1.0, %v2617_v18 }
 0x33f   :  { %v2678_v37 = vadd.f32 0.0036580483, %v2677_v7  ;;  %v2716_v52 = vadd.f32 0.00028619796, %v2715_v27  ;;  %v2657_v3 = vmul.f32 %v9310_v30, %v9250_v0  ;;  %v9327_v49 = vadd.f32 1.0, %v2694_v38 }
 0x340   :  { %v2756_v57 = vadd.f32 0.00028619796, %v2755_v21  ;;  %v2807_v8 = vadd.f32 0.001143296, %v2806_v33  ;;  %5407 = vmatmul.f32.gmra.mxu0 %v5233_v58  ;;  %v2590_v42 = vmul.f32 %v2589_v1, %v2565_v34  ;;  %vm2621_vm12 = vweird.f32 %v9221_v59 }
 0x341   :  { %v2642_v24 = vadd.f32 0.18741608, %v2641_v14  ;;  %v9331_v44 = vmul.f32 0.70710677, %v9319_v55  ;;  %v2625_v25 = vand.u32 2147483647, %v9221_v59  ;;  %v2770_v7 = vmul.f32 %v2769_v32, %v9244_v2 }
 0x342   :  { %v2627_v20 = vand.u32 2147483648, %v9221_v59  ;;  %v2731_v18 = vadd.f32 0.112945676, %v2730_v60  ;;  %v5066_v27 = vadd.f32 1.0, %v5928_v63  ;;  %v2619_v38 = vmul.f32 %v9280_v17, %v2618_v13 }
 0x343   :  { %v2679_v21 = vmul.f32 %v2678_v37, %v9149_v40  ;;  %v2808_v34 = vmul.f32 %v2807_v8, %v9297_v15  ;;  %v2658_v1 = vsub.f32 1.0, %v2657_v3  ;;  %6077 = vrcp.f32 %v9327_v49 }
 0x344   :  { %v2717_v14 = vmul.f32 %v2716_v52, %v9232_v16  ;;  %v2757_v33 = vmul.f32 %v2756_v57, %v9244_v2  ;;  %v5929_v9 = vclamps-f32 %v2590_v42, 1.0  ;;  %v2643_v58 = vmul.f32 %v2642_v24, %v9076_v51 }
 0x345   :  { %v2809_v60 = vadd.f32 0.014752088, %v2808_v34  ;;  %v2833_v32 = vmul.f32 %v9331_v44, %v9331_v44  ;;  %vm9345_vm13 = vcmp.eq.f32.partialorder %v2625_v25, 8.507059e+37  ;;  %v2628_v13 = vor.u32 1.1754944e-38, %v2627_v20 }
 0x346   :  { %v2732_v37 = vmul.f32 %v2731_v18, %v9232_v16  ;;  %v2771_v3 = vadd.f32 0.112945676, %v2770_v7  ;;  %v2620_v8 = vadd.f32 %v9280_v17, %v2619_v38  ;;  %vm2622_vm14 = vweird.f32 %v9280_v17 }
 0x347   :  { %v2680_v52 = vadd.f32 0.05243302, %v2679_v21  ;;  %v2810_v57 = vmul.f32 %v2809_v60, %v9297_v15  ;;  %v9354_v51 = vmul.f32 %v5066_v27, %v9126_v5  ;;  %v2659_v42 = vmul.f32 %v9310_v30, %v2658_v1  ;;  %vm9364_vm15 = vmor %vm2621_vm12, %vm2622_vm14 }
 0x348   :  { %v2718_v24 = vadd.f32 0.0036580483, %v2717_v14  ;;  %v2758_v25 = vadd.f32 0.0036580483, %v2757_v33  ;;  %v5067_v34 = vadd.f32 1.0, %v5929_v9  ;;  %v9358_v18 = vmin.f32 %v2833_v32, 16.0 }
 0x349   :  { %13100 = vst [vmem:[#allocation81_spill] sm:$0xff] %v9354_v51  ;;  %v2644_v54 = vadd.f32 1.1283791, %v2643_v58  ;;  %v2795_v20 = vmul.f32 2.1237322e-06, %v9297_v15  ;;  %v9360_v7 = vpop.eup %6077  ;;  %v2667_v27 = vand.u32 2147483648, %v9250_v0  ;;  %v2772_v1 = vmul.f32 %v2771_v3, %v9244_v2 }
 0x34a   :  { %v2665_v5 = vand.u32 2147483647, %v9250_v0  ;;  %v2733_v21 = vadd.f32 0.4994258, %v2732_v37  ;;  %v2624_v14 = vsel %vm9364_vm15, %v9280_v17, %v2620_v8  ;;  %vm2662_vm0 = vweird.f32 %v9310_v30  ;;  %v13103_v32 = vld [vmem:[#allocation85_spill] sm:$0xff] }
 0x34b   :  { %v2681_v33 = vmul.f32 %v2680_v52, %v9149_v40  ;;  %v2811_v59 = vadd.f32 0.112945676, %v2810_v57  ;;  %v2660_v9 = vadd.f32 %v9310_v30, %v2659_v42  ;;  %v2719_v58 = vmul.f32 %v2718_v24, %v9232_v16 }
 0x34c   :  { %v2759_v60 = vmul.f32 %v2758_v25, %v9244_v2  ;;  %v5234_v37 = vmul.f32 %v8087_v12, %v13103_v32  ;;  %v9382_v3 = vmul.f32 %v5067_v34, %v9134_v46  ;;  %v2697_v17 = vmul.f32 %v9360_v7, %v9327_v49  ;;  %v870_v34 = vpop.f32.mrf.mxu2  ;;  %v13111_v46 = vld [vmem:[#allocation78_spill] sm:$0xff] }
 0x34d   :  { %v2796_v8 = vadd.f32 0.00028619796, %v2795_v20  ;;  %v2846_v38 = vmul.f32 3.8918573e-05, %v9358_v18  ;;  %v2645_v52 = vmul.f32 %v2644_v54, %v9046_v53  ;;  %vm2661_vm1 = vweird.f32 %v9250_v0 }
 0x34e   :  { %13104 = vst [vmem:[#allocation65_spill] sm:$0xff] %v9382_v3  ;;  %v2734_v57 = vmul.f32 %v2733_v21, %v9232_v16  ;;  %v2773_v42 = vadd.f32 0.4994258, %v2772_v1  ;;  %5496 = vmatmul.f32.gmra.mxu1 %v5234_v37  ;;  %v2629_v12 = vsel %vm9345_vm13, %v2628_v13, %v2624_v14  ;;  %vm9394_vm2 = vmor %vm2661_vm1, %vm2662_vm0  ;;  %vm9398_vm3 = vcmp.eq.f32.partialorder %v2665_v5, 8.507059e+37  ;;  %v13109_v14 = vld [vmem:[#allocation86_spill] sm:$0xff]  ;;  %v13110_v37 = vld [vmem:[#allocation87_spill] sm:$0xff] }
 0x34f   :  { %v2682_v53 = vadd.f32 0.18741608, %v2681_v33  ;;  %v2812_v0 = vmul.f32 %v2811_v59, %v9297_v15  ;;  %v2664_v54 = vsel %vm9394_vm2, %v9310_v30, %v2660_v9  ;;  %v2668_v25 = vor.u32 1.1754944e-38, %v2667_v27 }
 0x350   :  { %v2720_v63 = vadd.f32 0.05243302, %v2719_v58  ;;  %v2760_v13 = vadd.f32 0.05243302, %v2759_v60  ;;  %v2698_v20 = vsub.f32 1.0, %v2697_v17  ;;  %v2797_v21 = vmul.f32 %v2796_v8, %v9297_v15 }
 0x351   :  { %v2847_v1 = vadd.f32 0.001143296, %v2846_v38  ;;  %v5235_v5 = vmul.f32 %v8122_v39, %v13109_v14  ;;  %v2630_v32 = vmul.f32 %v2629_v12, %v9315_v19  ;;  %v9410_v33 = vadd.f32 1.0, %v2734_v57 }
 0x352   :  { %v2774_v59 = vmul.f32 %v2773_v42, %v9244_v2  ;;  %v5236_v30 = vmul.f32 %v13111_v46, %v13110_v37  ;;  %v2683_v27 = vmul.f32 %v2682_v53, %v9149_v40  ;;  %v2813_v9 = vadd.f32 0.4994258, %v2812_v0  ;;  %v959_v40 = vpop.f32.mrf.mxu3 }
 0x353   :  { %v2848_v58 = vmul.f32 %v2847_v1, %v9358_v18  ;;  %5585 = vmatmul.f32.gmra.mxu2 %v5235_v5  ;;  %v9418_v60 = vadd.f32 %v870_v34, %v6892_v6  ;;  %v2669_v39 = vsel %vm9398_vm3, %v2668_v25, %v2664_v54  ;;  %v9423_v19 = vmul.f32 0.5, %v9197_v31 }
 0x354   :  { %v9426_v17 = vmul.f32 0.5, %v9203_v50  ;;  %v9429_v8 = vmul.f32 0.5, %v9238_v22  ;;  %5674 = vmatmul.f32.gmra.mxu3 %v5236_v30  ;;  %v2699_v38 = vmul.f32 %v9360_v7, %v2698_v20  ;;  %v2721_v57 = vmul.f32 %v2720_v63, %v9232_v16 }
 0x355   :  { %v2761_v42 = vmul.f32 %v2760_v13, %v9244_v2  ;;  %v2798_v12 = vadd.f32 0.0036580483, %v2797_v21  ;;  %6079 = vrcp.f32 %v9410_v33  ;;  %v9435_v24 = vadd.f32 1.0, %v2774_v59 }
 0x356   :  { %v2849_v31 = vadd.f32 0.014752088, %v2848_v58  ;;  %v9438_v50 = vmul.f32 0.70710677, %v9418_v60  ;;  %v5930_v53 = vclamps-f32 %v2630_v32, 1.0  ;;  %v2814_v0 = vmul.f32 %v2813_v9, %v9297_v15 }
 0x357   :  { %v2684_v22 = vadd.f32 1.1283791, %v2683_v27  ;;  %v9442_v54 = vadd.f32 %v959_v40, %v6894_v26  ;;  %v2670_v25 = vmul.f32 %v2669_v39, %v2645_v52  ;;  %v2705_v63 = vand.u32 2147483647, %v9327_v49  ;;  %v695_v39 = vpop.f32.mrf.mxu0 }
 0x358   :  { %v2850_v13 = vmul.f32 %v2849_v31, %v9358_v18  ;;  %v2873_v34 = vmul.f32 %v9438_v50, %v9438_v50  ;;  %vm2702_vm4 = vweird.f32 %v9360_v7  ;;  %v2722_v20 = vadd.f32 0.18741608, %v2721_v57 }
 0x359   :  { %v2762_v21 = vadd.f32 0.18741608, %v2761_v42  ;;  %v2799_v1 = vmul.f32 %v2798_v12, %v9297_v15  ;;  %v2700_v14 = vadd.f32 %v9360_v7, %v2699_v38  ;;  %6081 = vrcp.f32 %v9435_v24 }
 0x35a   :  { %v2851_v5 = vadd.f32 0.112945676, %v2850_v13  ;;  %v9452_v32 = vmin.f32 %v2873_v34, 16.0  ;;  %v5068_v52 = vadd.f32 1.0, %v5930_v53  ;;  %vm2701_vm5 = vweird.f32 %v9327_v49 }
 0x35b   :  { %v9455_v59 = vadd.f32 1.0, %v2814_v0  ;;  %v9458_v37 = vmul.f32 0.70710677, %v9442_v54  ;;  %v9460_v46 = vpop.eup %6079  ;;  %v5931_v30 = vclamps-f32 %v2670_v25, 1.0  ;;  %v2707_v27 = vand.u32 2147483648, %v9327_v49  ;;  %vm9468_vm6 = vmor %vm2701_vm5, %vm2702_vm4 }
 0x35c   :  { %v2852_v9 = vmul.f32 %v2851_v5, %v9358_v18  ;;  %v2886_v58 = vmul.f32 3.8918573e-05, %v9452_v32  ;;  %v2685_v40 = vmul.f32 %v2684_v22, %v9112_v10  ;;  %vm9472_vm7 = vcmp.eq.f32.partialorder %v2705_v63, 8.507059e+37 }
 0x35d   :  { %v2723_v42 = vmul.f32 %v2722_v20, %v9232_v16  ;;  %v2763_v49 = vmul.f32 %v2762_v21, %v9244_v2  ;;  %v2704_v12 = vsel %vm9468_vm6, %v9360_v7, %v2700_v14  ;;  %v2800_v31 = vadd.f32 0.05243302, %v2799_v1 }
 0x35e   :  { %v2835_v10 = vmul.f32 2.1237322e-06, %v9358_v18  ;;  %v2887_v53 = vadd.f32 0.001143296, %v2886_v58  ;;  %v2737_v22 = vmul.f32 %v9460_v46, %v9410_v33  ;;  %6083 = vrcp.f32 %v9455_v59 }
 0x35f   :  { %v2913_v0 = vmul.f32 %v9458_v37, %v9458_v37  ;;  %v9488_v16 = vadd.f32 %v695_v39, %v6844_v56  ;;  %v9490_v2 = vpop.eup %6081  ;;  %v5069_v25 = vadd.f32 1.0, %v5931_v30  ;;  %v2708_v63 = vor.u32 1.1754944e-38, %v2707_v27 }
 0x360   :  { %v2853_v7 = vadd.f32 0.4994258, %v2852_v9  ;;  %v2888_v13 = vmul.f32 %v2887_v53, %v9452_v32  ;;  %v2724_v34 = vadd.f32 1.1283791, %v2723_v42  ;;  %v2747_v20 = vand.u32 2147483648, %v9410_v33 }
 0x361   :  { %v2764_v21 = vadd.f32 1.1283791, %v2763_v49  ;;  %v9494_v1 = vmin.f32 %v2913_v0, 16.0  ;;  %v2709_v14 = vsel %vm9472_vm7, %v2708_v63, %v2704_v12  ;;  %v2801_v5 = vmul.f32 %v2800_v31, %v9297_v15 }
 0x362   :  { %v2836_v58 = vadd.f32 0.00028619796, %v2835_v10  ;;  %v2889_v39 = vadd.f32 0.014752088, %v2888_v13  ;;  %v2738_v38 = vsub.f32 1.0, %v2737_v22  ;;  %v2777_v30 = vmul.f32 %v9490_v2, %v9435_v24 }
 0x363   :  { %v2926_v27 = vmul.f32 3.8918573e-05, %v9494_v1  ;;  %v9503_v9 = vmul.f32 0.70710677, %v9488_v16  ;;  %v9506_v42 = vmul.f32 %v5068_v52, %v9147_v45  ;;  %v9509_v49 = vmul.f32 %v5069_v25, %v9184_v28 }
 0x364   :  { %v9512_v57 = vmul.f32 0.5, %v9319_v55  ;;  %v2854_v12 = vmul.f32 %v2853_v7, %v9358_v18  ;;  %v9515_v31 = vpop.eup %6083  ;;  %v2710_v10 = vmul.f32 %v2709_v14, %v2685_v40  ;;  %v9518_v53 = vmul.f32 %v2724_v34, %v9209_v23  ;;  %v784_v14 = vpop.f32.mrf.mxu1 }
 0x365   :  { %13116 = vst [vmem:[#allocation82_spill] sm:$0xff] %v9506_v42  ;;  %v2745_v22 = vand.u32 2147483647, %v9410_v33  ;;  %v2748_v0 = vor.u32 1.1754944e-38, %v2747_v20  ;;  %vm2741_vm8 = vweird.f32 %v9410_v33  ;;  %v2802_v45 = vadd.f32 0.18741608, %v2801_v5 }
 0x366   :  { %13117 = vst [vmem:[#allocation83_spill] sm:$0xff] %v9509_v49  ;;  %v2890_v28 = vmul.f32 %v2889_v39, %v9452_v32  ;;  %v2927_v52 = vadd.f32 0.001143296, %v2926_v27  ;;  %v2953_v55 = vmul.f32 %v9503_v9, %v9503_v9  ;;  %v2739_v25 = vmul.f32 %v9460_v46, %v2738_v38  ;;  %v13118_v38 = vld [vmem:[#allocation88_spill] sm:$0xff] }
 0x367   :  { %v9527_v63 = vmul.f32 %v2764_v21, %v9224_v4  ;;  %v2778_v40 = vsub.f32 1.0, %v2777_v30  ;;  %v2837_v23 = vmul.f32 %v2836_v58, %v9358_v18  ;;  %v2817_v7 = vmul.f32 %v9515_v31, %v9455_v59  ;;  %v13119_v4 = vld [vmem:[#allocation79_spill] sm:$0xff] }
 0x368   :  { %v9532_v13 = vadd.f32 1.0, %v2854_v12  ;;  %v2875_v34 = vmul.f32 2.1237322e-06, %v9452_v32  ;;  %v2928_v20 = vmul.f32 %v2927_v52, %v9494_v1  ;;  %v5932_v5 = vclamps-f32 %v2710_v10, 1.0 }
 0x369   :  { %v2891_v39 = vadd.f32 0.112945676, %v2890_v28  ;;  %v9536_v27 = vmin.f32 %v2953_v55, 16.0  ;;  %v5237_v21 = vmul.f32 %v13119_v4, %v13118_v38  ;;  %vm2742_vm9 = vweird.f32 %v9460_v46 }
 0x36a   :  { %vm9541_vm10 = vcmp.eq.f32.partialorder %v2745_v22, 8.507059e+37  ;;  %v2785_v30 = vand.u32 2147483647, %v9435_v24  ;;  %v2787_v12 = vand.u32 2147483648, %v9435_v24  ;;  %v2803_v52 = vmul.f32 %v2802_v45, %v9297_v15  ;;  %vm9563_vm13 = vmor %vm2741_vm8, %vm2742_vm9 }
 0x36b   :  { %v2740_v10 = vadd.f32 %v9460_v46, %v2739_v25  ;;  %v2838_v28 = vadd.f32 0.0036580483, %v2837_v23  ;;  %v2929_v55 = vadd.f32 0.014752088, %v2928_v20  ;;  %v9550_v49 = vadd.f32 %v784_v14, %v6846_v62  ;;  %5410 = vmatmul.f32.gmra.mxu0 %v5237_v21 }
 0x36c   :  { %v2779_v38 = vmul.f32 %v9490_v2, %v2778_v40  ;;  %v2818_v22 = vsub.f32 1.0, %v2817_v7  ;;  %6085 = vrcp.f32 %v9532_v13  ;;  %v2876_v4 = vadd.f32 0.00028619796, %v2875_v34 }
 0x36d   :  { %v5070_v42 = vadd.f32 1.0, %v5932_v5  ;;  %v2892_v3 = vmul.f32 %v2891_v39, %v9452_v32  ;;  %v2915_v51 = vmul.f32 2.1237322e-06, %v9494_v1  ;;  %v2966_v15 = vmul.f32 3.8918573e-05, %v9536_v27 }
 0x36e   :  { %vm2781_vm11 = vweird.f32 %v9435_v24  ;;  %vm2782_vm12 = vweird.f32 %v9490_v2  ;;  %v2788_v45 = vor.u32 1.1754944e-38, %v2787_v12  ;;  %v2804_v25 = vadd.f32 1.1283791, %v2803_v52 }
 0x36f   :  { %vm9567_vm14 = vcmp.eq.f32.partialorder %v2785_v30, 8.507059e+37  ;;  %v2839_v7 = vmul.f32 %v2838_v28, %v9358_v18  ;;  %v2930_v34 = vmul.f32 %v2929_v55, %v9494_v1  ;;  %v2967_v20 = vadd.f32 0.001143296, %v2966_v15  ;;  %vm9601_vm0 = vmor %vm2781_vm11, %vm2782_vm12 }
 0x370   :  { %v9574_v14 = vmul.f32 0.70710677, %v9550_v49  ;;  %v2744_v33 = vsel %vm9563_vm13, %v9460_v46, %v2740_v10  ;;  %v2780_v5 = vadd.f32 %v9490_v2, %v2779_v38  ;;  %v2819_v39 = vmul.f32 %v9515_v31, %v2818_v22 }
 0x371   :  { %v2877_v21 = vmul.f32 %v2876_v4, %v9452_v32  ;;  %v9583_v30 = vmul.f32 %v5070_v42, %v9295_v43  ;;  %v2893_v12 = vadd.f32 0.4994258, %v2892_v3  ;;  %v2916_v52 = vadd.f32 0.00028619796, %v2915_v51 }
 0x372   :  { %v2968_v28 = vmul.f32 %v2967_v20, %v9536_v27  ;;  %v9586_v55 = vpop.eup %6085  ;;  %v9589_v15 = vmul.f32 %v2804_v25, %v9247_v41  ;;  %vm2821_vm15 = vweird.f32 %v9455_v59  ;;  %v2827_v46 = vand.u32 2147483648, %v9455_v59  ;;  %v13130_v20 = vld [vmem:[#allocation120_spill] sm:$0xff] }
 0x373   :  { %13126 = vst [vmem:[#allocation23_spill] sm:$0xff] %v9583_v30  ;;  %v2993_v10 = vmul.f32 %v9574_v14, %v9574_v14  ;;  %v2749_v43 = vsel %vm9541_vm10, %v2748_v0, %v2744_v33  ;;  %vm2822_vm1 = vweird.f32 %v9515_v31  ;;  %v2840_v41 = vadd.f32 0.05243302, %v2839_v7  ;;  %v13131_v33 = vld [vmem:[#allocation90_spill] sm:$0xff]  ;;  %v13182_v30 = vld [vmem:[#allocation128_spill] sm:$0xff] }
 0x374   :  { %v2931_v3 = vadd.f32 0.112945676, %v2930_v34  ;;  %v2784_v42 = vsel %vm9601_vm0, %v9490_v2, %v2780_v5  ;;  %v2820_v38 = vadd.f32 %v9515_v31, %v2819_v39  ;;  %v2878_v58 = vadd.f32 0.0036580483, %v2877_v21  ;;  %v13129_v34 = vld [vmem:[#allocation89_spill] sm:$0xff]  ;;  %vm9636_vm2 = vmor %vm2821_vm15, %vm2822_vm1 }
 0x375   :  { %v2969_v0 = vadd.f32 0.014752088, %v2968_v28  ;;  %v2857_v22 = vmul.f32 %v9586_v55, %v9532_v13  ;;  %v2894_v24 = vmul.f32 %v2893_v12, %v9452_v32  ;;  %v2917_v4 = vmul.f32 %v2916_v52, %v9494_v1  ;;  %v13132_v5 = vld [vmem:[#allocation121_spill] sm:$0xff] }
 0x376   :  { %v2955_v25 = vmul.f32 2.1237322e-06, %v9536_v27  ;;  %v9616_v7 = vmin.f32 %v2993_v10, 16.0  ;;  %v5238_v2 = vmul.f32 %v13130_v20, %v13129_v34  ;;  %v5239_v39 = vmul.f32 %v13132_v5, %v13131_v33  ;;  %v13133_v34 = vld [vmem:[#allocation91_spill] sm:$0xff]  ;;  %v13134_v20 = vld [vmem:[#allocation122_spill] sm:$0xff] }
 0x377   :  { %v2970_v40 = vmul.f32 %v2969_v0, %v9536_v27  ;;  %v2750_v21 = vmul.f32 %v2749_v43, %v9518_v53  ;;  %v2825_v28 = vand.u32 2147483647, %v9455_v59  ;;  %v2841_v12 = vmul.f32 %v2840_v41, %v9358_v18  ;;  %v873_v59 = vpop.f32.mrf.mxu2 }
 0x378   :  { %v2932_v52 = vmul.f32 %v2931_v3, %v9494_v1  ;;  %v2789_v51 = vsel %vm9567_vm14, %v2788_v45, %v2784_v42  ;;  %v2879_v10 = vmul.f32 %v2878_v58, %v9452_v32  ;;  %v3006_v0 = vmul.f32 3.8918573e-05, %v9616_v7  ;;  %5499 = vmatmul.f32.gmra.mxu1 %v5238_v2  ;;  %5588 = vmatmul.f32.gmra.mxu2 %v5239_v39 }
 0x379   :  { %v5240_v33 = vmul.f32 %v13134_v20, %v13133_v34  ;;  %v2828_v43 = vor.u32 1.1754944e-38, %v2827_v46  ;;  %v2858_v23 = vsub.f32 1.0, %v2857_v22  ;;  %v9641_v45 = vmul.f32 0.5, %v9418_v60 }
 0x37a   :  { %v2918_v41 = vadd.f32 0.0036580483, %v2917_v4  ;;  %v2824_v3 = vsel %vm9636_vm2, %v9515_v31, %v2820_v38  ;;  %v9646_v42 = vadd.f32 1.0, %v2894_v24  ;;  %v2956_v58 = vadd.f32 0.00028619796, %v2955_v25 }
 0x37b   :  { %v2971_v2 = vadd.f32 0.112945676, %v2970_v40  ;;  %5677 = vmatmul.f32.gmra.mxu3 %v5240_v33  ;;  %v5933_v5 = vclamps-f32 %v2750_v21, 1.0  ;;  %v2790_v39 = vmul.f32 %v2789_v51, %v9527_v63  ;;  %v2842_v34 = vadd.f32 0.18741608, %v2841_v12 }
 0x37c   :  { %v2933_v46 = vadd.f32 0.4994258, %v2932_v52  ;;  %vm2826_vm3 = vcmp.eq.f32.partialorder %v2825_v28, 8.507059e+37  ;;  %v2880_v22 = vadd.f32 0.05243302, %v2879_v10  ;;  %v9650_v60 = vmul.f32 0.5, %v9442_v54  ;;  %v962_v52 = vpop.f32.mrf.mxu3 }
 0x37d   :  { %v3007_v4 = vadd.f32 0.001143296, %v3006_v0  ;;  %v2829_v20 = vsel %vm2826_vm3, %v2828_v43, %v2824_v3  ;;  %v2859_v31 = vmul.f32 %v9586_v55, %v2858_v23  ;;  %v2919_v38 = vmul.f32 %v2918_v41, %v9494_v1 }
 0x37e   :  { %v9655_v24 = vadd.f32 %v873_v59, %v6892_v6  ;;  %6087 = vrcp.f32 %v9646_v42  ;;  %v2957_v63 = vmul.f32 %v2956_v58, %v9536_v27  ;;  %v2972_v25 = vmul.f32 %v2971_v2, %v9536_v27 }
 0x37f   :  { %v3008_v40 = vmul.f32 %v3007_v4, %v9616_v7  ;;  %v5071_v21 = vadd.f32 1.0, %v5933_v5  ;;  %v5934_v54 = vclamps-f32 %v2790_v39, 1.0  ;;  %v2843_v28 = vmul.f32 %v2842_v34, %v9358_v18 }
 0x380   :  { %v2934_v12 = vmul.f32 %v2933_v46, %v9494_v1  ;;  %vm2861_vm4 = vweird.f32 %v9532_v13  ;;  %v2881_v51 = vmul.f32 %v2880_v22, %v9452_v32  ;;  %v9666_v0 = vmul.f32 0.70710677, %v9655_v24 }
 0x381   :  { %v3009_v10 = vadd.f32 0.014752088, %v3008_v40  ;;  %v2830_v33 = vmul.f32 %v2829_v20, %v9589_v15  ;;  %v2860_v53 = vadd.f32 %v9586_v55, %v2859_v31  ;;  %vm2862_vm5 = vweird.f32 %v9586_v55 }
 0x382   :  { %v2920_v43 = vadd.f32 0.05243302, %v2919_v38  ;;  %v2958_v23 = vadd.f32 0.0036580483, %v2957_v63  ;;  %v2973_v18 = vadd.f32 0.4994258, %v2972_v25  ;;  %v9673_v3 = vadd.f32 %v962_v52, %v6894_v26  ;;  %vm9688_vm6 = vmor %vm2861_vm4, %vm2862_vm5 }
 0x383   :  { %v3010_v41 = vmul.f32 %v3009_v10, %v9616_v7  ;;  %v2865_v58 = vand.u32 2147483647, %v9532_v13  ;;  %v2867_v2 = vand.u32 2147483648, %v9532_v13  ;;  %v9677_v59 = vadd.f32 1.0, %v2934_v12 }
 0x384   :  { %v3033_v15 = vmul.f32 %v9666_v0, %v9666_v0  ;;  %v9681_v5 = vpop.eup %6087  ;;  %v9684_v39 = vmul.f32 %v5071_v21, %v9423_v19  ;;  %v5072_v34 = vadd.f32 1.0, %v5934_v54  ;;  %v2844_v46 = vadd.f32 1.1283791, %v2843_v28 }
 0x385   :  { %v2882_v4 = vadd.f32 0.18741608, %v2881_v51  ;;  %v5935_v20 = vclamps-f32 %v2830_v33, 1.0  ;;  %v2864_v31 = vsel %vm9688_vm6, %v9586_v55, %v2860_v53  ;;  %v2921_v38 = vmul.f32 %v2920_v43, %v9494_v1 }
 0x386   :  { %13137 = vst [vmem:[#allocation84_spill] sm:$0xff] %v9684_v39  ;;  %v3011_v63 = vadd.f32 0.112945676, %v3010_v41  ;;  %v2959_v19 = vmul.f32 %v2958_v23, %v9536_v27  ;;  %v2974_v25 = vmul.f32 %v2973_v18, %v9536_v27  ;;  %v9698_v40 = vmin.f32 %v3033_v15, 16.0 }
 0x387   :  { %v9701_v13 = vmul.f32 0.70710677, %v9673_v3  ;;  %vm2866_vm7 = vcmp.eq.f32.partialorder %v2865_v58, 8.507059e+37  ;;  %v2868_v21 = vor.u32 1.1754944e-38, %v2867_v2  ;;  %v2897_v54 = vmul.f32 %v9681_v5, %v9646_v42 }
 0x388   :  { %6089 = vrcp.f32 %v9677_v59  ;;  %v2883_v55 = vmul.f32 %v2882_v4, %v9452_v32  ;;  %v3012_v28 = vmul.f32 %v3011_v63, %v9616_v7  ;;  %v3046_v12 = vmul.f32 3.8918573e-05, %v9698_v40 }
 0x389   :  { %v3073_v52 = vmul.f32 %v9701_v13, %v9701_v13  ;;  %v5073_v51 = vadd.f32 1.0, %v5935_v20  ;;  %v2845_v10 = vmul.f32 %v2844_v46, %v9331_v44  ;;  %v2869_v33 = vsel %vm2866_vm7, %v2868_v21, %v2864_v31  ;;  %v698_v20 = vpop.f32.mrf.mxu0 }
 0x38a   :  { %v2922_v53 = vadd.f32 0.18741608, %v2921_v38  ;;  %v2960_v43 = vadd.f32 0.05243302, %v2959_v19  ;;  %v9712_v23 = vadd.f32 1.0, %v2974_v25  ;;  %v9717_v32 = vmul.f32 %v5072_v34, %v9426_v17 }
 0x38b   :  { %v3047_v18 = vadd.f32 0.001143296, %v3046_v12  ;;  %v9714_v41 = vmin.f32 %v3073_v52, 16.0  ;;  %v2898_v58 = vsub.f32 1.0, %v2897_v54  ;;  %v9720_v2 = vmul.f32 0.5, %v9488_v16 }
 0x38c   :  { %13140 = vst [vmem:[#allocation85_spill] sm:$0xff] %v9717_v32  ;;  %v2995_v15 = vmul.f32 2.1237322e-06, %v9616_v7  ;;  %v2870_v22 = vmul.f32 %v2869_v33, %v2845_v10  ;;  %v2884_v4 = vadd.f32 1.1283791, %v2883_v55  ;;  %v9727_v38 = vmul.f32 %v5073_v51, %v9429_v8 }
 0x38d   :  { %v3013_v44 = vadd.f32 0.4994258, %v3012_v28  ;;  %v3048_v46 = vmul.f32 %v3047_v18, %v9698_v40  ;;  %v2905_v17 = vand.u32 2147483647, %v9646_v42  ;;  %v2907_v34 = vand.u32 2147483648, %v9646_v42  ;;  %v787_v28 = vpop.f32.mrf.mxu1 }
 0x38e   :  { %v9724_v31 = vpop.eup %6089  ;;  %13141 = vst [vmem:[#allocation86_spill] sm:$0xff] %v9727_v38  ;;  %v2923_v16 = vmul.f32 %v2922_v53, %v9494_v1  ;;  %v2961_v63 = vmul.f32 %v2960_v43, %v9536_v27  ;;  %6091 = vrcp.f32 %v9712_v23  ;;  %v3086_v25 = vmul.f32 3.8918573e-05, %v9714_v41 }
 0x38f   :  { %v3049_v19 = vadd.f32 0.014752088, %v3048_v46  ;;  %v2899_v21 = vmul.f32 %v9681_v5, %v2898_v58  ;;  %v9737_v54 = vmul.f32 0.5, %v9550_v49  ;;  %v2996_v8 = vadd.f32 0.00028619796, %v2995_v15 }
 0x390   :  { %v9740_v55 = vadd.f32 %v698_v20, %v6844_v56  ;;  %v5936_v12 = vclamps-f32 %v2870_v22, 1.0  ;;  %v2885_v1 = vmul.f32 %v2884_v4, %v9438_v50  ;;  %v2937_v52 = vmul.f32 %v9724_v31, %v9677_v59 }
 0x391   :  { %v3014_v51 = vmul.f32 %v3013_v44, %v9616_v7  ;;  %vm2901_vm8 = vweird.f32 %v9646_v42  ;;  %v2908_v10 = vor.u32 1.1754944e-38, %v2907_v34  ;;  %v3035_v33 = vmul.f32 2.1237322e-06, %v9698_v40 }
 0x392   :  { %v3050_v49 = vmul.f32 %v3049_v19, %v9698_v40  ;;  %vm9749_vm9 = vcmp.eq.f32.partialorder %v2905_v17, 8.507059e+37  ;;  %v2924_v43 = vadd.f32 1.1283791, %v2923_v16  ;;  %v2962_v18 = vadd.f32 0.18741608, %v2961_v63 }
 0x393   :  { %v3087_v58 = vadd.f32 0.001143296, %v3086_v25  ;;  %v9754_v50 = vadd.f32 %v787_v28, %v6846_v62  ;;  %v2900_v15 = vadd.f32 %v9681_v5, %v2899_v21  ;;  %vm2902_vm10 = vweird.f32 %v9681_v5 }
 0x394   :  { %v2997_v22 = vmul.f32 %v2996_v8, %v9616_v7  ;;  %v9760_v4 = vmul.f32 0.70710677, %v9740_v55  ;;  %v9762_v44 = vpop.eup %6091  ;;  %v5074_v46 = vadd.f32 1.0, %v5936_v12  ;;  %v2938_v20 = vsub.f32 1.0, %v2937_v52  ;;  %vm9772_vm11 = vmor %vm2901_vm8, %vm2902_vm10  ;;  %v13146_v52 = vld [vmem:[#allocation92_spill] sm:$0xff] }
 0x395   :  { %v9764_v17 = vadd.f32 1.0, %v3014_v51  ;;  %v3088_v34 = vmul.f32 %v3087_v58, %v9714_v41  ;;  %v2947_v16 = vand.u32 2147483648, %v9677_v59  ;;  %v3036_v63 = vadd.f32 0.00028619796, %v3035_v33  ;;  %v13147_v51 = vld [vmem:[#allocation123_spill] sm:$0xff] }
 0x396   :  { %v3051_v19 = vadd.f32 0.112945676, %v3050_v49  ;;  %v3113_v25 = vmul.f32 %v9760_v4, %v9760_v4  ;;  %v2963_v8 = vmul.f32 %v2962_v18, %v9536_v27  ;;  %v9778_v12 = vmul.f32 0.70710677, %v9754_v50 }
 0x397   :  { %v3089_v28 = vadd.f32 0.014752088, %v3088_v34  ;;  %v5241_v58 = vmul.f32 %v13147_v51, %v13146_v52  ;;  %v2904_v33 = vsel %vm9772_vm11, %v9681_v5, %v2900_v15  ;;  %v2945_v49 = vand.u32 2147483647, %v9677_v59 }
 0x398   :  { %v2977_v42 = vmul.f32 %v9762_v44, %v9712_v23  ;;  %v2998_v38 = vadd.f32 0.0036580483, %v2997_v22  ;;  %v2939_v32 = vmul.f32 %v9724_v31, %v2938_v20  ;;  %6093 = vrcp.f32 %v9764_v17 }
 0x399   :  { %v3075_v27 = vmul.f32 2.1237322e-06, %v9714_v41  ;;  %v9791_v18 = vmin.f32 %v3113_v25, 16.0  ;;  %5413 = vmatmul.f32.gmra.mxu0 %v5241_v58  ;;  %v9794_v34 = vmul.f32 %v2924_v43, %v9458_v37  ;;  %vm2941_vm12 = vweird.f32 %v9677_v59 }
 0x39a   :  { %v3037_v5 = vmul.f32 %v3036_v63, %v9698_v40  ;;  %v3052_v15 = vmul.f32 %v3051_v19, %v9698_v40  ;;  %v2948_v21 = vor.u32 1.1754944e-38, %v2947_v16  ;;  %v2964_v22 = vadd.f32 1.1283791, %v2963_v8 }
 0x39b   :  { %v3090_v20 = vmul.f32 %v3089_v28, %v9714_v41  ;;  %v3153_v52 = vmul.f32 %v9778_v12, %v9778_v12  ;;  %v2909_v25 = vsel %vm9749_vm9, %v2908_v10, %v2904_v33  ;;  %v2978_v51 = vsub.f32 1.0, %v2977_v42 }
 0x39c   :  { %v2999_v37 = vmul.f32 %v2998_v38, %v9616_v7  ;;  %v3126_v43 = vmul.f32 3.8918573e-05, %v9791_v18  ;;  %v2940_v58 = vadd.f32 %v9724_v31, %v2939_v32  ;;  %vm2942_vm13 = vweird.f32 %v9724_v31 }
 0x39d   :  { %vm9808_vm14 = vcmp.eq.f32.partialorder %v2945_v49, 8.507059e+37  ;;  %v9813_v63 = vmul.f32 0.5, %v9655_v24  ;;  %v3076_v19 = vadd.f32 0.00028619796, %v3075_v27  ;;  %v9816_v53 = vmul.f32 %v5074_v46, %v9512_v57  ;;  %vm9827_vm15 = vmor %vm2941_vm12, %vm2942_vm13 }
 0x39e   :  { %v3038_v10 = vadd.f32 0.0036580483, %v3037_v5  ;;  %v3053_v8 = vadd.f32 0.4994258, %v3052_v15  ;;  %v3127_v38 = vadd.f32 0.001143296, %v3126_v43  ;;  %v9818_v28 = vpop.eup %6093  ;;  %v2910_v33 = vmul.f32 %v2909_v25, %v2885_v1 }
 0x39f   :  { %13150 = vst [vmem:[#allocation87_spill] sm:$0xff] %v9816_v53  ;;  %v9821_v32 = vmul.f32 %v2964_v22, %v9503_v9  ;;  %v3091_v49 = vadd.f32 0.112945676, %v3090_v20  ;;  %v9823_v42 = vmin.f32 %v3153_v52, 16.0  ;;  %v2979_v57 = vmul.f32 %v9762_v44, %v2978_v51  ;;  %v13154_v53 = vld [vmem:[#allocation94_spill] sm:$0xff] }
 0x3a0   :  { %v2985_v46 = vand.u32 2147483647, %v9712_v23  ;;  %v3000_v27 = vadd.f32 0.05243302, %v2999_v37  ;;  %v9834_v5 = vmul.f32 0.5, %v9673_v3  ;;  %v2944_v9 = vsel %vm9827_vm15, %v9724_v31, %v2940_v58  ;;  %v13153_v37 = vld [vmem:[#allocation93_spill] sm:$0xff] }
 0x3a1   :  { %v2987_v1 = vand.u32 2147483648, %v9712_v23  ;;  %v3077_v59 = vmul.f32 %v3076_v19, %v9714_v41  ;;  %v3128_v15 = vmul.f32 %v3127_v38, %v9791_v18  ;;  %v3017_v22 = vmul.f32 %v9818_v28, %v9764_v17 }
 0x3a2   :  { %v3039_v20 = vmul.f32 %v3038_v10, %v9698_v40  ;;  %v3054_v52 = vmul.f32 %v3053_v8, %v9698_v40  ;;  %v3115_v3 = vmul.f32 2.1237322e-06, %v9791_v18  ;;  %v3092_v25 = vmul.f32 %v3091_v49, %v9714_v41 }
 0x3a3   :  { %v3129_v51 = vadd.f32 0.014752088, %v3128_v15  ;;  %v3166_v31 = vmul.f32 3.8918573e-05, %v9823_v42  ;;  %v5242_v43 = vmul.f32 %v8481_v61, %v13153_v37  ;;  %v5937_v58 = vclamps-f32 %v2910_v33, 1.0  ;;  %v13160_v37 = vld [vmem:[#allocation124_spill] sm:$0xff] }
 0x3a4   :  { %v2980_v19 = vadd.f32 %v9762_v44, %v2979_v57  ;;  %vm2982_vm0 = vweird.f32 %v9762_v44  ;;  %v3001_v38 = vmul.f32 %v3000_v27, %v9616_v7  ;;  %v3078_v10 = vadd.f32 0.0036580483, %v3077_v59 }
 0x3a5   :  { %v3130_v8 = vmul.f32 %v3129_v51, %v9791_v18  ;;  %v3167_v24 = vadd.f32 0.001143296, %v3166_v31  ;;  %5502 = vmatmul.f32.gmra.mxu1 %v5242_v43  ;;  %v5243_v49 = vmul.f32 %v8584_v35, %v13154_v53  ;;  %v2949_v15 = vsel %vm9808_vm14, %v2948_v21, %v2944_v9 }
 0x3a6   :  { %vm2981_vm1 = vweird.f32 %v9712_v23  ;;  %v3018_v61 = vsub.f32 1.0, %v3017_v22  ;;  %v3040_v33 = vadd.f32 0.05243302, %v3039_v20  ;;  %vm9860_vm2 = vcmp.eq.f32.partialorder %v2985_v46, 8.507059e+37  ;;  %v876_v20 = vpop.f32.mrf.mxu2 }
 0x3a7   :  { %v9864_v27 = vadd.f32 1.0, %v3054_v52  ;;  %v3093_v59 = vadd.f32 0.4994258, %v3092_v25  ;;  %v3116_v51 = vadd.f32 0.00028619796, %v3115_v3  ;;  %5591 = vmatmul.f32.gmra.mxu2 %v5243_v49  ;;  %v5075_v31 = vadd.f32 1.0, %v5937_v58  ;;  %vm9868_vm3 = vmor %vm2981_vm1, %vm2982_vm0 }
 0x3a8   :  { %v2988_v21 = vor.u32 1.1754944e-38, %v2987_v1  ;;  %v3002_v23 = vadd.f32 0.18741608, %v3001_v38  ;;  %v3131_v16 = vadd.f32 0.112945676, %v3130_v8  ;;  %v2950_v53 = vmul.f32 %v2949_v15, %v9794_v34  ;;  %v13159_v1 = vld [vmem:[#allocation95_spill] sm:$0xff] }
 0x3a9   :  { %v2984_v46 = vsel %vm9868_vm3, %v9762_v44, %v2980_v19  ;;  %v3079_v9 = vmul.f32 %v3078_v10, %v9714_v41  ;;  %v3168_v22 = vmul.f32 %v3167_v24, %v9823_v42  ;;  %v3019_v52 = vmul.f32 %v9818_v28, %v3018_v61 }
 0x3aa   :  { %v3041_v3 = vmul.f32 %v3040_v33, %v9698_v40  ;;  %v3132_v25 = vmul.f32 %v3131_v16, %v9791_v18  ;;  %v5244_v43 = vmul.f32 %v13160_v37, %v13159_v1  ;;  %6095 = vrcp.f32 %v9864_v27  ;;  %v965_v33 = vpop.f32.mrf.mxu3 }
 0x3ab   :  { %v3094_v34 = vmul.f32 %v3093_v59, %v9714_v41  ;;  %v3117_v44 = vmul.f32 %v3116_v51, %v9791_v18  ;;  %v3169_v58 = vadd.f32 0.014752088, %v3168_v22  ;;  %v9887_v19 = vmul.f32 %v5075_v31, %v9641_v45 }
 0x3ac   :  { %v9890_v38 = vmul.f32 0.5, %v9740_v55  ;;  %v3133_v10 = vadd.f32 0.4994258, %v3132_v25  ;;  %5680 = vmatmul.f32.gmra.mxu3 %v5244_v43  ;;  %v9893_v8 = vadd.f32 %v876_v20, %v6892_v6  ;;  %v5938_v24 = vclamps-f32 %v2950_v53, 1.0 }
 0x3ad   :  { %13161 = vst [vmem:[#allocation78_spill] sm:$0xff] %v9887_v19  ;;  %v3003_v49 = vmul.f32 %v3002_v23, %v9616_v7  ;;  %v3080_v15 = vadd.f32 0.05243302, %v3079_v9  ;;  %v3170_v61 = vmul.f32 %v3169_v58, %v9823_v42  ;;  %v2989_v59 = vsel %vm9860_vm2, %v2988_v21, %v2984_v46 }
 0x3ae   :  { %vm3022_vm4 = vweird.f32 %v9818_v28  ;;  %v3042_v45 = vadd.f32 0.18741608, %v3041_v3  ;;  %v3155_v55 = vmul.f32 2.1237322e-06, %v9823_v42  ;;  %v3020_v51 = vadd.f32 %v9818_v28, %v3019_v52  ;;  %v879_v39 = vpop.f32.mrf.mxu2 }
 0x3af   :  { %v9902_v31 = vadd.f32 1.0, %v3094_v34  ;;  %v3118_v35 = vadd.f32 0.0036580483, %v3117_v44  ;;  %v3171_v16 = vadd.f32 0.112945676, %v3170_v61  ;;  %vm3021_vm5 = vweird.f32 %v9764_v17 }
 0x3b0   :  { %v3134_v7 = vmul.f32 %v3133_v10, %v9791_v18  ;;  %v9907_v23 = vmul.f32 0.70710677, %v9893_v8  ;;  %v9910_v57 = vadd.f32 %v965_v33, %v6894_v26  ;;  %v9912_v21 = vpop.eup %6095  ;;  %v3025_v53 = vand.u32 2147483647, %v9764_v17  ;;  %vm9921_vm6 = vmor %vm3021_vm5, %vm3022_vm4 }
 0x3b1   :  { %v3027_v46 = vand.u32 2147483648, %v9764_v17  ;;  %v3081_v9 = vmul.f32 %v3080_v15, %v9714_v41  ;;  %v3172_v22 = vmul.f32 %v3171_v16, %v9823_v42  ;;  %v5076_v20 = vadd.f32 1.0, %v5938_v24 }
 0x3b2   :  { %v2990_v52 = vmul.f32 %v2989_v59, %v9821_v32  ;;  %v3004_v3 = vadd.f32 1.1283791, %v3003_v49  ;;  %v3043_v1 = vmul.f32 %v3042_v45, %v9698_v40  ;;  %v3024_v17 = vsel %vm9921_vm6, %v9818_v28, %v3020_v51  ;;  %v701_v51 = vpop.f32.mrf.mxu0 }
 0x3b3   :  { %6097 = vrcp.f32 %v9902_v31  ;;  %v3119_v37 = vmul.f32 %v3118_v35, %v9791_v18  ;;  %v3156_v43 = vadd.f32 0.00028619796, %v3155_v55  ;;  %v3057_v32 = vmul.f32 %v9912_v21, %v9864_v27 }
 0x3b4   :  { %v9933_v34 = vadd.f32 1.0, %v3134_v7  ;;  %v3193_v44 = vmul.f32 %v9907_v23, %v9907_v23  ;;  %v9938_v58 = vmul.f32 0.70710677, %v9910_v57  ;;  %vm3026_vm7 = vcmp.eq.f32.partialorder %v3025_v53, 8.507059e+37 }
 0x3b5   :  { %v3028_v40 = vor.u32 1.1754944e-38, %v3027_v46  ;;  %v3082_v10 = vadd.f32 0.18741608, %v3081_v9  ;;  %v3173_v28 = vadd.f32 0.4994258, %v3172_v22  ;;  %v5939_v24 = vclamps-f32 %v2990_v52, 1.0 }
 0x3b6   :  { %v3044_v49 = vadd.f32 1.1283791, %v3043_v1  ;;  %v9940_v15 = vmin.f32 %v3193_v44, 16.0  ;;  %v3233_v61 = vmul.f32 %v9938_v58, %v9938_v58  ;;  %v3120_v59 = vadd.f32 0.05243302, %v3119_v37 }
 0x3b7   :  { %v3029_v33 = vsel %vm3026_vm7, %v3028_v40, %v3024_v17  ;;  %v9945_v45 = vmul.f32 0.5, %v9754_v50  ;;  %v3157_v55 = vmul.f32 %v3156_v43, %v9823_v42  ;;  %v3058_v35 = vsub.f32 1.0, %v3057_v32 }
 0x3b8   :  { %6099 = vrcp.f32 %v9933_v34  ;;  %v3206_v16 = vmul.f32 3.8918573e-05, %v9940_v15  ;;  %v9950_v7 = vmin.f32 %v3233_v61, 16.0  ;;  %v9955_v46 = vmul.f32 %v5076_v20, %v9650_v60  ;;  %v13165_v61 = vld [vmem:[#allocation96_spill] sm:$0xff] }
 0x3b9   :  { %v9952_v53 = vpop.eup %6097  ;;  %v3005_v9 = vmul.f32 %v3004_v3, %v9574_v14  ;;  %v3083_v50 = vmul.f32 %v3082_v10, %v9714_v41  ;;  %v3174_v22 = vmul.f32 %v3173_v28, %v9823_v42  ;;  %v9960_v52 = vadd.f32 1.0, %v5939_v24 }
 0x3ba   :  { %13164 = vst [vmem:[#allocation88_spill] sm:$0xff] %v9955_v46  ;;  %v9963_v25 = vmul.f32 %v3044_v49, %v9666_v0  ;;  %vm3061_vm8 = vweird.f32 %v9864_v27  ;;  %v9967_v1 = vadd.f32 %v701_v51, %v6844_v56  ;;  %v3065_v60 = vand.u32 2147483647, %v9864_v27 }
 0x3bb   :  { %v3030_v17 = vmul.f32 %v3029_v33, %v3005_v9  ;;  %v3158_v20 = vadd.f32 0.0036580483, %v3157_v55  ;;  %v3207_v37 = vadd.f32 0.001143296, %v3206_v16  ;;  %v3059_v14 = vmul.f32 %v9912_v21, %v3058_v35  ;;  %v13166_v33 = vld [vmem:[#allocation125_spill] sm:$0xff] }
 0x3bc   :  { %v3097_v41 = vmul.f32 %v9952_v53, %v9902_v31  ;;  %v3121_v3 = vmul.f32 %v3120_v59, %v9791_v18  ;;  %v3246_v0 = vmul.f32 3.8918573e-05, %v9950_v7  ;;  %v3067_v43 = vand.u32 2147483648, %v9864_v27 }
 0x3bd   :  { %v3084_v32 = vadd.f32 1.1283791, %v3083_v50  ;;  %v9976_v44 = vadd.f32 1.0, %v3174_v22  ;;  %v3208_v40 = vmul.f32 %v3207_v37, %v9940_v15  ;;  %v3195_v28 = vmul.f32 2.1237322e-06, %v9940_v15  ;;  %v790_v37 = vpop.f32.mrf.mxu1 }
 0x3be   :  { %v9979_v10 = vpop.eup %6099  ;;  %v3247_v24 = vadd.f32 0.001143296, %v3246_v0  ;;  %v9983_v49 = vmul.f32 0.70710677, %v9967_v1  ;;  %v5245_v59 = vmul.f32 %v13166_v33, %v13165_v61  ;;  %v5940_v55 = vclamps-f32 %v3030_v17, 1.0 }
 0x3bf   :  { %vm3062_vm9 = vweird.f32 %v9912_v21  ;;  %v3159_v51 = vmul.f32 %v3158_v20, %v9823_v42  ;;  %v3209_v35 = vadd.f32 0.014752088, %v3208_v40  ;;  %v3060_v16 = vadd.f32 %v9912_v21, %v3059_v14 }
 0x3c0   :  { %v3098_v9 = vsub.f32 1.0, %v3097_v41  ;;  %v3122_v50 = vadd.f32 0.18741608, %v3121_v3  ;;  %v3248_v22 = vmul.f32 %v3247_v24, %v9950_v7  ;;  %5416 = vmatmul.f32.gmra.mxu0 %v5245_v59  ;;  %v3137_v0 = vmul.f32 %v9979_v10, %v9933_v34  ;;  %vm10005_vm11 = vmor %vm3061_vm8, %vm3062_vm9 }
 0x3c1   :  { %6101 = vrcp.f32 %v9976_v44  ;;  %v3210_v17 = vmul.f32 %v3209_v35, %v9940_v15  ;;  %v3273_v61 = vmul.f32 %v9983_v49, %v9983_v49  ;;  %vm9997_vm10 = vcmp.eq.f32.partialorder %v3065_v60, 8.507059e+37 }
 0x3c2   :  { %v3068_v14 = vor.u32 1.1754944e-38, %v3067_v43  ;;  %v3196_v41 = vadd.f32 0.00028619796, %v3195_v28  ;;  %v3249_v3 = vadd.f32 0.014752088, %v3248_v22  ;;  %v10010_v24 = vmul.f32 %v3084_v32, %v9701_v13 }
 0x3c3   :  { %v3211_v33 = vadd.f32 0.112945676, %v3210_v17  ;;  %v10012_v59 = vmin.f32 %v3273_v61, 16.0  ;;  %v10015_v60 = vadd.f32 %v790_v37, %v6846_v62  ;;  %v3064_v43 = vsel %vm10005_vm11, %v9912_v21, %v3060_v16 }
 0x3c4   :  { %v3123_v28 = vmul.f32 %v3122_v50, %v9791_v18  ;;  %v3160_v27 = vadd.f32 0.05243302, %v3159_v51  ;;  %v3250_v35 = vmul.f32 %v3249_v3, %v9950_v7  ;;  %v10022_v22 = vadd.f32 1.0, %v5940_v55 }
 0x3c5   :  { %v3099_v13 = vmul.f32 %v9952_v53, %v3098_v9  ;;  %v3138_v32 = vsub.f32 1.0, %v3137_v0  ;;  %v3235_v17 = vmul.f32 2.1237322e-06, %v9950_v7  ;;  %vm3101_vm12 = vweird.f32 %v9902_v31 }
 0x3c6   :  { %v3105_v37 = vand.u32 2147483647, %v9902_v31  ;;  %v3197_v61 = vmul.f32 %v3196_v41, %v9940_v15  ;;  %v3286_v21 = vmul.f32 3.8918573e-05, %v10012_v59  ;;  %v3069_v18 = vsel %vm9997_vm10, %v3068_v14, %v3064_v43 }
 0x3c7   :  { %v10030_v16 = vpop.eup %6101  ;;  %v3212_v55 = vmul.f32 %v3211_v33, %v9940_v15  ;;  %v3251_v51 = vadd.f32 0.112945676, %v3250_v35  ;;  %v10036_v9 = vmul.f32 0.70710677, %v10015_v60  ;;  %v3107_v50 = vand.u32 2147483648, %v9902_v31 }
 0x3c8   :  { %v3124_v0 = vadd.f32 1.1283791, %v3123_v28  ;;  %v3161_v3 = vmul.f32 %v3160_v27, %v9823_v42  ;;  %v3287_v40 = vadd.f32 0.001143296, %v3286_v21  ;;  %v3100_v41 = vadd.f32 %v9952_v53, %v3099_v13 }
 0x3c9   :  { %vm3102_vm13 = vweird.f32 %v9952_v53  ;;  %v3139_v46 = vmul.f32 %v9979_v10, %v3138_v32  ;;  %v3236_v20 = vadd.f32 0.00028619796, %v3235_v17  ;;  %v10044_v14 = vmul.f32 %v3069_v18, %v9963_v25  ;;  %v13177_v25 = vld [vmem:[#allocation97_spill] sm:$0xff] }
 0x3ca   :  { %vm10046_vm14 = vcmp.eq.f32.partialorder %v3105_v37, 8.507059e+37  ;;  %v3177_v43 = vmul.f32 %v10030_v16, %v9976_v44  ;;  %v3198_v28 = vadd.f32 0.0036580483, %v3197_v61  ;;  %v3213_v27 = vadd.f32 0.4994258, %v3212_v55  ;;  %vm10058_vm15 = vmor %vm3101_vm12, %vm3102_vm13 }
 0x3cb   :  { %v3252_v35 = vmul.f32 %v3251_v51, %v9950_v7  ;;  %v3288_v13 = vmul.f32 %v3287_v40, %v10012_v59  ;;  %v3313_v32 = vmul.f32 %v10036_v9, %v10036_v9  ;;  %v3108_v17 = vor.u32 1.1754944e-38, %v3107_v50  ;;  %v13179_v51 = vld [vmem:[#allocation98_spill] sm:$0xff] }
 0x3cc   :  { %v3125_v37 = vmul.f32 %v3124_v0, %v9760_v4  ;;  %v3147_v21 = vand.u32 2147483648, %v9933_v34  ;;  %v3162_v61 = vadd.f32 0.18741608, %v3161_v3  ;;  %v3104_v18 = vsel %vm10058_vm15, %v9952_v53, %v3100_v41 }
 0x3cd   :  { %v3140_v55 = vadd.f32 %v9979_v10, %v3139_v46  ;;  %vm3142_vm0 = vweird.f32 %v9979_v10  ;;  %v3237_v31 = vmul.f32 %v3236_v20, %v9950_v7  ;;  %vm3141_vm1 = vweird.f32 %v9933_v34 }
 0x3ce   :  { %v3178_v50 = vsub.f32 1.0, %v3177_v43  ;;  %v3199_v4 = vmul.f32 %v3198_v28, %v9940_v15  ;;  %v3214_v0 = vmul.f32 %v3213_v27, %v9940_v15  ;;  %v3253_v3 = vadd.f32 0.4994258, %v3252_v35  ;;  %vm10078_vm2 = vmor %vm3141_vm1, %vm3142_vm0 }
 0x3cf   :  { %v3289_v40 = vadd.f32 0.014752088, %v3288_v13  ;;  %v10074_v19 = vmin.f32 %v3313_v32, 16.0  ;;  %v3109_v53 = vsel %vm10046_vm14, %v3108_v17, %v3104_v18  ;;  %v3145_v41 = vand.u32 2147483647, %v9933_v34  ;;  %v13178_v17 = vld [vmem:[#allocation126_spill] sm:$0xff] }
 0x3d0   :  { %v3148_v20 = vor.u32 1.1754944e-38, %v3147_v21  ;;  %v3163_v43 = vmul.f32 %v3162_v61, %v9823_v42  ;;  %v3144_v28 = vsel %vm10078_vm2, %v9979_v10, %v3140_v55  ;;  %v3238_v27 = vadd.f32 0.0036580483, %v3237_v31  ;;  %v13180_v34 = vld [vmem:[#allocation127_spill] sm:$0xff] }
 0x3d1   :  { %v3275_v35 = vmul.f32 2.1237322e-06, %v10012_v59  ;;  %v3290_v13 = vmul.f32 %v3289_v40, %v10012_v59  ;;  %v3200_v33 = vadd.f32 0.05243302, %v3199_v4  ;;  %v3326_v32 = vmul.f32 3.8918573e-05, %v10074_v19 }
 0x3d2   :  { %v5246_v18 = vmul.f32 %v13178_v17, %v13177_v25  ;;  %v5247_v21 = vmul.f32 %v13180_v34, %v13179_v51  ;;  %v3179_v42 = vmul.f32 %v10030_v16, %v3178_v50  ;;  %v10095_v61 = vadd.f32 1.0, %v3214_v0  ;;  %v13181_v17 = vld [vmem:[#allocation99_spill] sm:$0xff]  ;;  %v968_v50 = vpop.f32.mrf.mxu3 }
 0x3d3   :  { %v3254_v10 = vmul.f32 %v3253_v3, %v9950_v7  ;;  %v3291_v55 = vadd.f32 0.112945676, %v3290_v13  ;;  %v3110_v31 = vmul.f32 %v3109_v53, %v10010_v24  ;;  %vm3146_vm3 = vcmp.eq.f32.partialorder %v3145_v41, 8.507059e+37 }
 0x3d4   :  { %v3164_v4 = vadd.f32 1.1283791, %v3163_v43  ;;  %v3327_v40 = vadd.f32 0.001143296, %v3326_v32  ;;  %5505 = vmatmul.f32.gmra.mxu1 %v5246_v18  ;;  %5594 = vmatmul.f32.gmra.mxu2 %v5247_v21  ;;  %v3149_v46 = vsel %vm3146_vm3, %v3148_v20, %v3144_v28  ;;  %v3276_v25 = vadd.f32 0.00028619796, %v3275_v35 }
 0x3d5   :  { %v5248_v51 = vmul.f32 %v13182_v30, %v13181_v17  ;;  %v10102_v34 = vadd.f32 %v879_v39, %v6892_v6  ;;  %v3201_v0 = vmul.f32 %v3200_v33, %v9940_v15  ;;  %v3239_v3 = vmul.f32 %v3238_v27, %v9950_v7 }
 0x3d6   :  { %v3292_v24 = vmul.f32 %v3291_v55, %v10012_v59  ;;  %v3328_v53 = vmul.f32 %v3327_v40, %v10074_v19  ;;  %v3180_v41 = vadd.f32 %v10030_v16, %v3179_v42  ;;  %vm3182_vm4 = vweird.f32 %v10030_v16 }
 0x3d7   :  { %6103 = vrcp.f32 %v10095_v61  ;;  %v10111_v20 = vadd.f32 1.0, %v3254_v10  ;;  %5683 = vmatmul.f32.gmra.mxu3 %v5248_v51  ;;  %vm3181_vm5 = vweird.f32 %v9976_v44  ;;  %v3187_v30 = vand.u32 2147483648, %v9976_v44 }
 0x3d8   :  { %v3329_v39 = vadd.f32 0.014752088, %v3328_v53  ;;  %v10116_v43 = vadd.f32 %v968_v50, %v6894_v26  ;;  %v3150_v28 = vmul.f32 %v3149_v46, %v3125_v37  ;;  %v3185_v27 = vand.u32 2147483647, %v9976_v44  ;;  %vm10127_vm6 = vmor %vm3181_vm5, %vm3182_vm4 }
 0x3d9   :  { %v3277_v35 = vmul.f32 %v3276_v25, %v10012_v59  ;;  %v10121_v13 = vmul.f32 0.70710677, %v10102_v34  ;;  %v10125_v33 = vmul.f32 %v9960_v52, %v9720_v2  ;;  %v3202_v18 = vadd.f32 0.18741608, %v3201_v0 }
 0x3da   :  { %v3240_v21 = vadd.f32 0.05243302, %v3239_v3  ;;  %v3293_v42 = vadd.f32 0.4994258, %v3292_v24  ;;  %v3184_v44 = vsel %vm10127_vm6, %v10030_v16, %v3180_v41  ;;  %6105 = vrcp.f32 %v10111_v20 }
 0x3db   :  { %v3330_v37 = vmul.f32 %v3329_v39, %v10074_v19  ;;  %v3353_v10 = vmul.f32 %v10121_v13, %v10121_v13  ;;  %v13185_v2 = vclamps-f32 %v10044_v14, 1.0  ;;  %v3165_v55 = vmul.f32 %v3164_v4, %v9778_v12 }
 0x3dc   :  { %v3188_v40 = vor.u32 1.1754944e-38, %v3187_v30  ;;  %v10142_v46 = vmul.f32 0.70710677, %v10116_v43  ;;  %v5942_v17 = vclamps-f32 %v3110_v31, 1.0  ;;  %v5943_v16 = vclamps-f32 %v3150_v28, 1.0 }
 0x3dd   :  { %v5079_v52 = vadd.f32 1.0, %v13185_v2  ;;  %v10144_v25 = vpop.eup %6103  ;;  %vm3186_vm7 = vcmp.eq.f32.partialorder %v3185_v27, 8.507059e+37  ;;  %v3278_v51 = vadd.f32 0.0036580483, %v3277_v35  ;;  %v3241_v0 = vmul.f32 %v3240_v21, %v9950_v7 }
 0x3de   :  { %v3189_v50 = vsel %vm3186_vm7, %v3188_v40, %v3184_v44  ;;  %v3294_v3 = vmul.f32 %v3293_v42, %v10012_v59  ;;  %v3315_v14 = vmul.f32 2.1237322e-06, %v10074_v19  ;;  %v3203_v24 = vmul.f32 %v3202_v18, %v9940_v15 }
 0x3df   :  { %v3331_v12 = vadd.f32 0.112945676, %v3330_v37  ;;  %v10150_v4 = vmin.f32 %v3353_v10, 16.0  ;;  %v3393_v53 = vmul.f32 %v10142_v46, %v10142_v46  ;;  %v10156_v31 = vmul.f32 %v10022_v22, %v9737_v54 }
 0x3e0   :  { %v10159_v41 = vmul.f32 0.5, %v9893_v8  ;;  %v3217_v30 = vmul.f32 %v10144_v25, %v10095_v61  ;;  %v10164_v39 = vmul.f32 0.5, %v9910_v57  ;;  %v10166_v15 = vpop.eup %6105  ;;  %v10169_v28 = vmul.f32 %v5079_v52, %v9813_v63 }
 0x3e1   :  { %v5080_v27 = vadd.f32 1.0, %v5942_v17  ;;  %v3190_v35 = vmul.f32 %v3189_v50, %v3165_v55  ;;  %v3279_v32 = vmul.f32 %v3278_v51, %v10012_v59  ;;  %v10172_v54 = vadd.f32 1.0, %v3294_v3 }
 0x3e2   :  { %v3316_v22 = vadd.f32 0.00028619796, %v3315_v14  ;;  %v3366_v8 = vmul.f32 3.8918573e-05, %v10150_v4  ;;  %v10175_v18 = vmin.f32 %v3393_v53, 16.0  ;;  %v5081_v21 = vadd.f32 1.0, %v5943_v16  ;;  %v704_v16 = vpop.f32.mrf.mxu0 }
 0x3e3   :  { %v3204_v42 = vadd.f32 1.1283791, %v3203_v24  ;;  %v3242_v57 = vadd.f32 0.18741608, %v3241_v0  ;;  %v3332_v44 = vmul.f32 %v3331_v12, %v10074_v19  ;;  %v3218_v37 = vsub.f32 1.0, %v3217_v30 }
 0x3e4   :  { %v3257_v63 = vmul.f32 %v10166_v15, %v10111_v20  ;;  %v10181_v10 = vmul.f32 0.5, %v9967_v1  ;;  %v3367_v2 = vadd.f32 0.001143296, %v3366_v8  ;;  %v10184_v52 = vmul.f32 %v5080_v27, %v9834_v5 }
 0x3e5   :  { %v5944_v55 = vclamps-f32 %v3190_v35, 1.0  ;;  %v3280_v40 = vadd.f32 0.05243302, %v3279_v32  ;;  %v10187_v17 = vmul.f32 0.5, %v10015_v60  ;;  %6107 = vrcp.f32 %v10172_v54  ;;  %v793_v35 = vpop.f32.mrf.mxu1 }
 0x3e6   :  { %v3317_v51 = vmul.f32 %v3316_v22, %v10074_v19  ;;  %v3368_v50 = vmul.f32 %v3367_v2, %v10150_v4  ;;  %v3406_v0 = vmul.f32 3.8918573e-05, %v10175_v18  ;;  %v10194_v1 = vmul.f32 %v5081_v21, %v9890_v38 }
 0x3e7   :  { %v10197_v5 = vmul.f32 %v3204_v42, %v9907_v23  ;;  %v3243_v3 = vmul.f32 %v3242_v57, %v9950_v7  ;;  %v3333_v14 = vadd.f32 0.4994258, %v3332_v44  ;;  %v3219_v60 = vmul.f32 %v10144_v25, %v3218_v37 }
 0x3e8   :  { %v3225_v24 = vand.u32 2147483647, %v10095_v61  ;;  %v3258_v12 = vsub.f32 1.0, %v3257_v63  ;;  %v10203_v53 = vadd.f32 %v704_v16, %v6844_v56  ;;  %vm3221_vm8 = vweird.f32 %v10095_v61 }
 0x3e9   :  { %v3227_v30 = vand.u32 2147483648, %v10095_v61  ;;  %v3369_v38 = vadd.f32 0.014752088, %v3368_v50  ;;  %v3407_v27 = vadd.f32 0.001143296, %v3406_v0  ;;  %v5082_v23 = vadd.f32 1.0, %v5944_v55 }
 0x3ea   :  { %v3281_v32 = vmul.f32 %v3280_v40, %v10012_v59  ;;  %v3318_v7 = vadd.f32 0.0036580483, %v3317_v51  ;;  %v3355_v22 = vmul.f32 2.1237322e-06, %v10150_v4  ;;  %vm3222_vm9 = vweird.f32 %v10144_v25 }
 0x3eb   :  { %v3334_v8 = vmul.f32 %v3333_v14, %v10074_v19  ;;  %v3370_v21 = vmul.f32 %v3369_v38, %v10150_v4  ;;  %v3408_v42 = vmul.f32 %v3407_v27, %v10175_v18  ;;  %v10213_v57 = vpop.eup %6107  ;;  %v3220_v44 = vadd.f32 %v10144_v25, %v3219_v60  ;;  %vm10235_vm11 = vmor %vm3221_vm8, %vm3222_vm9 }
 0x3ec   :  { %v3259_v37 = vmul.f32 %v10166_v15, %v3258_v12  ;;  %v10218_v63 = vmul.f32 0.70710677, %v10203_v53  ;;  %v10221_v2 = vadd.f32 %v793_v35, %v6846_v62  ;;  %vm10223_vm10 = vcmp.eq.f32.partialorder %v3225_v24, 8.507059e+37 }
 0x3ed   :  { %v3228_v40 = vor.u32 1.1754944e-38, %v3227_v30  ;;  %v3244_v16 = vadd.f32 1.1283791, %v3243_v3  ;;  %v3371_v51 = vadd.f32 0.112945676, %v3370_v21  ;;  %v10228_v50 = vmul.f32 %v5082_v23, %v9945_v45 }
 0x3ee   :  { %v3282_v0 = vadd.f32 0.18741608, %v3281_v32  ;;  %v3319_v14 = vmul.f32 %v3318_v7, %v10074_v19  ;;  %v3356_v60 = vadd.f32 0.00028619796, %v3355_v22  ;;  %v3297_v24 = vmul.f32 %v10213_v57, %v10172_v54  ;;  %v13191_v7 = vld [vmem:[#allocation100_spill] sm:$0xff]  ;;  %v13192_v22 = vld [vmem:[#allocation129_spill] sm:$0xff] }
 0x3ef   :  { %13188 = vst [vmem:[#allocation79_spill] sm:$0xff] %v10228_v50  ;;  %v10241_v3 = vadd.f32 1.0, %v3334_v8  ;;  %v3409_v30 = vadd.f32 0.014752088, %v3408_v42  ;;  %v3433_v45 = vmul.f32 %v10218_v63, %v10218_v63  ;;  %v3224_v38 = vsel %vm10235_vm11, %v10144_v25, %v3220_v44 }
 0x3f0   :  { %v3260_v27 = vadd.f32 %v10166_v15, %v3259_v37  ;;  %vm3262_vm12 = vweird.f32 %v10166_v15  ;;  %v10251_v61 = vmul.f32 0.70710677, %v10221_v2  ;;  %v3265_v35 = vand.u32 2147483647, %v10111_v20 }
 0x3f1   :  { %v3267_v23 = vand.u32 2147483648, %v10111_v20  ;;  %v3372_v32 = vmul.f32 %v3371_v51, %v10150_v4  ;;  %v5249_v8 = vmul.f32 %v13192_v22, %v13191_v7  ;;  %vm3261_vm13 = vweird.f32 %v10111_v20 }
 0x3f2   :  { %v3320_v21 = vadd.f32 0.05243302, %v3319_v14  ;;  %v3357_v25 = vmul.f32 %v3356_v60, %v10150_v4  ;;  %v10260_v42 = vmin.f32 %v3433_v45, 16.0  ;;  %v3229_v44 = vsel %vm10223_vm10, %v3228_v40, %v3224_v38  ;;  %vm10264_vm14 = vmor %vm3261_vm13, %vm3262_vm12 }
 0x3f3   :  { %v3298_v12 = vsub.f32 1.0, %v3297_v24  ;;  %6109 = vrcp.f32 %v10241_v3  ;;  %v3410_v51 = vmul.f32 %v3409_v30, %v10175_v18  ;;  %5419 = vmatmul.f32.gmra.mxu0 %v5249_v8  ;;  %v3264_v20 = vsel %vm10264_vm14, %v10166_v15, %v3260_v27 }
 0x3f4   :  { %v3283_v14 = vmul.f32 %v3282_v0, %v10012_v59  ;;  %v3395_v60 = vmul.f32 2.1237322e-06, %v10175_v18  ;;  %v3473_v55 = vmul.f32 %v10251_v61, %v10251_v61  ;;  %v3245_v40 = vmul.f32 %v3244_v16, %v9938_v58 }
 0x3f5   :  { %vm3266_vm15 = vcmp.eq.f32.partialorder %v3265_v35, 8.507059e+37  ;;  %v3268_v24 = vor.u32 1.1754944e-38, %v3267_v23  ;;  %v3373_v45 = vadd.f32 0.4994258, %v3372_v32  ;;  %v3230_v38 = vmul.f32 %v3229_v44, %v10197_v5 }
 0x3f6   :  { %v3321_v30 = vmul.f32 %v3320_v21, %v10074_v19  ;;  %v3358_v7 = vadd.f32 0.0036580483, %v3357_v25  ;;  %v3446_v22 = vmul.f32 3.8918573e-05, %v10260_v42  ;;  %v3299_v59 = vmul.f32 %v10213_v57, %v3298_v12 }
 0x3f7   :  { %v3269_v15 = vsel %vm3266_vm15, %v3268_v24, %v3264_v20  ;;  %v10283_v0 = vmul.f32 0.5, %v10102_v34  ;;  %v3411_v27 = vadd.f32 0.112945676, %v3410_v51  ;;  %v3284_v8 = vadd.f32 1.1283791, %v3283_v14 }
 0x3f8   :  { %v10286_v58 = vmul.f32 0.5, %v10116_v43  ;;  %v3396_v16 = vadd.f32 0.00028619796, %v3395_v60  ;;  %v10288_v35 = vmin.f32 %v3473_v55, 16.0  ;;  %v3305_v23 = vand.u32 2147483647, %v10172_v54 }
 0x3f9   :  { %v10290_v5 = vpop.eup %6109  ;;  %v3307_v32 = vand.u32 2147483648, %v10172_v54  ;;  %v3374_v21 = vmul.f32 %v3373_v45, %v10150_v4  ;;  %v3447_v25 = vadd.f32 0.001143296, %v3446_v22  ;;  %v5945_v44 = vclamps-f32 %v3230_v38, 1.0  ;;  %v13202_v22 = vld [vmem:[#allocation103_spill] sm:$0xff] }
 0x3fa   :  { %v3270_v34 = vmul.f32 %v3269_v15, %v3245_v40  ;;  %v3322_v37 = vadd.f32 0.18741608, %v3321_v30  ;;  %v3359_v12 = vmul.f32 %v3358_v7, %v10150_v4  ;;  %v3300_v43 = vadd.f32 %v10213_v57, %v3299_v59 }
 0x3fb   :  { %vm3302_vm0 = vweird.f32 %v10213_v57  ;;  %v3412_v51 = vmul.f32 %v3411_v27, %v10175_v18  ;;  %v3448_v20 = vmul.f32 %v3447_v25, %v10260_v42  ;;  %vm3301_vm1 = vweird.f32 %v10172_v54 }
 0x3fc   :  { %v3337_v14 = vmul.f32 %v10290_v5, %v10241_v3  ;;  %v3397_v60 = vmul.f32 %v3396_v16, %v10175_v18  ;;  %v3486_v55 = vmul.f32 3.8918573e-05, %v10288_v35  ;;  %vm10305_vm2 = vcmp.eq.f32.partialorder %v3305_v23, 8.507059e+37  ;;  %vm10311_vm3 = vmor %vm3301_vm1, %vm3302_vm0 }
 0x3fd   :  { %v3308_v24 = vor.u32 1.1754944e-38, %v3307_v32  ;;  %v10309_v45 = vadd.f32 1.0, %v3374_v21  ;;  %v3449_v38 = vadd.f32 0.014752088, %v3448_v20  ;;  %v5083_v30 = vadd.f32 1.0, %v5945_v44  ;;  %v882_v32 = vpop.f32.mrf.mxu2  ;;  %v13200_v20 = vld [vmem:[#allocation130_spill] sm:$0xff] }
 0x3fe   :  { %v5946_v7 = vclamps-f32 %v3270_v34, 1.0  ;;  %v3323_v54 = vmul.f32 %v3322_v37, %v10074_v19  ;;  %v3360_v15 = vadd.f32 0.05243302, %v3359_v12  ;;  %v3304_v59 = vsel %vm10311_vm3, %v10213_v57, %v3300_v43  ;;  %v13199_v34 = vld [vmem:[#allocation101_spill] sm:$0xff]  ;;  %v13201_v37 = vld [vmem:[#allocation102_spill] sm:$0xff] }
 0x3ff   :  { %v3413_v27 = vadd.f32 0.4994258, %v3412_v51  ;;  %v3435_v16 = vmul.f32 2.1237322e-06, %v10260_v42  ;;  %v3450_v23 = vmul.f32 %v3449_v38, %v10260_v42  ;;  %v3338_v21 = vsub.f32 1.0, %v3337_v14 }
 0x400   :  { %v3398_v25 = vadd.f32 0.0036580483, %v3397_v60  ;;  %v3487_v44 = vadd.f32 0.001143296, %v3486_v55  ;;  %v5250_v50 = vmul.f32 %v13200_v20, %v13199_v34  ;;  %6111 = vrcp.f32 %v10309_v45  ;;  %v971_v20 = vpop.f32.mrf.mxu3 }
 0x401   :  { %v3451_v19 = vadd.f32 0.112945676, %v3450_v23  ;;  %v5251_v12 = vmul.f32 %v8995_v48, %v13201_v37  ;;  %v5252_v57 = vmul.f32 %v9006_v11, %v13202_v22  ;;  %v5084_v43 = vadd.f32 1.0, %v5946_v7 }
 0x402   :  { %v3361_v51 = vmul.f32 %v3360_v15, %v10150_v4  ;;  %v3488_v38 = vmul.f32 %v3487_v44, %v10288_v35  ;;  %5508 = vmatmul.f32.gmra.mxu1 %v5250_v50  ;;  %v10331_v14 = vadd.f32 %v882_v32, %v6892_v6  ;;  %v3309_v60 = vsel %vm10305_vm2, %v3308_v24, %v3304_v59 }
 0x403   :  { %v3414_v55 = vmul.f32 %v3413_v27, %v10175_v18  ;;  %v3436_v23 = vadd.f32 0.00028619796, %v3435_v16  ;;  %v3452_v48 = vmul.f32 %v3451_v19, %v10260_v42  ;;  %5597 = vmatmul.f32.gmra.mxu2 %v5251_v12  ;;  %5686 = vmatmul.f32.gmra.mxu3 %v5252_v57  ;;  %v10338_v11 = vmul.f32 %v5083_v30, %v10159_v41 }
 0x404   :  { %v3285_v7 = vmul.f32 %v3284_v8, %v9983_v49  ;;  %v3339_v50 = vmul.f32 %v10290_v5, %v3338_v21  ;;  %v3489_v15 = vadd.f32 0.014752088, %v3488_v38  ;;  %v3324_v32 = vadd.f32 1.1283791, %v3323_v54 }
 0x405   :  { %v3399_v44 = vmul.f32 %v3398_v25, %v10175_v18  ;;  %v3453_v40 = vadd.f32 0.4994258, %v3452_v48  ;;  %v10344_v24 = vmul.f32 0.70710677, %v10331_v14  ;;  %v10347_v59 = vmul.f32 %v5084_v43, %v10164_v39 }
 0x406   :  { %v3310_v27 = vmul.f32 %v3309_v60, %v3285_v7  ;;  %v3362_v16 = vadd.f32 0.18741608, %v3361_v51  ;;  %v3490_v41 = vmul.f32 %v3489_v15, %v10288_v35  ;;  %v10350_v30 = vpop.eup %6111  ;;  %v3345_v49 = vand.u32 2147483647, %v10241_v3 }
 0x407   :  { %v10353_v8 = vadd.f32 1.0, %v3414_v55  ;;  %v3437_v54 = vmul.f32 %v3436_v23, %v10260_v42  ;;  %v3475_v21 = vmul.f32 2.1237322e-06, %v10288_v35  ;;  %v3340_v25 = vadd.f32 %v10290_v5, %v3339_v50 }
 0x408   :  { %vm3342_vm4 = vweird.f32 %v10290_v5  ;;  %v3491_v39 = vadd.f32 0.112945676, %v3490_v41  ;;  %v3513_v34 = vmul.f32 %v10344_v24, %v10344_v24  ;;  %vm3341_vm5 = vweird.f32 %v10241_v3 }
 0x409   :  { %v3347_v19 = vand.u32 2147483648, %v10241_v3  ;;  %v3400_v37 = vadd.f32 0.05243302, %v3399_v44  ;;  %v3454_v12 = vmul.f32 %v3453_v40, %v10260_v42  ;;  %v5947_v22 = vclamps-f32 %v3310_v27, 1.0  ;;  %vm10369_vm6 = vmor %vm3341_vm5, %vm3342_vm4 }
 0x40a   :  { %v3363_v57 = vmul.f32 %v3362_v16, %v10150_v4  ;;  %v3377_v43 = vmul.f32 %v10350_v30, %v10309_v45  ;;  %v10367_v51 = vmin.f32 %v3513_v34, 16.0  ;;  %6113 = vrcp.f32 %v10353_v8 }
 0x40b   :  { %v3438_v60 = vadd.f32 0.0036580483, %v3437_v54  ;;  %v3476_v55 = vadd.f32 0.00028619796, %v3475_v21  ;;  %v10375_v3 = vadd.f32 %v971_v20, %v6894_v26  ;;  %v3325_v23 = vmul.f32 %v3324_v32, %v10036_v9  ;;  %v707_v32 = vpop.f32.mrf.mxu0 }
 0x40c   :  { %v3344_v4 = vsel %vm10369_vm6, %v10290_v5, %v3340_v25  ;;  %vm3346_vm7 = vcmp.eq.f32.partialorder %v3345_v49, 8.507059e+37  ;;  %v3492_v48 = vmul.f32 %v3491_v39, %v10288_v35  ;;  %v3348_v7 = vor.u32 1.1754944e-38, %v3347_v19  ;;  %v13205_v39 = vld [vmem:[#allocation104_spill] sm:$0xff] }
 0x40d   :  { %v3401_v50 = vmul.f32 %v3400_v37, %v10175_v18  ;;  %v10384_v15 = vmul.f32 0.5, %v10203_v53  ;;  %v10386_v44 = vadd.f32 1.0, %v3454_v12  ;;  %v5085_v40 = vadd.f32 1.0, %v5947_v22 }
 0x40e   :  { %v3364_v27 = vadd.f32 1.1283791, %v3363_v57  ;;  %v3378_v16 = vsub.f32 1.0, %v3377_v43  ;;  %v3526_v9 = vmul.f32 3.8918573e-05, %v10367_v51  ;;  %v3349_v41 = vsel %vm3346_vm7, %v3348_v7, %v3344_v4 }
 0x40f   :  { %v3439_v5 = vmul.f32 %v3438_v60, %v10260_v42  ;;  %v3477_v49 = vmul.f32 %v3476_v55, %v10288_v35  ;;  %v10392_v54 = vmul.f32 0.70710677, %v10375_v3  ;;  %v10395_v21 = vmul.f32 0.5, %v10221_v2 }
 0x410   :  { %v3493_v53 = vadd.f32 0.4994258, %v3492_v48  ;;  %v3527_v25 = vadd.f32 0.001143296, %v3526_v9  ;;  %v5253_v34 = vmul.f32 %v9093_v29, %v13205_v39  ;;  %v10399_v20 = vpop.eup %6113  ;;  %v3402_v19 = vadd.f32 0.18741608, %v3401_v50 }
 0x411   :  { %6115 = vrcp.f32 %v10386_v44  ;;  %v3553_v37 = vmul.f32 %v10392_v54, %v10392_v54  ;;  %v10405_v12 = vadd.f32 %v707_v32, %v6844_v56  ;;  %v10408_v22 = vmul.f32 %v5085_v40, %v10181_v10 }
 0x412   :  { %v3350_v2 = vmul.f32 %v3349_v41, %v3325_v23  ;;  %v3379_v57 = vmul.f32 %v10350_v30, %v3378_v16  ;;  %v3528_v43 = vmul.f32 %v3527_v25, %v10367_v51  ;;  %5422 = vmatmul.f32.gmra.mxu0 %v5253_v34  ;;  %v3365_v29 = vmul.f32 %v3364_v27, %v10121_v13  ;;  %v796_v23 = vpop.f32.mrf.mxu1  ;;  %v13207_v34 = vld [vmem:[#allocation105_spill] sm:$0xff] }
 0x413   :  { %13206 = vst [vmem:[#allocation89_spill] sm:$0xff] %v10408_v22  ;;  %vm3381_vm8 = vweird.f32 %v10309_v45  ;;  %v3440_v38 = vadd.f32 0.05243302, %v3439_v5  ;;  %v3478_v60 = vadd.f32 0.0036580483, %v3477_v49  ;;  %v3417_v4 = vmul.f32 %v10399_v20, %v10353_v8 }
 0x414   :  { %v3385_v55 = vand.u32 2147483647, %v10309_v45  ;;  %v3494_v10 = vmul.f32 %v3493_v53, %v10288_v35  ;;  %v3529_v48 = vadd.f32 0.014752088, %v3528_v43  ;;  %v3387_v7 = vand.u32 2147483648, %v10309_v45 }
 0x415   :  { %v3403_v50 = vmul.f32 %v3402_v19, %v10175_v18  ;;  %v10420_v40 = vmin.f32 %v3553_v37, 16.0  ;;  %v10423_v13 = vmul.f32 0.70710677, %v10405_v12  ;;  %v5948_v27 = vclamps-f32 %v3350_v2, 1.0 }
 0x416   :  { %v3380_v16 = vadd.f32 %v10350_v30, %v3379_v57  ;;  %vm3382_vm9 = vweird.f32 %v10350_v30  ;;  %v3530_v9 = vmul.f32 %v3529_v48, %v10367_v51  ;;  %v3441_v41 = vmul.f32 %v3440_v38, %v10260_v42 }
 0x417   :  { %v10428_v32 = vpop.eup %6115  ;;  %v3479_v5 = vmul.f32 %v3478_v60, %v10288_v35  ;;  %v3566_v18 = vmul.f32 3.8918573e-05, %v10420_v40  ;;  %v10434_v49 = vadd.f32 %v796_v23, %v6846_v62  ;;  %v3418_v53 = vsub.f32 1.0, %v3417_v4  ;;  %vm10442_vm10 = vmor %vm3381_vm8, %vm3382_vm9 }
 0x418   :  { %v10436_v25 = vadd.f32 1.0, %v3494_v10  ;;  %v3531_v39 = vadd.f32 0.112945676, %v3530_v9  ;;  %v5254_v19 = vmul.f32 %v9131_v47, %v13207_v34  ;;  %vm10446_vm11 = vcmp.eq.f32.partialorder %v3385_v55, 8.507059e+37 }
 0x419   :  { %v3515_v57 = vmul.f32 2.1237322e-06, %v10367_v51  ;;  %v3567_v43 = vadd.f32 0.001143296, %v3566_v18  ;;  %v3593_v38 = vmul.f32 %v10423_v13, %v10423_v13  ;;  %v3384_v47 = vsel %vm10442_vm10, %v10350_v30, %v3380_v16  ;;  %v13212_v16 = vld [vmem:[#allocation106_spill] sm:$0xff] }
 0x41a   :  { %v3388_v60 = vor.u32 1.1754944e-38, %v3387_v7  ;;  %v3404_v45 = vadd.f32 1.1283791, %v3403_v50  ;;  %v3457_v4 = vmul.f32 %v10428_v32, %v10386_v44  ;;  %5511 = vmatmul.f32.gmra.mxu1 %v5254_v19  ;;  %v3442_v55 = vadd.f32 0.18741608, %v3441_v41 }
 0x41b   :  { %v3532_v10 = vmul.f32 %v3531_v39, %v10367_v51  ;;  %v3568_v48 = vmul.f32 %v3567_v43, %v10420_v40  ;;  %v10461_v23 = vmul.f32 0.70710677, %v10434_v49  ;;  %v5086_v9 = vadd.f32 1.0, %v5948_v27 }
 0x41c   :  { %v3419_v18 = vmul.f32 %v10399_v20, %v3418_v53  ;;  %v3480_v34 = vadd.f32 0.05243302, %v3479_v5  ;;  %6117 = vrcp.f32 %v10436_v25  ;;  %v3389_v30 = vsel %vm10446_vm11, %v3388_v60, %v3384_v47 }
 0x41d   :  { %v3516_v7 = vadd.f32 0.00028619796, %v3515_v57  ;;  %v10467_v50 = vmin.f32 %v3593_v38, 16.0  ;;  %v5255_v41 = vmul.f32 %v9141_v36, %v13212_v16  ;;  %v3405_v39 = vmul.f32 %v3404_v45, %v10142_v46 }
 0x41e   :  { %v3425_v19 = vand.u32 2147483647, %v10353_v8  ;;  %v3427_v27 = vand.u32 2147483648, %v10353_v8  ;;  %v3458_v37 = vsub.f32 1.0, %v3457_v4  ;;  %v3443_v5 = vmul.f32 %v3442_v55, %v10260_v42 }
 0x41f   :  { %v3533_v53 = vadd.f32 0.4994258, %v3532_v10  ;;  %v3569_v43 = vadd.f32 0.014752088, %v3568_v48  ;;  %v3633_v2 = vmul.f32 %v10461_v23, %v10461_v23  ;;  %5600 = vmatmul.f32.gmra.mxu2 %v5255_v41  ;;  %v3390_v57 = vmul.f32 %v3389_v30, %v3365_v29 }
 0x420   :  { %v3420_v38 = vadd.f32 %v10399_v20, %v3419_v18  ;;  %vm3422_vm12 = vweird.f32 %v10399_v20  ;;  %v3481_v36 = vmul.f32 %v3480_v34, %v10288_v35  ;;  %v10481_v46 = vmul.f32 %v5086_v9, %v10187_v17 }
 0x421   :  { %vm3421_vm13 = vweird.f32 %v10353_v8  ;;  %v3517_v42 = vmul.f32 %v3516_v7, %v10367_v51  ;;  %v3606_v47 = vmul.f32 3.8918573e-05, %v10467_v50  ;;  %vm10488_vm14 = vcmp.eq.f32.partialorder %v3425_v19, 8.507059e+37 }
 0x422   :  { %13213 = vst [vmem:[#allocation120_spill] sm:$0xff] %v10481_v46  ;;  %v10486_v60 = vpop.eup %6117  ;;  %v3428_v29 = vor.u32 1.1754944e-38, %v3427_v27  ;;  %v3459_v4 = vmul.f32 %v10428_v32, %v3458_v37  ;;  %v10494_v55 = vmul.f32 0.5, %v10331_v14  ;;  %vm10496_vm15 = vmor %vm3421_vm13, %vm3422_vm12  ;;  %v3444_v8 = vadd.f32 1.1283791, %v3443_v5 }
 0x423   :  { %v3534_v10 = vmul.f32 %v3533_v53, %v10367_v51  ;;  %v3570_v48 = vmul.f32 %v3569_v43, %v10420_v40  ;;  %v10502_v9 = vmin.f32 %v3633_v2, 16.0  ;;  %v5949_v18 = vclamps-f32 %v3390_v57, 1.0 }
 0x424   :  { %v3424_v34 = vsel %vm10496_vm15, %v10399_v20, %v3420_v38  ;;  %v3482_v30 = vadd.f32 0.18741608, %v3481_v36  ;;  %v3555_v14 = vmul.f32 2.1237322e-06, %v10420_v40  ;;  %vm3461_vm0 = vweird.f32 %v10386_v44  ;;  %v13218_v36 = vld [vmem:[#allocation107_spill] sm:$0xff] }
 0x425   :  { %v3497_v7 = vmul.f32 %v10486_v60, %v10436_v25  ;;  %v3518_v16 = vadd.f32 0.0036580483, %v3517_v42  ;;  %v3607_v41 = vadd.f32 0.001143296, %v3606_v47  ;;  %v3460_v19 = vadd.f32 %v10428_v32, %v3459_v4  ;;  %v13219_v42 = vld [vmem:[#allocation80_spill] sm:$0xff] }
 0x426   :  { %vm3462_vm1 = vweird.f32 %v10428_v32  ;;  %v3465_v27 = vand.u32 2147483647, %v10386_v44  ;;  %v3595_v37 = vmul.f32 2.1237322e-06, %v10467_v50  ;;  %v10515_v5 = vadd.f32 1.0, %v3534_v10 }
 0x427   :  { %v3571_v20 = vadd.f32 0.112945676, %v3570_v48  ;;  %v3608_v53 = vmul.f32 %v3607_v41, %v10467_v50  ;;  %v3646_v43 = vmul.f32 3.8918573e-05, %v10502_v9  ;;  %v3429_v2 = vsel %vm10488_vm14, %v3428_v29, %v3424_v34  ;;  %vm10530_vm2 = vmor %vm3461_vm0, %vm3462_vm1 }
 0x428   :  { %v3467_v57 = vand.u32 2147483648, %v10386_v44  ;;  %v3556_v38 = vadd.f32 0.00028619796, %v3555_v14  ;;  %v5256_v47 = vmul.f32 %v13219_v42, %v13218_v36  ;;  %v3498_v4 = vsub.f32 1.0, %v3497_v7  ;;  %v885_v14 = vpop.f32.mrf.mxu2 }
 0x429   :  { %v3519_v17 = vmul.f32 %v3518_v16, %v10367_v51  ;;  %v3609_v46 = vadd.f32 0.014752088, %v3608_v53  ;;  %v3647_v10 = vadd.f32 0.001143296, %v3646_v43  ;;  %v5087_v22 = vadd.f32 1.0, %v5949_v18 }
 0x42a   :  { %v3445_v48 = vmul.f32 %v3444_v8, %v10218_v63  ;;  %v3483_v29 = vmul.f32 %v3482_v30, %v10288_v35  ;;  %v3596_v34 = vadd.f32 0.00028619796, %v3595_v37  ;;  %5689 = vmatmul.f32.gmra.mxu3 %v5256_v47  ;;  %v3464_v7 = vsel %vm10530_vm2, %v10428_v32, %v3460_v19 }
 0x42b   :  { %6119 = vrcp.f32 %v10515_v5  ;;  %v3572_v63 = vmul.f32 %v3571_v20, %v10420_v40  ;;  %v3610_v8 = vmul.f32 %v3609_v46, %v10467_v50  ;;  %v3430_v44 = vmul.f32 %v3429_v2, %v3405_v39 }
 0x42c   :  { %v3468_v18 = vor.u32 1.1754944e-38, %v3467_v57  ;;  %v3557_v16 = vmul.f32 %v3556_v38, %v10420_v40  ;;  %v3648_v41 = vmul.f32 %v3647_v10, %v10502_v9  ;;  %vm3466_vm3 = vcmp.eq.f32.partialorder %v3465_v27, 8.507059e+37 }
 0x42d   :  { %v3499_v35 = vmul.f32 %v10486_v60, %v3498_v4  ;;  %v3520_v30 = vadd.f32 0.05243302, %v3519_v17  ;;  %v10545_v37 = vadd.f32 %v885_v14, %v6892_v6  ;;  %v10548_v19 = vmul.f32 0.5, %v10375_v3 }
 0x42e   :  { %v3469_v32 = vsel %vm3466_vm3, %v3468_v18, %v3464_v7  ;;  %v3597_v20 = vmul.f32 %v3596_v34, %v10467_v50  ;;  %v3611_v46 = vadd.f32 0.112945676, %v3610_v8  ;;  %v10552_v39 = vmul.f32 %v5087_v22, %v10283_v0  ;;  %v974_v0 = vpop.f32.mrf.mxu3  ;;  %v710_v7 = vpop.f32.mrf.mxu0 }
 0x42f   :  { %v3484_v53 = vadd.f32 1.1283791, %v3483_v29  ;;  %v3573_v43 = vadd.f32 0.4994258, %v3572_v63  ;;  %v3649_v2 = vadd.f32 0.014752088, %v3648_v41  ;;  %vm3501_vm4 = vweird.f32 %v10436_v25 }
 0x430   :  { %v5950_v27 = vclamps-f32 %v3430_v44, 1.0  ;;  %vm3502_vm5 = vweird.f32 %v10486_v60  ;;  %v3558_v57 = vadd.f32 0.0036580483, %v3557_v16  ;;  %v3470_v36 = vmul.f32 %v3469_v32, %v3445_v48 }
 0x431   :  { %v10556_v38 = vpop.eup %6119  ;;  %v3500_v3 = vadd.f32 %v10486_v60, %v3499_v35  ;;  %v3521_v42 = vmul.f32 %v3520_v30, %v10367_v51  ;;  %v10561_v47 = vmul.f32 0.70710677, %v10545_v37  ;;  %v3507_v22 = vand.u32 2147483648, %v10436_v25  ;;  %vm10575_vm6 = vmor %vm3501_vm4, %vm3502_vm5 }
 0x432   :  { %v3598_v4 = vadd.f32 0.0036580483, %v3597_v20  ;;  %v3612_v17 = vmul.f32 %v3611_v46, %v10467_v50  ;;  %v3635_v10 = vmul.f32 2.1237322e-06, %v10502_v9  ;;  %v3505_v45 = vand.u32 2147483647, %v10436_v25 }
 0x433   :  { %v3574_v29 = vmul.f32 %v3573_v43, %v10420_v40  ;;  %v3650_v48 = vmul.f32 %v3649_v2, %v10502_v9  ;;  %v3673_v34 = vmul.f32 %v10561_v47, %v10561_v47  ;;  %v5088_v14 = vadd.f32 1.0, %v5950_v27 }
 0x434   :  { %v3537_v63 = vmul.f32 %v10556_v38, %v10515_v5  ;;  %v3559_v8 = vmul.f32 %v3558_v57, %v10420_v40  ;;  %v10583_v44 = vadd.f32 %v974_v0, %v6894_v26  ;;  %v5951_v18 = vclamps-f32 %v3470_v36, 1.0 }
 0x435   :  { %v3504_v16 = vsel %vm10575_vm6, %v10486_v60, %v3500_v3  ;;  %v3522_v41 = vadd.f32 0.18741608, %v3521_v42  ;;  %v10588_v35 = vmin.f32 %v3673_v34, 16.0  ;;  %v3508_v25 = vor.u32 1.1754944e-38, %v3507_v22 }
 0x436   :  { %v3599_v30 = vmul.f32 %v3598_v4, %v10467_v50  ;;  %v3613_v32 = vadd.f32 0.4994258, %v3612_v17  ;;  %v3636_v20 = vadd.f32 0.00028619796, %v3635_v10  ;;  %vm3506_vm7 = vcmp.eq.f32.partialorder %v3505_v45, 8.507059e+37 }
 0x437   :  { %v10591_v46 = vadd.f32 1.0, %v3574_v29  ;;  %v3651_v43 = vadd.f32 0.112945676, %v3650_v48  ;;  %v3686_v2 = vmul.f32 3.8918573e-05, %v10588_v35  ;;  %v3509_v27 = vsel %vm3506_vm7, %v3508_v25, %v3504_v16 }
 0x438   :  { %v3538_v57 = vsub.f32 1.0, %v3537_v63  ;;  %v3560_v36 = vadd.f32 0.05243302, %v3559_v8  ;;  %v10595_v0 = vmul.f32 0.70710677, %v10583_v44  ;;  %v5089_v60 = vadd.f32 1.0, %v5951_v18 }
 0x439   :  { %v3485_v3 = vmul.f32 %v3484_v53, %v10251_v61  ;;  %v3523_v42 = vmul.f32 %v3522_v41, %v10367_v51  ;;  %v10600_v22 = vmul.f32 0.5, %v10405_v12  ;;  %v3600_v4 = vadd.f32 0.05243302, %v3599_v30 }
 0x43a   :  { %v3614_v17 = vmul.f32 %v3613_v32, %v10467_v50  ;;  %v3637_v10 = vmul.f32 %v3636_v20, %v10502_v9  ;;  %v3687_v45 = vadd.f32 0.001143296, %v3686_v2  ;;  %v10605_v29 = vmul.f32 %v5088_v14, %v10286_v58 }
 0x43b   :  { %v3510_v48 = vmul.f32 %v3509_v27, %v3485_v3  ;;  %6121 = vrcp.f32 %v10591_v46  ;;  %v3652_v34 = vmul.f32 %v3651_v43, %v10502_v9  ;;  %v3539_v61 = vmul.f32 %v10556_v38, %v3538_v57 }
 0x43c   :  { %13224 = vst [vmem:[#allocation90_spill] sm:$0xff] %v10605_v29  ;;  %v3561_v51 = vmul.f32 %v3560_v36, %v10420_v40  ;;  %v3688_v12 = vmul.f32 %v3687_v45, %v10588_v35  ;;  %v3713_v53 = vmul.f32 %v10595_v0, %v10595_v0  ;;  %v10615_v63 = vmul.f32 %v5089_v60, %v10384_v15 }
 0x43d   :  { %v3524_v58 = vadd.f32 1.1283791, %v3523_v42  ;;  %vm3541_vm8 = vweird.f32 %v10515_v5  ;;  %v10619_v14 = vmul.f32 0.5, %v10434_v49  ;;  %v3601_v8 = vmul.f32 %v3600_v4, %v10467_v50  ;;  %v13226_v4 = vld [vmem:[#allocation108_spill] sm:$0xff] }
 0x43e   :  { %13225 = vst [vmem:[#allocation121_spill] sm:$0xff] %v10615_v63  ;;  %v10622_v18 = vadd.f32 1.0, %v3614_v17  ;;  %v3638_v16 = vadd.f32 0.0036580483, %v3637_v10  ;;  %v3689_v41 = vadd.f32 0.014752088, %v3688_v12  ;;  %v10628_v15 = vadd.f32 %v710_v7, %v6844_v56 }
 0x43f   :  { %v3653_v25 = vadd.f32 0.4994258, %v3652_v34  ;;  %v3675_v30 = vmul.f32 2.1237322e-06, %v10588_v35  ;;  %v10625_v32 = vmin.f32 %v3713_v53, 16.0  ;;  %v5952_v20 = vclamps-f32 %v3510_v48, 1.0 }
 0x440   :  { %v3540_v43 = vadd.f32 %v10556_v38, %v3539_v61  ;;  %vm3542_vm9 = vweird.f32 %v10556_v38  ;;  %v3562_v49 = vadd.f32 0.18741608, %v3561_v51  ;;  %v3545_v27 = vand.u32 2147483647, %v10515_v5  ;;  %v13227_v17 = vld [vmem:[#allocation22_spill] sm:$0xff] }
 0x441   :  { %v10632_v2 = vpop.eup %6121  ;;  %v3547_v57 = vand.u32 2147483648, %v10515_v5  ;;  %v3690_v36 = vmul.f32 %v3689_v41, %v10588_v35  ;;  %v3726_v60 = vmul.f32 3.8918573e-05, %v10625_v32  ;;  %v3602_v3 = vadd.f32 0.18741608, %v3601_v8  ;;  %vm10644_vm10 = vmor %vm3541_vm8, %vm3542_vm9 }
 0x442   :  { %6123 = vrcp.f32 %v10622_v18  ;;  %v3639_v42 = vmul.f32 %v3638_v16, %v10502_v9  ;;  %v5257_v10 = vmul.f32 %v13227_v17, %v13226_v4  ;;  %v3654_v48 = vmul.f32 %v3653_v25, %v10502_v9 }
 0x443   :  { %v3676_v34 = vadd.f32 0.00028619796, %v3675_v30  ;;  %v3727_v61 = vadd.f32 0.001143296, %v3726_v60  ;;  %v10650_v51 = vmul.f32 0.70710677, %v10628_v15  ;;  %v3544_v53 = vsel %vm10644_vm10, %v10556_v38, %v3540_v43 }
 0x444   :  { %v5090_v12 = vadd.f32 1.0, %v5952_v20  ;;  %v3563_v7 = vmul.f32 %v3562_v49, %v10420_v40  ;;  %v3577_v5 = vmul.f32 %v10632_v2, %v10591_v46  ;;  %5425 = vmatmul.f32.gmra.mxu0 %v5257_v10  ;;  %v3525_v8 = vmul.f32 %v3524_v58, %v10344_v24 }
 0x445   :  { %v3548_v16 = vor.u32 1.1754944e-38, %v3547_v57  ;;  %v3691_v41 = vadd.f32 0.112945676, %v3690_v36  ;;  %v3728_v25 = vmul.f32 %v3727_v61, %v10625_v32  ;;  %vm3546_vm11 = vcmp.eq.f32.partialorder %v3545_v27, 8.507059e+37 }
 0x446   :  { %v3603_v30 = vmul.f32 %v3602_v3, %v10467_v50  ;;  %v3640_v20 = vadd.f32 0.05243302, %v3639_v42  ;;  %v3753_v60 = vmul.f32 %v10650_v51, %v10650_v51  ;;  %v10663_v43 = vadd.f32 1.0, %v3654_v48 }
 0x447   :  { %v3549_v38 = vsel %vm3546_vm11, %v3548_v16, %v3544_v53  ;;  %v3677_v40 = vmul.f32 %v3676_v34, %v10588_v35  ;;  %v3729_v49 = vadd.f32 0.014752088, %v3728_v25  ;;  %v10669_v24 = vmul.f32 %v5090_v12, %v10395_v21  ;;  %v799_v12 = vpop.f32.mrf.mxu1 }
 0x448   :  { %v10666_v4 = vpop.eup %6123  ;;  %v3564_v58 = vadd.f32 1.1283791, %v3563_v7  ;;  %v3578_v57 = vsub.f32 1.0, %v3577_v5  ;;  %v10671_v27 = vmin.f32 %v3753_v60, 16.0  ;;  %v3585_v50 = vand.u32 2147483647, %v10591_v46 }
 0x449   :  { %13230 = vst [vmem:[#allocation91_spill] sm:$0xff] %v10669_v24  ;;  %v3587_v36 = vand.u32 2147483648, %v10591_v46  ;;  %v3692_v3 = vmul.f32 %v3691_v41, %v10588_v35  ;;  %v3730_v42 = vmul.f32 %v3729_v49, %v10625_v32  ;;  %v3550_v17 = vmul.f32 %v3549_v38, %v3525_v8 }
 0x44a   :  { %v3604_v10 = vadd.f32 1.1283791, %v3603_v30  ;;  %v3641_v45 = vmul.f32 %v3640_v20, %v10502_v9  ;;  %v3766_v48 = vmul.f32 3.8918573e-05, %v10671_v27  ;;  %v3617_v21 = vmul.f32 %v10666_v4, %v10622_v18 }
 0x44b   :  { %6125 = vrcp.f32 %v10663_v43  ;;  %v3678_v34 = vadd.f32 0.0036580483, %v3677_v40  ;;  %v3731_v61 = vadd.f32 0.112945676, %v3730_v42  ;;  %v10683_v53 = vmul.f32 %v3564_v58, %v10392_v54 }
 0x44c   :  { %v3579_v7 = vmul.f32 %v10632_v2, %v3578_v57  ;;  %v3715_v5 = vmul.f32 2.1237322e-06, %v10625_v32  ;;  %v3767_v8 = vadd.f32 0.001143296, %v3766_v48  ;;  %vm3581_vm12 = vweird.f32 %v10591_v46 }
 0x44d   :  { %v3588_v16 = vor.u32 1.1754944e-38, %v3587_v36  ;;  %v10689_v41 = vmul.f32 0.5, %v10545_v37  ;;  %v3693_v25 = vadd.f32 0.4994258, %v3692_v3  ;;  %v5953_v30 = vclamps-f32 %v3550_v17, 1.0 }
 0x44e   :  { %vm10691_vm13 = vcmp.eq.f32.partialorder %v3585_v50, 8.507059e+37  ;;  %v10696_v54 = vmul.f32 %v3604_v10, %v10423_v13  ;;  %v3642_v60 = vadd.f32 0.18741608, %v3641_v45  ;;  %v10699_v38 = vadd.f32 %v799_v12, %v6846_v62  ;;  %v13233_v10 = vld [vmem:[#allocation109_spill] sm:$0xff] }
 0x44f   :  { %v3618_v40 = vsub.f32 1.0, %v3617_v21  ;;  %v3679_v49 = vmul.f32 %v3678_v34, %v10588_v35  ;;  %v3732_v58 = vmul.f32 %v3731_v61, %v10625_v32  ;;  %v3768_v37 = vmul.f32 %v3767_v8, %v10671_v27  ;;  %v13234_v45 = vld [vmem:[#allocation81_spill] sm:$0xff] }
 0x450   :  { %v3580_v57 = vadd.f32 %v10632_v2, %v3579_v7  ;;  %vm3582_vm14 = vweird.f32 %v10632_v2  ;;  %v10707_v50 = vmul.f32 0.5, %v10583_v44  ;;  %v3716_v13 = vadd.f32 0.00028619796, %v3715_v5  ;;  %v13235_v44 = vld [vmem:[#allocation110_spill] sm:$0xff]  ;;  %v13236_v12 = vld [vmem:[#allocation65_spill] sm:$0xff] }
 0x451   :  { %v10709_v36 = vpop.eup %6125  ;;  %v3694_v3 = vmul.f32 %v3693_v25, %v10588_v35  ;;  %v3733_v42 = vadd.f32 0.4994258, %v3732_v58  ;;  %v3769_v17 = vadd.f32 0.014752088, %v3768_v37  ;;  %v5258_v48 = vmul.f32 %v13234_v45, %v13233_v10  ;;  %vm10725_vm15 = vmor %vm3581_vm12, %vm3582_vm14  ;;  %v888_v37 = vpop.f32.mrf.mxu2 }
 0x452   :  { %v3643_v21 = vmul.f32 %v3642_v60, %v10502_v9  ;;  %v10716_v34 = vmul.f32 0.5, %v10628_v15  ;;  %v10719_v61 = vmul.f32 0.70710677, %v10699_v38  ;;  %v5259_v7 = vmul.f32 %v13236_v12, %v13235_v44  ;;  %v13239_v9 = vld [vmem:[#allocation111_spill] sm:$0xff]  ;;  %v13240_v15 = vld [vmem:[#allocation82_spill] sm:$0xff]  ;;  %v977_v12 = vpop.f32.mrf.mxu3 }
 0x453   :  { %v5091_v5 = vadd.f32 1.0, %v5953_v30  ;;  %v3619_v25 = vmul.f32 %v10666_v4, %v3618_v40  ;;  %v3680_v58 = vadd.f32 0.05243302, %v3679_v49  ;;  %5514 = vmatmul.f32.gmra.mxu1 %v5258_v48  ;;  %v5260_v60 = vmul.f32 %v13240_v15, %v13239_v9 }
 0x454   :  { %v3584_v10 = vsel %vm10725_vm15, %v10632_v2, %v3580_v57  ;;  %v3657_v30 = vmul.f32 %v10709_v36, %v10663_v43  ;;  %v3717_v46 = vmul.f32 %v3716_v13, %v10625_v32  ;;  %v3755_v45 = vmul.f32 2.1237322e-06, %v10671_v27  ;;  %5603 = vmatmul.f32.gmra.mxu2 %v5259_v7 }
 0x455   :  { %v10739_v44 = vadd.f32 1.0, %v3694_v3  ;;  %v3734_v40 = vmul.f32 %v3733_v42, %v10625_v32  ;;  %v3770_v49 = vmul.f32 %v3769_v17, %v10671_v27  ;;  %v3793_v48 = vmul.f32 %v10719_v61, %v10719_v61  ;;  %5692 = vmatmul.f32.gmra.mxu3 %v5260_v60 }
 0x456   :  { %vm3621_vm0 = vweird.f32 %v10622_v18  ;;  %v3625_v2 = vand.u32 2147483647, %v10622_v18  ;;  %v3627_v57 = vand.u32 2147483648, %v10622_v18  ;;  %v10749_v13 = vadd.f32 %v888_v37, %v6892_v6 }
 0x457   :  { %v3589_v3 = vsel %vm10691_vm13, %v3588_v16, %v3584_v10  ;;  %v3620_v42 = vadd.f32 %v10666_v4, %v3619_v25  ;;  %vm3622_vm1 = vweird.f32 %v10666_v4  ;;  %v3681_v17 = vmul.f32 %v3680_v58, %v10588_v35 }
 0x458   :  { %v3658_v7 = vsub.f32 1.0, %v3657_v30  ;;  %v3718_v8 = vadd.f32 0.0036580483, %v3717_v46  ;;  %v3756_v9 = vadd.f32 0.00028619796, %v3755_v45  ;;  %v10756_v15 = vmin.f32 %v3793_v48, 16.0  ;;  %vm10775_vm2 = vmor %vm3621_vm0, %vm3622_vm1 }
 0x459   :  { %6127 = vrcp.f32 %v10739_v44  ;;  %v10759_v60 = vadd.f32 1.0, %v3734_v40  ;;  %v3771_v37 = vadd.f32 0.112945676, %v3770_v49  ;;  %v10762_v20 = vmul.f32 0.70710677, %v10749_v13 }
 0x45a   :  { %v10765_v16 = vmul.f32 %v5091_v5, %v10494_v55  ;;  %v3628_v25 = vor.u32 1.1754944e-38, %v3627_v57  ;;  %v3644_v10 = vadd.f32 1.1283791, %v3643_v21  ;;  %v10768_v58 = vadd.f32 %v977_v12, %v6894_v26 }
 0x45b   :  { %v3590_v30 = vmul.f32 %v3589_v3, %v10683_v53  ;;  %v3682_v45 = vadd.f32 0.18741608, %v3681_v17  ;;  %v3806_v40 = vmul.f32 3.8918573e-05, %v10756_v15  ;;  %v3833_v55 = vmul.f32 %v10762_v20, %v10762_v20 }
 0x45c   :  { %13241 = vst [vmem:[#allocation122_spill] sm:$0xff] %v10765_v16  ;;  %v3624_v21 = vsel %vm10775_vm2, %v10666_v4, %v3620_v42  ;;  %v3659_v53 = vmul.f32 %v10709_v36, %v3658_v7  ;;  %v3719_v5 = vmul.f32 %v3718_v8, %v10625_v32  ;;  %v3757_v18 = vmul.f32 %v3756_v9, %v10671_v27 }
 0x45d   :  { %6129 = vrcp.f32 %v10759_v60  ;;  %v3772_v49 = vmul.f32 %v3771_v37, %v10671_v27  ;;  %v3807_v48 = vadd.f32 0.001143296, %v3806_v40  ;;  %v10790_v57 = vmin.f32 %v3833_v55, 16.0 }
 0x45e   :  { %vm3626_vm3 = vcmp.eq.f32.partialorder %v3625_v2, 8.507059e+37  ;;  %v3645_v3 = vmul.f32 %v3644_v10, %v10461_v23  ;;  %vm3661_vm4 = vweird.f32 %v10663_v43  ;;  %v10795_v4 = vmul.f32 0.70710677, %v10768_v58 }
 0x45f   :  { %v10797_v42 = vpop.eup %6127  ;;  %v5954_v17 = vclamps-f32 %v3590_v30, 1.0  ;;  %v3629_v12 = vsel %vm3626_vm3, %v3628_v25, %v3624_v21  ;;  %v3667_v7 = vand.u32 2147483648, %v10663_v43  ;;  %v3808_v8 = vmul.f32 %v3807_v48, %v10756_v15 }
 0x460   :  { %v3683_v9 = vmul.f32 %v3682_v45, %v10588_v35  ;;  %v3720_v37 = vadd.f32 0.05243302, %v3719_v5  ;;  %v3758_v46 = vadd.f32 0.0036580483, %v3757_v18  ;;  %v3846_v2 = vmul.f32 3.8918573e-05, %v10790_v57 }
 0x461   :  { %v3660_v23 = vadd.f32 %v10709_v36, %v3659_v53  ;;  %vm3662_vm5 = vweird.f32 %v10709_v36  ;;  %v3773_v10 = vadd.f32 0.4994258, %v3772_v49  ;;  %v3795_v40 = vmul.f32 2.1237322e-06, %v10756_v15 }
 0x462   :  { %v3665_v30 = vand.u32 2147483647, %v10663_v43  ;;  %v3697_v25 = vmul.f32 %v10797_v42, %v10739_v44  ;;  %v3809_v55 = vadd.f32 0.014752088, %v3808_v8  ;;  %v3873_v35 = vmul.f32 %v10795_v4, %v10795_v4  ;;  %vm10816_vm6 = vmor %vm3661_vm4, %vm3662_vm5 }
 0x463   :  { %v10811_v45 = vpop.eup %6129  ;;  %v5092_v21 = vadd.f32 1.0, %v5954_v17  ;;  %v3630_v5 = vmul.f32 %v3629_v12, %v10696_v54  ;;  %v3668_v53 = vor.u32 1.1754944e-38, %v3667_v7  ;;  %v3847_v18 = vadd.f32 0.001143296, %v3846_v2 }
 0x464   :  { %v3684_v48 = vadd.f32 1.1283791, %v3683_v9  ;;  %v3721_v16 = vmul.f32 %v3720_v37, %v10625_v32  ;;  %v3759_v8 = vmul.f32 %v3758_v46, %v10671_v27  ;;  %v3810_v24 = vmul.f32 %v3809_v55, %v10756_v15 }
 0x465   :  { %v3664_v17 = vsel %vm10816_vm6, %v10709_v36, %v3660_v23  ;;  %v3774_v54 = vmul.f32 %v3773_v10, %v10671_v27  ;;  %v3796_v12 = vadd.f32 0.00028619796, %v3795_v40  ;;  %v3848_v43 = vmul.f32 %v3847_v18, %v10790_v57 }
 0x466   :  { %v3698_v7 = vsub.f32 1.0, %v3697_v25  ;;  %v3737_v2 = vmul.f32 %v10811_v45, %v10759_v60  ;;  %v3811_v9 = vadd.f32 0.112945676, %v3810_v24  ;;  %v10830_v63 = vmin.f32 %v3873_v35, 16.0 }
 0x467   :  { %v10833_v37 = vmul.f32 %v5092_v21, %v10548_v19  ;;  %v5955_v46 = vclamps-f32 %v3630_v5, 1.0  ;;  %vm3666_vm7 = vcmp.eq.f32.partialorder %v3665_v30, 8.507059e+37  ;;  %v3849_v55 = vadd.f32 0.014752088, %v3848_v43 }
 0x468   :  { %v3669_v49 = vsel %vm3666_vm7, %v3668_v53, %v3664_v17  ;;  %v3722_v36 = vadd.f32 0.18741608, %v3721_v16  ;;  %v3760_v23 = vadd.f32 0.05243302, %v3759_v8  ;;  %v10836_v10 = vmul.f32 0.5, %v10699_v38 }
 0x469   :  { %13246 = vst [vmem:[#allocation92_spill] sm:$0xff] %v10833_v37  ;;  %v10839_v40 = vmul.f32 %v3684_v48, %v10561_v47  ;;  %v10841_v25 = vadd.f32 1.0, %v3774_v54  ;;  %v3797_v24 = vmul.f32 %v3796_v12, %v10756_v15  ;;  %v3850_v35 = vmul.f32 %v3849_v55, %v10790_v57  ;;  %v713_v54 = vpop.f32.mrf.mxu0 }
 0x46a   :  { %v3699_v19 = vmul.f32 %v10797_v42, %v3698_v7  ;;  %v3738_v21 = vsub.f32 1.0, %v3737_v2  ;;  %v3812_v30 = vmul.f32 %v3811_v9, %v10756_v15  ;;  %v3886_v16 = vmul.f32 3.8918573e-05, %v10830_v63 }
 0x46b   :  { %v5093_v5 = vadd.f32 1.0, %v5955_v46  ;;  %v3670_v53 = vmul.f32 %v3669_v49, %v3645_v3  ;;  %v3705_v38 = vand.u32 2147483647, %v10739_v44  ;;  %v3851_v18 = vadd.f32 0.112945676, %v3850_v35 }
 0x46c   :  { %v3707_v47 = vand.u32 2147483648, %v10739_v44  ;;  %v3723_v48 = vmul.f32 %v3722_v36, %v10625_v32  ;;  %v3761_v8 = vmul.f32 %v3760_v23, %v10671_v27  ;;  %v3887_v17 = vadd.f32 0.001143296, %v3886_v16 }
 0x46d   :  { %vm3702_vm8 = vweird.f32 %v10797_v42  ;;  %6131 = vrcp.f32 %v10841_v25  ;;  %v3798_v12 = vadd.f32 0.0036580483, %v3797_v24  ;;  %v3835_v43 = vmul.f32 2.1237322e-06, %v10790_v57 }
 0x46e   :  { %v3700_v3 = vadd.f32 %v10797_v42, %v3699_v19  ;;  %v3739_v7 = vmul.f32 %v10811_v45, %v3738_v21  ;;  %v3813_v2 = vadd.f32 0.4994258, %v3812_v30  ;;  %v3888_v9 = vmul.f32 %v3887_v17, %v10830_v63 }
 0x46f   :  { %v10859_v32 = vmul.f32 %v5093_v5, %v10600_v22  ;;  %vm3701_vm9 = vweird.f32 %v10739_v44  ;;  %v3852_v46 = vmul.f32 %v3851_v18, %v10790_v57  ;;  %v10864_v55 = vadd.f32 %v713_v54, %v6844_v56  ;;  %v802_v54 = vpop.f32.mrf.mxu1 }
 0x470   :  { %v5956_v49 = vclamps-f32 %v3670_v53, 1.0  ;;  %vm10866_vm10 = vcmp.eq.f32.partialorder %v3705_v38, 8.507059e+37  ;;  %v3762_v23 = vadd.f32 0.18741608, %v3761_v8  ;;  %v3889_v24 = vadd.f32 0.014752088, %v3888_v9  ;;  %vm10872_vm11 = vmor %vm3701_vm9, %vm3702_vm8 }
 0x471   :  { %13247 = vst [vmem:[#allocation123_spill] sm:$0xff] %v10859_v32  ;;  %v3708_v22 = vor.u32 1.1754944e-38, %v3707_v47  ;;  %v3724_v44 = vadd.f32 1.1283791, %v3723_v48  ;;  %v3799_v19 = vmul.f32 %v3798_v12, %v10756_v15  ;;  %v3836_v21 = vadd.f32 0.00028619796, %v3835_v43 }
 0x472   :  { %v3704_v30 = vsel %vm10872_vm11, %v10797_v42, %v3700_v3  ;;  %v3740_v16 = vadd.f32 %v10811_v45, %v3739_v7  ;;  %vm3742_vm12 = vweird.f32 %v10811_v45  ;;  %v3814_v5 = vmul.f32 %v3813_v2, %v10756_v15 }
 0x473   :  { %v10883_v53 = vpop.eup %6131  ;;  %v3747_v38 = vand.u32 2147483648, %v10759_v60  ;;  %v3853_v18 = vadd.f32 0.4994258, %v3852_v46  ;;  %v3890_v47 = vmul.f32 %v3889_v24, %v10830_v63  ;;  %v10888_v48 = vmul.f32 0.70710677, %v10864_v55 }
 0x474   :  { %v5094_v8 = vadd.f32 1.0, %v5956_v49  ;;  %vm3741_vm13 = vweird.f32 %v10759_v60  ;;  %v3745_v42 = vand.u32 2147483647, %v10759_v60  ;;  %v3763_v17 = vmul.f32 %v3762_v23, %v10671_v27 }
 0x475   :  { %v3709_v12 = vsel %vm10866_vm10, %v3708_v22, %v3704_v30  ;;  %vm10895_vm14 = vmor %vm3741_vm13, %vm3742_vm12  ;;  %v3800_v3 = vadd.f32 0.05243302, %v3799_v19  ;;  %v3837_v7 = vmul.f32 %v3836_v21, %v10790_v57  ;;  %v3913_v2 = vmul.f32 %v10888_v48, %v10888_v48 }
 0x476   :  { %v3725_v9 = vmul.f32 %v3724_v44, %v10595_v0  ;;  %v3744_v27 = vsel %vm10895_vm14, %v10811_v45, %v3740_v16  ;;  %v3777_v60 = vmul.f32 %v10883_v53, %v10841_v25  ;;  %v10908_v46 = vadd.f32 1.0, %v3814_v5  ;;  %v13254_v5 = vld [vmem:[#allocation112_spill] sm:$0xff] }
 0x477   :  { %v3748_v49 = vor.u32 1.1754944e-38, %v3747_v38  ;;  %v3854_v36 = vmul.f32 %v3853_v18, %v10790_v57  ;;  %v3891_v23 = vadd.f32 0.112945676, %v3890_v47  ;;  %v10912_v24 = vadd.f32 %v802_v54, %v6846_v62  ;;  %v13255_v38 = vld [vmem:[#allocation83_spill] sm:$0xff] }
 0x478   :  { %v3710_v35 = vmul.f32 %v3709_v12, %v10839_v40  ;;  %vm3746_vm15 = vcmp.eq.f32.partialorder %v3745_v42, 8.507059e+37  ;;  %v3764_v0 = vadd.f32 1.1283791, %v3763_v17  ;;  %v10915_v22 = vmin.f32 %v3913_v2, 16.0  ;;  %v13256_v17 = vld [vmem:[#allocation113_spill] sm:$0xff]  ;;  %v13257_v54 = vld [vmem:[#allocation23_spill] sm:$0xff] }
 0x479   :  { %v3749_v44 = vsel %vm3746_vm15, %v3748_v49, %v3744_v27  ;;  %v3801_v45 = vmul.f32 %v3800_v3, %v10756_v15  ;;  %v3838_v19 = vadd.f32 0.0036580483, %v3837_v7  ;;  %v3875_v21 = vmul.f32 2.1237322e-06, %v10830_v63  ;;  %v13259_v2 = vld [vmem:[#allocation114_spill] sm:$0xff]  ;;  %v13260_v27 = vld [vmem:[#allocation84_spill] sm:$0xff] }
 0x47a   :  { %v3778_v30 = vsub.f32 1.0, %v3777_v60  ;;  %6133 = vrcp.f32 %v10908_v46  ;;  %v3926_v16 = vmul.f32 3.8918573e-05, %v10915_v22  ;;  %v5261_v18 = vmul.f32 %v13255_v38, %v13254_v5 }
 0x47b   :  { %v10923_v47 = vadd.f32 1.0, %v3854_v36  ;;  %v3892_v40 = vmul.f32 %v3891_v23, %v10830_v63  ;;  %v10927_v42 = vmul.f32 0.70710677, %v10912_v24  ;;  %v5262_v12 = vmul.f32 %v13257_v54, %v13256_v17 }
 0x47c   :  { %v10932_v43 = vmul.f32 %v5094_v8, %v10619_v14  ;;  %v10935_v3 = vmul.f32 0.5, %v10749_v13  ;;  %v3927_v7 = vadd.f32 0.001143296, %v3926_v16  ;;  %5428 = vmatmul.f32.gmra.mxu0 %v5261_v18  ;;  %v5263_v60 = vmul.f32 %v13260_v27, %v13259_v2  ;;  %v13261_v2 = vld [vmem:[#allocation24_spill] sm:$0xff]  ;;  %v13262_v27 = vld [vmem:[#allocation85_spill] sm:$0xff] }
 0x47d   :  { %v3750_v49 = vmul.f32 %v3749_v44, %v3725_v9  ;;  %v3839_v36 = vmul.f32 %v3838_v19, %v10790_v57  ;;  %v10941_v23 = vmul.f32 0.5, %v10768_v58  ;;  %v3876_v5 = vadd.f32 0.00028619796, %v3875_v21  ;;  %5517 = vmatmul.f32.gmra.mxu1 %v5262_v12 }
 0x47e   :  { %13258 = vst [vmem:[#allocation93_spill] sm:$0xff] %v10932_v43  ;;  %v3779_v38 = vmul.f32 %v10883_v53, %v3778_v30  ;;  %v3802_v14 = vadd.f32 0.18741608, %v3801_v45  ;;  %v3928_v8 = vmul.f32 %v3927_v7, %v10915_v22  ;;  %v3953_v13 = vmul.f32 %v10927_v42, %v10927_v42  ;;  %5606 = vmatmul.f32.gmra.mxu2 %v5263_v60 }
 0x47f   :  { %v5957_v16 = vclamps-f32 %v3710_v35, 1.0  ;;  %v3765_v18 = vmul.f32 %v3764_v0, %v10650_v51  ;;  %6135 = vrcp.f32 %v10923_v47  ;;  %v3893_v9 = vadd.f32 0.4994258, %v3892_v40 }
 0x480   :  { %v10949_v44 = vpop.eup %6133  ;;  %vm3781_vm0 = vweird.f32 %v10841_v25  ;;  %v3785_v58 = vand.u32 2147483647, %v10841_v25  ;;  %v3787_v45 = vand.u32 2147483648, %v10841_v25  ;;  %v3929_v19 = vadd.f32 0.014752088, %v3928_v8 }
 0x481   :  { %v5958_v21 = vclamps-f32 %v3750_v49, 1.0  ;;  %v3840_v30 = vadd.f32 0.05243302, %v3839_v36  ;;  %v3877_v17 = vmul.f32 %v3876_v5, %v10830_v63  ;;  %v10955_v54 = vmin.f32 %v3953_v13, 16.0  ;;  %v891_v49 = vpop.f32.mrf.mxu2 }
 0x482   :  { %v3780_v51 = vadd.f32 %v10883_v53, %v3779_v38  ;;  %vm3782_vm1 = vweird.f32 %v10883_v53  ;;  %v3803_v35 = vmul.f32 %v3802_v14, %v10756_v15  ;;  %v3930_v0 = vmul.f32 %v3929_v19, %v10915_v22  ;;  %v980_v14 = vpop.f32.mrf.mxu3 }
 0x483   :  { %v3894_v40 = vmul.f32 %v3893_v9, %v10830_v63  ;;  %v3915_v12 = vmul.f32 2.1237322e-06, %v10915_v22  ;;  %v3966_v7 = vmul.f32 3.8918573e-05, %v10955_v54  ;;  %v5264_v60 = vmul.f32 %v13262_v27, %v13261_v2  ;;  %vm10978_vm3 = vmor %vm3781_vm0, %vm3782_vm1 }
 0x484   :  { %v5095_v36 = vadd.f32 1.0, %v5957_v16  ;;  %vm10966_vm2 = vcmp.eq.f32.partialorder %v3785_v58, 8.507059e+37  ;;  %v3817_v15 = vmul.f32 %v10949_v44, %v10908_v46  ;;  %v3931_v38 = vadd.f32 0.112945676, %v3930_v0 }
 0x485   :  { %v10972_v8 = vpop.eup %6135  ;;  %v5096_v13 = vadd.f32 1.0, %v5958_v21  ;;  %v3841_v16 = vmul.f32 %v3840_v30, %v10790_v57  ;;  %v3878_v58 = vadd.f32 0.0036580483, %v3877_v17  ;;  %v3967_v19 = vadd.f32 0.001143296, %v3966_v7  ;;  %5695 = vmatmul.f32.gmra.mxu3 %v5264_v60 }
 0x486   :  { %v3784_v0 = vsel %vm10978_vm3, %v10883_v53, %v3780_v51  ;;  %v3788_v2 = vor.u32 1.1754944e-38, %v3787_v45  ;;  %v3804_v27 = vadd.f32 1.1283791, %v3803_v35  ;;  %v10987_v21 = vadd.f32 %v891_v49, %v6892_v6 }
 0x487   :  { %v10989_v43 = vadd.f32 1.0, %v3894_v40  ;;  %v3916_v25 = vadd.f32 0.00028619796, %v3915_v12  ;;  %v3932_v32 = vmul.f32 %v3931_v38, %v10915_v22  ;;  %v10993_v37 = vadd.f32 %v980_v14, %v6894_v26 }
 0x488   :  { %v10996_v30 = vmul.f32 %v5095_v36, %v10689_v41  ;;  %v3818_v17 = vsub.f32 1.0, %v3817_v15  ;;  %v3857_v53 = vmul.f32 %v10972_v8, %v10923_v47  ;;  %v3968_v45 = vmul.f32 %v3967_v19, %v10955_v54 }
 0x489   :  { %v11002_v51 = vmul.f32 %v5096_v13, %v10707_v50  ;;  %v3789_v35 = vsel %vm10966_vm2, %v3788_v2, %v3784_v0  ;;  %v3842_v40 = vadd.f32 0.18741608, %v3841_v16  ;;  %v3879_v12 = vmul.f32 %v3878_v58, %v10830_v63 }
 0x48a   :  { %13267 = vst [vmem:[#allocation94_spill] sm:$0xff] %v10996_v30  ;;  %v11008_v7 = vmul.f32 %v3804_v27, %v10719_v61  ;;  %v3933_v41 = vadd.f32 0.4994258, %v3932_v32  ;;  %v3969_v60 = vadd.f32 0.014752088, %v3968_v45  ;;  %6137 = vrcp.f32 %v10989_v43  ;;  %v805_v30 = vpop.f32.mrf.mxu1 }
 0x48b   :  { %13268 = vst [vmem:[#allocation95_spill] sm:$0xff] %v11002_v51  ;;  %v11011_v49 = vmul.f32 0.70710677, %v10987_v21  ;;  %v3825_v36 = vand.u32 2147483647, %v10908_v46  ;;  %v3917_v50 = vmul.f32 %v3916_v25, %v10915_v22  ;;  %v3790_v15 = vmul.f32 %v3789_v35, %v3765_v18 }
 0x48c   :  { %v11017_v5 = vmul.f32 0.70710677, %v10993_v37  ;;  %v3819_v38 = vmul.f32 %v10949_v44, %v3818_v17  ;;  %v3858_v14 = vsub.f32 1.0, %v3857_v53  ;;  %v3827_v32 = vand.u32 2147483648, %v10908_v46 }
 0x48d   :  { %v3993_v61 = vmul.f32 %v11011_v49, %v11011_v49  ;;  %v3880_v13 = vadd.f32 0.05243302, %v3879_v12  ;;  %v3970_v9 = vmul.f32 %v3969_v60, %v10955_v54  ;;  %v3843_v58 = vmul.f32 %v3842_v40, %v10790_v57 }
 0x48e   :  { %v4033_v16 = vmul.f32 %v11017_v5, %v11017_v5  ;;  %v3934_v19 = vmul.f32 %v3933_v41, %v10915_v22  ;;  %v3955_v18 = vmul.f32 2.1237322e-06, %v10955_v54  ;;  %vm3821_vm4 = vweird.f32 %v10908_v46 }
 0x48f   :  { %v11029_v0 = vmin.f32 %v3993_v61, 16.0  ;;  %vm11032_vm5 = vcmp.eq.f32.partialorder %v3825_v36, 8.507059e+37  ;;  %v11037_v27 = vmul.f32 0.5, %v10864_v55  ;;  %v3918_v25 = vadd.f32 0.0036580483, %v3917_v50 }
 0x490   :  { %v5959_v17 = vclamps-f32 %v3790_v15, 1.0  ;;  %v3820_v53 = vadd.f32 %v10949_v44, %v3819_v38  ;;  %vm3822_vm6 = vweird.f32 %v10949_v44  ;;  %v3859_v57 = vmul.f32 %v10972_v8, %v3858_v14  ;;  %v11042_v45 = vpop.eup %6137 }
 0x491   :  { %v3881_v35 = vmul.f32 %v3880_v13, %v10830_v63  ;;  %v3971_v40 = vadd.f32 0.112945676, %v3970_v9  ;;  %v4006_v12 = vmul.f32 3.8918573e-05, %v11029_v0  ;;  %v11046_v41 = vmin.f32 %v4033_v16, 16.0  ;;  %vm11052_vm7 = vmor %vm3821_vm4, %vm3822_vm6  ;;  %v716_v16 = vpop.f32.mrf.mxu0 }
 0x492   :  { %v3828_v60 = vor.u32 1.1754944e-38, %v3827_v32  ;;  %v3844_v55 = vadd.f32 1.1283791, %v3843_v58  ;;  %v11048_v36 = vadd.f32 1.0, %v3934_v19  ;;  %v3956_v50 = vadd.f32 0.00028619796, %v3955_v18 }
 0x493   :  { %vm3862_vm8 = vweird.f32 %v10972_v8  ;;  %v3919_v38 = vmul.f32 %v3918_v25, %v10915_v22  ;;  %v11059_v14 = vmul.f32 0.5, %v10912_v24  ;;  %v4007_v61 = vadd.f32 0.001143296, %v4006_v12 }
 0x494   :  { %v3824_v32 = vsel %vm11052_vm7, %v10949_v44, %v3820_v53  ;;  %v3860_v13 = vadd.f32 %v10972_v8, %v3859_v57  ;;  %v3897_v46 = vmul.f32 %v11042_v45, %v10989_v43  ;;  %v4046_v9 = vmul.f32 3.8918573e-05, %v11046_v41 }
 0x495   :  { %v3867_v58 = vand.u32 2147483648, %v10923_v47  ;;  %v3882_v19 = vadd.f32 0.18741608, %v3881_v35  ;;  %v3972_v18 = vmul.f32 %v3971_v40, %v10955_v54  ;;  %v4008_v24 = vmul.f32 %v4007_v61, %v11029_v0 }
 0x496   :  { %vm3861_vm9 = vweird.f32 %v10923_v47  ;;  %v3865_v25 = vand.u32 2147483647, %v10923_v47  ;;  %6139 = vrcp.f32 %v11048_v36  ;;  %v3957_v44 = vmul.f32 %v3956_v50, %v10955_v54 }
 0x497   :  { %v3829_v53 = vsel %vm11032_vm5, %v3828_v60, %v3824_v32  ;;  %vm11079_vm10 = vmor %vm3861_vm9, %vm3862_vm8  ;;  %v3920_v35 = vadd.f32 0.05243302, %v3919_v38  ;;  %v4009_v40 = vadd.f32 0.014752088, %v4008_v24  ;;  %v11084_v12 = vadd.f32 %v716_v16, %v6844_v56 }
 0x498   :  { %v5097_v15 = vadd.f32 1.0, %v5959_v17  ;;  %v3864_v47 = vsel %vm11079_vm10, %v10972_v8, %v3860_v13  ;;  %v3898_v50 = vsub.f32 1.0, %v3897_v46  ;;  %v4047_v61 = vadd.f32 0.001143296, %v4046_v9 }
 0x499   :  { %v3845_v2 = vmul.f32 %v3844_v55, %v10762_v20  ;;  %v3868_v60 = vor.u32 1.1754944e-38, %v3867_v58  ;;  %v3883_v32 = vmul.f32 %v3882_v19, %v10830_v63  ;;  %v3973_v51 = vadd.f32 0.4994258, %v3972_v18 }
 0x49a   :  { %v3830_v38 = vmul.f32 %v3829_v53, %v11008_v7  ;;  %vm3866_vm11 = vcmp.eq.f32.partialorder %v3865_v25, 8.507059e+37  ;;  %v3958_v24 = vadd.f32 0.0036580483, %v3957_v44  ;;  %v4010_v16 = vmul.f32 %v4009_v40, %v11029_v0 }
 0x49b   :  { %v3869_v17 = vsel %vm3866_vm11, %v3868_v60, %v3864_v47  ;;  %v3921_v29 = vmul.f32 %v3920_v35, %v10915_v22  ;;  %v4048_v8 = vmul.f32 %v4047_v61, %v11046_v41  ;;  %v11096_v13 = vmul.f32 0.70710677, %v11084_v12 }
 0x49c   :  { %v11098_v20 = vpop.eup %6139  ;;  %v3899_v63 = vmul.f32 %v11042_v45, %v3898_v50  ;;  %v3995_v55 = vmul.f32 2.1237322e-06, %v11029_v0  ;;  %v4011_v46 = vadd.f32 0.112945676, %v4010_v16  ;;  %v11103_v7 = vadd.f32 %v805_v30, %v6846_v62 }
 0x49d   :  { %v11106_v9 = vmul.f32 %v5097_v15, %v10716_v34  ;;  %v3884_v58 = vadd.f32 1.1283791, %v3883_v32  ;;  %v3974_v19 = vmul.f32 %v3973_v51, %v10955_v54  ;;  %v4073_v18 = vmul.f32 %v11096_v13, %v11096_v13 }
 0x49e   :  { %v5960_v25 = vclamps-f32 %v3830_v38, 1.0  ;;  %vm3902_vm12 = vweird.f32 %v11042_v45  ;;  %v3907_v44 = vand.u32 2147483648, %v10989_v43  ;;  %v3959_v53 = vmul.f32 %v3958_v24, %v10955_v54 }
 0x49f   :  { %v3870_v57 = vmul.f32 %v3869_v17, %v3845_v2  ;;  %v3922_v35 = vadd.f32 0.18741608, %v3921_v29  ;;  %v3937_v30 = vmul.f32 %v11098_v20, %v11048_v36  ;;  %v4049_v34 = vadd.f32 0.014752088, %v4048_v8  ;;  %v13275_v2 = vld [vmem:[#allocation25_spill] sm:$0xff]  ;;  %v13276_v29 = vld [vmem:[#allocation86_spill] sm:$0xff] }
 0x4a0   :  { %v3900_v40 = vadd.f32 %v11042_v45, %v3899_v63  ;;  %v3996_v15 = vadd.f32 0.00028619796, %v3995_v55  ;;  %v4012_v51 = vmul.f32 %v4011_v46, %v11029_v0  ;;  %v11119_v47 = vmul.f32 0.70710677, %v11103_v7 }
 0x4a1   :  { %v11121_v50 = vadd.f32 1.0, %v3974_v19  ;;  %v4035_v61 = vmul.f32 2.1237322e-06, %v11046_v41  ;;  %v11124_v60 = vmin.f32 %v4073_v18, 16.0  ;;  %v5265_v32 = vmul.f32 %v13276_v29, %v13275_v2 }
 0x4a2   :  { %v5098_v38 = vadd.f32 1.0, %v5960_v25  ;;  %vm3901_vm13 = vweird.f32 %v10989_v43  ;;  %v3905_v24 = vand.u32 2147483647, %v10989_v43  ;;  %v3960_v16 = vadd.f32 0.05243302, %v3959_v53 }
 0x4a3   :  { %vm11132_vm14 = vmor %vm3901_vm13, %vm3902_vm12  ;;  %v3908_v8 = vor.u32 1.1754944e-38, %v3907_v44  ;;  %v3923_v63 = vmul.f32 %v3922_v35, %v10915_v22  ;;  %v3938_v55 = vsub.f32 1.0, %v3937_v30  ;;  %v4050_v46 = vmul.f32 %v4049_v34, %v11046_v41  ;;  %5431 = vmatmul.f32.gmra.mxu0 %v5265_v32 }
 0x4a4   :  { %v3904_v19 = vsel %vm11132_vm14, %v11042_v45, %v3900_v40  ;;  %v3997_v43 = vmul.f32 %v3996_v15, %v11029_v0  ;;  %v4013_v18 = vadd.f32 0.4994258, %v4012_v51  ;;  %v4113_v25 = vmul.f32 %v11119_v47, %v11119_v47 }
 0x4a5   :  { %v5961_v53 = vclamps-f32 %v3870_v57, 1.0  ;;  %6141 = vrcp.f32 %v11121_v50  ;;  %v4036_v44 = vadd.f32 0.00028619796, %v4035_v61  ;;  %v4086_v22 = vmul.f32 3.8918573e-05, %v11124_v60 }
 0x4a6   :  { %v11147_v35 = vmul.f32 %v5098_v38, %v10836_v10  ;;  %v3885_v30 = vmul.f32 %v3884_v58, %v10795_v4  ;;  %vm3906_vm15 = vcmp.eq.f32.partialorder %v3905_v24, 8.507059e+37  ;;  %v3961_v45 = vmul.f32 %v3960_v16, %v10955_v54 }
 0x4a7   :  { %v3909_v34 = vsel %vm3906_vm15, %v3908_v8, %v3904_v19  ;;  %v3939_v40 = vmul.f32 %v11098_v20, %v3938_v55  ;;  %v11153_v15 = vmul.f32 0.5, %v10987_v21  ;;  %v4051_v57 = vadd.f32 0.112945676, %v4050_v46  ;;  %v13280_v55 = vld [vmem:[#allocation26_spill] sm:$0xff] }
 0x4a8   :  { %13279 = vst [vmem:[#allocation124_spill] sm:$0xff] %v11147_v35  ;;  %v3924_v51 = vadd.f32 1.1283791, %v3923_v63  ;;  %v3998_v2 = vadd.f32 0.0036580483, %v3997_v43  ;;  %v4014_v61 = vmul.f32 %v4013_v18, %v11029_v0  ;;  %v11156_v29 = vmin.f32 %v4113_v25, 16.0 }
 0x4a9   :  { %v5099_v10 = vadd.f32 1.0, %v5961_v53  ;;  %v11159_v32 = vmul.f32 0.5, %v10993_v37  ;;  %v4037_v4 = vmul.f32 %v4036_v44, %v11046_v41  ;;  %v4087_v58 = vadd.f32 0.001143296, %v4086_v22  ;;  %v13281_v37 = vld [vmem:[#allocation87_spill] sm:$0xff]  ;;  %v13308_v35 = vld [vmem:[#allocation117_spill] sm:$0xff] }
 0x4aa   :  { %v3910_v38 = vmul.f32 %v3909_v34, %v3885_v30  ;;  %vm3942_vm0 = vweird.f32 %v11098_v20  ;;  %v3947_v21 = vand.u32 2147483648, %v11048_v36  ;;  %v3962_v24 = vadd.f32 0.18741608, %v3961_v45  ;;  %v13282_v22 = vld [vmem:[#allocation115_spill] sm:$0xff]  ;;  %v13283_v30 = vld [vmem:[#allocation78_spill] sm:$0xff] }
 0x4ab   :  { %v11164_v16 = vpop.eup %6141  ;;  %v3940_v17 = vadd.f32 %v11098_v20, %v3939_v40  ;;  %v4052_v8 = vmul.f32 %v4051_v57, %v11046_v41  ;;  %v4088_v63 = vmul.f32 %v4087_v58, %v11124_v60  ;;  %v5266_v46 = vmul.f32 %v13281_v37, %v13280_v55  ;;  %v13286_v37 = vld [vmem:[#allocation116_spill] sm:$0xff] }
 0x4ac   :  { %v3925_v19 = vmul.f32 %v3924_v51, %v10888_v48  ;;  %v3999_v43 = vmul.f32 %v3998_v2, %v11029_v0  ;;  %v11173_v18 = vadd.f32 1.0, %v4014_v61  ;;  %v4126_v25 = vmul.f32 3.8918573e-05, %v11156_v29  ;;  %v894_v2 = vpop.f32.mrf.mxu2 }
 0x4ad   :  { %vm3941_vm1 = vweird.f32 %v11048_v36  ;;  %v3945_v53 = vand.u32 2147483647, %v11048_v36  ;;  %v4038_v44 = vadd.f32 0.0036580483, %v4037_v4  ;;  %5520 = vmatmul.f32.gmra.mxu1 %v5266_v46  ;;  %v5267_v45 = vmul.f32 %v13283_v30, %v13282_v22  ;;  %v13287_v46 = vld [vmem:[#allocation88_spill] sm:$0xff] }
 0x4ae   :  { %v5962_v34 = vclamps-f32 %v3910_v38, 1.0  ;;  %vm11182_vm2 = vmor %vm3941_vm1, %vm3942_vm0  ;;  %v3948_v40 = vor.u32 1.1754944e-38, %v3947_v21  ;;  %v3977_v57 = vmul.f32 %v11164_v16, %v11121_v50  ;;  %v4089_v51 = vadd.f32 0.014752088, %v4088_v63 }
 0x4af   :  { %v3944_v36 = vsel %vm11182_vm2, %v11098_v20, %v3940_v17  ;;  %v3963_v61 = vmul.f32 %v3962_v24, %v10955_v54  ;;  %v4053_v4 = vadd.f32 0.4994258, %v4052_v8  ;;  %v4075_v58 = vmul.f32 2.1237322e-06, %v11124_v60  ;;  %5609 = vmatmul.f32.gmra.mxu2 %v5267_v45 }
 0x4b0   :  { %v4000_v38 = vadd.f32 0.05243302, %v3999_v43  ;;  %6143 = vrcp.f32 %v11173_v18  ;;  %v4090_v21 = vmul.f32 %v4089_v51, %v11124_v60  ;;  %v4127_v55 = vadd.f32 0.001143296, %v4126_v25  ;;  %v983_v43 = vpop.f32.mrf.mxu3 }
 0x4b1   :  { %vm3946_vm3 = vcmp.eq.f32.partialorder %v3945_v53, 8.507059e+37  ;;  %v4039_v63 = vmul.f32 %v4038_v44, %v11046_v41  ;;  %v5268_v22 = vmul.f32 %v13287_v46, %v13286_v37  ;;  %v11199_v20 = vadd.f32 %v894_v2, %v6892_v6 }
 0x4b2   :  { %v3949_v54 = vsel %vm3946_vm3, %v3948_v40, %v3944_v36  ;;  %v3978_v24 = vsub.f32 1.0, %v3977_v57  ;;  %v4091_v17 = vadd.f32 0.112945676, %v4090_v21  ;;  %v4128_v8 = vmul.f32 %v4127_v55, %v11156_v29 }
 0x4b3   :  { %v5100_v30 = vadd.f32 1.0, %v5962_v34  ;;  %v3964_v45 = vadd.f32 1.1283791, %v3963_v61  ;;  %v4054_v48 = vmul.f32 %v4053_v4, %v11046_v41  ;;  %v4076_v25 = vadd.f32 0.00028619796, %v4075_v58  ;;  %5698 = vmatmul.f32.gmra.mxu3 %v5268_v22 }
 0x4b4   :  { %v11204_v53 = vmul.f32 %v5099_v10, %v10935_v3  ;;  %v4001_v44 = vmul.f32 %v4000_v38, %v11029_v0  ;;  %v4092_v51 = vmul.f32 %v4091_v17, %v11124_v60  ;;  %v4129_v2 = vadd.f32 0.014752088, %v4128_v8 }
 0x4b5   :  { %v3950_v40 = vmul.f32 %v3949_v54, %v3925_v19  ;;  %v11209_v57 = vmul.f32 0.5, %v11084_v12  ;;  %v11212_v36 = vmul.f32 0.70710677, %v11199_v20  ;;  %v11215_v34 = vadd.f32 %v983_v43, %v6894_v26  ;;  %v719_v43 = vpop.f32.mrf.mxu0 }
 0x4b6   :  { %13288 = vst [vmem:[#allocation96_spill] sm:$0xff] %v11204_v53  ;;  %v11217_v61 = vpop.eup %6143  ;;  %v3979_v3 = vmul.f32 %v11164_v16, %v3978_v24  ;;  %v4040_v10 = vadd.f32 0.05243302, %v4039_v63  ;;  %v4093_v4 = vadd.f32 0.4994258, %v4092_v51  ;;  %v4130_v58 = vmul.f32 %v4129_v2, %v11156_v29 }
 0x4b7   :  { %v11222_v38 = vmul.f32 %v5100_v30, %v10941_v23  ;;  %v3965_v12 = vmul.f32 %v3964_v45, %v10927_v42  ;;  %v11225_v19 = vadd.f32 1.0, %v4054_v48  ;;  %v4077_v21 = vmul.f32 %v4076_v25, %v11124_v60 }
 0x4b8   :  { %v3985_v55 = vand.u32 2147483647, %v11121_v50  ;;  %v4002_v37 = vadd.f32 0.18741608, %v4001_v44  ;;  %v4094_v46 = vmul.f32 %v4093_v4, %v11124_v60  ;;  %v4153_v63 = vmul.f32 %v11212_v36, %v11212_v36 }
 0x4b9   :  { %13289 = vst [vmem:[#allocation125_spill] sm:$0xff] %v11222_v38  ;;  %vm3982_vm4 = vweird.f32 %v11164_v16  ;;  %v4017_v23 = vmul.f32 %v11217_v61, %v11173_v18  ;;  %v4131_v22 = vadd.f32 0.112945676, %v4130_v58  ;;  %v11236_v42 = vmul.f32 0.70710677, %v11215_v34 }
 0x4ba   :  { %v5963_v54 = vclamps-f32 %v3950_v40, 1.0  ;;  %v3980_v24 = vadd.f32 %v11164_v16, %v3979_v3  ;;  %v4041_v17 = vmul.f32 %v4040_v10, %v11046_v41  ;;  %v11240_v8 = vmin.f32 %v4153_v63, 16.0 }
 0x4bb   :  { %v3987_v30 = vand.u32 2147483648, %v11121_v50  ;;  %6145 = vrcp.f32 %v11225_v19  ;;  %v4078_v45 = vadd.f32 0.0036580483, %v4077_v21  ;;  %v4115_v48 = vmul.f32 2.1237322e-06, %v11156_v29 }
 0x4bc   :  { %vm3981_vm5 = vweird.f32 %v11121_v50  ;;  %v4003_v25 = vmul.f32 %v4002_v37, %v11029_v0  ;;  %v11247_v44 = vadd.f32 1.0, %v4094_v46  ;;  %v4193_v51 = vmul.f32 %v11236_v42, %v11236_v42 }
 0x4bd   :  { %vm11253_vm6 = vmor %vm3981_vm5, %vm3982_vm4  ;;  %vm11257_vm7 = vcmp.eq.f32.partialorder %v3985_v55, 8.507059e+37  ;;  %v4018_v3 = vsub.f32 1.0, %v4017_v23  ;;  %v4132_v50 = vmul.f32 %v4131_v22, %v11156_v29  ;;  %v11263_v0 = vadd.f32 %v719_v43, %v6844_v56 }
 0x4be   :  { %v5101_v10 = vadd.f32 1.0, %v5963_v54  ;;  %v3984_v4 = vsel %vm11253_vm6, %v11164_v16, %v3980_v24  ;;  %v4042_v58 = vadd.f32 0.18741608, %v4041_v17  ;;  %v4166_v21 = vmul.f32 3.8918573e-05, %v11240_v8 }
 0x4bf   :  { %v3988_v37 = vor.u32 1.1754944e-38, %v3987_v30  ;;  %v4079_v55 = vmul.f32 %v4078_v45, %v11124_v60  ;;  %v11271_v46 = vmul.f32 0.5, %v11103_v7  ;;  %v4116_v63 = vadd.f32 0.00028619796, %v4115_v48 }
 0x4c0   :  { %v4004_v23 = vadd.f32 1.1283791, %v4003_v25  ;;  %6147 = vrcp.f32 %v11247_v44  ;;  %v4167_v22 = vadd.f32 0.001143296, %v4166_v21  ;;  %v11274_v43 = vmin.f32 %v4193_v51, 16.0 }
 0x4c1   :  { %v11276_v54 = vpop.eup %6145  ;;  %v3989_v16 = vsel %vm11257_vm7, %v3988_v37, %v3984_v4  ;;  %v4019_v24 = vmul.f32 %v11217_v61, %v4018_v3  ;;  %v4133_v17 = vadd.f32 0.4994258, %v4132_v50  ;;  %v11282_v30 = vmul.f32 0.70710677, %v11263_v0 }
 0x4c2   :  { %v11285_v7 = vmul.f32 %v5101_v10, %v11037_v27  ;;  %v4025_v45 = vand.u32 2147483647, %v11173_v18  ;;  %v4043_v48 = vmul.f32 %v4042_v58, %v11046_v41  ;;  %v4168_v25 = vmul.f32 %v4167_v22, %v11240_v8 }
 0x4c3   :  { %v4027_v51 = vand.u32 2147483648, %v11173_v18  ;;  %v4080_v2 = vadd.f32 0.05243302, %v4079_v55  ;;  %v4117_v40 = vmul.f32 %v4116_v63, %v11156_v29  ;;  %v4206_v3 = vmul.f32 3.8918573e-05, %v11274_v43 }
 0x4c4   :  { %13294 = vst [vmem:[#allocation97_spill] sm:$0xff] %v11285_v7  ;;  %v3990_v50 = vmul.f32 %v3989_v16, %v3965_v12  ;;  %v4005_v4 = vmul.f32 %v4004_v23, %v11011_v49  ;;  %vm4022_vm8 = vweird.f32 %v11217_v61  ;;  %v4057_v27 = vmul.f32 %v11276_v54, %v11225_v19  ;;  %v13299_v12 = vld [vmem:[#allocation27_spill] sm:$0xff] }
 0x4c5   :  { %v4020_v10 = vadd.f32 %v11217_v61, %v4019_v24  ;;  %v4134_v41 = vmul.f32 %v4133_v17, %v11156_v29  ;;  %v4169_v58 = vadd.f32 0.014752088, %v4168_v25  ;;  %v4233_v21 = vmul.f32 %v11282_v30, %v11282_v30  ;;  %v808_v24 = vpop.f32.mrf.mxu1 }
 0x4c6   :  { %v11301_v37 = vpop.eup %6147  ;;  %vm4021_vm9 = vweird.f32 %v11173_v18  ;;  %vm11304_vm10 = vcmp.eq.f32.partialorder %v4025_v45, 8.507059e+37  ;;  %v4044_v49 = vadd.f32 1.1283791, %v4043_v48  ;;  %v4207_v55 = vadd.f32 0.001143296, %v4206_v3 }
 0x4c7   :  { %v4028_v63 = vor.u32 1.1754944e-38, %v4027_v51  ;;  %v4081_v23 = vmul.f32 %v4080_v2, %v11124_v60  ;;  %v4118_v22 = vadd.f32 0.0036580483, %v4117_v40  ;;  %v4170_v16 = vmul.f32 %v4169_v58, %v11240_v8  ;;  %vm11312_vm11 = vmor %vm4021_vm9, %vm4022_vm8 }
 0x4c8   :  { %v4058_v18 = vsub.f32 1.0, %v4057_v27  ;;  %v4155_v45 = vmul.f32 2.1237322e-06, %v11240_v8  ;;  %v4208_v25 = vmul.f32 %v4207_v55, %v11274_v43  ;;  %v11318_v48 = vmin.f32 %v4233_v21, 16.0 }
 0x4c9   :  { %v5964_v51 = vclamps-f32 %v3990_v50, 1.0  ;;  %v4024_v2 = vsel %vm11312_vm11, %v11217_v61, %v4020_v10  ;;  %v4097_v40 = vmul.f32 %v11301_v37, %v11247_v44  ;;  %v11325_v3 = vadd.f32 1.0, %v4134_v41 }
 0x4ca   :  { %v11328_v58 = vmul.f32 %v4044_v49, %v11017_v5  ;;  %v4171_v27 = vadd.f32 0.112945676, %v4170_v16  ;;  %v4209_v7 = vadd.f32 0.014752088, %v4208_v25  ;;  %v11331_v38 = vadd.f32 %v808_v24, %v6846_v62 }
 0x4cb   :  { %vm4061_vm12 = vweird.f32 %v11225_v19  ;;  %v4065_v50 = vand.u32 2147483647, %v11225_v19  ;;  %v4082_v21 = vadd.f32 0.18741608, %v4081_v23  ;;  %v4119_v61 = vmul.f32 %v4118_v22, %v11156_v29 }
 0x4cc   :  { %v4029_v10 = vsel %vm11304_vm10, %v4028_v63, %v4024_v2  ;;  %v4059_v41 = vmul.f32 %v11276_v54, %v4058_v18  ;;  %v4156_v55 = vadd.f32 0.00028619796, %v4155_v45  ;;  %v4246_v5 = vmul.f32 3.8918573e-05, %v11318_v48 }
 0x4cd   :  { %v5102_v49 = vadd.f32 1.0, %v5964_v51  ;;  %v4067_v16 = vand.u32 2147483648, %v11225_v19  ;;  %v4098_v24 = vsub.f32 1.0, %v4097_v40  ;;  %6149 = vrcp.f32 %v11325_v3 }
 0x4ce   :  { %v4172_v17 = vmul.f32 %v4171_v27, %v11240_v8  ;;  %v4210_v23 = vmul.f32 %v4209_v7, %v11274_v43  ;;  %v11345_v22 = vmul.f32 0.70710677, %v11331_v38  ;;  %v5269_v63 = vmul.f32 %v10125_v33, %v13299_v12 }
 0x4cf   :  { %v4030_v18 = vmul.f32 %v4029_v10, %v4005_v4  ;;  %vm4062_vm13 = vweird.f32 %v11276_v54  ;;  %v4083_v45 = vmul.f32 %v4082_v21, %v11124_v60  ;;  %v4120_v25 = vadd.f32 0.05243302, %v4119_v61 }
 0x4d0   :  { %v4060_v51 = vadd.f32 %v11276_v54, %v4059_v41  ;;  %v4157_v2 = vmul.f32 %v4156_v55, %v11240_v8  ;;  %v4195_v40 = vmul.f32 2.1237322e-06, %v11274_v43  ;;  %v4247_v27 = vadd.f32 0.001143296, %v4246_v5  ;;  %5434 = vmatmul.f32.gmra.mxu0 %v5269_v63  ;;  %vm11371_vm15 = vmor %vm4061_vm12, %vm4062_vm13 }
 0x4d1   :  { %v11355_v7 = vmul.f32 %v5102_v49, %v11059_v14  ;;  %vm11357_vm14 = vcmp.eq.f32.partialorder %v4065_v50, 8.507059e+37  ;;  %v4068_v33 = vor.u32 1.1754944e-38, %v4067_v16  ;;  %v4099_v4 = vmul.f32 %v11301_v37, %v4098_v24 }
 0x4d2   :  { %v4173_v60 = vadd.f32 0.4994258, %v4172_v17  ;;  %v4211_v21 = vadd.f32 0.112945676, %v4210_v23  ;;  %v4248_v61 = vmul.f32 %v4247_v27, %v11318_v48  ;;  %v4273_v10 = vmul.f32 %v11345_v22, %v11345_v22 }
 0x4d3   :  { %13300 = vst [vmem:[#allocation126_spill] sm:$0xff] %v11355_v7  ;;  %v11365_v41 = vpop.eup %6149  ;;  %v4084_v50 = vadd.f32 1.1283791, %v4083_v45  ;;  %v4121_v55 = vmul.f32 %v4120_v25, %v11156_v29  ;;  %v11377_v5 = vmul.f32 0.5, %v11199_v20  ;;  %v11380_v49 = vmul.f32 0.5, %v11215_v34 }
 0x4d4   :  { %v5965_v16 = vclamps-f32 %v4030_v18, 1.0  ;;  %v4064_v24 = vsel %vm11371_vm15, %v11276_v54, %v4060_v51  ;;  %v4158_v17 = vadd.f32 0.0036580483, %v4157_v2  ;;  %v4196_v19 = vadd.f32 0.00028619796, %v4195_v40 }
 0x4d5   :  { %v4100_v23 = vadd.f32 %v11301_v37, %v4099_v4  ;;  %vm4102_vm0 = vweird.f32 %v11301_v37  ;;  %v4107_v12 = vand.u32 2147483648, %v11247_v44  ;;  %v4235_v63 = vmul.f32 2.1237322e-06, %v11318_v48 }
 0x4d6   :  { %v4174_v20 = vmul.f32 %v4173_v60, %v11240_v8  ;;  %v4212_v34 = vmul.f32 %v4211_v21, %v11274_v43  ;;  %v4249_v45 = vadd.f32 0.014752088, %v4248_v61  ;;  %v11391_v18 = vmin.f32 %v4273_v10, 16.0 }
 0x4d7   :  { %vm4101_vm1 = vweird.f32 %v11247_v44  ;;  %v4105_v54 = vand.u32 2147483647, %v11247_v44  ;;  %v4122_v25 = vadd.f32 0.18741608, %v4121_v55  ;;  %v4137_v51 = vmul.f32 %v11365_v41, %v11325_v3  ;;  %v13307_v55 = vld [vmem:[#allocation28_spill] sm:$0xff] }
 0x4d8   :  { %v4069_v2 = vsel %vm11357_vm14, %v4068_v33, %v4064_v24  ;;  %vm11399_vm2 = vmor %vm4101_vm1, %vm4102_vm0  ;;  %v4159_v27 = vmul.f32 %v4158_v17, %v11240_v8  ;;  %v4197_v4 = vmul.f32 %v4196_v19, %v11274_v43  ;;  %v4250_v60 = vmul.f32 %v4249_v45, %v11318_v48 }
 0x4d9   :  { %v5103_v21 = vadd.f32 1.0, %v5965_v16  ;;  %v4104_v44 = vsel %vm11399_vm2, %v11301_v37, %v4100_v23  ;;  %v4236_v61 = vadd.f32 0.00028619796, %v4235_v63  ;;  %v4286_v10 = vmul.f32 3.8918573e-05, %v11391_v18  ;;  %v897_v16 = vpop.f32.mrf.mxu2  ;;  %v986_v63 = vpop.f32.mrf.mxu3 }
 0x4da   :  { %v4108_v53 = vor.u32 1.1754944e-38, %v4107_v12  ;;  %v11410_v33 = vadd.f32 1.0, %v4174_v20  ;;  %v4213_v14 = vadd.f32 0.4994258, %v4212_v34  ;;  %v5270_v24 = vmul.f32 %v10156_v31, %v13307_v55 }
 0x4db   :  { %v4070_v17 = vmul.f32 %v4069_v2, %v11328_v58  ;;  %vm4106_vm3 = vcmp.eq.f32.partialorder %v4105_v54, 8.507059e+37  ;;  %v4138_v19 = vsub.f32 1.0, %v4137_v51  ;;  %v4251_v45 = vadd.f32 0.112945676, %v4250_v60  ;;  %v13309_v54 = vld [vmem:[#allocation29_spill] sm:$0xff] }
 0x4dc   :  { %v4109_v7 = vsel %vm4106_vm3, %v4108_v53, %v4104_v44  ;;  %v4123_v40 = vmul.f32 %v4122_v25, %v11156_v29  ;;  %v4160_v37 = vadd.f32 0.05243302, %v4159_v27  ;;  %v4198_v23 = vadd.f32 0.0036580483, %v4197_v4  ;;  %5523 = vmatmul.f32.gmra.mxu1 %v5270_v24 }
 0x4dd   :  { %v4237_v12 = vmul.f32 %v4236_v61, %v11318_v48  ;;  %v4252_v20 = vmul.f32 %v4251_v45, %v11318_v48  ;;  %v4287_v34 = vadd.f32 0.001143296, %v4286_v10  ;;  %v5271_v31 = vmul.f32 %v10169_v28, %v13308_v35 }
 0x4de   :  { %6151 = vrcp.f32 %v11410_v33  ;;  %v4214_v58 = vmul.f32 %v4213_v14, %v11274_v43  ;;  %v5272_v51 = vmul.f32 %v10184_v52, %v13309_v54  ;;  %v11425_v29 = vadd.f32 %v897_v16, %v6892_v6 }
 0x4df   :  { %v4085_v25 = vmul.f32 %v4084_v50, %v11096_v13  ;;  %v4139_v2 = vmul.f32 %v11365_v41, %v4138_v19  ;;  %v4288_v27 = vmul.f32 %v4287_v34, %v11391_v18  ;;  %5612 = vmatmul.f32.gmra.mxu2 %v5271_v31  ;;  %v11431_v4 = vadd.f32 %v986_v63, %v6894_v26 }
 0x4e0   :  { %v11434_v28 = vmul.f32 %v5103_v21, %v11153_v15  ;;  %v4124_v35 = vadd.f32 1.1283791, %v4123_v40  ;;  %v11437_v60 = vmul.f32 0.5, %v11263_v0  ;;  %v4253_v52 = vadd.f32 0.4994258, %v4252_v20  ;;  %5701 = vmatmul.f32.gmra.mxu3 %v5272_v51 }
 0x4e1   :  { %v4110_v44 = vmul.f32 %v4109_v7, %v4085_v25  ;;  %v4161_v13 = vmul.f32 %v4160_v37, %v11240_v8  ;;  %v4199_v50 = vmul.f32 %v4198_v23, %v11274_v43  ;;  %v4289_v61 = vadd.f32 0.014752088, %v4288_v27 }
 0x4e2   :  { %v5966_v10 = vclamps-f32 %v4070_v17, 1.0  ;;  %v11441_v53 = vadd.f32 1.0, %v4214_v58  ;;  %v4238_v14 = vadd.f32 0.0036580483, %v4237_v12  ;;  %v11444_v55 = vmul.f32 0.70710677, %v11425_v29 }
 0x4e3   :  { %v4140_v15 = vadd.f32 %v11365_v41, %v4139_v2  ;;  %vm4142_vm4 = vweird.f32 %v11365_v41  ;;  %v4290_v0 = vmul.f32 %v4289_v61, %v11391_v18  ;;  %v11450_v7 = vmul.f32 0.70710677, %v11431_v4 }
 0x4e4   :  { %v11452_v21 = vpop.eup %6151  ;;  %v4145_v24 = vand.u32 2147483647, %v11325_v3  ;;  %v4147_v17 = vand.u32 2147483648, %v11325_v3  ;;  %v4254_v19 = vmul.f32 %v4253_v52, %v11318_v48  ;;  %v4313_v45 = vmul.f32 %v11444_v55, %v11444_v55 }
 0x4e5   :  { %v5967_v16 = vclamps-f32 %v4110_v44, 1.0  ;;  %vm4141_vm5 = vweird.f32 %v11325_v3  ;;  %v4162_v40 = vadd.f32 0.18741608, %v4161_v13  ;;  %v4200_v37 = vadd.f32 0.05243302, %v4199_v50 }
 0x4e6   :  { %vm11460_vm6 = vmor %vm4141_vm5, %vm4142_vm4  ;;  %6153 = vrcp.f32 %v11441_v53  ;;  %v4239_v63 = vmul.f32 %v4238_v14, %v11318_v48  ;;  %v4275_v12 = vmul.f32 2.1237322e-06, %v11391_v18  ;;  %v4291_v20 = vadd.f32 0.112945676, %v4290_v0 }
 0x4e7   :  { %v4144_v34 = vsel %vm11460_vm6, %v11365_v41, %v4140_v15  ;;  %v4177_v3 = vmul.f32 %v11452_v21, %v11410_v33  ;;  %v11472_v31 = vmin.f32 %v4313_v45, 16.0  ;;  %v4353_v58 = vmul.f32 %v11450_v7, %v11450_v7  ;;  %v722_v45 = vpop.f32.mrf.mxu0 }
 0x4e8   :  { %v5104_v54 = vadd.f32 1.0, %v5966_v10  ;;  %v4148_v51 = vor.u32 1.1754944e-38, %v4147_v17  ;;  %v11476_v25 = vadd.f32 1.0, %v4254_v19  ;;  %v4292_v2 = vmul.f32 %v4291_v20, %v11391_v18 }
 0x4e9   :  { %vm4146_vm7 = vcmp.eq.f32.partialorder %v4145_v24, 8.507059e+37  ;;  %v4163_v27 = vmul.f32 %v4162_v40, %v11240_v8  ;;  %v4201_v52 = vmul.f32 %v4200_v37, %v11274_v43  ;;  %v4326_v41 = vmul.f32 3.8918573e-05, %v11472_v31 }
 0x4ea   :  { %v4149_v44 = vsel %vm4146_vm7, %v4148_v51, %v4144_v34  ;;  %v4240_v13 = vadd.f32 0.05243302, %v4239_v63  ;;  %v4276_v50 = vadd.f32 0.00028619796, %v4275_v12  ;;  %v11482_v61 = vmin.f32 %v4353_v58, 16.0 }
 0x4eb   :  { %v5105_v14 = vadd.f32 1.0, %v5967_v16  ;;  %v4125_v10 = vmul.f32 %v4124_v35, %v11119_v47  ;;  %v4178_v15 = vsub.f32 1.0, %v4177_v3  ;;  %v4327_v0 = vadd.f32 0.001143296, %v4326_v41 }
 0x4ec   :  { %v11485_v17 = vpop.eup %6153  ;;  %v11488_v24 = vmul.f32 %v5104_v54, %v11159_v32  ;;  %6155 = vrcp.f32 %v11476_v25  ;;  %v11492_v8 = vmul.f32 0.5, %v11331_v38  ;;  %v4293_v19 = vadd.f32 0.4994258, %v4292_v2 }
 0x4ed   :  { %v4150_v40 = vmul.f32 %v4149_v44, %v4125_v10  ;;  %v4164_v37 = vadd.f32 1.1283791, %v4163_v27  ;;  %v4185_v16 = vand.u32 2147483647, %v11410_v33  ;;  %v4202_v23 = vadd.f32 0.18741608, %v4201_v52 }
 0x4ee   :  { %v4241_v47 = vmul.f32 %v4240_v13, %v11318_v48  ;;  %v4277_v35 = vmul.f32 %v4276_v50, %v11391_v18  ;;  %v4328_v63 = vmul.f32 %v4327_v0, %v11472_v31  ;;  %v4366_v32 = vmul.f32 3.8918573e-05, %v11482_v61 }
 0x4ef   :  { %v11500_v12 = vmul.f32 %v5105_v14, %v11209_v57  ;;  %v4179_v38 = vmul.f32 %v11452_v21, %v4178_v15  ;;  %v4217_v20 = vmul.f32 %v11485_v17, %v11441_v53  ;;  %v11506_v34 = vadd.f32 %v722_v45, %v6844_v56  ;;  %v811_v14 = vpop.f32.mrf.mxu1 }
 0x4f0   :  { %v4187_v3 = vand.u32 2147483648, %v11410_v33  ;;  %v4294_v58 = vmul.f32 %v4293_v19, %v11391_v18  ;;  %v4315_v54 = vmul.f32 2.1237322e-06, %v11472_v31  ;;  %v4367_v51 = vadd.f32 0.001143296, %v4366_v32 }
 0x4f1   :  { %v5968_v2 = vclamps-f32 %v4150_v40, 1.0  ;;  %v4165_v27 = vmul.f32 %v4164_v37, %v11212_v36  ;;  %vm4181_vm8 = vweird.f32 %v11410_v33  ;;  %v4203_v57 = vmul.f32 %v4202_v23, %v11274_v43 }
 0x4f2   :  { %v11514_v52 = vpop.eup %6155  ;;  %vm4182_vm9 = vweird.f32 %v11452_v21  ;;  %vm11517_vm10 = vcmp.eq.f32.partialorder %v4185_v16, 8.507059e+37  ;;  %v4242_v44 = vadd.f32 0.18741608, %v4241_v47  ;;  %v4278_v13 = vadd.f32 0.0036580483, %v4277_v35 }
 0x4f3   :  { %v4329_v50 = vadd.f32 0.014752088, %v4328_v63  ;;  %v4180_v10 = vadd.f32 %v11452_v21, %v4179_v38  ;;  %v4218_v15 = vsub.f32 1.0, %v4217_v20  ;;  %v4368_v36 = vmul.f32 %v4367_v51, %v11482_v61  ;;  %vm11540_vm11 = vmor %vm4181_vm8, %vm4182_vm9 }
 0x4f4   :  { %v11524_v0 = vmul.f32 0.70710677, %v11506_v34  ;;  %v4188_v43 = vor.u32 1.1754944e-38, %v4187_v3  ;;  %v11526_v19 = vadd.f32 1.0, %v4294_v58  ;;  %v4316_v45 = vadd.f32 0.00028619796, %v4315_v54 }
 0x4f5   :  { %v4355_v40 = vmul.f32 2.1237322e-06, %v11482_v61  ;;  %v4204_v37 = vadd.f32 1.1283791, %v4203_v57  ;;  %v4257_v16 = vmul.f32 %v11514_v52, %v11476_v25  ;;  %v11534_v47 = vadd.f32 %v811_v14, %v6846_v62 }
 0x4f6   :  { %v4393_v23 = vmul.f32 %v11524_v0, %v11524_v0  ;;  %v5106_v35 = vadd.f32 1.0, %v5968_v2  ;;  %v4243_v32 = vmul.f32 %v4242_v44, %v11318_v48  ;;  %v4330_v38 = vmul.f32 %v4329_v50, %v11472_v31 }
 0x4f7   :  { %v4369_v20 = vadd.f32 0.014752088, %v4368_v36  ;;  %v4184_v3 = vsel %vm11540_vm11, %v11452_v21, %v4180_v10  ;;  %v4219_v58 = vmul.f32 %v11485_v17, %v4218_v15  ;;  %v4279_v54 = vmul.f32 %v4278_v13, %v11391_v18 }
 0x4f8   :  { %v11551_v51 = vmin.f32 %v4393_v23, 16.0  ;;  %6157 = vrcp.f32 %v11526_v19  ;;  %v4317_v33 = vmul.f32 %v4316_v45, %v11472_v31  ;;  %v4356_v2 = vadd.f32 0.00028619796, %v4355_v40 }
 0x4f9   :  { %v11556_v48 = vmul.f32 0.70710677, %v11534_v47  ;;  %v4205_v57 = vmul.f32 %v4204_v37, %v11236_v42  ;;  %v4225_v44 = vand.u32 2147483647, %v11441_v53  ;;  %v4227_v21 = vand.u32 2147483648, %v11441_v53 }
 0x4fa   :  { %v4258_v50 = vsub.f32 1.0, %v4257_v16  ;;  %vm4221_vm12 = vweird.f32 %v11441_v53  ;;  %v4244_v13 = vadd.f32 1.1283791, %v4243_v32  ;;  %v4331_v14 = vadd.f32 0.112945676, %v4330_v38 }
 0x4fb   :  { %v4370_v10 = vmul.f32 %v4369_v20, %v11482_v61  ;;  %v4189_v15 = vsel %vm11517_vm10, %v4188_v43, %v4184_v3  ;;  %vm4222_vm13 = vweird.f32 %v11485_v17  ;;  %v4280_v36 = vadd.f32 0.05243302, %v4279_v54 }
 0x4fc   :  { %v4406_v45 = vmul.f32 3.8918573e-05, %v11551_v51  ;;  %v4220_v42 = vadd.f32 %v11485_v17, %v4219_v58  ;;  %v4318_v40 = vadd.f32 0.0036580483, %v4317_v33  ;;  %v4357_v37 = vmul.f32 %v4356_v2, %v11482_v61  ;;  %vm11587_vm15 = vmor %vm4221_vm12, %vm4222_vm13 }
 0x4fd   :  { %v4433_v16 = vmul.f32 %v11556_v48, %v11556_v48  ;;  %v11572_v23 = vmul.f32 %v5106_v35, %v11271_v46  ;;  %vm11574_vm14 = vcmp.eq.f32.partialorder %v4225_v44, 8.507059e+37  ;;  %v4228_v41 = vor.u32 1.1754944e-38, %v4227_v21 }
 0x4fe   :  { %v4259_v43 = vmul.f32 %v11514_v52, %v4258_v50  ;;  %v11579_v32 = vpop.eup %6157  ;;  %v4245_v38 = vmul.f32 %v4244_v13, %v11282_v30  ;;  %v4332_v20 = vmul.f32 %v4331_v14, %v11472_v31  ;;  %v4371_v3 = vadd.f32 0.112945676, %v4370_v10 }
 0x4ff   :  { %v4407_v58 = vadd.f32 0.001143296, %v4406_v45  ;;  %v4190_v54 = vmul.f32 %v4189_v15, %v4165_v27  ;;  %v4281_v35 = vmul.f32 %v4280_v36, %v11391_v18  ;;  %v11593_v33 = vmul.f32 0.5, %v11425_v29  ;;  %v13320_v36 = vld [vmem:[#allocation30_spill] sm:$0xff] }
 0x500   :  { %v11596_v30 = vmul.f32 0.5, %v11431_v4  ;;  %v4224_v27 = vsel %vm11587_vm15, %v11485_v17, %v4220_v42  ;;  %v4319_v2 = vmul.f32 %v4318_v40, %v11472_v31  ;;  %v4358_v44 = vadd.f32 0.0036580483, %v4357_v37 }
 0x501   :  { %v11602_v53 = vmin.f32 %v4433_v16, 16.0  ;;  %v4260_v21 = vadd.f32 %v11514_v52, %v4259_v43  ;;  %vm4262_vm0 = vweird.f32 %v11514_v52  ;;  %v4297_v29 = vmul.f32 %v11579_v32, %v11526_v19 }
 0x502   :  { %v4408_v50 = vmul.f32 %v4407_v58, %v11551_v51  ;;  %v4265_v4 = vand.u32 2147483647, %v11476_v25  ;;  %v4267_v13 = vand.u32 2147483648, %v11476_v25  ;;  %v4333_v14 = vadd.f32 0.4994258, %v4332_v20 }
 0x503   :  { %v4372_v17 = vmul.f32 %v4371_v3, %v11482_v61  ;;  %vm4261_vm1 = vweird.f32 %v11476_v25  ;;  %v4282_v10 = vadd.f32 0.18741608, %v4281_v35  ;;  %v5273_v45 = vmul.f32 %v10194_v1, %v13320_v36 }
 0x504   :  { %v4409_v15 = vadd.f32 0.014752088, %v4408_v50  ;;  %v4229_v42 = vsel %vm11574_vm14, %v4228_v41, %v4224_v27  ;;  %vm11617_vm2 = vmor %vm4261_vm1, %vm4262_vm0  ;;  %v4320_v37 = vadd.f32 0.05243302, %v4319_v2  ;;  %v4359_v16 = vmul.f32 %v4358_v44, %v11482_v61 }
 0x505   :  { %v4446_v43 = vmul.f32 3.8918573e-05, %v11602_v53  ;;  %v5969_v20 = vclamps-f32 %v4190_v54, 1.0  ;;  %v4264_v25 = vsel %vm11617_vm2, %v11514_v52, %v4260_v21  ;;  %v4298_v3 = vsub.f32 1.0, %v4297_v29  ;;  %5437 = vmatmul.f32.gmra.mxu0 %v5273_v45  ;;  %v13326_v45 = vld [vmem:[#allocation33_spill] sm:$0xff] }
 0x506   :  { %v4410_v1 = vmul.f32 %v4409_v15, %v11551_v51  ;;  %vm4266_vm3 = vcmp.eq.f32.partialorder %v4265_v4, 8.507059e+37  ;;  %v4268_v63 = vor.u32 1.1754944e-38, %v4267_v13  ;;  %v4334_v41 = vmul.f32 %v4333_v14, %v11472_v31  ;;  %v13323_v4 = vld [vmem:[#allocation31_spill] sm:$0xff]  ;;  %v13325_v14 = vld [vmem:[#allocation32_spill] sm:$0xff] }
 0x507   :  { %v4373_v58 = vadd.f32 0.4994258, %v4372_v17  ;;  %v4230_v46 = vmul.f32 %v4229_v42, %v4205_v57  ;;  %v4283_v35 = vmul.f32 %v4282_v10, %v11391_v18  ;;  %v4395_v27 = vmul.f32 2.1237322e-06, %v11551_v51  ;;  %v13324_v13 = vld [vmem:[#allocation79_spill] sm:$0xff]  ;;  %v900_v17 = vpop.f32.mrf.mxu2 }
 0x508   :  { %v4411_v2 = vadd.f32 0.112945676, %v4410_v1  ;;  %v4269_v54 = vsel %vm4266_vm3, %v4268_v63, %v4264_v25  ;;  %v4321_v44 = vmul.f32 %v4320_v37, %v11472_v31  ;;  %v4360_v50 = vadd.f32 0.05243302, %v4359_v16 }
 0x509   :  { %v4447_v52 = vadd.f32 0.001143296, %v4446_v43  ;;  %v4299_v21 = vmul.f32 %v11579_v32, %v4298_v3  ;;  %v5274_v15 = vmul.f32 %v13324_v13, %v13323_v4  ;;  %v5275_v57 = vmul.f32 %v10338_v11, %v13325_v14 }
 0x50a   :  { %v4412_v29 = vmul.f32 %v4411_v2, %v11551_v51  ;;  %v11637_v18 = vadd.f32 1.0, %v4334_v41  ;;  %v4374_v10 = vmul.f32 %v4373_v58, %v11482_v61  ;;  %v5276_v42 = vmul.f32 %v10347_v59, %v13326_v45 }
 0x50b   :  { %v4448_v36 = vmul.f32 %v4447_v52, %v11602_v53  ;;  %v5107_v40 = vadd.f32 1.0, %v5969_v20  ;;  %v5970_v37 = vclamps-f32 %v4230_v46, 1.0  ;;  %v4396_v16 = vadd.f32 0.00028619796, %v4395_v27  ;;  %5526 = vmatmul.f32.gmra.mxu1 %v5274_v15  ;;  %5615 = vmatmul.f32.gmra.mxu2 %v5275_v57  ;;  %v989_v46 = vpop.f32.mrf.mxu3 }
 0x50c   :  { %v4413_v43 = vadd.f32 0.4994258, %v4412_v29  ;;  %v4270_v25 = vmul.f32 %v4269_v54, %v4245_v38  ;;  %v4284_v3 = vadd.f32 1.1283791, %v4283_v35  ;;  %5704 = vmatmul.f32.gmra.mxu3 %v5276_v42  ;;  %v11644_v11 = vadd.f32 %v900_v17, %v6892_v6 }
 0x50d   :  { %v4449_v1 = vadd.f32 0.014752088, %v4448_v36  ;;  %vm4302_vm4 = vweird.f32 %v11579_v32  ;;  %v4322_v63 = vadd.f32 0.18741608, %v4321_v44  ;;  %v4361_v41 = vmul.f32 %v4360_v50, %v11482_v61 }
 0x50e   :  { %v4414_v59 = vmul.f32 %v4413_v43, %v11551_v51  ;;  %v4300_v20 = vadd.f32 %v11579_v32, %v4299_v21  ;;  %6159 = vrcp.f32 %v11637_v18  ;;  %v11651_v58 = vadd.f32 1.0, %v4374_v10 }
 0x50f   :  { %v4450_v38 = vmul.f32 %v4449_v1, %v11602_v53  ;;  %v4305_v35 = vand.u32 2147483647, %v11526_v19  ;;  %v4397_v27 = vmul.f32 %v4396_v16, %v11551_v51  ;;  %v4435_v54 = vmul.f32 2.1237322e-06, %v11602_v53 }
 0x510   :  { %v11656_v2 = vadd.f32 1.0, %v4414_v59  ;;  %vm4301_vm5 = vweird.f32 %v11526_v19  ;;  %v4307_v44 = vand.u32 2147483648, %v11526_v19  ;;  %v11662_v52 = vmul.f32 0.70710677, %v11644_v11 }
 0x511   :  { %v4451_v50 = vadd.f32 0.112945676, %v4450_v38  ;;  %v11665_v21 = vmul.f32 %v5107_v40, %v11377_v5  ;;  %v5971_v29 = vclamps-f32 %v4270_v25, 1.0  ;;  %vm11669_vm6 = vmor %vm4301_vm5, %vm4302_vm4  ;;  %v4323_v13 = vmul.f32 %v4322_v63, %v11472_v31  ;;  %v725_v31 = vpop.f32.mrf.mxu0 }
 0x512   :  { %v11675_v15 = vadd.f32 %v989_v46, %v6894_v26  ;;  %v4304_v19 = vsel %vm11669_vm6, %v11579_v32, %v4300_v20  ;;  %v4362_v14 = vadd.f32 0.18741608, %v4361_v41  ;;  %6161 = vrcp.f32 %v11651_v58 }
 0x513   :  { %v4452_v5 = vmul.f32 %v4451_v50, %v11602_v53  ;;  %v4398_v57 = vadd.f32 0.0036580483, %v4397_v27  ;;  %6163 = vrcp.f32 %v11656_v2  ;;  %v4436_v17 = vadd.f32 0.00028619796, %v4435_v54 }
 0x514   :  { %v4473_v10 = vmul.f32 %v11662_v52, %v11662_v52  ;;  %v11685_v36 = vpop.eup %6159  ;;  %v5108_v45 = vadd.f32 1.0, %v5970_v37  ;;  %v4285_v42 = vmul.f32 %v4284_v3, %v11345_v22  ;;  %vm4306_vm7 = vcmp.eq.f32.partialorder %v4305_v35, 8.507059e+37 }
 0x515   :  { %v4308_v32 = vor.u32 1.1754944e-38, %v4307_v44  ;;  %v5109_v40 = vadd.f32 1.0, %v5971_v29  ;;  %v4453_v16 = vadd.f32 0.4994258, %v4452_v5  ;;  %v11691_v25 = vmul.f32 0.70710677, %v11675_v15 }
 0x516   :  { %v11688_v43 = vmin.f32 %v4473_v10, 16.0  ;;  %v4324_v63 = vadd.f32 1.1283791, %v4323_v13  ;;  %v4363_v41 = vmul.f32 %v4362_v14, %v11482_v61  ;;  %v11695_v59 = vadd.f32 %v725_v31, %v6844_v56 }
 0x517   :  { %v4309_v1 = vsel %vm4306_vm7, %v4308_v32, %v4304_v19  ;;  %v4337_v37 = vmul.f32 %v11685_v36, %v11637_v18  ;;  %v4399_v22 = vmul.f32 %v4398_v57, %v11551_v51  ;;  %v4437_v3 = vmul.f32 %v4436_v17, %v11602_v53 }
 0x518   :  { %v4486_v20 = vmul.f32 3.8918573e-05, %v11688_v43  ;;  %v11702_v38 = vpop.eup %6161  ;;  %v11705_v46 = vmul.f32 %v5108_v45, %v11380_v49  ;;  %v11708_v35 = vmul.f32 0.5, %v11506_v34  ;;  %v11711_v61 = vmul.f32 0.5, %v11534_v47 }
 0x519   :  { %v4513_v27 = vmul.f32 %v11691_v25, %v11691_v25  ;;  %v11715_v54 = vpop.eup %6163  ;;  %v11718_v44 = vmul.f32 %v5109_v40, %v11437_v60  ;;  %v4347_v50 = vand.u32 2147483648, %v11637_v18  ;;  %v4454_v29 = vmul.f32 %v4453_v16, %v11602_v53 }
 0x51a   :  { %13329 = vst [vmem:[#allocation98_spill] sm:$0xff] %v11705_v46  ;;  %v4487_v49 = vadd.f32 0.001143296, %v4486_v20  ;;  %v4310_v4 = vmul.f32 %v4309_v1, %v4285_v42  ;;  %v4364_v13 = vadd.f32 1.1283791, %v4363_v41  ;;  %v11728_v19 = vmul.f32 %v4324_v63, %v11444_v55  ;;  %v814_v41 = vpop.f32.mrf.mxu1 }
 0x51b   :  { %13330 = vst [vmem:[#allocation127_spill] sm:$0xff] %v11718_v44  ;;  %v11722_v34 = vmin.f32 %v4513_v27, 16.0  ;;  %v11725_v47 = vmul.f32 0.70710677, %v11695_v59  ;;  %v4338_v14 = vsub.f32 1.0, %v4337_v37  ;;  %v4377_v60 = vmul.f32 %v11702_v38, %v11651_v58 }
 0x51c   :  { %v4400_v5 = vadd.f32 0.05243302, %v4399_v22  ;;  %v4438_v57 = vadd.f32 0.0036580483, %v4437_v3  ;;  %v4417_v17 = vmul.f32 %v11715_v54, %v11656_v2  ;;  %v4475_v10 = vmul.f32 2.1237322e-06, %v11688_v43 }
 0x51d   :  { %v4488_v31 = vmul.f32 %v4487_v49, %v11688_v43  ;;  %vm4341_vm8 = vweird.f32 %v11637_v18  ;;  %v4345_v45 = vand.u32 2147483647, %v11637_v18  ;;  %v11738_v42 = vadd.f32 1.0, %v4454_v29 }
 0x51e   :  { %v4526_v55 = vmul.f32 3.8918573e-05, %v11722_v34  ;;  %v4553_v32 = vmul.f32 %v11725_v47, %v11725_v47  ;;  %v5972_v40 = vclamps-f32 %v4310_v4, 1.0  ;;  %v4348_v16 = vor.u32 1.1754944e-38, %v4347_v50 }
 0x51f   :  { %v11744_v1 = vmul.f32 %v4364_v13, %v11450_v7  ;;  %v4489_v63 = vadd.f32 0.014752088, %v4488_v31  ;;  %v4339_v37 = vmul.f32 %v11685_v36, %v4338_v14  ;;  %v4401_v22 = vmul.f32 %v4400_v5, %v11551_v51 }
 0x520   :  { %v4439_v3 = vmul.f32 %v4438_v57, %v11602_v53  ;;  %v4527_v20 = vadd.f32 0.001143296, %v4526_v55  ;;  %v4378_v27 = vsub.f32 1.0, %v4377_v60  ;;  %v4418_v29 = vsub.f32 1.0, %v4417_v17 }
 0x521   :  { %v4476_v49 = vadd.f32 0.00028619796, %v4475_v10  ;;  %v4490_v44 = vmul.f32 %v4489_v63, %v11688_v43  ;;  %vm11750_vm9 = vcmp.eq.f32.partialorder %v4345_v45, 8.507059e+37  ;;  %6165 = vrcp.f32 %v11738_v42 }
 0x522   :  { %v4528_v7 = vmul.f32 %v4527_v20, %v11722_v34  ;;  %v11756_v50 = vmin.f32 %v4553_v32, 16.0  ;;  %v11759_v13 = vadd.f32 %v814_v41, %v6846_v62  ;;  %v5110_v14 = vadd.f32 1.0, %v5972_v40 }
 0x523   :  { %vm4342_vm10 = vweird.f32 %v11685_v36  ;;  %vm4381_vm11 = vweird.f32 %v11651_v58  ;;  %v4385_v5 = vand.u32 2147483647, %v11651_v58  ;;  %v4387_v57 = vand.u32 2147483648, %v11651_v58 }
 0x524   :  { %v4340_v60 = vadd.f32 %v11685_v36, %v4339_v37  ;;  %v4440_v17 = vadd.f32 0.05243302, %v4439_v3  ;;  %v4491_v10 = vadd.f32 0.112945676, %v4490_v44  ;;  %v4529_v31 = vadd.f32 0.014752088, %v4528_v7  ;;  %vm11782_vm12 = vmor %vm4341_vm8, %vm4342_vm10 }
 0x525   :  { %v4379_v45 = vmul.f32 %v11702_v38, %v4378_v27  ;;  %v4402_v55 = vadd.f32 0.18741608, %v4401_v22  ;;  %v4419_v32 = vmul.f32 %v11715_v54, %v4418_v29  ;;  %v4477_v40 = vmul.f32 %v4476_v49, %v11688_v43  ;;  %v13338_v7 = vld [vmem:[#allocation34_spill] sm:$0xff] }
 0x526   :  { %v4492_v63 = vmul.f32 %v4491_v10, %v11688_v43  ;;  %v4530_v41 = vmul.f32 %v4529_v31, %v11722_v34  ;;  %v4566_v20 = vmul.f32 3.8918573e-05, %v11756_v50  ;;  %v11773_v46 = vmul.f32 0.70710677, %v11759_v13 }
 0x527   :  { %v11776_v37 = vmul.f32 %v5110_v14, %v11492_v8  ;;  %vm4382_vm13 = vweird.f32 %v11702_v38  ;;  %v4388_v22 = vor.u32 1.1754944e-38, %v4387_v57  ;;  %v4515_v3 = vmul.f32 2.1237322e-06, %v11722_v34  ;;  %v11788_v27 = vpop.eup %6165  ;;  %v13339_v14 = vld [vmem:[#allocation89_spill] sm:$0xff] }
 0x528   :  { %v4344_v8 = vsel %vm11782_vm12, %v11685_v36, %v4340_v60  ;;  %vm11793_vm14 = vcmp.eq.f32.partialorder %v4385_v5, 8.507059e+37  ;;  %v4441_v18 = vmul.f32 %v4440_v17, %v11602_v53  ;;  %v4531_v49 = vadd.f32 0.112945676, %v4530_v41  ;;  %vm11815_vm0 = vmor %vm4381_vm11, %vm4382_vm13 }
 0x529   :  { %13333 = vst [vmem:[#allocation99_spill] sm:$0xff] %v11776_v37  ;;  %v5277_v10 = vmul.f32 %v13339_v14, %v13338_v7  ;;  %v4380_v57 = vadd.f32 %v11702_v38, %v4379_v45  ;;  %v4403_v31 = vmul.f32 %v4402_v55, %v11551_v51  ;;  %vm4422_vm15 = vweird.f32 %v11715_v54 }
 0x52a   :  { %v4478_v37 = vadd.f32 0.0036580483, %v4477_v40  ;;  %v4420_v44 = vadd.f32 %v11715_v54, %v4419_v32  ;;  %v4493_v36 = vadd.f32 0.4994258, %v4492_v63  ;;  %v4567_v5 = vadd.f32 0.001143296, %v4566_v20 }
 0x52b   :  { %v4593_v60 = vmul.f32 %v11773_v46, %v11773_v46  ;;  %5440 = vmatmul.f32.gmra.mxu0 %v5277_v10  ;;  %v4349_v17 = vsel %vm11750_vm9, %v4348_v16, %v4344_v8  ;;  %v4427_v41 = vand.u32 2147483648, %v11656_v2  ;;  %v4457_v45 = vmul.f32 %v11788_v27, %v11738_v42 }
 0x52c   :  { %v4516_v51 = vadd.f32 0.00028619796, %v4515_v3  ;;  %vm4421_vm1 = vweird.f32 %v11656_v2  ;;  %v4425_v32 = vand.u32 2147483647, %v11656_v2  ;;  %v4442_v4 = vadd.f32 0.18741608, %v4441_v18 }
 0x52d   :  { %v4532_v16 = vmul.f32 %v4531_v49, %v11722_v34  ;;  %v4404_v40 = vadd.f32 1.1283791, %v4403_v31  ;;  %vm11824_vm2 = vmor %vm4421_vm1, %vm4422_vm15  ;;  %v11829_v58 = vmul.f32 0.5, %v11644_v11  ;;  %v4479_v20 = vmul.f32 %v4478_v37, %v11688_v43 }
 0x52e   :  { %v4568_v3 = vmul.f32 %v4567_v5, %v11756_v50  ;;  %v4384_v2 = vsel %vm11815_vm0, %v11702_v38, %v4380_v57  ;;  %v4424_v8 = vsel %vm11824_vm2, %v11715_v54, %v4420_v44  ;;  %v4494_v18 = vmul.f32 %v4493_v36, %v11688_v43 }
 0x52f   :  { %v11840_v49 = vmin.f32 %v4593_v60, 16.0  ;;  %v11843_v7 = vmul.f32 %v4349_v17, %v11728_v19  ;;  %v4428_v11 = vor.u32 1.1754944e-38, %v4427_v41  ;;  %v4458_v14 = vsub.f32 1.0, %v4457_v45  ;;  %v13344_v17 = vld [vmem:[#allocation19_spill] sm:$0xff]  ;;  %v13345_v41 = vld [vmem:[#allocation120_spill] sm:$0xff] }
 0x530   :  { %v4517_v37 = vmul.f32 %v4516_v51, %v11722_v34  ;;  %vm4426_vm3 = vcmp.eq.f32.partialorder %v4425_v32, 8.507059e+37  ;;  %v4443_v10 = vmul.f32 %v4442_v4, %v11602_v53  ;;  %v4533_v31 = vadd.f32 0.4994258, %v4532_v16 }
 0x531   :  { %v4569_v38 = vadd.f32 0.014752088, %v4568_v3  ;;  %v4389_v57 = vsel %vm11793_vm14, %v4388_v22, %v4384_v2  ;;  %v4429_v54 = vsel %vm4426_vm3, %v4428_v11, %v4424_v8  ;;  %v4480_v44 = vadd.f32 0.05243302, %v4479_v20  ;;  %v903_v8 = vpop.f32.mrf.mxu2 }
 0x532   :  { %v4555_v36 = vmul.f32 2.1237322e-06, %v11756_v50  ;;  %v11850_v5 = vadd.f32 1.0, %v4494_v18  ;;  %v4606_v60 = vmul.f32 3.8918573e-05, %v11840_v49  ;;  %v5278_v45 = vmul.f32 %v13345_v41, %v13344_v17 }
 0x533   :  { %v4570_v19 = vmul.f32 %v4569_v38, %v11756_v50  ;;  %v5973_v53 = vclamps-f32 %v11843_v7, 1.0  ;;  %v4405_v51 = vmul.f32 %v4404_v40, %v11524_v0  ;;  %v4459_v29 = vmul.f32 %v11788_v27, %v4458_v14  ;;  %v13346_v14 = vld [vmem:[#allocation35_spill] sm:$0xff]  ;;  %v13347_v38 = vld [vmem:[#allocation118_spill] sm:$0xff] }
 0x534   :  { %v4518_v22 = vadd.f32 0.0036580483, %v4517_v37  ;;  %v4390_v55 = vmul.f32 %v4389_v57, %v11744_v1  ;;  %v4444_v32 = vadd.f32 1.1283791, %v4443_v10  ;;  %v4534_v4 = vmul.f32 %v4533_v31, %v11722_v34  ;;  %5529 = vmatmul.f32.gmra.mxu1 %v5278_v45  ;;  %v992_v1 = vpop.f32.mrf.mxu3  ;;  %v13348_v57 = vld [vmem:[#allocation90_spill] sm:$0xff] }
 0x535   :  { %v4571_v16 = vadd.f32 0.112945676, %v4570_v19  ;;  %v4430_v63 = vmul.f32 %v4429_v54, %v4405_v51  ;;  %v4467_v20 = vand.u32 2147483648, %v11738_v42  ;;  %v4556_v3 = vadd.f32 0.00028619796, %v4555_v36 }
 0x536   :  { %v4607_v2 = vadd.f32 0.001143296, %v4606_v60  ;;  %vm4462_vm4 = vweird.f32 %v11788_v27  ;;  %v4481_v0 = vmul.f32 %v4480_v44, %v11688_v43  ;;  %6167 = vrcp.f32 %v11850_v5 }
 0x537   :  { %v4572_v40 = vmul.f32 %v4571_v16, %v11756_v50  ;;  %v4460_v18 = vadd.f32 %v11788_v27, %v4459_v29  ;;  %v4519_v7 = vmul.f32 %v4518_v22, %v11722_v34  ;;  %v5279_v37 = vmul.f32 %v10552_v39, %v13346_v14 }
 0x538   :  { %v4608_v11 = vmul.f32 %v4607_v2, %v11840_v49  ;;  %v11871_v10 = vadd.f32 1.0, %v4534_v4  ;;  %v5280_v54 = vmul.f32 %v13348_v57, %v13347_v38  ;;  %v11876_v44 = vadd.f32 %v903_v8, %v6892_v6 }
 0x539   :  { %v4573_v31 = vadd.f32 0.4994258, %v4572_v40  ;;  %v4557_v36 = vmul.f32 %v4556_v3, %v11756_v50  ;;  %v4595_v19 = vmul.f32 2.1237322e-06, %v11840_v49  ;;  %5618 = vmatmul.f32.gmra.mxu2 %v5279_v37  ;;  %v11881_v17 = vadd.f32 %v992_v1, %v6894_v26 }
 0x53a   :  { %v4609_v60 = vadd.f32 0.014752088, %v4608_v11  ;;  %v5974_v41 = vclamps-f32 %v4390_v55, 1.0  ;;  %vm4461_vm5 = vweird.f32 %v11738_v42  ;;  %v4465_v39 = vand.u32 2147483647, %v11738_v42  ;;  %5707 = vmatmul.f32.gmra.mxu3 %v5280_v54 }
 0x53b   :  { %v4574_v45 = vmul.f32 %v4573_v31, %v11756_v50  ;;  %vm11888_vm6 = vmor %vm4461_vm5, %vm4462_vm4  ;;  %v4468_v29 = vor.u32 1.1754944e-38, %v4467_v20  ;;  %v4482_v22 = vadd.f32 0.18741608, %v4481_v0  ;;  %v11894_v16 = vmul.f32 0.70710677, %v11876_v44 }
 0x53c   :  { %v4610_v4 = vmul.f32 %v4609_v60, %v11840_v49  ;;  %v11896_v55 = vpop.eup %6167  ;;  %v4464_v42 = vsel %vm11888_vm6, %v11788_v27, %v4460_v18  ;;  %v4520_v3 = vadd.f32 0.05243302, %v4519_v7  ;;  %6169 = vrcp.f32 %v11871_v10 }
 0x53d   :  { %v11903_v2 = vmul.f32 0.70710677, %v11881_v17  ;;  %v5975_v8 = vclamps-f32 %v4430_v63, 1.0  ;;  %v4558_v20 = vadd.f32 0.0036580483, %v4557_v36  ;;  %v4633_v40 = vmul.f32 %v11894_v16, %v11894_v16 }
 0x53e   :  { %v4596_v0 = vadd.f32 0.00028619796, %v4595_v19  ;;  %v5111_v1 = vadd.f32 1.0, %v5973_v53  ;;  %vm4466_vm7 = vcmp.eq.f32.partialorder %v4465_v39, 8.507059e+37  ;;  %v11907_v11 = vadd.f32 1.0, %v4574_v45 }
 0x53f   :  { %v4611_v14 = vadd.f32 0.112945676, %v4610_v4  ;;  %v4445_v37 = vmul.f32 %v4444_v32, %v11556_v48  ;;  %v4469_v27 = vsel %vm4466_vm7, %v4468_v29, %v4464_v42  ;;  %v4483_v18 = vmul.f32 %v4482_v22, %v11688_v43 }
 0x540   :  { %v4497_v7 = vmul.f32 %v11896_v55, %v11850_v5  ;;  %v5112_v31 = vadd.f32 1.0, %v5974_v41  ;;  %v4521_v63 = vmul.f32 %v4520_v3, %v11722_v34  ;;  %v11914_v38 = vmin.f32 %v4633_v40, 16.0 }
 0x541   :  { %v4673_v53 = vmul.f32 %v11903_v2, %v11903_v2  ;;  %v5113_v57 = vadd.f32 1.0, %v5975_v8  ;;  %v11919_v54 = vmul.f32 0.5, %v11675_v15  ;;  %v4559_v48 = vmul.f32 %v4558_v20, %v11756_v50  ;;  %v728_v20 = vpop.f32.mrf.mxu0 }
 0x542   :  { %v4597_v32 = vmul.f32 %v4596_v0, %v11840_v49  ;;  %v11923_v43 = vpop.eup %6169  ;;  %v4470_v36 = vmul.f32 %v4469_v27, %v4445_v37  ;;  %6171 = vrcp.f32 %v11907_v11  ;;  %v4612_v19 = vmul.f32 %v4611_v14, %v11840_v49 }
 0x543   :  { %v4646_v60 = vmul.f32 3.8918573e-05, %v11914_v38  ;;  %v11929_v41 = vmul.f32 %v5111_v1, %v11593_v33  ;;  %v4484_v39 = vadd.f32 1.1283791, %v4483_v18  ;;  %v4498_v45 = vsub.f32 1.0, %v4497_v7 }
 0x544   :  { %v11931_v15 = vmin.f32 %v4673_v53, 16.0  ;;  %v11934_v51 = vmul.f32 %v5112_v31, %v11596_v30  ;;  %v4522_v29 = vadd.f32 0.18741608, %v4521_v63  ;;  %v11937_v22 = vmul.f32 0.5, %v11695_v59 }
 0x545   :  { %v4647_v4 = vadd.f32 0.001143296, %v4646_v60  ;;  %v11940_v42 = vmul.f32 %v5113_v57, %v11708_v35  ;;  %v4537_v3 = vmul.f32 %v11923_v43, %v11871_v10  ;;  %v11945_v33 = vmul.f32 0.5, %v11759_v13 }
 0x546   :  { %v4598_v8 = vadd.f32 0.0036580483, %v4597_v32  ;;  %v5976_v0 = vclamps-f32 %v4470_v36, 1.0  ;;  %v4560_v40 = vadd.f32 0.05243302, %v4559_v48  ;;  %v4485_v59 = vmul.f32 %v4484_v39, %v11662_v52 }
 0x547   :  { %v4613_v30 = vadd.f32 0.4994258, %v4612_v19  ;;  %v4648_v1 = vmul.f32 %v4647_v4, %v11914_v38  ;;  %v4499_v14 = vmul.f32 %v11896_v55, %v4498_v45  ;;  %vm4501_vm8 = vweird.f32 %v11850_v5 }
 0x548   :  { %v4686_v35 = vmul.f32 3.8918573e-05, %v11931_v15  ;;  %v11952_v37 = vpop.eup %6171  ;;  %v4505_v13 = vand.u32 2147483647, %v11850_v5  ;;  %v4507_v27 = vand.u32 2147483648, %v11850_v5  ;;  %v4523_v18 = vmul.f32 %v4522_v29, %v11722_v34 }
 0x549   :  { %v11958_v7 = vadd.f32 %v728_v20, %v6844_v56  ;;  %v4538_v31 = vsub.f32 1.0, %v4537_v3  ;;  %v4599_v52 = vmul.f32 %v4598_v8, %v11840_v49  ;;  %v4635_v63 = vmul.f32 2.1237322e-06, %v11914_v38 }
 0x54a   :  { %v4649_v53 = vadd.f32 0.014752088, %v4648_v1  ;;  %v5114_v57 = vadd.f32 1.0, %v5976_v0  ;;  %v4561_v48 = vmul.f32 %v4560_v40, %v11756_v50  ;;  %v4614_v32 = vmul.f32 %v4613_v30, %v11840_v49 }
 0x54b   :  { %v4687_v36 = vadd.f32 0.001143296, %v4686_v35  ;;  %v4500_v19 = vadd.f32 %v11896_v55, %v4499_v14  ;;  %vm4502_vm9 = vweird.f32 %v11896_v55  ;;  %v4577_v34 = vmul.f32 %v11952_v37, %v11907_v11 }
 0x54c   :  { %v4650_v60 = vmul.f32 %v4649_v53, %v11914_v38  ;;  %vm11969_vm10 = vcmp.eq.f32.partialorder %v4505_v13, 8.507059e+37  ;;  %v4508_v45 = vor.u32 1.1754944e-38, %v4507_v27  ;;  %v11975_v4 = vmul.f32 0.70710677, %v11958_v7  ;;  %vm11980_vm11 = vmor %vm4501_vm8, %vm4502_vm9 }
 0x54d   :  { %v4688_v29 = vmul.f32 %v4687_v36, %v11931_v15  ;;  %v4524_v3 = vadd.f32 1.1283791, %v4523_v18  ;;  %v4539_v8 = vmul.f32 %v11923_v43, %v4538_v31  ;;  %v4600_v20 = vadd.f32 0.05243302, %v4599_v52  ;;  %v13355_v36 = vld [vmem:[#allocation36_spill] sm:$0xff] }
 0x54e   :  { %v4636_v0 = vadd.f32 0.00028619796, %v4635_v63  ;;  %v11984_v30 = vadd.f32 1.0, %v4614_v32  ;;  %v4651_v1 = vadd.f32 0.112945676, %v4650_v60  ;;  %v4713_v35 = vmul.f32 %v11975_v4, %v11975_v4 }
 0x54f   :  { %v4689_v14 = vadd.f32 0.014752088, %v4688_v29  ;;  %v11989_v13 = vmul.f32 %v5114_v57, %v11711_v61  ;;  %v4504_v27 = vsel %vm11980_vm11, %v11896_v55, %v4500_v19  ;;  %v4562_v18 = vadd.f32 0.18741608, %v4561_v48  ;;  %v13356_v19 = vld [vmem:[#allocation121_spill] sm:$0xff] }
 0x550   :  { %v4578_v5 = vsub.f32 1.0, %v4577_v34  ;;  %v4545_v31 = vand.u32 2147483647, %v11871_v10  ;;  %v4547_v52 = vand.u32 2147483648, %v11871_v10  ;;  %v11997_v53 = vmin.f32 %v4713_v35, 16.0 }
 0x551   :  { %v4690_v63 = vmul.f32 %v4689_v14, %v11931_v15  ;;  %v4540_v32 = vadd.f32 %v11923_v43, %v4539_v8  ;;  %vm4542_vm12 = vweird.f32 %v11923_v43  ;;  %v4601_v61 = vmul.f32 %v4600_v20, %v11840_v49  ;;  %v817_v20 = vpop.f32.mrf.mxu1 }
 0x552   :  { %v4637_v57 = vmul.f32 %v4636_v0, %v11914_v38  ;;  %v4509_v55 = vsel %vm11969_vm10, %v4508_v45, %v4504_v27  ;;  %6173 = vrcp.f32 %v11984_v30  ;;  %v4652_v48 = vmul.f32 %v4651_v1, %v11914_v38 }
 0x553   :  { %v5281_v34 = vmul.f32 %v13356_v19, %v13355_v36  ;;  %v4525_v60 = vmul.f32 %v4524_v3, %v11691_v25  ;;  %vm4541_vm13 = vweird.f32 %v11871_v10  ;;  %v4579_v29 = vmul.f32 %v11952_v37, %v4578_v5  ;;  %v13362_v36 = vld [vmem:[#allocation91_spill] sm:$0xff] }
 0x554   :  { %v4675_v8 = vmul.f32 2.1237322e-06, %v11931_v15  ;;  %vm12013_vm14 = vmor %vm4541_vm13, %vm4542_vm12  ;;  %vm12017_vm15 = vcmp.eq.f32.partialorder %v4545_v31, 8.507059e+37  ;;  %v4563_v45 = vmul.f32 %v4562_v18, %v11756_v50  ;;  %v4691_v40 = vadd.f32 0.112945676, %v4690_v63  ;;  %v13361_v31 = vld [vmem:[#allocation37_spill] sm:$0xff] }
 0x555   :  { %v4726_v25 = vmul.f32 3.8918573e-05, %v11997_v53  ;;  %5443 = vmatmul.f32.gmra.mxu0 %v5281_v34  ;;  %v4510_v10 = vmul.f32 %v4509_v55, %v4485_v59  ;;  %v4544_v3 = vsel %vm12013_vm14, %v11923_v43, %v4540_v32  ;;  %v4548_v1 = vor.u32 1.1754944e-38, %v4547_v52 }
 0x556   :  { %v4638_v14 = vadd.f32 0.0036580483, %v4637_v57  ;;  %v4602_v35 = vadd.f32 0.18741608, %v4601_v61  ;;  %v4653_v27 = vadd.f32 0.4994258, %v4652_v48  ;;  %v12027_v5 = vadd.f32 %v817_v20, %v6846_v62 }
 0x557   :  { %v5282_v19 = vmul.f32 %v13362_v36, %v13361_v31  ;;  %v4580_v50 = vadd.f32 %v11952_v37, %v4579_v29  ;;  %vm4582_vm0 = vweird.f32 %v11952_v37  ;;  %v4676_v18 = vadd.f32 0.00028619796, %v4675_v8 }
 0x558   :  { %v4727_v59 = vadd.f32 0.001143296, %v4726_v25  ;;  %v12033_v63 = vpop.eup %6173  ;;  %v4549_v43 = vsel %vm12017_vm15, %v4548_v1, %v4544_v3  ;;  %v4564_v52 = vadd.f32 1.1283791, %v4563_v45  ;;  %vm4581_vm1 = vweird.f32 %v11907_v11  ;;  %v13365_v3 = vld [vmem:[#allocation119_spill] sm:$0xff]  ;;  %v13366_v1 = vld [vmem:[#allocation122_spill] sm:$0xff] }
 0x559   :  { %v4692_v32 = vmul.f32 %v4691_v40, %v11931_v15  ;;  %5532 = vmatmul.f32.gmra.mxu1 %v5282_v19  ;;  %v5977_v61 = vclamps-f32 %v4510_v10, 1.0  ;;  %v4585_v57 = vand.u32 2147483647, %v11907_v11  ;;  %v4587_v55 = vand.u32 2147483648, %v11907_v11  ;;  %vm12042_vm2 = vmor %vm4581_vm1, %vm4582_vm0 }
 0x55a   :  { %v4639_v48 = vmul.f32 %v4638_v14, %v11914_v38  ;;  %v4603_v29 = vmul.f32 %v4602_v35, %v11840_v49  ;;  %v4654_v8 = vmul.f32 %v4653_v27, %v11914_v38  ;;  %v4728_v20 = vmul.f32 %v4727_v59, %v11997_v53 }
 0x55b   :  { %v12050_v0 = vmul.f32 0.70710677, %v12027_v5  ;;  %v4550_v39 = vmul.f32 %v4549_v43, %v4525_v60  ;;  %v4584_v11 = vsel %vm12042_vm2, %v11952_v37, %v4580_v50  ;;  %v4617_v45 = vmul.f32 %v12033_v63, %v11984_v30 }
 0x55c   :  { %v4677_v40 = vmul.f32 %v4676_v18, %v11931_v15  ;;  %v4693_v25 = vadd.f32 0.4994258, %v4692_v32  ;;  %v4729_v10 = vadd.f32 0.014752088, %v4728_v20  ;;  %v5283_v14 = vmul.f32 %v13366_v1, %v13365_v3  ;;  %v906_v32 = vpop.f32.mrf.mxu2 }
 0x55d   :  { %v4753_v49 = vmul.f32 %v12050_v0, %v12050_v0  ;;  %v4565_v35 = vmul.f32 %v4564_v52, %v11725_v47  ;;  %v4588_v60 = vor.u32 1.1754944e-38, %v4587_v55  ;;  %v4640_v27 = vadd.f32 0.05243302, %v4639_v48  ;;  %v13367_v48 = vld [vmem:[#allocation38_spill] sm:$0xff] }
 0x55e   :  { %v4715_v31 = vmul.f32 2.1237322e-06, %v11997_v53  ;;  %v5115_v37 = vadd.f32 1.0, %v5977_v61  ;;  %vm4586_vm3 = vcmp.eq.f32.partialorder %v4585_v57, 8.507059e+37  ;;  %v12064_v36 = vadd.f32 1.0, %v4654_v8  ;;  %5621 = vmatmul.f32.gmra.mxu2 %v5283_v14  ;;  %v13368_v8 = vld [vmem:[#allocation92_spill] sm:$0xff] }
 0x55f   :  { %v4730_v19 = vmul.f32 %v4729_v10, %v11997_v53  ;;  %v4589_v50 = vsel %vm4586_vm3, %v4588_v60, %v4584_v11  ;;  %v4604_v18 = vadd.f32 1.1283791, %v4603_v29  ;;  %v4678_v59 = vadd.f32 0.0036580483, %v4677_v40 }
 0x560   :  { %v12067_v43 = vmin.f32 %v4753_v49, 16.0  ;;  %v5978_v34 = vclamps-f32 %v4550_v39, 1.0  ;;  %v4618_v20 = vsub.f32 1.0, %v4617_v45  ;;  %v4694_v47 = vmul.f32 %v4693_v25, %v11931_v15 }
 0x561   :  { %v4731_v52 = vadd.f32 0.112945676, %v4730_v19  ;;  %v4641_v55 = vmul.f32 %v4640_v27, %v11914_v38  ;;  %v4716_v61 = vadd.f32 0.00028619796, %v4715_v31  ;;  %v5284_v10 = vmul.f32 %v13368_v8, %v13367_v48  ;;  %v995_v31 = vpop.f32.mrf.mxu3 }
 0x562   :  { %v4766_v57 = vmul.f32 3.8918573e-05, %v12067_v43  ;;  %v4590_v3 = vmul.f32 %v4589_v50, %v4565_v35  ;;  %6175 = vrcp.f32 %v12064_v36  ;;  %v12077_v11 = vadd.f32 %v906_v32, %v6892_v6 }
 0x563   :  { %v4732_v29 = vmul.f32 %v4731_v52, %v11997_v53  ;;  %v12080_v39 = vmul.f32 0.5, %v11876_v44  ;;  %v12083_v45 = vmul.f32 0.5, %v11881_v17  ;;  %v4679_v40 = vmul.f32 %v4678_v59, %v11931_v15  ;;  %5710 = vmatmul.f32.gmra.mxu3 %v5284_v10 }
 0x564   :  { %13369 = vst [vmem:[#allocation128_spill] sm:$0xff] %v12077_v11  ;;  %v4767_v25 = vadd.f32 0.001143296, %v4766_v57  ;;  %v12087_v49 = vmul.f32 %v5115_v37, %v11829_v58  ;;  %v4619_v1 = vmul.f32 %v12033_v63, %v4618_v20  ;;  %v12090_v14 = vadd.f32 1.0, %v4694_v47 }
 0x565   :  { %v4733_v35 = vadd.f32 0.4994258, %v4732_v29  ;;  %v4605_v60 = vmul.f32 %v4604_v18, %v11773_v46  ;;  %v4642_v27 = vadd.f32 0.18741608, %v4641_v55  ;;  %v4717_v44 = vmul.f32 %v4716_v61, %v11997_v53 }
 0x566   :  { %v4768_v17 = vmul.f32 %v4767_v25, %v12067_v43  ;;  %v5116_v19 = vadd.f32 1.0, %v5978_v34  ;;  %v5979_v50 = vclamps-f32 %v4590_v3, 1.0  ;;  %v4625_v59 = vand.u32 2147483647, %v11984_v30 }
 0x567   :  { %v12097_v58 = vmul.f32 0.70710677, %v12077_v11  ;;  %vm4622_vm4 = vweird.f32 %v12033_v63  ;;  %v4627_v37 = vand.u32 2147483648, %v11984_v30  ;;  %v4680_v32 = vadd.f32 0.05243302, %v4679_v40 }
 0x568   :  { %v4769_v20 = vadd.f32 0.014752088, %v4768_v17  ;;  %v12101_v46 = vpop.eup %6175  ;;  %v4620_v18 = vadd.f32 %v12033_v63, %v4619_v1  ;;  %6177 = vrcp.f32 %v12090_v14  ;;  %v4734_v34 = vmul.f32 %v4733_v35, %v11997_v53 }
 0x569   :  { %v12107_v47 = vadd.f32 %v995_v31, %v6894_v26  ;;  %v4643_v52 = vmul.f32 %v4642_v27, %v11914_v38  ;;  %v4718_v55 = vadd.f32 0.0036580483, %v4717_v44  ;;  %v4793_v57 = vmul.f32 %v12097_v58, %v12097_v58 }
 0x56a   :  { %v4770_v61 = vmul.f32 %v4769_v20, %v12067_v43  ;;  %v12114_v48 = vmul.f32 %v5116_v19, %v11919_v54  ;;  %v5117_v8 = vadd.f32 1.0, %v5979_v50  ;;  %vm4621_vm5 = vweird.f32 %v11984_v30  ;;  %v731_v19 = vpop.f32.mrf.mxu0 }
 0x56b   :  { %13370 = vst [vmem:[#allocation100_spill] sm:$0xff] %v12107_v47  ;;  %vm12117_vm6 = vcmp.eq.f32.partialorder %v4625_v59, 8.507059e+37  ;;  %vm12123_vm7 = vmor %vm4621_vm5, %vm4622_vm4  ;;  %v4657_v3 = vmul.f32 %v12101_v46, %v12064_v36  ;;  %v4681_v29 = vmul.f32 %v4680_v32, %v11931_v15  ;;  %v4755_v54 = vmul.f32 2.1237322e-06, %v12067_v43 }
 0x56c   :  { %v4771_v40 = vadd.f32 0.112945676, %v4770_v61  ;;  %v4624_v30 = vsel %vm12123_vm7, %v12033_v63, %v4620_v18  ;;  %v12134_v25 = vadd.f32 1.0, %v4734_v34  ;;  %v12136_v1 = vmin.f32 %v4793_v57, 16.0 }
 0x56d   :  { %v12139_v35 = vmul.f32 0.70710677, %v12107_v47  ;;  %v4628_v27 = vor.u32 1.1754944e-38, %v4627_v37  ;;  %v4644_v44 = vadd.f32 1.1283791, %v4643_v52  ;;  %v12142_v17 = vmul.f32 0.5, %v11958_v7 }
 0x56e   :  { %v4719_v31 = vmul.f32 %v4718_v55, %v11997_v53  ;;  %v12145_v50 = vpop.eup %6177  ;;  %v12148_v59 = vmul.f32 %v5117_v8, %v11937_v22  ;;  %v12151_v63 = vmul.f32 0.5, %v12027_v5  ;;  %v4772_v32 = vmul.f32 %v4771_v40, %v12067_v43  ;;  %v13383_v47 = vld [vmem:[#allocation123_spill] sm:$0xff] }
 0x56f   :  { %v4806_v20 = vmul.f32 3.8918573e-05, %v12136_v1  ;;  %v4629_v37 = vsel %vm12117_vm6, %v4628_v27, %v4624_v30  ;;  %v4658_v7 = vsub.f32 1.0, %v4657_v3  ;;  %v4756_v18 = vadd.f32 0.00028619796, %v4755_v54 }
 0x570   :  { %13375 = vst [vmem:[#allocation129_spill] sm:$0xff] %v12148_v59  ;;  %v4833_v34 = vmul.f32 %v12139_v35, %v12139_v35  ;;  %v4682_v52 = vadd.f32 0.18741608, %v4681_v29  ;;  %6179 = vrcp.f32 %v12134_v25  ;;  %v4773_v22 = vadd.f32 0.4994258, %v4772_v32 }
 0x571   :  { %13376 = vst [vmem:[#allocation101_spill] sm:$0xff] %v12151_v63  ;;  %v12161_v55 = vadd.f32 %v731_v19, %v6844_v56  ;;  %v12164_v5 = vmul.f32 %v4644_v44, %v11894_v16  ;;  %v4697_v61 = vmul.f32 %v12145_v50, %v12090_v14  ;;  %v4720_v57 = vadd.f32 0.05243302, %v4719_v31 }
 0x572   :  { %v4807_v8 = vadd.f32 0.001143296, %v4806_v20  ;;  %v12168_v10 = vmul.f32 %v4629_v37, %v4605_v60  ;;  %v4665_v38 = vand.u32 2147483647, %v12064_v36  ;;  %v4667_v3 = vand.u32 2147483648, %v12064_v36 }
 0x573   :  { %13377 = vst [vmem:[#allocation130_spill] sm:$0xff] %v12161_v55  ;;  %v12172_v29 = vmin.f32 %v4833_v34, 16.0  ;;  %v4659_v54 = vmul.f32 %v12101_v46, %v4658_v7  ;;  %v4757_v56 = vmul.f32 %v4756_v18, %v12067_v43  ;;  %v4795_v16 = vmul.f32 2.1237322e-06, %v12136_v1 }
 0x574   :  { %v4808_v40 = vmul.f32 %v4807_v8, %v12136_v1  ;;  %vm4661_vm8 = vweird.f32 %v12064_v36  ;;  %v4683_v30 = vmul.f32 %v4682_v52, %v11931_v15  ;;  %v4774_v60 = vmul.f32 %v4773_v22, %v12067_v43 }
 0x575   :  { %v12182_v27 = vmul.f32 0.70710677, %v12161_v55  ;;  %v4698_v44 = vsub.f32 1.0, %v4697_v61  ;;  %v4721_v31 = vmul.f32 %v4720_v57, %v11997_v53  ;;  %v4846_v32 = vmul.f32 3.8918573e-05, %v12172_v29 }
 0x576   :  { %v4809_v19 = vadd.f32 0.014752088, %v4808_v40  ;;  %v12186_v20 = vpop.eup %6179  ;;  %vm4662_vm9 = vweird.f32 %v12101_v46  ;;  %vm12190_vm10 = vcmp.eq.f32.partialorder %v4665_v38, 8.507059e+37  ;;  %v4668_v15 = vor.u32 1.1754944e-38, %v4667_v3 }
 0x577   :  { %v4660_v18 = vadd.f32 %v12101_v46, %v4659_v54  ;;  %v4758_v34 = vadd.f32 0.0036580483, %v4757_v56  ;;  %v4796_v52 = vadd.f32 0.00028619796, %v4795_v16  ;;  %v4684_v61 = vadd.f32 1.1283791, %v4683_v30  ;;  %vm12208_vm11 = vmor %vm4661_vm8, %vm4662_vm9 }
 0x578   :  { %v4810_v22 = vmul.f32 %v4809_v19, %v12136_v1  ;;  %v12196_v57 = vadd.f32 1.0, %v4774_v60  ;;  %v4847_v8 = vadd.f32 0.001143296, %v4846_v32  ;;  %v4873_v40 = vmul.f32 %v12182_v27, %v12182_v27 }
 0x579   :  { %v4699_v37 = vmul.f32 %v12145_v50, %v4698_v44  ;;  %v4705_v38 = vand.u32 2147483647, %v12090_v14  ;;  %v4722_v55 = vadd.f32 0.18741608, %v4721_v31  ;;  %v4737_v3 = vmul.f32 %v12186_v20, %v12134_v25 }
 0x57a   :  { %v4707_v56 = vand.u32 2147483648, %v12090_v14  ;;  %v4811_v16 = vadd.f32 0.112945676, %v4810_v22  ;;  %v4848_v30 = vmul.f32 %v4847_v8, %v12172_v29  ;;  %v12214_v60 = vmin.f32 %v4873_v40, 16.0  ;;  %v13382_v22 = vld [vmem:[#allocation39_spill] sm:$0xff] }
 0x57b   :  { %v4664_v44 = vsel %vm12208_vm11, %v12101_v46, %v4660_v18  ;;  %v4759_v31 = vmul.f32 %v4758_v34, %v12067_v43  ;;  %v4797_v19 = vmul.f32 %v4796_v52, %v12136_v1  ;;  %v4835_v36 = vmul.f32 2.1237322e-06, %v12172_v29  ;;  %v820_v34 = vpop.f32.mrf.mxu1 }
 0x57c   :  { %6181 = vrcp.f32 %v12196_v57  ;;  %v4849_v32 = vadd.f32 0.014752088, %v4848_v30  ;;  %v4886_v63 = vmul.f32 3.8918573e-05, %v12214_v60  ;;  %v5285_v8 = vmul.f32 %v13383_v47, %v13382_v22 }
 0x57d   :  { %v4700_v40 = vadd.f32 %v12145_v50, %v4699_v37  ;;  %vm4702_vm12 = vweird.f32 %v12145_v50  ;;  %v4723_v46 = vmul.f32 %v4722_v55, %v11997_v53  ;;  %v4738_v18 = vsub.f32 1.0, %v4737_v3 }
 0x57e   :  { %v4685_v52 = vmul.f32 %v4684_v61, %v11903_v2  ;;  %vm4701_vm13 = vweird.f32 %v12090_v14  ;;  %v4812_v54 = vmul.f32 %v4811_v16, %v12136_v1  ;;  %v4850_v30 = vmul.f32 %v4849_v32, %v12172_v29  ;;  %5446 = vmatmul.f32.gmra.mxu0 %v5285_v8 }
 0x57f   :  { %v4669_v47 = vsel %vm12190_vm10, %v4668_v15, %v4664_v44  ;;  %v4760_v22 = vadd.f32 0.05243302, %v4759_v31  ;;  %v4798_v37 = vadd.f32 0.0036580483, %v4797_v19  ;;  %v4887_v11 = vadd.f32 0.001143296, %v4886_v63  ;;  %vm12235_vm14 = vmor %vm4701_vm13, %vm4702_vm12 }
 0x580   :  { %vm12239_vm15 = vcmp.eq.f32.partialorder %v4705_v38, 8.507059e+37  ;;  %v4708_v2 = vor.u32 1.1754944e-38, %v4707_v56  ;;  %v4836_v14 = vadd.f32 0.00028619796, %v4835_v36  ;;  %v12244_v55 = vadd.f32 %v820_v34, %v6846_v62 }
 0x581   :  { %v4704_v7 = vsel %vm12235_vm14, %v12145_v50, %v4700_v40  ;;  %v4724_v15 = vadd.f32 1.1283791, %v4723_v46  ;;  %v4739_v63 = vmul.f32 %v12186_v20, %v4738_v18  ;;  %v4888_v61 = vmul.f32 %v4887_v11, %v12214_v60 }
 0x582   :  { %13388 = vst [vmem:[#allocation102_spill] sm:$0xff] %v12244_v55  ;;  %v12251_v3 = vpop.eup %6181  ;;  %v4670_v38 = vmul.f32 %v4669_v47, %v12164_v5  ;;  %vm4741_vm0 = vweird.f32 %v12134_v25  ;;  %v4813_v56 = vadd.f32 0.4994258, %v4812_v54  ;;  %v4851_v16 = vadd.f32 0.112945676, %v4850_v30 }
 0x583   :  { %v4747_v62 = vand.u32 2147483648, %v12134_v25  ;;  %v4761_v44 = vmul.f32 %v4760_v22, %v12067_v43  ;;  %v4799_v59 = vmul.f32 %v4798_v37, %v12136_v1  ;;  %v4889_v50 = vadd.f32 0.014752088, %v4888_v61  ;;  %v13393_v61 = vld [vmem:[#allocation41_spill] sm:$0xff] }
 0x584   :  { %v4709_v31 = vsel %vm12239_vm15, %v4708_v2, %v4704_v7  ;;  %v4745_v11 = vand.u32 2147483647, %v12134_v25  ;;  %v4837_v19 = vmul.f32 %v4836_v14, %v12172_v29  ;;  %v12263_v5 = vmul.f32 0.70710677, %v12244_v55  ;;  %v13391_v14 = vld [vmem:[#allocation40_spill] sm:$0xff]  ;;  %v13392_v7 = vld [vmem:[#allocation93_spill] sm:$0xff] }
 0x585   :  { %v4740_v36 = vadd.f32 %v12186_v20, %v4739_v63  ;;  %vm4742_vm1 = vweird.f32 %v12186_v20  ;;  %v4777_v32 = vmul.f32 %v12251_v3, %v12196_v57  ;;  %v4875_v8 = vmul.f32 2.1237322e-06, %v12214_v60 }
 0x586   :  { %v5981_v40 = vclamps-f32 %v4670_v38, 1.0  ;;  %v4814_v46 = vmul.f32 %v4813_v56, %v12136_v1  ;;  %v4852_v18 = vmul.f32 %v4851_v16, %v12172_v29  ;;  %v4890_v34 = vmul.f32 %v4889_v50, %v12214_v60  ;;  %vm12277_vm2 = vmor %vm4741_vm0, %vm4742_vm1  ;;  %v13394_v38 = vld [vmem:[#allocation94_spill] sm:$0xff]  ;;  %v909_v56 = vpop.f32.mrf.mxu2  ;;  %v998_v16 = vpop.f32.mrf.mxu3 }
 0x587   :  { %v12273_v54 = vmul.f32 %v4709_v31, %v4685_v52  ;;  %v4748_v30 = vor.u32 1.1754944e-38, %v4747_v62  ;;  %v4762_v47 = vadd.f32 0.18741608, %v4761_v44  ;;  %v4800_v22 = vadd.f32 0.05243302, %v4799_v59 }
 0x588   :  { %v4838_v53 = vadd.f32 0.0036580483, %v4837_v19  ;;  %v4913_v2 = vmul.f32 %v12263_v5, %v12263_v5  ;;  %v5286_v63 = vmul.f32 %v13392_v7, %v13391_v14  ;;  %v5287_v52 = vmul.f32 %v13394_v38, %v13393_v61  ;;  %v13395_v14 = vld [vmem:[#allocation42_spill] sm:$0xff]  ;;  %v13396_v7 = vld [vmem:[#allocation95_spill] sm:$0xff]  ;;  %v12296_v61 = vpop.f32.mrf.mxu0  ;;  %v12298_v38 = vpop.f32.mrf.mxu1 }
 0x589   :  { %v4744_v25 = vsel %vm12277_vm2, %v12186_v20, %v4740_v36  ;;  %v4778_v62 = vsub.f32 1.0, %v4777_v32  ;;  %v4876_v44 = vadd.f32 0.00028619796, %v4875_v8  ;;  %v4891_v59 = vadd.f32 0.112945676, %v4890_v34 }
 0x58a   :  { %v12290_v50 = vadd.f32 1.0, %v4814_v46  ;;  %v4853_v31 = vadd.f32 0.4994258, %v4852_v18  ;;  %v12292_v19 = vmin.f32 %v4913_v2, 16.0  ;;  %5535 = vmatmul.f32.gmra.mxu1 %v5286_v63  ;;  %5624 = vmatmul.f32.gmra.mxu2 %v5287_v52  ;;  %v5288_v55 = vmul.f32 %v13396_v7, %v13395_v14 }
 0x58b   :  { %v13397_v37 = vclamps-f32 %v12168_v10, 1.0  ;;  %vm4746_vm3 = vcmp.eq.f32.partialorder %v4745_v11, 8.507059e+37  ;;  %v4763_v36 = vmul.f32 %v4762_v47, %v12067_v43  ;;  %v4801_v32 = vmul.f32 %v4800_v22, %v12136_v1 }
 0x58c   :  { %v4725_v8 = vmul.f32 %v4724_v15, %v11975_v4  ;;  %v4749_v46 = vsel %vm4746_vm3, %v4748_v30, %v4744_v25  ;;  %v4839_v18 = vmul.f32 %v4838_v53, %v12172_v29  ;;  %5713 = vmatmul.f32.gmra.mxu3 %v5288_v55  ;;  %v12307_v34 = vadd.f32 %v909_v56, %v6892_v6 }
 0x58d   :  { %v5118_v20 = vadd.f32 1.0, %v13397_v37  ;;  %v5119_v2 = vadd.f32 1.0, %v5981_v40  ;;  %v4779_v63 = vmul.f32 %v12251_v3, %v4778_v62  ;;  %v4877_v10 = vmul.f32 %v4876_v44, %v12214_v60 }
 0x58e   :  { %13398 = vst [vmem:[#allocation103_spill] sm:$0xff] %v12307_v34  ;;  %v4892_v11 = vmul.f32 %v4891_v59, %v12214_v60  ;;  %v5982_v43 = vclamps-f32 %v12273_v54, 1.0  ;;  %6183 = vrcp.f32 %v12290_v50  ;;  %v4854_v4 = vmul.f32 %v4853_v31, %v12172_v29  ;;  %v12333_v31 = vpop.f32.mrf.mxu2  ;;  %v12335_v14 = vpop.f32.mrf.mxu3 }
 0x58f   :  { %v4926_v15 = vmul.f32 3.8918573e-05, %v12292_v19  ;;  %v4750_v30 = vmul.f32 %v4749_v46, %v4725_v8  ;;  %v4764_v55 = vadd.f32 1.1283791, %v4763_v36  ;;  %v4787_v6 = vand.u32 2147483648, %v12196_v57 }
 0x590   :  { %v4802_v47 = vadd.f32 0.18741608, %v4801_v32  ;;  %v12318_v40 = vmul.f32 %v5118_v20, %v11945_v33  ;;  %v4840_v22 = vadd.f32 0.05243302, %v4839_v18  ;;  %v12321_v52 = vmul.f32 0.70710677, %v12307_v34  ;;  %v12353_v18 = vpop.f32.mrf.mxu0 }
 0x591   :  { %v4927_v53 = vadd.f32 0.001143296, %v4926_v15  ;;  %v4780_v54 = vadd.f32 %v12251_v3, %v4779_v63  ;;  %vm4782_vm4 = vweird.f32 %v12251_v3  ;;  %v4878_v56 = vadd.f32 0.0036580483, %v4877_v10 }
 0x592   :  { %v4893_v25 = vadd.f32 0.4994258, %v4892_v11  ;;  %v12325_v62 = vadd.f32 1.0, %v4854_v4  ;;  %v4953_v59 = vmul.f32 %v12321_v52, %v12321_v52  ;;  %v12331_v33 = vadd.f32 %v998_v16, %v6894_v26 }
 0x593   :  { %v4928_v44 = vmul.f32 %v4927_v53, %v12292_v19  ;;  %v5983_v7 = vclamps-f32 %v4750_v30, 1.0  ;;  %vm4781_vm5 = vweird.f32 %v12196_v57  ;;  %v4785_v37 = vand.u32 2147483647, %v12196_v57  ;;  %v12355_v57 = vpop.f32.mrf.mxu1 }
 0x594   :  { %13399 = vst [vmem:[#allocation104_spill] sm:$0xff] %v12331_v33  ;;  %v4803_v20 = vmul.f32 %v4802_v47, %v12136_v1  ;;  %v12340_v36 = vpop.eup %6183  ;;  %v12343_v32 = vmul.f32 %v5119_v2, %v12080_v39  ;;  %v5120_v8 = vadd.f32 1.0, %v5982_v43  ;;  %v4765_v26 = vmul.f32 %v4764_v55, %v12050_v0  ;;  %vm12348_vm6 = vmor %vm4781_vm5, %vm4782_vm4 }
 0x595   :  { %v4841_v46 = vmul.f32 %v4840_v22, %v12172_v29  ;;  %v4784_v39 = vsel %vm12348_vm6, %v12251_v3, %v4780_v54  ;;  %v4788_v1 = vor.u32 1.1754944e-38, %v4787_v6  ;;  %v4879_v2 = vmul.f32 %v4878_v56, %v12214_v60  ;;  %v13402_v54 = vld [vmem:[#allocation43_spill] sm:$0xff] }
 0x596   :  { %v4894_v0 = vmul.f32 %v4893_v25, %v12214_v60  ;;  %6185 = vrcp.f32 %v12325_v62  ;;  %v4929_v63 = vadd.f32 0.014752088, %v4928_v44  ;;  %v12363_v10 = vmin.f32 %v4953_v59, 16.0 }
 0x597   :  { %v12366_v11 = vmul.f32 0.70710677, %v12331_v33  ;;  %v5121_v43 = vadd.f32 1.0, %v5983_v7  ;;  %vm4786_vm7 = vcmp.eq.f32.partialorder %v4785_v37, 8.507059e+37  ;;  %v4804_v4 = vadd.f32 1.1283791, %v4803_v20 }
 0x598   :  { %v4817_v15 = vmul.f32 %v12340_v36, %v12290_v50  ;;  %v4789_v3 = vsel %vm4786_vm7, %v4788_v1, %v4784_v39  ;;  %v4842_v30 = vadd.f32 0.18741608, %v4841_v46  ;;  %v4930_v55 = vmul.f32 %v4929_v63, %v12292_v19  ;;  %v13403_v7 = vld [vmem:[#allocation44_spill] sm:$0xff] }
 0x599   :  { %v4966_v6 = vmul.f32 3.8918573e-05, %v12363_v10  ;;  %v4880_v47 = vadd.f32 0.05243302, %v4879_v2  ;;  %v12372_v22 = vadd.f32 1.0, %v4894_v0  ;;  %v5289_v56 = vmul.f32 %v11106_v9, %v13402_v54  ;;  %v13404_v37 = vld [vmem:[#allocation124_spill] sm:$0xff] }
 0x59a   :  { %v4915_v53 = vmul.f32 2.1237322e-06, %v12292_v19  ;;  %v4931_v25 = vadd.f32 0.112945676, %v4930_v55  ;;  %v4993_v59 = vmul.f32 %v12366_v11, %v12366_v11  ;;  %v5290_v20 = vmul.f32 %v13404_v37, %v13403_v7 }
 0x59b   :  { %v4967_v44 = vadd.f32 0.001143296, %v4966_v6  ;;  %v12382_v16 = vmul.f32 %v5120_v8, %v12083_v45  ;;  %v12385_v46 = vmul.f32 %v5121_v43, %v12142_v17  ;;  %v12388_v39 = vmul.f32 %v4804_v4, %v12097_v58  ;;  %5449 = vmatmul.f32.gmra.mxu0 %v5289_v56  ;;  %v12395_v45 = vpop.f32.mrf.mxu2  ;;  %v12397_v8 = vpop.f32.mrf.mxu3 }
 0x59c   :  { %v4818_v1 = vsub.f32 1.0, %v4817_v15  ;;  %v12390_v9 = vpop.eup %6185  ;;  %v4790_v2 = vmul.f32 %v4789_v3, %v4765_v26  ;;  %v4827_v0 = vand.u32 2147483648, %v12290_v50  ;;  %v4843_v63 = vmul.f32 %v4842_v30, %v12172_v29  ;;  %5538 = vmatmul.f32.gmra.mxu1 %v5290_v20  ;;  %v13407_v29 = vld [vmem:[#allocation20_spill] sm:$0xff]  ;;  %v12407_v6 = vpop.f32.mrf.mxu0 }
 0x59d   :  { %13405 = vst [vmem:[#allocation105_spill] sm:$0xff] %v12382_v16  ;;  %v4932_v55 = vmul.f32 %v4931_v25, %v12292_v19  ;;  %v4825_v17 = vand.u32 2147483647, %v12290_v50  ;;  %v4881_v58 = vmul.f32 %v4880_v47, %v12214_v60  ;;  %v4916_v43 = vadd.f32 0.00028619796, %v4915_v53  ;;  %v13408_v3 = vld [vmem:[#allocation96_spill] sm:$0xff]  ;;  %v12409_v54 = vpop.f32.mrf.mxu1 }
 0x59e   :  { %13406 = vst [vmem:[#allocation106_spill] sm:$0xff] %v12385_v46  ;;  %v4968_v4 = vmul.f32 %v4967_v44, %v12363_v10  ;;  %6187 = vrcp.f32 %v12372_v22  ;;  %v12403_v15 = vmin.f32 %v4993_v59, 16.0  ;;  %v5291_v30 = vmul.f32 %v13408_v3, %v13407_v29 }
 0x59f   :  { %v4933_v26 = vadd.f32 0.4994258, %v4932_v55  ;;  %v4819_v56 = vmul.f32 %v12340_v36, %v4818_v1  ;;  %vm4821_vm8 = vweird.f32 %v12290_v50  ;;  %v4857_v47 = vmul.f32 %v12390_v9, %v12325_v62 }
 0x5a0   :  { %v4969_v53 = vadd.f32 0.014752088, %v4968_v4  ;;  %v5984_v25 = vclamps-f32 %v4790_v2, 1.0  ;;  %v4828_v44 = vor.u32 1.1754944e-38, %v4827_v0  ;;  %v4844_v7 = vadd.f32 1.1283791, %v4843_v63  ;;  %5627 = vmatmul.f32.gmra.mxu2 %v5291_v30 }
 0x5a1   :  { %v4955_v59 = vmul.f32 2.1237322e-06, %v12363_v10  ;;  %v4882_v37 = vadd.f32 0.18741608, %v4881_v58  ;;  %v4917_v20 = vmul.f32 %v4916_v43, %v12292_v19  ;;  %v4934_v55 = vmul.f32 %v4933_v26, %v12292_v19  ;;  %v13411_v63 = vld [vmem:[#allocation45_spill] sm:$0xff] }
 0x5a2   :  { %v4970_v29 = vmul.f32 %v4969_v53, %v12363_v10  ;;  %vm4822_vm9 = vweird.f32 %v12340_v36  ;;  %vm12420_vm10 = vcmp.eq.f32.partialorder %v4825_v17, 8.507059e+37  ;;  %v4995_v2 = vmul.f32 2.1237322e-06, %v12403_v15  ;;  %v13412_v4 = vld [vmem:[#allocation125_spill] sm:$0xff] }
 0x5a3   :  { %v5006_v0 = vmul.f32 3.8918573e-05, %v12403_v15  ;;  %v5292_v3 = vmul.f32 %v13412_v4, %v13411_v63  ;;  %v4820_v58 = vadd.f32 %v12340_v36, %v4819_v56  ;;  %v4858_v43 = vsub.f32 1.0, %v4857_v47  ;;  %v12439_v16 = vpop.f32.mrf.mxu2  ;;  %v12441_v63 = vpop.f32.mrf.mxu3  ;;  %vm12451_vm11 = vmor %vm4821_vm8, %vm4822_vm9 }
 0x5a4   :  { %v4867_v26 = vand.u32 2147483648, %v12325_v62  ;;  %v4971_v30 = vadd.f32 0.112945676, %v4970_v29  ;;  %v12430_v53 = vpop.eup %6187  ;;  %v12432_v33 = vadd.f32 1.0, %v5984_v25  ;;  %v12435_v17 = vmul.f32 %v4844_v7, %v12139_v35  ;;  %v13416_v35 = vld [vmem:[#allocation46_spill] sm:$0xff] }
 0x5a5   :  { %v4956_v34 = vadd.f32 0.00028619796, %v4955_v59  ;;  %v5492_v46 = vadd.f32 %v12298_v38, %v12296_v61  ;;  %5716 = vmatmul.f32.gmra.mxu3 %v5292_v3  ;;  %v4865_v56 = vand.u32 2147483647, %v12325_v62  ;;  %v4883_v47 = vmul.f32 %v4882_v37, %v12214_v60  ;;  %v12461_v60 = vld [vmem:[%s12734_s6] ss:$0 sm:$0xff]  ;;  %v12463_v59 = vpop.f32.mrf.mxu0  ;;  %v12465_v50 = vpop.f32.mrf.mxu1 }
 0x5a6   :  { %13413 = vst [vmem:[#allocation107_spill] sm:$0xff] %v12432_v33  ;;  %v4918_v29 = vadd.f32 0.0036580483, %v4917_v20  ;;  %v12445_v4 = vadd.f32 1.0, %v4934_v55  ;;  %vm4861_vm12 = vweird.f32 %v12325_v62  ;;  %v4972_v61 = vmul.f32 %v4971_v30, %v12363_v10  ;;  %s6383_s6 = smov [#allocation13]  }
 0x5a7   :  { %v4996_v38 = vadd.f32 0.00028619796, %v4995_v2  ;;  %v5007_v25 = vadd.f32 0.001143296, %v5006_v0  ;;  %v5581_v7 = vadd.f32 %v12333_v31, %v5492_v46  ;;  %v4824_v37 = vsel %vm12451_vm11, %v12340_v36, %v4820_v58  ;;  %v13417_v36 = vld [vmem:[#allocation97_spill] sm:$0xff]  ;;  %s5877_s8 = sshll.u32 %s6383_s6, 4  ;;  %s5878_s8 = int_to_ptr.vmem [resolvable:$true] %s5877_s8 }
 0x5a8   :  { %v4859_v20 = vmul.f32 %v12390_v9, %v4858_v43  ;;  %v4868_v55 = vor.u32 1.1754944e-38, %v4867_v26  ;;  %v4897_v2 = vmul.f32 %v12430_v53, %v12372_v22  ;;  %v4957_v31 = vmul.f32 %v4956_v34, %v12363_v10 }
 0x5a9   :  { %v4973_v46 = vadd.f32 0.4994258, %v4972_v61  ;;  %v5008_v0 = vmul.f32 %v5007_v25, %v12403_v15  ;;  %v5670_v3 = vadd.f32 %v12335_v14, %v5581_v7  ;;  %v4884_v30 = vadd.f32 1.1283791, %v4883_v47 }
 0x5aa   :  { %v4919_v33 = vmul.f32 %v4918_v29, %v12292_v19  ;;  %6189 = vrcp.f32 %v12445_v4  ;;  %v5293_v58 = vmul.f32 %v13417_v36, %v13416_v35  ;;  %vm12480_vm13 = vcmp.eq.f32.partialorder %v4865_v56, 8.507059e+37 }
 0x5ab   :  { %v4974_v26 = vmul.f32 %v4973_v46, %v12363_v10  ;;  %v4997_v34 = vmul.f32 %v4996_v38, %v12403_v15  ;;  %v5009_v61 = vadd.f32 0.014752088, %v5008_v0  ;;  %v5749_v25 = vadd.f32 %v12461_v60, %v5670_v3  ;;  %v13420_v46 = vld [vmem:[#allocation47_spill] sm:$0xff]  ;;  %v13421_v38 = vld [vmem:[#allocation126_spill] sm:$0xff]  ;;  %v12496_v36 = vpop.f32.mrf.mxu2  ;;  %v12498_v3 = vpop.f32.mrf.mxu3 }
 0x5ac   :  { %v4829_v14 = vsel %vm12420_vm10, %v4828_v44, %v4824_v37  ;;  %v4860_v47 = vadd.f32 %v12390_v9, %v4859_v20  ;;  %vm4862_vm14 = vweird.f32 %v12390_v9  ;;  %v4898_v29 = vsub.f32 1.0, %v4897_v2  ;;  %5452 = vmatmul.f32.gmra.mxu0 %v5293_v58  ;;  %v13422_v37 = vld [vmem:[#allocation48_spill] sm:$0xff]  ;;  %v13423_v2 = vld [vmem:[#allocation49_spill] sm:$0xff] }
 0x5ad   :  { %v4958_v56 = vadd.f32 0.0036580483, %v4957_v31  ;;  %v12491_v7 = vadd.f32 1.0, %v4974_v26  ;;  %v5010_v35 = vmul.f32 %v5009_v61, %v12403_v15  ;;  %5773 = vst [vmem:[#allocation13] sm:$0xff] %v5749_v25  ;;  %v5294_v0 = vmul.f32 %v13421_v38, %v13420_v46  ;;  %v12511_v61 = vpop.f32.mrf.mxu0  ;;  %vm12524_vm0 = vmor %vm4861_vm12, %vm4862_vm14  ;;  %v13426_v38 = vld [vmem:[#allocation50_spill] sm:$0xff] }
 0x5ae   :  { %v4920_v44 = vadd.f32 0.05243302, %v4919_v33  ;;  %v5495_v1 = vadd.f32 %v12355_v57, %v12353_v18  ;;  %v5295_v20 = vmul.f32 %v11434_v28, %v13422_v37  ;;  %v5296_v31 = vmul.f32 %v11488_v24, %v13423_v2  ;;  %v12513_v33 = vpop.f32.mrf.mxu1  ;;  %v13430_v24 = vld [vmem:[#allocation98_spill] sm:$0xff] }
 0x5af   :  { %v12507_v58 = vmul.f32 %v4884_v30, %v12182_v27  ;;  %vm4901_vm15 = vweird.f32 %v12372_v22  ;;  %6191 = vrcp.f32 %v12491_v7  ;;  %v4998_v26 = vadd.f32 0.0036580483, %v4997_v34  ;;  %5541 = vmatmul.f32.gmra.mxu1 %v5294_v0 }
 0x5b0   :  { %v12515_v18 = vpop.eup %6189  ;;  %v12518_v28 = vmul.f32 %v4829_v14, %v12388_v39  ;;  %v4905_v27 = vand.u32 2147483647, %v12372_v22  ;;  %v5011_v57 = vadd.f32 0.112945676, %v5010_v35  ;;  %5630 = vmatmul.f32.gmra.mxu2 %v5295_v20  ;;  %5719 = vmatmul.f32.gmra.mxu3 %v5296_v31  ;;  %v5584_v30 = vadd.f32 %v12395_v45, %v5495_v1  ;;  %v13427_v1 = vld [vmem:[#allocation51_spill] sm:$0xff] }
 0x5b1   :  { %v4864_v39 = vsel %vm12524_vm0, %v12390_v9, %v4860_v47  ;;  %v4899_v34 = vmul.f32 %v12430_v53, %v4898_v29  ;;  %v4959_v25 = vmul.f32 %v4958_v56, %v12363_v10  ;;  %v5498_v62 = vadd.f32 %v12409_v54, %v12407_v6 }
 0x5b2   :  { %v4921_v14 = vmul.f32 %v4920_v44, %v12292_v19  ;;  %v5012_v46 = vmul.f32 %v5011_v57, %v12403_v15  ;;  %v5673_v35 = vadd.f32 %v12397_v8, %v5584_v30  ;;  %v5297_v45 = vmul.f32 %v11500_v12, %v13426_v38 }
 0x5b3   :  { %v4907_v0 = vand.u32 2147483648, %v12372_v22  ;;  %v4937_v9 = vmul.f32 %v12515_v18, %v12445_v4  ;;  %v4999_v47 = vmul.f32 %v4998_v26, %v12403_v15  ;;  %v5587_v29 = vadd.f32 %v12439_v16, %v5498_v62  ;;  %v5592_v16 = vpop.f32.mrf.mxu2  ;;  %v5681_v2 = vpop.f32.mrf.mxu3  ;;  %v13429_v26 = vld [vmem:[#allocation53_spill] sm:$0xff] }
 0x5b4   :  { %v4869_v6 = vsel %vm12480_vm13, %v4868_v55, %v4864_v39  ;;  %vm4902_vm1 = vweird.f32 %v12430_v53  ;;  %v5013_v54 = vadd.f32 0.4994258, %v5012_v46  ;;  %v5750_v8 = vadd.f32 %v12461_v60, %v5673_v35  ;;  %5455 = vmatmul.f32.gmra.mxu0 %v5297_v45  ;;  %v13428_v55 = vld [vmem:[#allocation52_spill] sm:$0xff] }
 0x5b5   :  { %v12551_v56 = vpop.eup %6191  ;;  %v4900_v12 = vadd.f32 %v12430_v53, %v4899_v34  ;;  %v4960_v44 = vadd.f32 0.05243302, %v4959_v25  ;;  %v5298_v37 = vmul.f32 %v11572_v23, %v13427_v1  ;;  %v5676_v20 = vadd.f32 %v12441_v63, %v5587_v29  ;;  %v5417_v63 = vpop.f32.mrf.mxu0  ;;  %vm12572_vm2 = vmor %vm4901_vm15, %vm4902_vm1  ;;  %v13438_v1 = vld [vmem:[#allocation99_spill] sm:$0xff] }
 0x5b6   :  { %v4922_v43 = vadd.f32 0.18741608, %v4921_v14  ;;  %5774 = vst [vmem:[#allocation13 + $0x8] sm:$0xff] %v5750_v8  ;;  %v5299_v31 = vmul.f32 %v11665_v21, %v13428_v55  ;;  %v5300_v57 = vmul.f32 %v13430_v24, %v13429_v26  ;;  %v5501_v30 = vadd.f32 %v12465_v50, %v12463_v59  ;;  %v5506_v62 = vpop.f32.mrf.mxu1  ;;  %v13440_v24 = vld [vmem:[#allocation56_spill] sm:$0xff] }
 0x5b7   :  { %v4938_v39 = vsub.f32 1.0, %v4937_v9  ;;  %v5000_v34 = vadd.f32 0.05243302, %v4999_v47  ;;  %v5014_v25 = vmul.f32 %v5013_v54, %v12403_v15  ;;  %5544 = vmatmul.f32.gmra.mxu1 %v5298_v37  ;;  %v5751_v23 = vadd.f32 %v12461_v60, %v5676_v20  ;;  %v13435_v9 = vld [vmem:[#allocation21_spill] sm:$0xff]  ;;  %v13436_v47 = vld [vmem:[#allocation127_spill] sm:$0xff] }
 0x5b8   :  { %v12566_v14 = vmul.f32 %v4869_v6, %v12435_v17  ;;  %vm12576_vm3 = vcmp.eq.f32.partialorder %v4905_v27, 8.507059e+37  ;;  %v4977_v50 = vmul.f32 %v12551_v56, %v12491_v7  ;;  %5633 = vmatmul.f32.gmra.mxu2 %v5299_v31  ;;  %5722 = vmatmul.f32.gmra.mxu3 %v5300_v57  ;;  %v5590_v17 = vadd.f32 %v12496_v36, %v5501_v30 }
 0x5b9   :  { %v5985_v46 = vclamps-f32 %v12518_v28, 1.0  ;;  %v4904_v22 = vsel %vm12572_vm2, %v12430_v53, %v4900_v12  ;;  %v4961_v35 = vmul.f32 %v4960_v44, %v12363_v10  ;;  %v12588_v38 = vadd.f32 1.0, %v5014_v25  ;;  %5775 = vst [vmem:[#allocation13 + $0x10] sm:$0xff] %v5751_v23  ;;  %v13451_v28 = vld [vmem:[#allocation62_spill] sm:$0xff] }
 0x5ba   :  { %v4908_v27 = vor.u32 1.1754944e-38, %v4907_v0  ;;  %v4923_v45 = vmul.f32 %v4922_v43, %v12292_v19  ;;  %v5301_v29 = vmul.f32 %v13436_v47, %v13435_v9  ;;  %v5679_v6 = vadd.f32 %v12498_v3, %v5590_v17  ;;  %v13437_v3 = vld [vmem:[#allocation54_spill] sm:$0xff] }
 0x5bb   :  { %v4939_v36 = vmul.f32 %v12515_v18, %v4938_v39  ;;  %v5001_v54 = vmul.f32 %v5000_v34, %v12403_v15  ;;  %6193 = vrcp.f32 %v12588_v38  ;;  %v5504_v53 = vadd.f32 %v12513_v33, %v12511_v61  ;;  %v5595_v55 = vpop.f32.mrf.mxu2  ;;  %v5684_v31 = vpop.f32.mrf.mxu3  ;;  %v13439_v61 = vld [vmem:[#allocation55_spill] sm:$0xff] }
 0x5bc   :  { %v5986_v8 = vclamps-f32 %v12566_v14, 1.0  ;;  %v4909_v0 = vsel %vm12576_vm3, %v4908_v27, %v4904_v22  ;;  %v4978_v19 = vsub.f32 1.0, %v4977_v50  ;;  %5458 = vmatmul.f32.gmra.mxu0 %v5301_v29  ;;  %v5752_v12 = vadd.f32 %v12461_v60, %v5679_v6 }
 0x5bd   :  { %v4962_v44 = vadd.f32 0.18741608, %v4961_v35  ;;  %v5302_v37 = vmul.f32 %v13438_v1, %v13437_v3  ;;  %v5593_v20 = vadd.f32 %v5592_v16, %v5504_v53  ;;  %v5507_v43 = vadd.f32 %v5506_v62, %v5417_v63  ;;  %v5420_v25 = vpop.f32.mrf.mxu0  ;;  %v13443_v35 = vld [vmem:[#allocation57_spill] sm:$0xff]  ;;  %v13445_v53 = vld [vmem:[#allocation59_spill] sm:$0xff] }
 0x5be   :  { %v12605_v26 = vadd.f32 1.1283791, %v4923_v45  ;;  %vm4942_vm4 = vweird.f32 %v12515_v18  ;;  %v5303_v33 = vmul.f32 %v11929_v41, %v13439_v61  ;;  %v5304_v57 = vmul.f32 %v11934_v51, %v13440_v24  ;;  %5776 = vst [vmem:[#allocation13 + $0x18] sm:$0xff] %v5752_v12  ;;  %v5509_v23 = vpop.f32.mrf.mxu1 }
 0x5bf   :  { %v4940_v30 = vadd.f32 %v12515_v18, %v4939_v36  ;;  %v5002_v39 = vadd.f32 0.18741608, %v5001_v54  ;;  %5547 = vmatmul.f32.gmra.mxu1 %v5302_v37  ;;  %v5682_v34 = vadd.f32 %v5681_v2, %v5593_v20  ;;  %v5596_v16 = vadd.f32 %v5595_v55, %v5507_v43  ;;  %v13444_v54 = vld [vmem:[#allocation58_spill] sm:$0xff] }
 0x5c0   :  { %v12614_v63 = vmul.f32 %v4909_v0, %v12507_v58  ;;  %vm4941_vm5 = vweird.f32 %v12445_v4  ;;  %v4945_v62 = vand.u32 2147483647, %v12445_v4  ;;  %v4979_v41 = vmul.f32 %v12551_v56, %v4978_v19  ;;  %5636 = vmatmul.f32.gmra.mxu2 %v5303_v33  ;;  %5725 = vmatmul.f32.gmra.mxu3 %v5304_v57 }
 0x5c1   :  { %v6194_v51 = vpop.eup %6193  ;;  %v4947_v21 = vand.u32 2147483648, %v12445_v4  ;;  %v4963_v59 = vmul.f32 %v4962_v44, %v12363_v10  ;;  %v5753_v2 = vadd.f32 %v12461_v60, %v5682_v34  ;;  %v5685_v50 = vadd.f32 %v5684_v31, %v5596_v16  ;;  %vm12624_vm6 = vmor %vm4941_vm5, %vm4942_vm4  ;;  %v13446_v44 = vld [vmem:[#allocation60_spill] sm:$0xff] }
 0x5c2   :  { %vm4981_vm7 = vweird.f32 %v12491_v7  ;;  %v4985_v17 = vand.u32 2147483647, %v12491_v7  ;;  %v5017_v22 = vmul.f32 %v6194_v51, %v12588_v38  ;;  %v5305_v4 = vmul.f32 %v11940_v42, %v13443_v35  ;;  %v13455_v35 = vld [vmem:[#allocation128_spill] sm:$0xff] }
 0x5c3   :  { %v4944_v10 = vsel %vm12624_vm6, %v12515_v18, %v4940_v30  ;;  %v4987_v27 = vand.u32 2147483648, %v12491_v7  ;;  %v5003_v45 = vmul.f32 %v5002_v39, %v12403_v15  ;;  %5777 = vst [vmem:[#allocation13 + $0x20] sm:$0xff] %v5753_v2  ;;  %v5754_v9 = vadd.f32 %v12461_v60, %v5685_v50  ;;  %v5598_v0 = vpop.f32.mrf.mxu2  ;;  %v5687_v19 = vpop.f32.mrf.mxu3  ;;  %v13449_v30 = vld [vmem:[#allocation61_spill] sm:$0xff]  ;;  %v13452_v50 = vld [vmem:[#allocation63_spill] sm:$0xff] }
 0x5c4   :  { %v4980_v47 = vadd.f32 %v12551_v56, %v4979_v41  ;;  %vm4982_vm8 = vweird.f32 %v12551_v56  ;;  %v5018_v29 = vsub.f32 1.0, %v5017_v22  ;;  %5461 = vmatmul.f32.gmra.mxu0 %v5305_v4  ;;  %v5510_v6 = vadd.f32 %v5509_v23, %v5420_v25  ;;  %v13450_v39 = vld [vmem:[#allocation129_spill] sm:$0xff] }
 0x5c5   :  { %v5025_v42 = vand.u32 2147483647, %v12588_v38  ;;  %v5027_v36 = vand.u32 2147483648, %v12588_v38  ;;  %v5306_v18 = vmul.f32 %v11989_v13, %v13444_v54  ;;  %v5307_v15 = vmul.f32 %v12087_v49, %v13445_v53  ;;  %5778 = vst [vmem:[#allocation13 + $0x28] sm:$0xff] %v5754_v9  ;;  %vm12653_vm11 = vmor %vm4981_vm7, %vm4982_vm8  ;;  %v5423_v43 = vpop.f32.mrf.mxu0  ;;  %v13457_v9 = vld [vmem:[#allocation72_spill] sm:$0xff] }
 0x5c6   :  { %v5019_v12 = vmul.f32 %v6194_v51, %v5018_v29  ;;  %vm5022_vm9 = vweird.f32 %v6194_v51  ;;  %v5308_v3 = vmul.f32 %v12114_v48, %v13446_v44  ;;  %v5599_v1 = vadd.f32 %v5598_v0, %v5510_v6  ;;  %v5512_v55 = vpop.f32.mrf.mxu1  ;;  %v13459_v29 = vld [vmem:[#allocation101_spill] sm:$0xff]  ;;  %v13465_v13 = vld [vmem:[#allocation68_spill] sm:$0xff] }
 0x5c7   :  { %vm4946_vm10 = vcmp.eq.f32.partialorder %v4945_v62, 8.507059e+37  ;;  %v4948_v37 = vor.u32 1.1754944e-38, %v4947_v21  ;;  %v4964_v20 = vadd.f32 1.1283791, %v4963_v59  ;;  %v5004_v49 = vadd.f32 1.1283791, %v5003_v45  ;;  %5550 = vmatmul.f32.gmra.mxu1 %v5306_v18 }
 0x5c8   :  { %v4984_v48 = vsel %vm12653_vm11, %v12551_v56, %v4980_v47  ;;  %v5020_v31 = vadd.f32 %v6194_v51, %v5019_v12  ;;  %vm5021_vm12 = vweird.f32 %v12588_v38  ;;  %5639 = vmatmul.f32.gmra.mxu2 %v5307_v15  ;;  %5728 = vmatmul.f32.gmra.mxu3 %v5308_v3  ;;  %v5688_v61 = vadd.f32 %v5687_v19, %v5599_v1  ;;  %v13461_v19 = vld [vmem:[#allocation106_spill] sm:$0xff]  ;;  %v13462_v3 = vld [vmem:[#allocation73_spill] sm:$0xff]  ;;  %v13463_v1 = vld [vmem:[#allocation67_spill] sm:$0xff] }
 0x5c9   :  { %v4949_v33 = vsel %vm4946_vm10, %v4948_v37, %v4944_v10  ;;  %vm4986_vm13 = vcmp.eq.f32.partialorder %v4985_v17, 8.507059e+37  ;;  %v4988_v7 = vor.u32 1.1754944e-38, %v4987_v27  ;;  %vm5023_vm14 = vmor %vm5021_vm12, %vm5022_vm9  ;;  %v5028_v24 = vor.u32 1.1754944e-38, %v5027_v36  ;;  %v13453_v17 = vld [vmem:[#allocation64_spill] sm:$0xff] }
 0x5ca   :  { %v5024_v57 = vsel %vm5023_vm14, %v6194_v51, %v5020_v31  ;;  %vm5026_vm15 = vcmp.eq.f32.partialorder %v5025_v42, 8.507059e+37  ;;  %v5309_v34 = vmul.f32 %v13450_v39, %v13449_v30  ;;  %v5755_v16 = vadd.f32 %v12461_v60, %v5688_v61  ;;  %v13456_v10 = vld [vmem:[#allocation100_spill] sm:$0xff]  ;;  %v13468_v31 = vld [vmem:[#allocation69_spill] sm:$0xff] }
 0x5cb   :  { %v5123_v56 = vadd.f32 1.0, %v5985_v46  ;;  %v4925_v38 = vmul.f32 %v12605_v26, %v12263_v5  ;;  %v4989_v25 = vsel %vm4986_vm13, %v4988_v7, %v4984_v48  ;;  %v5029_v23 = vsel %vm5026_vm15, %v5028_v24, %v5024_v57  ;;  %v5601_v26 = vpop.f32.mrf.mxu2  ;;  %v5690_v58 = vpop.f32.mrf.mxu3  ;;  %v13467_v48 = vld [vmem:[#allocation77_spill] sm:$0xff] }
 0x5cc   :  { %v5124_v62 = vadd.f32 1.0, %v5986_v8  ;;  %v4965_v41 = vmul.f32 %v4964_v20, %v12321_v52  ;;  %v5005_v51 = vmul.f32 %v5004_v49, %v12366_v11  ;;  %5464 = vmatmul.f32.gmra.mxu0 %v5309_v34  ;;  %5779 = vst [vmem:[#allocation13 + $0x30] sm:$0xff] %v5755_v16  ;;  %v5513_v21 = vadd.f32 %v5512_v55, %v5423_v43  ;;  %v13454_v52 = vld [vmem:[#allocation105_spill] sm:$0xff]  ;;  %v13464_v20 = vld [vmem:[#allocation76_spill] sm:$0xff]  ;;  %v13466_v43 = vld [vmem:[#allocation130_spill] sm:$0xff] }
 0x5cd   :  { %v5987_v59 = vclamps-f32 %v12614_v63, 1.0  ;;  %v4950_v2 = vmul.f32 %v4949_v33, %v4925_v38  ;;  %v5310_v46 = vmul.f32 %v12318_v40, %v13451_v28  ;;  %v5311_v5 = vmul.f32 %v12343_v32, %v13452_v50  ;;  %v5426_v63 = vpop.f32.mrf.mxu0  ;;  %v13458_v40 = vld [vmem:[#allocation66_spill] sm:$0xff]  ;;  %v13460_v32 = vld [vmem:[#allocation107_spill] sm:$0xff] }
 0x5ce   :  { %v4990_v14 = vmul.f32 %v4989_v25, %v4965_v41  ;;  %v5030_v8 = vmul.f32 %v5029_v23, %v5005_v51  ;;  %v5312_v22 = vmul.f32 %v13454_v52, %v13453_v17  ;;  %v5602_v11 = vadd.f32 %v5601_v26, %v5513_v21  ;;  %v5515_v45 = vpop.f32.mrf.mxu1  ;;  %v13469_v23 = vld [vmem:[#allocation102_spill] sm:$0xff]  ;;  %v13473_v52 = vld [vmem:[#allocation71_spill] sm:$0xff] }
 0x5cf   :  { %v1091_v4 = vmul.f32 0.5, %v13455_v35  ;;  %v1092_v27 = vmul.f32 0.5, %v13456_v10  ;;  %5553 = vmatmul.f32.gmra.mxu1 %v5310_v46  ;;  %v299_v47 = vadd.f32 %v13458_v40, %v13457_v9  ;;  %v5218_v6 = vmul.f32 %v13460_v32, %v13459_v29  ;;  %v13470_v21 = vld [vmem:[#allocation70_spill] sm:$0xff]  ;;  %v13472_v46 = vld [vmem:[#allocation104_spill] sm:$0xff] }
 0x5d0   :  { %5642 = vmatmul.f32.gmra.mxu2 %v5311_v5  ;;  %5731 = vmatmul.f32.gmra.mxu3 %v5312_v22  ;;  %v5691_v42 = vadd.f32 %v5690_v58, %v5602_v11  ;;  %v5125_v18 = vadd.f32 1.0, %v5987_v59  ;;  %v5988_v53 = vclamps-f32 %v4950_v2, 1.0  ;;  %v5989_v15 = vclamps-f32 %v4990_v14, 1.0  ;;  %v13471_v2 = vld [vmem:[#allocation103_spill] sm:$0xff]  ;;  %v13474_v11 = vld [vmem:[#allocation74_spill] sm:$0xff] }
 0x5d1   :  { %v5219_v36 = vmul.f32 %v5123_v56, %v1091_v4  ;;  %v5220_v54 = vmul.f32 %v5124_v62, %v1092_v27  ;;  %v5990_v0 = vclamps-f32 %v5030_v8, 1.0  ;;  %v5313_v12 = vmul.f32 %v13461_v19, %v299_v47  ;;  %v13475_v4 = vld [vmem:[#allocation75_spill] sm:$0xff] }
 0x5d2   :  { %v5756_v44 = vadd.f32 %v12461_v60, %v5691_v42  ;;  %v388_v37 = vadd.f32 %v13463_v1, %v13462_v3  ;;  %v477_v49 = vadd.f32 %v13465_v13, %v13464_v20  ;;  %v1093_v55 = vmul.f32 0.5, %v13466_v43 }
 0x5d3   :  { %v566_v61 = vadd.f32 %v13468_v31, %v13467_v48  ;;  %v5516_v33 = vadd.f32 %v5515_v45, %v5426_v63  ;;  %v5126_v24 = vadd.f32 1.0, %v5988_v53  ;;  %v5604_v39 = vpop.f32.mrf.mxu2  ;;  %v5693_v34 = vpop.f32.mrf.mxu3  ;;  %v5127_v16 = vadd.f32 1.0, %v5989_v15 }
 0x5d4   :  { %5467 = vmatmul.f32.gmra.mxu0 %v5313_v12  ;;  %5780 = vst [vmem:[#allocation13 + $0x38] sm:$0xff] %v5756_v44  ;;  %v5221_v7 = vmul.f32 %v5125_v18, %v1093_v55  ;;  %v5314_v57 = vmul.f32 %v5218_v6, %v388_v37  ;;  %v5315_v30 = vmul.f32 %v5219_v36, %v477_v49  ;;  %v5128_v56 = vadd.f32 1.0, %v5990_v0 }
 0x5d5   :  { %v5316_v38 = vmul.f32 %v5220_v54, %v566_v61  ;;  %v5605_v25 = vadd.f32 %v5604_v39, %v5516_v33  ;;  %v1094_v62 = vmul.f32 0.5, %v13469_v23  ;;  %v5429_v41 = vpop.f32.mrf.mxu0  ;;  %v302_v59 = vadd.f32 %v13470_v21, %v13457_v9 }
 0x5d6   :  { %v5518_v51 = vpop.f32.mrf.mxu1  ;;  %v1095_v28 = vmul.f32 0.5, %v13471_v2  ;;  %v1096_v50 = vmul.f32 0.5, %v13472_v46  ;;  %v391_v22 = vadd.f32 %v13473_v52, %v13462_v3  ;;  %v480_v35 = vadd.f32 %v13474_v11, %v13464_v20 }
 0x5d7   :  { %5556 = vmatmul.f32.gmra.mxu1 %v5314_v57  ;;  %v5694_v5 = vadd.f32 %v5693_v34, %v5605_v25  ;;  %v5222_v26 = vmul.f32 %v5126_v24, %v1094_v62  ;;  %v5317_v8 = vmul.f32 %v5221_v7, %v302_v59  ;;  %v569_v10 = vadd.f32 %v13475_v4, %v13467_v48 }
 0x5d8   :  { %5645 = vmatmul.f32.gmra.mxu2 %v5315_v30  ;;  %5734 = vmatmul.f32.gmra.mxu3 %v5316_v38  ;;  %v5223_v58 = vmul.f32 %v5127_v16, %v1095_v28  ;;  %v5224_v14 = vmul.f32 %v5128_v56, %v1096_v50  ;;  %v5519_v27 = vadd.f32 %v5518_v51, %v5429_v41 }
 0x5d9   :  { %v5757_v17 = vadd.f32 %v12461_v60, %v5694_v5  ;;  %v5318_v63 = vmul.f32 %v5222_v26, %v391_v22 }
 0x5da   :  { %v5319_v40 = vmul.f32 %v5223_v58, %v480_v35  ;;  %v5320_v47 = vmul.f32 %v5224_v14, %v569_v10 }
 0x5db   :  { %5781 = vst [vmem:[#allocation13 + $0x40] sm:$0xff] %v5757_v17  ;;  %v5607_v45 = vpop.f32.mrf.mxu2  ;;  %v5696_v9 = vpop.f32.mrf.mxu3 }
 0x5dc   :  { %5470 = vmatmul.f32.gmra.mxu0 %v5317_v8  ;;  %v5608_v29 = vadd.f32 %v5607_v45, %v5519_v27 }
 0x5dd   :  { %v5432_v32 = vpop.f32.mrf.mxu0 }
 0x5de   :  { %v5521_v6 = vpop.f32.mrf.mxu1  ;;  %v5697_v42 = vadd.f32 %v5696_v9, %v5608_v29 }
 0x5df   :  { %5559 = vmatmul.f32.gmra.mxu1 %v5318_v63  ;;  %v5522_v54 = vadd.f32 %v5521_v6, %v5432_v32 }
 0x5e0   :  { %5648 = vmatmul.f32.gmra.mxu2 %v5319_v40  ;;  %5737 = vmatmul.f32.gmra.mxu3 %v5320_v47  ;;  %v5758_v36 = vadd.f32 %v12461_v60, %v5697_v42 }
 0x5e2   :  { %5782 = vst [vmem:[#allocation13 + $0x48] sm:$0xff] %v5758_v36 }
 0x5e3   :  { %v5610_v18 = vpop.f32.mrf.mxu2  ;;  %v5699_v53 = vpop.f32.mrf.mxu3 }
 0x5e4   :  { %v5611_v15 = vadd.f32 %v5610_v18, %v5522_v54 }
 0x5e5   :  { %v5435_v0 = vpop.f32.mrf.mxu0 }
 0x5e6   :  { %v5524_v19 = vpop.f32.mrf.mxu1  ;;  %v5700_v12 = vadd.f32 %v5699_v53, %v5611_v15 }
 0x5e7   :  { %v5525_v3 = vadd.f32 %v5524_v19, %v5435_v0 }
 0x5e8   :  { %v5759_v44 = vadd.f32 %v12461_v60, %v5700_v12 }
 0x5ea   :  { %5783 = vst [vmem:[#allocation13 + $0x50] sm:$0xff] %v5759_v44 }
 0x5eb   :  { %v5613_v1 = vpop.f32.mrf.mxu2  ;;  %v5702_v37 = vpop.f32.mrf.mxu3 }
 0x5ec   :  { %v5614_v20 = vadd.f32 %v5613_v1, %v5525_v3 }
 0x5ed   :  { %v5438_v13 = vpop.f32.mrf.mxu0 }
 0x5ee   :  { %v5527_v49 = vpop.f32.mrf.mxu1  ;;  %v5703_v43 = vadd.f32 %v5702_v37, %v5614_v20 }
 0x5ef   :  { %v5528_v48 = vadd.f32 %v5527_v49, %v5438_v13 }
 0x5f0   :  { %v5760_v55 = vadd.f32 %v12461_v60, %v5703_v43 }
 0x5f2   :  { %5784 = vst [vmem:[#allocation13 + $0x58] sm:$0xff] %v5760_v55 }
 0x5f3   :  { %v5616_v31 = vpop.f32.mrf.mxu2  ;;  %v5705_v61 = vpop.f32.mrf.mxu3 }
 0x5f4   :  { %v5617_v33 = vadd.f32 %v5616_v31, %v5528_v48 }
 0x5f5   :  { %v5441_v7 = vpop.f32.mrf.mxu0 }
 0x5f6   :  { %v5530_v24 = vpop.f32.mrf.mxu1  ;;  %v5706_v57 = vadd.f32 %v5705_v61, %v5617_v33 }
 0x5f7   :  { %v5531_v39 = vadd.f32 %v5530_v24, %v5441_v7 }
 0x5f8   :  { %v5761_v30 = vadd.f32 %v12461_v60, %v5706_v57 }
 0x5fa   :  { %5785 = vst [vmem:[#allocation13 + $0x60] sm:$0xff] %v5761_v30 }
 0x5fb   :  { %v5619_v34 = vpop.f32.mrf.mxu2  ;;  %v5708_v16 = vpop.f32.mrf.mxu3 }
 0x5fc   :  { %v5620_v56 = vadd.f32 %v5619_v34, %v5531_v39 }
 0x5fd   :  { %v5444_v25 = vpop.f32.mrf.mxu0 }
 0x5fe   :  { %v5709_v38 = vadd.f32 %v5708_v16, %v5620_v56  ;;  %v5533_v23 = vpop.f32.mrf.mxu1 }
 0x5ff   :  { %v5534_v41 = vadd.f32 %v5533_v23, %v5444_v25 }
 0x600   :  { %v5762_v62 = vadd.f32 %v12461_v60, %v5709_v38 }
 0x602   :  { %5786 = vst [vmem:[#allocation13 + $0x68] sm:$0xff] %v5762_v62 }
 0x603   :  { %v5622_v51 = vpop.f32.mrf.mxu2  ;;  %v5711_v59 = vpop.f32.mrf.mxu3 }
 0x604   :  { %v5623_v21 = vadd.f32 %v5622_v51, %v5534_v41 }
 0x605   :  { %v5447_v46 = vpop.f32.mrf.mxu0 }
 0x606   :  { %v5712_v2 = vadd.f32 %v5711_v59, %v5623_v21 }
 0x607   :  { %v5536_v50 = vpop.f32.mrf.mxu1 }
 0x608   :  { %v5763_v28 = vadd.f32 %v12461_v60, %v5712_v2  ;;  %v5537_v5 = vadd.f32 %v5536_v50, %v5447_v46 }
 0x60a   :  { %5787 = vst [vmem:[#allocation13 + $0x70] sm:$0xff] %v5763_v28 }
 0x60d   :  { %v5625_v26 = vpop.f32.mrf.mxu2 }
 0x60e   :  { %v5626_v58 = vadd.f32 %v5625_v26, %v5537_v5 }
 0x60f   :  { %v5714_v14 = vpop.f32.mrf.mxu3 }
 0x610   :  { %v5715_v8 = vadd.f32 %v5714_v14, %v5626_v58 }
 0x612   :  { %v5764_v17 = vadd.f32 %v12461_v60, %v5715_v8 }
 0x614   :  { %5788 = vst [vmem:[#allocation13 + $0x78] sm:$0xff] %v5764_v17 }
 0x618   :  { %v5450_v52 = vpop.f32.mrf.mxu0 }
 0x619   :  { %v5539_v22 = vpop.f32.mrf.mxu1 }
 0x61a   :  { %v5540_v11 = vadd.f32 %v5539_v22, %v5450_v52 }
 0x623   :  { %v5628_v35 = vpop.f32.mrf.mxu2 }
 0x624   :  { %v5629_v4 = vadd.f32 %v5628_v35, %v5540_v11 }
 0x628   :  { %v5717_v10 = vpop.f32.mrf.mxu3 }
 0x629   :  { %v5718_v27 = vadd.f32 %v5717_v10, %v5629_v4  ;;  %v5453_v63 = vpop.f32.mrf.mxu0 }
 0x62b   :  { %v5765_v45 = vadd.f32 %v12461_v60, %v5718_v27 }
 0x62c   :  { %v5542_v9 = vpop.f32.mrf.mxu1 }
 0x62d   :  { %5789 = vst [vmem:[#allocation13 + $0x80] sm:$0xff] %v5765_v45  ;;  %v5543_v47 = vadd.f32 %v5542_v9, %v5453_v63 }
 0x631   :  { %v5456_v40 = vpop.f32.mrf.mxu0 }
 0x633   :  { %v5631_v29 = vpop.f32.mrf.mxu2  ;;  %v5720_v32 = vpop.f32.mrf.mxu3 }
 0x634   :  { %v5632_v6 = vadd.f32 %v5631_v29, %v5543_v47  ;;  %v5545_v42 = vpop.f32.mrf.mxu1 }
 0x635   :  { %v5546_v53 = vadd.f32 %v5545_v42, %v5456_v40 }
 0x636   :  { %v5721_v36 = vadd.f32 %v5720_v32, %v5632_v6 }
 0x638   :  { %v5766_v54 = vadd.f32 %v12461_v60, %v5721_v36 }
 0x639   :  { %v5459_v18 = vpop.f32.mrf.mxu0 }
 0x63a   :  { %5790 = vst [vmem:[#allocation13 + $0x88] sm:$0xff] %v5766_v54 }
 0x63b   :  { %v5634_v15 = vpop.f32.mrf.mxu2  ;;  %v5723_v0 = vpop.f32.mrf.mxu3 }
 0x63c   :  { %v5635_v19 = vadd.f32 %v5634_v15, %v5546_v53  ;;  %v5548_v12 = vpop.f32.mrf.mxu1 }
 0x63d   :  { %v5549_v37 = vadd.f32 %v5548_v12, %v5459_v18 }
 0x63e   :  { %v5724_v44 = vadd.f32 %v5723_v0, %v5635_v19 }
 0x640   :  { %v5767_v3 = vadd.f32 %v12461_v60, %v5724_v44 }
 0x641   :  { %v5462_v1 = vpop.f32.mrf.mxu0 }
 0x642   :  { %5791 = vst [vmem:[#allocation13 + $0x90] sm:$0xff] %v5767_v3 }
 0x643   :  { %v5637_v20 = vpop.f32.mrf.mxu2  ;;  %v5726_v13 = vpop.f32.mrf.mxu3 }
 0x644   :  { %v5638_v49 = vadd.f32 %v5637_v20, %v5549_v37  ;;  %v5551_v43 = vpop.f32.mrf.mxu1 }
 0x645   :  { %v5552_v31 = vadd.f32 %v5551_v43, %v5462_v1 }
 0x646   :  { %v5727_v55 = vadd.f32 %v5726_v13, %v5638_v49 }
 0x648   :  { %v5768_v48 = vadd.f32 %v12461_v60, %v5727_v55 }
 0x649   :  { %v5465_v61 = vpop.f32.mrf.mxu0 }
 0x64a   :  { %5792 = vst [vmem:[#allocation13 + $0x98] sm:$0xff] %v5768_v48 }
 0x64b   :  { %v5640_v33 = vpop.f32.mrf.mxu2  ;;  %v5729_v7 = vpop.f32.mrf.mxu3 }
 0x64c   :  { %v5641_v24 = vadd.f32 %v5640_v33, %v5552_v31  ;;  %v5554_v57 = vpop.f32.mrf.mxu1 }
 0x64d   :  { %v5555_v34 = vadd.f32 %v5554_v57, %v5465_v61 }
 0x64e   :  { %v5730_v30 = vadd.f32 %v5729_v7, %v5641_v24 }
 0x650   :  { %v5769_v39 = vadd.f32 %v12461_v60, %v5730_v30 }
 0x651   :  { %v5468_v25 = vpop.f32.mrf.mxu0 }
 0x652   :  { %5793 = vst [vmem:[#allocation13 + $0xa0] sm:$0xff] %v5769_v39 }
 0x653   :  { %v5643_v16 = vpop.f32.mrf.mxu2  ;;  %v5732_v56 = vpop.f32.mrf.mxu3 }
 0x654   :  { %v5644_v38 = vadd.f32 %v5643_v16, %v5555_v34  ;;  %v5557_v23 = vpop.f32.mrf.mxu1 }
 0x655   :  { %v5558_v51 = vadd.f32 %v5557_v23, %v5468_v25 }
 0x656   :  { %v5733_v62 = vadd.f32 %v5732_v56, %v5644_v38 }
 0x658   :  { %v5770_v41 = vadd.f32 %v12461_v60, %v5733_v62 }
 0x659   :  { %v5471_v46 = vpop.f32.mrf.mxu0 }
 0x65a   :  { %5794 = vst [vmem:[#allocation13 + $0xa8] sm:$0xff] %v5770_v41 }
 0x65b   :  { %v5646_v21 = vpop.f32.mrf.mxu2  ;;  %v5735_v59 = vpop.f32.mrf.mxu3 }
 0x65c   :  { %v5647_v2 = vadd.f32 %v5646_v21, %v5558_v51  ;;  %v5560_v50 = vpop.f32.mrf.mxu1 }
 0x65d   :  { %v5561_v26 = vadd.f32 %v5560_v50, %v5471_v46 }
 0x65e   :  { %v5736_v28 = vadd.f32 %v5735_v59, %v5647_v2 }
 0x660   :  { %v5771_v5 = vadd.f32 %v12461_v60, %v5736_v28 }
 0x662   :  { %5795 = vst [vmem:[#allocation13 + $0xb0] sm:$0xff] %v5771_v5 }
 0x663   :  { %v5649_v58 = vpop.f32.mrf.mxu2  ;;  %v5738_v8 = vpop.f32.mrf.mxu3 }
 0x664   :  { %v5650_v14 = vadd.f32 %v5649_v58, %v5561_v26 }
 0x666   :  { %v5739_v17 = vadd.f32 %v5738_v8, %v5650_v14 }
 0x668   :  { %v5772_v52 = vadd.f32 %v12461_v60, %v5739_v17 }
 0x66a   :  { %5796 = vst [vmem:[#allocation13 + $0xb8] sm:$0xff] %v5772_v52 }
 0x66b   :  { %5885 = dma.vmem_to_hbm [thread:$0]  %s5878_s8, 3072, %s5880_s11, [#allocation4], %s6378_s19, %s6378_s19, %s6379_s20  }
 0x66c   :  { %6371 = dma.done.wait [#allocation4], 3072  }
 0x66d   :  { %6372 = vsyncadd [#allocation4], 4294964224 }
 0x66e   :  { %5890 = vsyncpa [#allocation3], 1 }
 0x66f   :  { %5891 = vsyncpa [#allocation6], 1 }
 0x670   :  { %5892 = vsyncpa [#allocation9], 1 }
 0x671   :  { %5893 = vsyncpa [#allocation12], 1 }
 0x672   :  { %5894 = vsyncpa [#allocation4], 1 }

</bundles_post_ra>
